<compile_context>
chip_gen: v5e
topology: v5e:2x2
jax: 0.10.0
libtpu: 0.0.40
codegen_flags: <defaults>
</compile_context>

<pallas_src>
import functools

import jax
import jax.numpy as jnp
import numpy as np
from jax.experimental import pallas as pl
from jax.experimental.pallas import tpu as pltpu


def _round_up(x, m):
    return ((x + m - 1) // m) * m


# ---------------------------------------------------------------------------
# Fused Pallas kernel
# ---------------------------------------------------------------------------
def _fused_bottleneck_kernel(*refs, Wp, Hp2, Cin, Chid, Cout, stride, THo, Wo,
                             has_expand, use_shortcut, row_chunk, flat_out,
                             compute_dtype):
    """One output row-strip of the whole bottleneck block.

    Ref order (inputs, then output):
      x | [mask, w_e, b_e] | w_dw, b_dw, w_p, b_p | out
    All BN parameters are pre-folded into the weights / biases (inference mode).
    """
    it = iter(refs)
    x_ref = next(it)
    if has_expand:
        mask_ref, we_ref, be_ref = next(it), next(it), next(it)
    wdw_ref, bdw_ref = next(it), next(it)
    wp_ref, bp_ref = next(it), next(it)
    o_ref = next(it)

    si = pl.program_id(1)
    cdt = compute_dtype
    wdw = wdw_ref[...]                        # (9, 1, Chid)  BN-folded taps
    bdw = bdw_ref[...]                        # (1, Chid)     f32
    w_pr = wp_ref[...]                        # (Chid, Cout)
    b_pr = bp_ref[...]                        # (1, Cout)     f32

    def expand(flat, mflat):
        """1x1 expand conv + BN + ReLU6 on a zero-padded input slab.

        mflat (M, 1) re-zeroes depthwise-halo positions (the 1x1 conv of a
        zero-padded pixel is clip(bias, 0, 6), not 0).  No index decode needed:
        the mask is precomputed in the wrapper.
        """
        if not has_expand:
            return flat                        # hidden == input; pad already 0
        h = jnp.dot(flat, we_ref[...], preferred_element_type=jnp.float32)
        h = jnp.clip(h + be_ref[...], 0.0, 6.0)
        return (h * mflat).astype(cdt)

    def project_store(acc, cs, ch, width, res):
        """Depthwise BN+ReLU6, 1x1 project + BN, (+ residual), store row chunk."""
        dw = jnp.clip(acc + bdw, 0.0, 6.0).astype(cdt)
        out2d = jnp.dot(dw, w_pr, preferred_element_type=jnp.float32) + b_pr
        y = out2d.reshape(ch, width, Cout)[:, :Wo, :]     # drop padded columns
        if res is not None:
            y = y + res.astype(jnp.float32)               # residual in f32
        if flat_out:
            # lane-dense store: trailing dim W_out*Cout (>=128 for real layers)
            o_ref[0, pl.ds(cs, ch), :] = y.reshape(ch, Wo * Cout).astype(o_ref.dtype)
        else:
            o_ref[0, pl.ds(cs, ch), :, :] = y.astype(o_ref.dtype)

    if stride == 1:
        TH_pad = THo + 2
        r0p = pl.multiple_of(si * THo, THo)               # first padded row of strip
        slab = x_ref[0, pl.ds(r0p, TH_pad), :, :]         # (TH_pad, Wp, Cin)
        mflat = (mask_ref[pl.ds(r0p * Wp, TH_pad * Wp), :] if has_expand else None)
        h2d = expand(slab.reshape(TH_pad * Wp, Cin), mflat)   # (TH_pad*Wp, Chid)

        # Two row chunks per strip: the project matmul of chunk A overlaps the
        # VALU/XLU 9-tap depthwise of chunk B (independent chains in one trace).
        for cs in range(0, THo, row_chunk):
            ch = min(row_chunk, THo - cs)
            Lc = ch * Wp
            acc = jnp.zeros((Lc, Chid), jnp.float32)
            for kh in range(3):
                s_kh = h2d[(cs + kh) * Wp:(cs + kh) * Wp + Lc, :]
                for kw in range(3):
                    # column shift via XLU roll; wrapped elems land in pad cols
                    t = s_kh if kw == 0 else pltpu.roll(s_kh, Lc - kw, 0)
                    acc = acc + t * wdw[3 * kh + kw]
            res = None
            if use_shortcut:
                res = x_ref[0, pl.ds(r0p + cs + 1, ch), pl.ds(1, Wo), :]
            project_store(acc, cs, ch, Wp, res)
    else:
        # stride 2: full 2x2 polyphase (row x col) decomposition.  Every tap is
        # an aligned static slice of a phase slab (plus two rolls per strip).
        We = Wp // 2
        Lp = (THo + 1) * We
        row0 = pl.multiple_of(si * THo, THo)

        def phase(p):
            # p: 0 = even-row/even-col, 1 = even/odd, 2 = odd/even, 3 = odd/odd
            sl = x_ref[0, pl.ds(p * Hp2 + row0, THo + 1), :, :]   # (THo+1, We, Cin)
            mf = (mask_ref[pl.ds((p * Hp2 + row0) * We, Lp), :]
                  if has_expand else None)
            return expand(sl.reshape(Lp, Cin), mf)

        hee, heo, hoe, hoo = phase(0), phase(1), phase(2), phase(3)
        hee_r = pltpu.roll(hee, Lp - 1, 0)    # even-col phase shifted to col j+1
        hoe_r = pltpu.roll(hoe, Lp - 1, 0)
        # tap i = 3*kh + kw  ->  (phase slab, row offset within the phase)
        taps = ((hee, 0), (heo, 0), (hee_r, 0),     # kh = 0  (padded row 2r)
                (hoe, 0), (hoo, 0), (hoe_r, 0),     # kh = 1  (padded row 2r+1)
                (hee, 1), (heo, 1), (hee_r, 1))     # kh = 2  (padded row 2r+2)

        for cs in range(0, THo, row_chunk):
            ch = min(row_chunk, THo - cs)
            Lc = ch * We
            acc = jnp.zeros((Lc, Chid), jnp.float32)
            for i, (slab, dr) in enumerate(taps):
                base = (cs + dr) * We
                acc = acc + slab[base:base + Lc, :] * wdw[i]
            project_store(acc, cs, ch, We, None)


# ---------------------------------------------------------------------------
# BN folding / parameter setup
# ---------------------------------------------------------------------------
def _bn_fold(gamma, beta, mean, var, eps=1e-5):
    scale = gamma / jnp.sqrt(var + eps)
    bias = beta - mean * scale
    return (scale.reshape(1, -1).astype(jnp.float32),
            bias.reshape(1, -1).astype(jnp.float32))


def init_params(key, in_ch, out_ch, expansion):
    hidden = in_ch * expansion
    ks = jax.random.split(key, 16)
    p = {}

    def bn(k0, k1, k2, k3, c):
        gamma = 1.0 + 0.1 * jax.random.normal(ks[k0], (c,), jnp.float32)
        beta = 0.1 * jax.random.normal(ks[k1], (c,), jnp.float32)
        mean = 0.1 * jax.random.normal(ks[k2], (c,), jnp.float32)
        var = jax.random.uniform(ks[k3], (c,), jnp.float32, 0.5, 1.5)
        return gamma, beta, mean, var

    if expansion != 1:
        p["w_expand"] = 0.2 * jax.random.normal(ks[0], (in_ch, hidden), jnp.float32)
        p["bn1"] = bn(1, 2, 3, 4, hidden)
    p["w_dw"] = 0.2 * jax.random.normal(ks[5], (3, 3, hidden), jnp.float32)
    p["bn2"] = bn(6, 7, 8, 9, hidden)
    p["w_proj"] = 0.2 * jax.random.normal(ks[10], (hidden, out_ch), jnp.float32)
    p["bn3"] = bn(11, 12, 13, 14, out_ch)
    return p


# ---------------------------------------------------------------------------
# Row-strip sizing (VMEM budget, megacore, lane-dense-store compatibility)
# ---------------------------------------------------------------------------
def _pick_tile_rows(H_out, N, Hp, Wp_like, Cin, Chid, Cout, esize, need_flat):
    budget = 24 * 1024 * 1024                 # conservative on v5e/v6e/v7x
    cin_p = _round_up(Cin, 128)
    chid_p = _round_up(Chid, 128)
    cout_p = _round_up(Cout, 128)
    fixed = 2 * Hp * Wp_like * cin_p * esize  # double-buffered resident input

    def fits(t):
        hid = (t + 2) * Wp_like * chid_p * esize            # hidden slab
        work = t * Wp_like * chid_p * (8 + 2 * esize)       # f32 acc/dw + temps
        outb = 2 * t * Wp_like * cout_p * 4                 # output block x2
        return fixed + hid + work + outb <= budget

    cands = [t for t in range(1, H_out + 1)
             if H_out % t == 0 and fits(t)
             and (not need_flat or t % 8 == 0 or t == H_out)]
    if not cands:
        return None if need_flat else 1
    # keep >=2 parallel grid units when possible (v7x has 2 TensorCores)
    multi = [t for t in cands if N * (H_out // t) >= 2]
    return max(multi) if multi else max(cands)


# ---------------------------------------------------------------------------
# Forward pass (wrapper around the fused pallas_call)
# ---------------------------------------------------------------------------
def _forward(x_nhwc, params, *, in_ch, out_ch, expansion, stride,
             compute_dtype, flat_out):
    use_shortcut = (stride == 1 and in_ch == out_ch)
    has_expand = (expansion != 1)
    hidden = in_ch * expansion
    cdt = compute_dtype

    N, H, W, Cin = x_nhwc.shape
    H_out = (H - 1) // stride + 1
    W_out = (W - 1) // stride + 1

    # ---- fold inference-mode BN into the conv weights (f32), cast to cdt ----
    if has_expand:
        s1, b_e = _bn_fold(*params["bn1"])
        w_e = (params["w_expand"] * s1).astype(cdt)                 # (Cin, hidden)
    s2, b_dw = _bn_fold(*params["bn2"])
    w_dw = (params["w_dw"] * s2.reshape(1, 1, -1)).reshape(9, 1, hidden).astype(cdt)
    s3, b_p = _bn_fold(*params["bn3"])
    w_p = (params["w_proj"] * s3).astype(cdt)                       # (hidden, out_ch)
    # biases stay f32 (they are added to the f32 accumulators)

    x = x_nhwc.astype(cdt)
    # TODO(synk): on v5e (no bf16 VPU) keep the depthwise taps in f32 even when
    # storage is bf16; here Mosaic upcasts automatically, which is correct.

    # ---- spatial halo padding of the small pre-expansion input only ----
    # TODO(synk): an in-kernel halo mask / strided deinterleave (pl.ds stride=2)
    # would remove these wrapper-side HBM passes over the pre-expansion input.
    if stride == 1:
        Hp = H + 2
        Wp = _round_up(W + 2, 8)              # >=2 trailing pad cols kept
        Hp2 = 0
        xin = jnp.pad(x, ((0, 0), (1, 1), (1, Wp - W - 1), (0, 0)))
        data_spec = pl.BlockSpec((1, Hp, Wp, Cin), lambda n, si: (n, 0, 0, 0))
        width_like = Wp
    else:
        Hp = _round_up(H + 2, 2)
        Wp = _round_up(W + 2, 16)             # so We = Wp//2 stays 8-aligned
        We = Wp // 2
        Hp2 = Hp // 2
        xpad = jnp.pad(x, ((0, 0), (1, Hp - H - 1), (1, Wp - W - 1), (0, 0)))
        xin = jnp.concatenate(                # 2x2 polyphase, stacked along rows
            [xpad[:, 0::2, 0::2, :], xpad[:, 0::2, 1::2, :],
             xpad[:, 1::2, 0::2, :], xpad[:, 1::2, 1::2, :]], axis=1)
        data_spec = pl.BlockSpec((1, 4 * Hp2, We, Cin), lambda n, si: (n, 0, 0, 0))
        width_like = 4 * We

    inputs = [xin]
    in_specs = [data_spec]

    if has_expand:
        rv = (jnp.arange(Hp) >= 1) & (jnp.arange(Hp) <= H)
        cv = (jnp.arange(Wp) >= 1) & (jnp.arange(Wp) <= W)
        mask = (rv[:, None] & cv[None, :]).astype(jnp.float32)      # (Hp, Wp)
        if stride == 1:
            mask_flat = mask.reshape(Hp * Wp, 1)
        else:
            mask_flat = jnp.concatenate(
                [mask[0::2, 0::2], mask[0::2, 1::2],
                 mask[1::2, 0::2], mask[1::2, 1::2]],
                axis=0).reshape(4 * Hp2 * (Wp // 2), 1)
        inputs += [mask_flat, w_e, b_e]
        in_specs += [pl.BlockSpec(tuple(mask_flat.shape), lambda n, si: (0, 0)),
                     pl.BlockSpec((Cin, hidden), lambda n, si: (0, 0)),
                     pl.BlockSpec((1, hidden), lambda n, si: (0, 0))]
    inputs += [w_dw, b_dw, w_p, b_p]
    in_specs += [pl.BlockSpec((9, 1, hidden), lambda n, si: (0, 0, 0)),
                 pl.BlockSpec((1, hidden), lambda n, si: (0, 0)),
                 pl.BlockSpec((hidden, out_ch), lambda n, si: (0, 0)),
                 pl.BlockSpec((1, out_ch), lambda n, si: (0, 0))]

    esize = jnp.dtype(cdt).itemsize
    THo = _pick_tile_rows(H_out, N, Hp, width_like, Cin, hidden, out_ch,
                          esize, flat_out)
    if THo is None:
        raise ValueError("no lane-dense-compatible row tile fits the VMEM budget")
    n_strips = H_out // THo
    row_chunk = THo // 2 if (THo % 2 == 0 and THo >= 4) else THo

    if flat_out:
        out_shape = jax.ShapeDtypeStruct((N, H_out, W_out * out_ch), jnp.float32)
        out_spec = pl.BlockSpec((1, THo, W_out * out_ch), lambda n, si: (n, si, 0))
    else:
        out_shape = jax.ShapeDtypeStruct((N, H_out, W_out, out_ch), jnp.float32)
        out_spec = pl.BlockSpec((1, THo, W_out, out_ch),
                                lambda n, si: (n, si, 0, 0))

    kernel = functools.partial(
        _fused_bottleneck_kernel,
        Wp=Wp, Hp2=Hp2, Cin=Cin, Chid=hidden, Cout=out_ch,
        stride=stride, THo=THo, Wo=W_out, has_expand=has_expand,
        use_shortcut=use_shortcut, row_chunk=row_chunk, flat_out=flat_out,
        compute_dtype=cdt)

    out = pl.pallas_call(
        kernel,
        out_shape=out_shape,
        grid_spec=pltpu.PrefetchScalarGridSpec(
            num_scalar_prefetch=0,
            grid=(N, n_strips),
            in_specs=in_specs,
            out_specs=out_spec),
        compiler_params=pltpu.CompilerParams(
            dimension_semantics=("parallel", "parallel"),
            vmem_limit_bytes=48 * 1024 * 1024),
    )(*inputs)
    out = jax.block_until_ready(out)   # surface lowering errors inside try/except

    if flat_out:
        out = out.reshape(N, H_out, W_out, out_ch)
    return jnp.transpose(out, (0, 3, 1, 2))                 # NHWC -> NCHW


def bottleneck_residual(x_nchw, params, *, in_ch, out_ch, expansion, stride,
                        compute_dtype=jnp.bfloat16):
    assert stride in (1, 2), "MobileNetV2 blocks use stride 1 or 2"
    # TODO(synk): drop the two NCHW<->NHWC transposes if the surrounding model
    # stays NHWC end-to-end (PyTorch interface is NCHW, so kept here).
    x = jnp.transpose(x_nchw, (0, 2, 3, 1)).astype(jnp.float32)

    # Try the fully optimized configuration first; fall back if this jax/libtpu
    # build cannot lower a piece of it (lane-dense minormost reshape, packed
    # bf16 sublane rolls).  Fallback only triggers when called eagerly.
    attempts = [(compute_dtype, True), (compute_dtype, False)]
    if compute_dtype != jnp.float32:
        attempts.append((jnp.float32, False))
    err = None
    for cdt, flat in attempts:
        try:
            return _forward(x, params, in_ch=in_ch, out_ch=out_ch,
                            expansion=expansion, stride=stride,
                            compute_dtype=cdt, flat_out=flat)
        except Exception as e:            # lowering-support probe
            err = e
    raise err


# ---------------------------------------------------------------------------
# Pure-JAX reference (for correctness check)
# ---------------------------------------------------------------------------
def _bn_apply(h, bn, eps=1e-5):
    gamma, beta, mean, var = bn
    return (h - mean) / jnp.sqrt(var + eps) * gamma + beta


def reference(x_nchw, params, *, in_ch, out_ch, expansion, stride):
    dn = ("NHWC", "HWIO", "NHWC")
    prec = jax.lax.Precision.HIGHEST
    x = jnp.transpose(x_nchw, (0, 2, 3, 1))
    h = x
    if expansion != 1:
        w = params["w_expand"].reshape(1, 1, in_ch, -1)
        h = jax.lax.conv_general_dilated(h, w, (1, 1), "VALID",
                                         dimension_numbers=dn, precision=prec)
        h = jnp.clip(_bn_apply(h, params["bn1"]), 0.0, 6.0)
    hidden = h.shape[-1]
    wdw = params["w_dw"].reshape(3, 3, hidden, 1)
    wdw = jnp.transpose(wdw, (0, 1, 3, 2))
    h = jax.lax.conv_general_dilated(h, wdw, (stride, stride),
                                     ((1, 1), (1, 1)), dimension_numbers=dn,
                                     feature_group_count=hidden, precision=prec)
    h = jnp.clip(_bn_apply(h, params["bn2"]), 0.0, 6.0)
    wp = params["w_proj"].reshape(1, 1, hidden, out_ch)
    h = jax.lax.conv_general_dilated(h, wp, (1, 1), "VALID",
                                     dimension_numbers=dn, precision=prec)
    h = _bn_apply(h, params["bn3"])
    if stride == 1 and in_ch == out_ch:
        h = h + x
    return jnp.transpose(h, (0, 3, 1, 2))


# ---------------------------------------------------------------------------
if __name__ == "__main__":
    key = jax.random.PRNGKey(0)
    N, H, W = 2, 16, 16
    configs = [
        dict(in_ch=4, out_ch=4, expansion=2, stride=1),   # shortcut path
        dict(in_ch=4, out_ch=8, expansion=2, stride=2),   # strided, no shortcut
        dict(in_ch=4, out_ch=4, expansion=1, stride=1),   # no expand conv
    ]
    for cfg in configs:
        key, kx, kp = jax.random.split(key, 3)
        x = jax.random.normal(kx, (N, cfg["in_ch"], H, W), jnp.float32)  # NCHW
        params = init_params(kp, cfg["in_ch"], cfg["out_ch"], cfg["expansion"])
        ref = jax.block_until_ready(reference(x, params, **cfg))

        # f32 debug path: tight structural / numerical check.
        out32 = jax.block_until_ready(
            bottleneck_residual(x, params, compute_dtype=jnp.float32, **cfg))
        np.testing.assert_allclose(np.asarray(out32), np.asarray(ref),
                                   rtol=2e-4, atol=2e-4)

        # bf16 fast path (f32 accumulation): looser tolerance vs f32 reference.
        out16 = jax.block_until_ready(
            bottleneck_residual(x, params, compute_dtype=jnp.bfloat16, **cfg))
        np.testing.assert_allclose(np.asarray(out16), np.asarray(ref),
                                   rtol=5e-2, atol=8e-2)

        exp_hw = (H - 1) // cfg["stride"] + 1
        assert out16.shape == (N, cfg["out_ch"], exp_hw, exp_hw)
    print("KERNEL_OK")
</pallas_src>

<mosaic_0001>
module attributes {stable_mosaic.version = 11 : i64} {
  func.func @_fused_bottleneck_kernel(%arg0: i32, %arg1: i32, %arg2: memref<1x18x24x4xf32, #tpu.memory_space<vmem>>, %arg3: memref<432x1xf32, #tpu.memory_space<vmem>>, %arg4: memref<4x8xf32, #tpu.memory_space<vmem>>, %arg5: memref<1x8xf32, #tpu.memory_space<vmem>>, %arg6: memref<9x1x8xf32, #tpu.memory_space<vmem>>, %arg7: memref<1x8xf32, #tpu.memory_space<vmem>>, %arg8: memref<8x4xf32, #tpu.memory_space<vmem>>, %arg9: memref<1x4xf32, #tpu.memory_space<vmem>>, %arg10: memref<1x16x64xf32, #tpu.memory_space<vmem>>) attributes {dimension_semantics = [#tpu.dimension_semantics<parallel>, #tpu.dimension_semantics<parallel>], iteration_bounds = array<i64: 2, 1>, scalar_prefetch = 0 : i64, scratch_operands = 0 : i64, tpu.core_type = #tpu.core_type<tc>, window_params = [{transform_indices = @transform_0, window_bounds = array<i64: 1, 18, 24, 4>}, {pipeline_mode = #tpu.pipeline_mode<synchronous>, transform_indices = @transform_1, window_bounds = array<i64: 432, 1>}, {pipeline_mode = #tpu.pipeline_mode<synchronous>, transform_indices = @transform_2, window_bounds = array<i64: 4, 8>}, {pipeline_mode = #tpu.pipeline_mode<synchronous>, transform_indices = @transform_3, window_bounds = array<i64: 1, 8>}, {pipeline_mode = #tpu.pipeline_mode<synchronous>, transform_indices = @transform_4, window_bounds = array<i64: 9, 1, 8>}, {pipeline_mode = #tpu.pipeline_mode<synchronous>, transform_indices = @transform_5, window_bounds = array<i64: 1, 8>}, {pipeline_mode = #tpu.pipeline_mode<synchronous>, transform_indices = @transform_6, window_bounds = array<i64: 8, 4>}, {pipeline_mode = #tpu.pipeline_mode<synchronous>, transform_indices = @transform_7, window_bounds = array<i64: 1, 4>}, {transform_indices = @transform_8, window_bounds = array<i64: 1, 16, 64>}]} {
    %c0 = arith.constant 0 : index
    %c0_0 = arith.constant 0 : index
    %c0_1 = arith.constant 0 : index
    %0 = vector.load %arg6[%c0, %c0_0, %c0_1] : memref<9x1x8xf32, #tpu.memory_space<vmem>>, vector<9x1x8xf32>
    %c0_2 = arith.constant 0 : index
    %c0_3 = arith.constant 0 : index
    %1 = vector.load %arg7[%c0_2, %c0_3] : memref<1x8xf32, #tpu.memory_space<vmem>>, vector<1x8xf32>
    %c0_4 = arith.constant 0 : index
    %c0_5 = arith.constant 0 : index
    %2 = vector.load %arg8[%c0_4, %c0_5] : memref<8x4xf32, #tpu.memory_space<vmem>>, vector<8x4xf32>
    %c0_6 = arith.constant 0 : index
    %c0_7 = arith.constant 0 : index
    %3 = vector.load %arg9[%c0_6, %c0_7] : memref<1x4xf32, #tpu.memory_space<vmem>>, vector<1x4xf32>
    %c16_i32 = arith.constant 16 : i32
    %4 = arith.muli %arg1, %c16_i32 : i32
    %5 = tpu.assume_multiple %4, 16 : i32
    %c0_8 = arith.constant 0 : index
    %6 = arith.index_cast %5 : i32 to index
    %c0_9 = arith.constant 0 : index
    %c0_10 = arith.constant 0 : index
    %7 = vector.load %arg2[%c0_8, %6, %c0_9, %c0_10] : memref<1x18x24x4xf32, #tpu.memory_space<vmem>>, vector<1x18x24x4xf32>
    %8 = vector.shape_cast %7 : vector<1x18x24x4xf32> to vector<18x24x4xf32>
    %c24_i32 = arith.constant 24 : i32
    %9 = arith.muli %5, %c24_i32 : i32
    %10 = arith.index_cast %9 : i32 to index
    %c0_11 = arith.constant 0 : index
    %11 = vector.load %arg3[%10, %c0_11] : memref<432x1xf32, #tpu.memory_space<vmem>>, vector<432x1xf32>
    %12 = vector.shape_cast %8 : vector<18x24x4xf32> to vector<432x4xf32>
    %c0_12 = arith.constant 0 : index
    %c0_13 = arith.constant 0 : index
    %13 = vector.load %arg4[%c0_12, %c0_13] : memref<4x8xf32, #tpu.memory_space<vmem>>, vector<4x8xf32>
    %cst = arith.constant dense<0.000000e+00> : vector<432x8xf32>
    %14 = tpu.matmul %12, %13, %cst {dimension_numbers = #tpu.dot_dimension_numbers<[1], [0], [0], [1], [0, 0, 1, 1], [], []>} : vector<432x4xf32>, vector<4x8xf32>, vector<432x8xf32> -> vector<432x8xf32>
    %c0_14 = arith.constant 0 : index
    %c0_15 = arith.constant 0 : index
    %15 = vector.load %arg5[%c0_14, %c0_15] : memref<1x8xf32, #tpu.memory_space<vmem>>, vector<1x8xf32>
    %16 = vector.broadcast %15 : vector<1x8xf32> to vector<432x8xf32>
    %17 = arith.addf %14, %16 : vector<432x8xf32>
    %cst_16 = arith.constant 0.000000e+00 : f32
    %cst_17 = arith.constant 6.000000e+00 : f32
    %18 = vector.broadcast %cst_16 : f32 to vector<432x8xf32>
    %19 = arith.maximumf %18, %17 : vector<432x8xf32>
    %20 = vector.broadcast %cst_17 : f32 to vector<432x8xf32>
    %21 = arith.minimumf %20, %19 : vector<432x8xf32>
    %22 = vector.broadcast %11 : vector<432x1xf32> to vector<432x8xf32>
    %23 = arith.mulf %21, %22 : vector<432x8xf32>
    %cst_18 = arith.constant 0.000000e+00 : f32
    %24 = vector.broadcast %cst_18 : f32 to vector<192x8xf32>
    %25 = vector.extract_strided_slice %23 {offsets = [0, 0], sizes = [192, 8], strides = [1, 1]} : vector<432x8xf32> to vector<192x8xf32>
    %26 = vector.extract_strided_slice %0 {offsets = [0, 0, 0], sizes = [1, 1, 8], strides = [1, 1, 1]} : vector<9x1x8xf32> to vector<1x1x8xf32>
    %27 = vector.shape_cast %26 : vector<1x1x8xf32> to vector<1x8xf32>
    %28 = vector.broadcast %27 : vector<1x8xf32> to vector<192x8xf32>
    %29 = arith.mulf %25, %28 : vector<192x8xf32>
    %30 = arith.addf %24, %29 : vector<192x8xf32>
    %c191_i32 = arith.constant 191 : i32
    %31 = tpu.dynamic_rotate %25 by %c191_i32 dim 0 : vector<192x8xf32>, i32 -> vector<192x8xf32>
    %32 = vector.extract_strided_slice %0 {offsets = [1, 0, 0], sizes = [1, 1, 8], strides = [1, 1, 1]} : vector<9x1x8xf32> to vector<1x1x8xf32>
    %33 = vector.shape_cast %32 : vector<1x1x8xf32> to vector<1x8xf32>
    %34 = vector.broadcast %33 : vector<1x8xf32> to vector<192x8xf32>
    %35 = arith.mulf %31, %34 : vector<192x8xf32>
    %36 = arith.addf %30, %35 : vector<192x8xf32>
    %c190_i32 = arith.constant 190 : i32
    %37 = tpu.dynamic_rotate %25 by %c190_i32 dim 0 : vector<192x8xf32>, i32 -> vector<192x8xf32>
    %38 = vector.extract_strided_slice %0 {offsets = [2, 0, 0], sizes = [1, 1, 8], strides = [1, 1, 1]} : vector<9x1x8xf32> to vector<1x1x8xf32>
    %39 = vector.shape_cast %38 : vector<1x1x8xf32> to vector<1x8xf32>
    %40 = vector.broadcast %39 : vector<1x8xf32> to vector<192x8xf32>
    %41 = arith.mulf %37, %40 : vector<192x8xf32>
    %42 = arith.addf %36, %41 : vector<192x8xf32>
    %43 = vector.extract_strided_slice %23 {offsets = [24, 0], sizes = [192, 8], strides = [1, 1]} : vector<432x8xf32> to vector<192x8xf32>
    %44 = vector.extract_strided_slice %0 {offsets = [3, 0, 0], sizes = [1, 1, 8], strides = [1, 1, 1]} : vector<9x1x8xf32> to vector<1x1x8xf32>
    %45 = vector.shape_cast %44 : vector<1x1x8xf32> to vector<1x8xf32>
    %46 = vector.broadcast %45 : vector<1x8xf32> to vector<192x8xf32>
    %47 = arith.mulf %43, %46 : vector<192x8xf32>
    %48 = arith.addf %42, %47 : vector<192x8xf32>
    %c191_i32_19 = arith.constant 191 : i32
    %49 = tpu.dynamic_rotate %43 by %c191_i32_19 dim 0 : vector<192x8xf32>, i32 -> vector<192x8xf32>
    %50 = vector.extract_strided_slice %0 {offsets = [4, 0, 0], sizes = [1, 1, 8], strides = [1, 1, 1]} : vector<9x1x8xf32> to vector<1x1x8xf32>
    %51 = vector.shape_cast %50 : vector<1x1x8xf32> to vector<1x8xf32>
    %52 = vector.broadcast %51 : vector<1x8xf32> to vector<192x8xf32>
    %53 = arith.mulf %49, %52 : vector<192x8xf32>
    %54 = arith.addf %48, %53 : vector<192x8xf32>
    %c190_i32_20 = arith.constant 190 : i32
    %55 = tpu.dynamic_rotate %43 by %c190_i32_20 dim 0 : vector<192x8xf32>, i32 -> vector<192x8xf32>
    %56 = vector.extract_strided_slice %0 {offsets = [5, 0, 0], sizes = [1, 1, 8], strides = [1, 1, 1]} : vector<9x1x8xf32> to vector<1x1x8xf32>
    %57 = vector.shape_cast %56 : vector<1x1x8xf32> to vector<1x8xf32>
    %58 = vector.broadcast %57 : vector<1x8xf32> to vector<192x8xf32>
    %59 = arith.mulf %55, %58 : vector<192x8xf32>
    %60 = arith.addf %54, %59 : vector<192x8xf32>
    %61 = vector.extract_strided_slice %23 {offsets = [48, 0], sizes = [192, 8], strides = [1, 1]} : vector<432x8xf32> to vector<192x8xf32>
    %62 = vector.extract_strided_slice %0 {offsets = [6, 0, 0], sizes = [1, 1, 8], strides = [1, 1, 1]} : vector<9x1x8xf32> to vector<1x1x8xf32>
    %63 = vector.shape_cast %62 : vector<1x1x8xf32> to vector<1x8xf32>
    %64 = vector.broadcast %63 : vector<1x8xf32> to vector<192x8xf32>
    %65 = arith.mulf %61, %64 : vector<192x8xf32>
    %66 = arith.addf %60, %65 : vector<192x8xf32>
    %c191_i32_21 = arith.constant 191 : i32
    %67 = tpu.dynamic_rotate %61 by %c191_i32_21 dim 0 : vector<192x8xf32>, i32 -> vector<192x8xf32>
    %68 = vector.extract_strided_slice %0 {offsets = [7, 0, 0], sizes = [1, 1, 8], strides = [1, 1, 1]} : vector<9x1x8xf32> to vector<1x1x8xf32>
    %69 = vector.shape_cast %68 : vector<1x1x8xf32> to vector<1x8xf32>
    %70 = vector.broadcast %69 : vector<1x8xf32> to vector<192x8xf32>
    %71 = arith.mulf %67, %70 : vector<192x8xf32>
    %72 = arith.addf %66, %71 : vector<192x8xf32>
    %c190_i32_22 = arith.constant 190 : i32
    %73 = tpu.dynamic_rotate %61 by %c190_i32_22 dim 0 : vector<192x8xf32>, i32 -> vector<192x8xf32>
    %74 = vector.extract_strided_slice %0 {offsets = [8, 0, 0], sizes = [1, 1, 8], strides = [1, 1, 1]} : vector<9x1x8xf32> to vector<1x1x8xf32>
    %75 = vector.shape_cast %74 : vector<1x1x8xf32> to vector<1x8xf32>
    %76 = vector.broadcast %75 : vector<1x8xf32> to vector<192x8xf32>
    %77 = arith.mulf %73, %76 : vector<192x8xf32>
    %78 = arith.addf %72, %77 : vector<192x8xf32>
    %c0_i32 = arith.constant 0 : i32
    %79 = arith.addi %5, %c0_i32 : i32
    %c1_i32 = arith.constant 1 : i32
    %80 = arith.addi %79, %c1_i32 : i32
    %c0_23 = arith.constant 0 : index
    %81 = arith.index_cast %80 : i32 to index
    %c1 = arith.constant 1 : index
    %c0_24 = arith.constant 0 : index
    %82 = vector.load %arg2[%c0_23, %81, %c1, %c0_24] : memref<1x18x24x4xf32, #tpu.memory_space<vmem>>, vector<1x8x16x4xf32>
    %83 = vector.shape_cast %82 : vector<1x8x16x4xf32> to vector<8x16x4xf32>
    %84 = vector.broadcast %1 : vector<1x8xf32> to vector<192x8xf32>
    %85 = arith.addf %78, %84 : vector<192x8xf32>
    %cst_25 = arith.constant 0.000000e+00 : f32
    %cst_26 = arith.constant 6.000000e+00 : f32
    %86 = vector.broadcast %cst_25 : f32 to vector<192x8xf32>
    %87 = arith.maximumf %86, %85 : vector<192x8xf32>
    %88 = vector.broadcast %cst_26 : f32 to vector<192x8xf32>
    %89 = arith.minimumf %88, %87 : vector<192x8xf32>
    %cst_27 = arith.constant dense<0.000000e+00> : vector<192x4xf32>
    %90 = tpu.matmul %89, %2, %cst_27 {dimension_numbers = #tpu.dot_dimension_numbers<[1], [0], [0], [1], [0, 0, 1, 1], [], []>} : vector<192x8xf32>, vector<8x4xf32>, vector<192x4xf32> -> vector<192x4xf32>
    %91 = vector.broadcast %3 : vector<1x4xf32> to vector<192x4xf32>
    %92 = arith.addf %90, %91 : vector<192x4xf32>
    %93 = vector.shape_cast %92 : vector<192x4xf32> to vector<8x24x4xf32>
    %94 = vector.extract_strided_slice %93 {offsets = [0, 0, 0], sizes = [8, 16, 4], strides = [1, 1, 1]} : vector<8x24x4xf32> to vector<8x16x4xf32>
    %95 = arith.addf %94, %83 : vector<8x16x4xf32>
    %96 = vector.shape_cast %95 : vector<8x16x4xf32> to vector<8x64xf32>
    %c0_28 = arith.constant 0 : index
    %c0_29 = arith.constant 0 : index
    %c0_30 = arith.constant 0 : index
    %97 = vector.load %arg10[%c0_28, %c0_29, %c0_30] : memref<1x16x64xf32, #tpu.memory_space<vmem>>, vector<1x8x64xf32>
    %98 = vector.shape_cast %97 : vector<1x8x64xf32> to vector<8x64xf32>
    %99 = vector.shape_cast %96 : vector<8x64xf32> to vector<1x8x64xf32>
    tpu.vector_store %arg10[%c0_28, %c0_29, %c0_30], %99 {strides = array<i32>} : memref<1x16x64xf32, #tpu.memory_space<vmem>>, vector<1x8x64xf32>,
    %cst_31 = arith.constant 0.000000e+00 : f32
    %100 = vector.broadcast %cst_31 : f32 to vector<192x8xf32>
    %101 = vector.extract_strided_slice %23 {offsets = [192, 0], sizes = [192, 8], strides = [1, 1]} : vector<432x8xf32> to vector<192x8xf32>
    %102 = vector.extract_strided_slice %0 {offsets = [0, 0, 0], sizes = [1, 1, 8], strides = [1, 1, 1]} : vector<9x1x8xf32> to vector<1x1x8xf32>
    %103 = vector.shape_cast %102 : vector<1x1x8xf32> to vector<1x8xf32>
    %104 = vector.broadcast %103 : vector<1x8xf32> to vector<192x8xf32>
    %105 = arith.mulf %101, %104 : vector<192x8xf32>
    %106 = arith.addf %100, %105 : vector<192x8xf32>
    %c191_i32_32 = arith.constant 191 : i32
    %107 = tpu.dynamic_rotate %101 by %c191_i32_32 dim 0 : vector<192x8xf32>, i32 -> vector<192x8xf32>
    %108 = vector.extract_strided_slice %0 {offsets = [1, 0, 0], sizes = [1, 1, 8], strides = [1, 1, 1]} : vector<9x1x8xf32> to vector<1x1x8xf32>
    %109 = vector.shape_cast %108 : vector<1x1x8xf32> to vector<1x8xf32>
    %110 = vector.broadcast %109 : vector<1x8xf32> to vector<192x8xf32>
    %111 = arith.mulf %107, %110 : vector<192x8xf32>
    %112 = arith.addf %106, %111 : vector<192x8xf32>
    %c190_i32_33 = arith.constant 190 : i32
    %113 = tpu.dynamic_rotate %101 by %c190_i32_33 dim 0 : vector<192x8xf32>, i32 -> vector<192x8xf32>
    %114 = vector.extract_strided_slice %0 {offsets = [2, 0, 0], sizes = [1, 1, 8], strides = [1, 1, 1]} : vector<9x1x8xf32> to vector<1x1x8xf32>
    %115 = vector.shape_cast %114 : vector<1x1x8xf32> to vector<1x8xf32>
    %116 = vector.broadcast %115 : vector<1x8xf32> to vector<192x8xf32>
    %117 = arith.mulf %113, %116 : vector<192x8xf32>
    %118 = arith.addf %112, %117 : vector<192x8xf32>
    %119 = vector.extract_strided_slice %23 {offsets = [216, 0], sizes = [192, 8], strides = [1, 1]} : vector<432x8xf32> to vector<192x8xf32>
    %120 = vector.extract_strided_slice %0 {offsets = [3, 0, 0], sizes = [1, 1, 8], strides = [1, 1, 1]} : vector<9x1x8xf32> to vector<1x1x8xf32>
    %121 = vector.shape_cast %120 : vector<1x1x8xf32> to vector<1x8xf32>
    %122 = vector.broadcast %121 : vector<1x8xf32> to vector<192x8xf32>
    %123 = arith.mulf %119, %122 : vector<192x8xf32>
    %124 = arith.addf %118, %123 : vector<192x8xf32>
    %c191_i32_34 = arith.constant 191 : i32
    %125 = tpu.dynamic_rotate %119 by %c191_i32_34 dim 0 : vector<192x8xf32>, i32 -> vector<192x8xf32>
    %126 = vector.extract_strided_slice %0 {offsets = [4, 0, 0], sizes = [1, 1, 8], strides = [1, 1, 1]} : vector<9x1x8xf32> to vector<1x1x8xf32>
    %127 = vector.shape_cast %126 : vector<1x1x8xf32> to vector<1x8xf32>
    %128 = vector.broadcast %127 : vector<1x8xf32> to vector<192x8xf32>
    %129 = arith.mulf %125, %128 : vector<192x8xf32>
    %130 = arith.addf %124, %129 : vector<192x8xf32>
    %c190_i32_35 = arith.constant 190 : i32
    %131 = tpu.dynamic_rotate %119 by %c190_i32_35 dim 0 : vector<192x8xf32>, i32 -> vector<192x8xf32>
    %132 = vector.extract_strided_slice %0 {offsets = [5, 0, 0], sizes = [1, 1, 8], strides = [1, 1, 1]} : vector<9x1x8xf32> to vector<1x1x8xf32>
    %133 = vector.shape_cast %132 : vector<1x1x8xf32> to vector<1x8xf32>
    %134 = vector.broadcast %133 : vector<1x8xf32> to vector<192x8xf32>
    %135 = arith.mulf %131, %134 : vector<192x8xf32>
    %136 = arith.addf %130, %135 : vector<192x8xf32>
    %137 = vector.extract_strided_slice %23 {offsets = [240, 0], sizes = [192, 8], strides = [1, 1]} : vector<432x8xf32> to vector<192x8xf32>
    %138 = vector.extract_strided_slice %0 {offsets = [6, 0, 0], sizes = [1, 1, 8], strides = [1, 1, 1]} : vector<9x1x8xf32> to vector<1x1x8xf32>
    %139 = vector.shape_cast %138 : vector<1x1x8xf32> to vector<1x8xf32>
    %140 = vector.broadcast %139 : vector<1x8xf32> to vector<192x8xf32>
    %141 = arith.mulf %137, %140 : vector<192x8xf32>
    %142 = arith.addf %136, %141 : vector<192x8xf32>
    %c191_i32_36 = arith.constant 191 : i32
    %143 = tpu.dynamic_rotate %137 by %c191_i32_36 dim 0 : vector<192x8xf32>, i32 -> vector<192x8xf32>
    %144 = vector.extract_strided_slice %0 {offsets = [7, 0, 0], sizes = [1, 1, 8], strides = [1, 1, 1]} : vector<9x1x8xf32> to vector<1x1x8xf32>
    %145 = vector.shape_cast %144 : vector<1x1x8xf32> to vector<1x8xf32>
    %146 = vector.broadcast %145 : vector<1x8xf32> to vector<192x8xf32>
    %147 = arith.mulf %143, %146 : vector<192x8xf32>
    %148 = arith.addf %142, %147 : vector<192x8xf32>
    %c190_i32_37 = arith.constant 190 : i32
    %149 = tpu.dynamic_rotate %137 by %c190_i32_37 dim 0 : vector<192x8xf32>, i32 -> vector<192x8xf32>
    %150 = vector.extract_strided_slice %0 {offsets = [8, 0, 0], sizes = [1, 1, 8], strides = [1, 1, 1]} : vector<9x1x8xf32> to vector<1x1x8xf32>
    %151 = vector.shape_cast %150 : vector<1x1x8xf32> to vector<1x8xf32>
    %152 = vector.broadcast %151 : vector<1x8xf32> to vector<192x8xf32>
    %153 = arith.mulf %149, %152 : vector<192x8xf32>
    %154 = arith.addf %148, %153 : vector<192x8xf32>
    %c8_i32 = arith.constant 8 : i32
    %155 = arith.addi %5, %c8_i32 : i32
    %c1_i32_38 = arith.constant 1 : i32
    %156 = arith.addi %155, %c1_i32_38 : i32
    %c0_39 = arith.constant 0 : index
    %157 = arith.index_cast %156 : i32 to index
    %c1_40 = arith.constant 1 : index
    %c0_41 = arith.constant 0 : index
    %158 = vector.load %arg2[%c0_39, %157, %c1_40, %c0_41] : memref<1x18x24x4xf32, #tpu.memory_space<vmem>>, vector<1x8x16x4xf32>
    %159 = vector.shape_cast %158 : vector<1x8x16x4xf32> to vector<8x16x4xf32>
    %160 = vector.broadcast %1 : vector<1x8xf32> to vector<192x8xf32>
    %161 = arith.addf %154, %160 : vector<192x8xf32>
    %cst_42 = arith.constant 0.000000e+00 : f32
    %cst_43 = arith.constant 6.000000e+00 : f32
    %162 = vector.broadcast %cst_42 : f32 to vector<192x8xf32>
    %163 = arith.maximumf %162, %161 : vector<192x8xf32>
    %164 = vector.broadcast %cst_43 : f32 to vector<192x8xf32>
    %165 = arith.minimumf %164, %163 : vector<192x8xf32>
    %cst_44 = arith.constant dense<0.000000e+00> : vector<192x4xf32>
    %166 = tpu.matmul %165, %2, %cst_44 {dimension_numbers = #tpu.dot_dimension_numbers<[1], [0], [0], [1], [0, 0, 1, 1], [], []>} : vector<192x8xf32>, vector<8x4xf32>, vector<192x4xf32> -> vector<192x4xf32>
    %167 = vector.broadcast %3 : vector<1x4xf32> to vector<192x4xf32>
    %168 = arith.addf %166, %167 : vector<192x4xf32>
    %169 = vector.shape_cast %168 : vector<192x4xf32> to vector<8x24x4xf32>
    %170 = vector.extract_strided_slice %169 {offsets = [0, 0, 0], sizes = [8, 16, 4], strides = [1, 1, 1]} : vector<8x24x4xf32> to vector<8x16x4xf32>
    %171 = arith.addf %170, %159 : vector<8x16x4xf32>
    %172 = vector.shape_cast %171 : vector<8x16x4xf32> to vector<8x64xf32>
    %c0_45 = arith.constant 0 : index
    %c8 = arith.constant 8 : index
    %c0_46 = arith.constant 0 : index
    %173 = vector.load %arg10[%c0_45, %c8, %c0_46] : memref<1x16x64xf32, #tpu.memory_space<vmem>>, vector<1x8x64xf32>
    %174 = vector.shape_cast %173 : vector<1x8x64xf32> to vector<8x64xf32>
    %175 = vector.shape_cast %172 : vector<8x64xf32> to vector<1x8x64xf32>
    tpu.vector_store %arg10[%c0_45, %c8, %c0_46], %175 {strides = array<i32>} : memref<1x16x64xf32, #tpu.memory_space<vmem>>, vector<1x8x64xf32>,
    return
  }
  func.func @transform_0(%arg0: i32, %arg1: i32) -> (i32, i32, i32, i32) {
    %c0_i32 = arith.constant 0 : i32
    %c0_i32_0 = arith.constant 0 : i32
    %c0_i32_1 = arith.constant 0 : i32
    %c0_i32_2 = arith.constant 0 : i32
    return %arg0, %c0_i32, %c0_i32_0, %c0_i32_1 : i32, i32, i32, i32
  }
  func.func @transform_1(%arg0: i32, %arg1: i32) -> (i32, i32) {
    %c0_i32 = arith.constant 0 : i32
    %c0_i32_0 = arith.constant 0 : i32
    %c0_i32_1 = arith.constant 0 : i32
    return %c0_i32, %c0_i32_0 : i32, i32
  }
  func.func @transform_2(%arg0: i32, %arg1: i32) -> (i32, i32) {
    %c0_i32 = arith.constant 0 : i32
    %c0_i32_0 = arith.constant 0 : i32
    %c0_i32_1 = arith.constant 0 : i32
    return %c0_i32, %c0_i32_0 : i32, i32
  }
  func.func @transform_3(%arg0: i32, %arg1: i32) -> (i32, i32) {
    %c0_i32 = arith.constant 0 : i32
    %c0_i32_0 = arith.constant 0 : i32
    %c0_i32_1 = arith.constant 0 : i32
    return %c0_i32, %c0_i32_0 : i32, i32
  }
  func.func @transform_4(%arg0: i32, %arg1: i32) -> (i32, i32, i32) {
    %c0_i32 = arith.constant 0 : i32
    %c0_i32_0 = arith.constant 0 : i32
    %c0_i32_1 = arith.constant 0 : i32
    %c0_i32_2 = arith.constant 0 : i32
    return %c0_i32, %c0_i32_0, %c0_i32_1 : i32, i32, i32
  }
  func.func @transform_5(%arg0: i32, %arg1: i32) -> (i32, i32) {
    %c0_i32 = arith.constant 0 : i32
    %c0_i32_0 = arith.constant 0 : i32
    %c0_i32_1 = arith.constant 0 : i32
    return %c0_i32, %c0_i32_0 : i32, i32
  }
  func.func @transform_6(%arg0: i32, %arg1: i32) -> (i32, i32) {
    %c0_i32 = arith.constant 0 : i32
    %c0_i32_0 = arith.constant 0 : i32
    %c0_i32_1 = arith.constant 0 : i32
    return %c0_i32, %c0_i32_0 : i32, i32
  }
  func.func @transform_7(%arg0: i32, %arg1: i32) -> (i32, i32) {
    %c0_i32 = arith.constant 0 : i32
    %c0_i32_0 = arith.constant 0 : i32
    %c0_i32_1 = arith.constant 0 : i32
    return %c0_i32, %c0_i32_0 : i32, i32
  }
  func.func @transform_8(%arg0: i32, %arg1: i32) -> (i32, i32, i32) {
    %c0_i32 = arith.constant 0 : i32
    %c0_i32_0 = arith.constant 0 : i32
    return %arg0, %arg1, %c0_i32 : i32, i32, i32
  }
}

module attributes {stable_mosaic.version = 11 : i64} {
  func.func @_fused_bottleneck_kernel(%arg0: i32, %arg1: i32, %arg2: memref<1x18x24x4xf32, #tpu.memory_space<vmem>>, %arg3: memref<432x1xf32, #tpu.memory_space<vmem>>, %arg4: memref<4x8xf32, #tpu.memory_space<vmem>>, %arg5: memref<1x8xf32, #tpu.memory_space<vmem>>, %arg6: memref<9x1x8xf32, #tpu.memory_space<vmem>>, %arg7: memref<1x8xf32, #tpu.memory_space<vmem>>, %arg8: memref<8x4xf32, #tpu.memory_space<vmem>>, %arg9: memref<1x4xf32, #tpu.memory_space<vmem>>, %arg10: memref<1x16x16x4xf32, #tpu.memory_space<vmem>>) attributes {dimension_semantics = [#tpu.dimension_semantics<parallel>, #tpu.dimension_semantics<parallel>], iteration_bounds = array<i64: 2, 1>, scalar_prefetch = 0 : i64, scratch_operands = 0 : i64, tpu.core_type = #tpu.core_type<tc>, window_params = [{transform_indices = @transform_0, window_bounds = array<i64: 1, 18, 24, 4>}, {pipeline_mode = #tpu.pipeline_mode<synchronous>, transform_indices = @transform_1, window_bounds = array<i64: 432, 1>}, {pipeline_mode = #tpu.pipeline_mode<synchronous>, transform_indices = @transform_2, window_bounds = array<i64: 4, 8>}, {pipeline_mode = #tpu.pipeline_mode<synchronous>, transform_indices = @transform_3, window_bounds = array<i64: 1, 8>}, {pipeline_mode = #tpu.pipeline_mode<synchronous>, transform_indices = @transform_4, window_bounds = array<i64: 9, 1, 8>}, {pipeline_mode = #tpu.pipeline_mode<synchronous>, transform_indices = @transform_5, window_bounds = array<i64: 1, 8>}, {pipeline_mode = #tpu.pipeline_mode<synchronous>, transform_indices = @transform_6, window_bounds = array<i64: 8, 4>}, {pipeline_mode = #tpu.pipeline_mode<synchronous>, transform_indices = @transform_7, window_bounds = array<i64: 1, 4>}, {transform_indices = @transform_8, window_bounds = array<i64: 1, 16, 16, 4>}]} {
    %c0 = arith.constant 0 : index
    %c0_0 = arith.constant 0 : index
    %c0_1 = arith.constant 0 : index
    %0 = vector.load %arg6[%c0, %c0_0, %c0_1] : memref<9x1x8xf32, #tpu.memory_space<vmem>>, vector<9x1x8xf32>
    %c0_2 = arith.constant 0 : index
    %c0_3 = arith.constant 0 : index
    %1 = vector.load %arg7[%c0_2, %c0_3] : memref<1x8xf32, #tpu.memory_space<vmem>>, vector<1x8xf32>
    %c0_4 = arith.constant 0 : index
    %c0_5 = arith.constant 0 : index
    %2 = vector.load %arg8[%c0_4, %c0_5] : memref<8x4xf32, #tpu.memory_space<vmem>>, vector<8x4xf32>
    %c0_6 = arith.constant 0 : index
    %c0_7 = arith.constant 0 : index
    %3 = vector.load %arg9[%c0_6, %c0_7] : memref<1x4xf32, #tpu.memory_space<vmem>>, vector<1x4xf32>
    %c16_i32 = arith.constant 16 : i32
    %4 = arith.muli %arg1, %c16_i32 : i32
    %5 = tpu.assume_multiple %4, 16 : i32
    %c0_8 = arith.constant 0 : index
    %6 = arith.index_cast %5 : i32 to index
    %c0_9 = arith.constant 0 : index
    %c0_10 = arith.constant 0 : index
    %7 = vector.load %arg2[%c0_8, %6, %c0_9, %c0_10] : memref<1x18x24x4xf32, #tpu.memory_space<vmem>>, vector<1x18x24x4xf32>
    %8 = vector.shape_cast %7 : vector<1x18x24x4xf32> to vector<18x24x4xf32>
    %c24_i32 = arith.constant 24 : i32
    %9 = arith.muli %5, %c24_i32 : i32
    %10 = arith.index_cast %9 : i32 to index
    %c0_11 = arith.constant 0 : index
    %11 = vector.load %arg3[%10, %c0_11] : memref<432x1xf32, #tpu.memory_space<vmem>>, vector<432x1xf32>
    %12 = vector.shape_cast %8 : vector<18x24x4xf32> to vector<432x4xf32>
    %c0_12 = arith.constant 0 : index
    %c0_13 = arith.constant 0 : index
    %13 = vector.load %arg4[%c0_12, %c0_13] : memref<4x8xf32, #tpu.memory_space<vmem>>, vector<4x8xf32>
    %cst = arith.constant dense<0.000000e+00> : vector<432x8xf32>
    %14 = tpu.matmul %12, %13, %cst {dimension_numbers = #tpu.dot_dimension_numbers<[1], [0], [0], [1], [0, 0, 1, 1], [], []>} : vector<432x4xf32>, vector<4x8xf32>, vector<432x8xf32> -> vector<432x8xf32>
    %c0_14 = arith.constant 0 : index
    %c0_15 = arith.constant 0 : index
    %15 = vector.load %arg5[%c0_14, %c0_15] : memref<1x8xf32, #tpu.memory_space<vmem>>, vector<1x8xf32>
    %16 = vector.broadcast %15 : vector<1x8xf32> to vector<432x8xf32>
    %17 = arith.addf %14, %16 : vector<432x8xf32>
    %cst_16 = arith.constant 0.000000e+00 : f32
    %cst_17 = arith.constant 6.000000e+00 : f32
    %18 = vector.broadcast %cst_16 : f32 to vector<432x8xf32>
    %19 = arith.maximumf %18, %17 : vector<432x8xf32>
    %20 = vector.broadcast %cst_17 : f32 to vector<432x8xf32>
    %21 = arith.minimumf %20, %19 : vector<432x8xf32>
    %22 = vector.broadcast %11 : vector<432x1xf32> to vector<432x8xf32>
    %23 = arith.mulf %21, %22 : vector<432x8xf32>
    %cst_18 = arith.constant 0.000000e+00 : f32
    %24 = vector.broadcast %cst_18 : f32 to vector<192x8xf32>
    %25 = vector.extract_strided_slice %23 {offsets = [0, 0], sizes = [192, 8], strides = [1, 1]} : vector<432x8xf32> to vector<192x8xf32>
    %26 = vector.extract_strided_slice %0 {offsets = [0, 0, 0], sizes = [1, 1, 8], strides = [1, 1, 1]} : vector<9x1x8xf32> to vector<1x1x8xf32>
    %27 = vector.shape_cast %26 : vector<1x1x8xf32> to vector<1x8xf32>
    %28 = vector.broadcast %27 : vector<1x8xf32> to vector<192x8xf32>
    %29 = arith.mulf %25, %28 : vector<192x8xf32>
    %30 = arith.addf %24, %29 : vector<192x8xf32>
    %c191_i32 = arith.constant 191 : i32
    %31 = tpu.dynamic_rotate %25 by %c191_i32 dim 0 : vector<192x8xf32>, i32 -> vector<192x8xf32>
    %32 = vector.extract_strided_slice %0 {offsets = [1, 0, 0], sizes = [1, 1, 8], strides = [1, 1, 1]} : vector<9x1x8xf32> to vector<1x1x8xf32>
    %33 = vector.shape_cast %32 : vector<1x1x8xf32> to vector<1x8xf32>
    %34 = vector.broadcast %33 : vector<1x8xf32> to vector<192x8xf32>
    %35 = arith.mulf %31, %34 : vector<192x8xf32>
    %36 = arith.addf %30, %35 : vector<192x8xf32>
    %c190_i32 = arith.constant 190 : i32
    %37 = tpu.dynamic_rotate %25 by %c190_i32 dim 0 : vector<192x8xf32>, i32 -> vector<192x8xf32>
    %38 = vector.extract_strided_slice %0 {offsets = [2, 0, 0], sizes = [1, 1, 8], strides = [1, 1, 1]} : vector<9x1x8xf32> to vector<1x1x8xf32>
    %39 = vector.shape_cast %38 : vector<1x1x8xf32> to vector<1x8xf32>
    %40 = vector.broadcast %39 : vector<1x8xf32> to vector<192x8xf32>
    %41 = arith.mulf %37, %40 : vector<192x8xf32>
    %42 = arith.addf %36, %41 : vector<192x8xf32>
    %43 = vector.extract_strided_slice %23 {offsets = [24, 0], sizes = [192, 8], strides = [1, 1]} : vector<432x8xf32> to vector<192x8xf32>
    %44 = vector.extract_strided_slice %0 {offsets = [3, 0, 0], sizes = [1, 1, 8], strides = [1, 1, 1]} : vector<9x1x8xf32> to vector<1x1x8xf32>
    %45 = vector.shape_cast %44 : vector<1x1x8xf32> to vector<1x8xf32>
    %46 = vector.broadcast %45 : vector<1x8xf32> to vector<192x8xf32>
    %47 = arith.mulf %43, %46 : vector<192x8xf32>
    %48 = arith.addf %42, %47 : vector<192x8xf32>
    %c191_i32_19 = arith.constant 191 : i32
    %49 = tpu.dynamic_rotate %43 by %c191_i32_19 dim 0 : vector<192x8xf32>, i32 -> vector<192x8xf32>
    %50 = vector.extract_strided_slice %0 {offsets = [4, 0, 0], sizes = [1, 1, 8], strides = [1, 1, 1]} : vector<9x1x8xf32> to vector<1x1x8xf32>
    %51 = vector.shape_cast %50 : vector<1x1x8xf32> to vector<1x8xf32>
    %52 = vector.broadcast %51 : vector<1x8xf32> to vector<192x8xf32>
    %53 = arith.mulf %49, %52 : vector<192x8xf32>
    %54 = arith.addf %48, %53 : vector<192x8xf32>
    %c190_i32_20 = arith.constant 190 : i32
    %55 = tpu.dynamic_rotate %43 by %c190_i32_20 dim 0 : vector<192x8xf32>, i32 -> vector<192x8xf32>
    %56 = vector.extract_strided_slice %0 {offsets = [5, 0, 0], sizes = [1, 1, 8], strides = [1, 1, 1]} : vector<9x1x8xf32> to vector<1x1x8xf32>
    %57 = vector.shape_cast %56 : vector<1x1x8xf32> to vector<1x8xf32>
    %58 = vector.broadcast %57 : vector<1x8xf32> to vector<192x8xf32>
    %59 = arith.mulf %55, %58 : vector<192x8xf32>
    %60 = arith.addf %54, %59 : vector<192x8xf32>
    %61 = vector.extract_strided_slice %23 {offsets = [48, 0], sizes = [192, 8], strides = [1, 1]} : vector<432x8xf32> to vector<192x8xf32>
    %62 = vector.extract_strided_slice %0 {offsets = [6, 0, 0], sizes = [1, 1, 8], strides = [1, 1, 1]} : vector<9x1x8xf32> to vector<1x1x8xf32>
    %63 = vector.shape_cast %62 : vector<1x1x8xf32> to vector<1x8xf32>
    %64 = vector.broadcast %63 : vector<1x8xf32> to vector<192x8xf32>
    %65 = arith.mulf %61, %64 : vector<192x8xf32>
    %66 = arith.addf %60, %65 : vector<192x8xf32>
    %c191_i32_21 = arith.constant 191 : i32
    %67 = tpu.dynamic_rotate %61 by %c191_i32_21 dim 0 : vector<192x8xf32>, i32 -> vector<192x8xf32>
    %68 = vector.extract_strided_slice %0 {offsets = [7, 0, 0], sizes = [1, 1, 8], strides = [1, 1, 1]} : vector<9x1x8xf32> to vector<1x1x8xf32>
    %69 = vector.shape_cast %68 : vector<1x1x8xf32> to vector<1x8xf32>
    %70 = vector.broadcast %69 : vector<1x8xf32> to vector<192x8xf32>
    %71 = arith.mulf %67, %70 : vector<192x8xf32>
    %72 = arith.addf %66, %71 : vector<192x8xf32>
    %c190_i32_22 = arith.constant 190 : i32
    %73 = tpu.dynamic_rotate %61 by %c190_i32_22 dim 0 : vector<192x8xf32>, i32 -> vector<192x8xf32>
    %74 = vector.extract_strided_slice %0 {offsets = [8, 0, 0], sizes = [1, 1, 8], strides = [1, 1, 1]} : vector<9x1x8xf32> to vector<1x1x8xf32>
    %75 = vector.shape_cast %74 : vector<1x1x8xf32> to vector<1x8xf32>
    %76 = vector.broadcast %75 : vector<1x8xf32> to vector<192x8xf32>
    %77 = arith.mulf %73, %76 : vector<192x8xf32>
    %78 = arith.addf %72, %77 : vector<192x8xf32>
    %c0_i32 = arith.constant 0 : i32
    %79 = arith.addi %5, %c0_i32 : i32
    %c1_i32 = arith.constant 1 : i32
    %80 = arith.addi %79, %c1_i32 : i32
    %c0_23 = arith.constant 0 : index
    %81 = arith.index_cast %80 : i32 to index
    %c1 = arith.constant 1 : index
    %c0_24 = arith.constant 0 : index
    %82 = vector.load %arg2[%c0_23, %81, %c1, %c0_24] : memref<1x18x24x4xf32, #tpu.memory_space<vmem>>, vector<1x8x16x4xf32>
    %83 = vector.shape_cast %82 : vector<1x8x16x4xf32> to vector<8x16x4xf32>
    %84 = vector.broadcast %1 : vector<1x8xf32> to vector<192x8xf32>
    %85 = arith.addf %78, %84 : vector<192x8xf32>
    %cst_25 = arith.constant 0.000000e+00 : f32
    %cst_26 = arith.constant 6.000000e+00 : f32
    %86 = vector.broadcast %cst_25 : f32 to vector<192x8xf32>
    %87 = arith.maximumf %86, %85 : vector<192x8xf32>
    %88 = vector.broadcast %cst_26 : f32 to vector<192x8xf32>
    %89 = arith.minimumf %88, %87 : vector<192x8xf32>
    %cst_27 = arith.constant dense<0.000000e+00> : vector<192x4xf32>
    %90 = tpu.matmul %89, %2, %cst_27 {dimension_numbers = #tpu.dot_dimension_numbers<[1], [0], [0], [1], [0, 0, 1, 1], [], []>} : vector<192x8xf32>, vector<8x4xf32>, vector<192x4xf32> -> vector<192x4xf32>
    %91 = vector.broadcast %3 : vector<1x4xf32> to vector<192x4xf32>
    %92 = arith.addf %90, %91 : vector<192x4xf32>
    %93 = vector.shape_cast %92 : vector<192x4xf32> to vector<8x24x4xf32>
    %94 = vector.extract_strided_slice %93 {offsets = [0, 0, 0], sizes = [8, 16, 4], strides = [1, 1, 1]} : vector<8x24x4xf32> to vector<8x16x4xf32>
    %95 = arith.addf %94, %83 : vector<8x16x4xf32>
    %c0_28 = arith.constant 0 : index
    %c0_29 = arith.constant 0 : index
    %c0_30 = arith.constant 0 : index
    %c0_31 = arith.constant 0 : index
    %96 = vector.load %arg10[%c0_28, %c0_29, %c0_30, %c0_31] : memref<1x16x16x4xf32, #tpu.memory_space<vmem>>, vector<1x8x16x4xf32>
    %97 = vector.shape_cast %96 : vector<1x8x16x4xf32> to vector<8x16x4xf32>
    %98 = vector.shape_cast %95 : vector<8x16x4xf32> to vector<1x8x16x4xf32>
    tpu.vector_store %arg10[%c0_28, %c0_29, %c0_30, %c0_31], %98 {strides = array<i32>} : memref<1x16x16x4xf32, #tpu.memory_space<vmem>>, vector<1x8x16x4xf32>,
    %cst_32 = arith.constant 0.000000e+00 : f32
    %99 = vector.broadcast %cst_32 : f32 to vector<192x8xf32>
    %100 = vector.extract_strided_slice %23 {offsets = [192, 0], sizes = [192, 8], strides = [1, 1]} : vector<432x8xf32> to vector<192x8xf32>
    %101 = vector.extract_strided_slice %0 {offsets = [0, 0, 0], sizes = [1, 1, 8], strides = [1, 1, 1]} : vector<9x1x8xf32> to vector<1x1x8xf32>
    %102 = vector.shape_cast %101 : vector<1x1x8xf32> to vector<1x8xf32>
    %103 = vector.broadcast %102 : vector<1x8xf32> to vector<192x8xf32>
    %104 = arith.mulf %100, %103 : vector<192x8xf32>
    %105 = arith.addf %99, %104 : vector<192x8xf32>
    %c191_i32_33 = arith.constant 191 : i32
    %106 = tpu.dynamic_rotate %100 by %c191_i32_33 dim 0 : vector<192x8xf32>, i32 -> vector<192x8xf32>
    %107 = vector.extract_strided_slice %0 {offsets = [1, 0, 0], sizes = [1, 1, 8], strides = [1, 1, 1]} : vector<9x1x8xf32> to vector<1x1x8xf32>
    %108 = vector.shape_cast %107 : vector<1x1x8xf32> to vector<1x8xf32>
    %109 = vector.broadcast %108 : vector<1x8xf32> to vector<192x8xf32>
    %110 = arith.mulf %106, %109 : vector<192x8xf32>
    %111 = arith.addf %105, %110 : vector<192x8xf32>
    %c190_i32_34 = arith.constant 190 : i32
    %112 = tpu.dynamic_rotate %100 by %c190_i32_34 dim 0 : vector<192x8xf32>, i32 -> vector<192x8xf32>
    %113 = vector.extract_strided_slice %0 {offsets = [2, 0, 0], sizes = [1, 1, 8], strides = [1, 1, 1]} : vector<9x1x8xf32> to vector<1x1x8xf32>
    %114 = vector.shape_cast %113 : vector<1x1x8xf32> to vector<1x8xf32>
    %115 = vector.broadcast %114 : vector<1x8xf32> to vector<192x8xf32>
    %116 = arith.mulf %112, %115 : vector<192x8xf32>
    %117 = arith.addf %111, %116 : vector<192x8xf32>
    %118 = vector.extract_strided_slice %23 {offsets = [216, 0], sizes = [192, 8], strides = [1, 1]} : vector<432x8xf32> to vector<192x8xf32>
    %119 = vector.extract_strided_slice %0 {offsets = [3, 0, 0], sizes = [1, 1, 8], strides = [1, 1, 1]} : vector<9x1x8xf32> to vector<1x1x8xf32>
    %120 = vector.shape_cast %119 : vector<1x1x8xf32> to vector<1x8xf32>
    %121 = vector.broadcast %120 : vector<1x8xf32> to vector<192x8xf32>
    %122 = arith.mulf %118, %121 : vector<192x8xf32>
    %123 = arith.addf %117, %122 : vector<192x8xf32>
    %c191_i32_35 = arith.constant 191 : i32
    %124 = tpu.dynamic_rotate %118 by %c191_i32_35 dim 0 : vector<192x8xf32>, i32 -> vector<192x8xf32>
    %125 = vector.extract_strided_slice %0 {offsets = [4, 0, 0], sizes = [1, 1, 8], strides = [1, 1, 1]} : vector<9x1x8xf32> to vector<1x1x8xf32>
    %126 = vector.shape_cast %125 : vector<1x1x8xf32> to vector<1x8xf32>
    %127 = vector.broadcast %126 : vector<1x8xf32> to vector<192x8xf32>
    %128 = arith.mulf %124, %127 : vector<192x8xf32>
    %129 = arith.addf %123, %128 : vector<192x8xf32>
    %c190_i32_36 = arith.constant 190 : i32
    %130 = tpu.dynamic_rotate %118 by %c190_i32_36 dim 0 : vector<192x8xf32>, i32 -> vector<192x8xf32>
    %131 = vector.extract_strided_slice %0 {offsets = [5, 0, 0], sizes = [1, 1, 8], strides = [1, 1, 1]} : vector<9x1x8xf32> to vector<1x1x8xf32>
    %132 = vector.shape_cast %131 : vector<1x1x8xf32> to vector<1x8xf32>
    %133 = vector.broadcast %132 : vector<1x8xf32> to vector<192x8xf32>
    %134 = arith.mulf %130, %133 : vector<192x8xf32>
    %135 = arith.addf %129, %134 : vector<192x8xf32>
    %136 = vector.extract_strided_slice %23 {offsets = [240, 0], sizes = [192, 8], strides = [1, 1]} : vector<432x8xf32> to vector<192x8xf32>
    %137 = vector.extract_strided_slice %0 {offsets = [6, 0, 0], sizes = [1, 1, 8], strides = [1, 1, 1]} : vector<9x1x8xf32> to vector<1x1x8xf32>
    %138 = vector.shape_cast %137 : vector<1x1x8xf32> to vector<1x8xf32>
    %139 = vector.broadcast %138 : vector<1x8xf32> to vector<192x8xf32>
    %140 = arith.mulf %136, %139 : vector<192x8xf32>
    %141 = arith.addf %135, %140 : vector<192x8xf32>
    %c191_i32_37 = arith.constant 191 : i32
    %142 = tpu.dynamic_rotate %136 by %c191_i32_37 dim 0 : vector<192x8xf32>, i32 -> vector<192x8xf32>
    %143 = vector.extract_strided_slice %0 {offsets = [7, 0, 0], sizes = [1, 1, 8], strides = [1, 1, 1]} : vector<9x1x8xf32> to vector<1x1x8xf32>
    %144 = vector.shape_cast %143 : vector<1x1x8xf32> to vector<1x8xf32>
    %145 = vector.broadcast %144 : vector<1x8xf32> to vector<192x8xf32>
    %146 = arith.mulf %142, %145 : vector<192x8xf32>
    %147 = arith.addf %141, %146 : vector<192x8xf32>
    %c190_i32_38 = arith.constant 190 : i32
    %148 = tpu.dynamic_rotate %136 by %c190_i32_38 dim 0 : vector<192x8xf32>, i32 -> vector<192x8xf32>
    %149 = vector.extract_strided_slice %0 {offsets = [8, 0, 0], sizes = [1, 1, 8], strides = [1, 1, 1]} : vector<9x1x8xf32> to vector<1x1x8xf32>
    %150 = vector.shape_cast %149 : vector<1x1x8xf32> to vector<1x8xf32>
    %151 = vector.broadcast %150 : vector<1x8xf32> to vector<192x8xf32>
    %152 = arith.mulf %148, %151 : vector<192x8xf32>
    %153 = arith.addf %147, %152 : vector<192x8xf32>
    %c8_i32 = arith.constant 8 : i32
    %154 = arith.addi %5, %c8_i32 : i32
    %c1_i32_39 = arith.constant 1 : i32
    %155 = arith.addi %154, %c1_i32_39 : i32
    %c0_40 = arith.constant 0 : index
    %156 = arith.index_cast %155 : i32 to index
    %c1_41 = arith.constant 1 : index
    %c0_42 = arith.constant 0 : index
    %157 = vector.load %arg2[%c0_40, %156, %c1_41, %c0_42] : memref<1x18x24x4xf32, #tpu.memory_space<vmem>>, vector<1x8x16x4xf32>
    %158 = vector.shape_cast %157 : vector<1x8x16x4xf32> to vector<8x16x4xf32>
    %159 = vector.broadcast %1 : vector<1x8xf32> to vector<192x8xf32>
    %160 = arith.addf %153, %159 : vector<192x8xf32>
    %cst_43 = arith.constant 0.000000e+00 : f32
    %cst_44 = arith.constant 6.000000e+00 : f32
    %161 = vector.broadcast %cst_43 : f32 to vector<192x8xf32>
    %162 = arith.maximumf %161, %160 : vector<192x8xf32>
    %163 = vector.broadcast %cst_44 : f32 to vector<192x8xf32>
    %164 = arith.minimumf %163, %162 : vector<192x8xf32>
    %cst_45 = arith.constant dense<0.000000e+00> : vector<192x4xf32>
    %165 = tpu.matmul %164, %2, %cst_45 {dimension_numbers = #tpu.dot_dimension_numbers<[1], [0], [0], [1], [0, 0, 1, 1], [], []>} : vector<192x8xf32>, vector<8x4xf32>, vector<192x4xf32> -> vector<192x4xf32>
    %166 = vector.broadcast %3 : vector<1x4xf32> to vector<192x4xf32>
    %167 = arith.addf %165, %166 : vector<192x4xf32>
    %168 = vector.shape_cast %167 : vector<192x4xf32> to vector<8x24x4xf32>
    %169 = vector.extract_strided_slice %168 {offsets = [0, 0, 0], sizes = [8, 16, 4], strides = [1, 1, 1]} : vector<8x24x4xf32> to vector<8x16x4xf32>
    %170 = arith.addf %169, %158 : vector<8x16x4xf32>
    %c0_46 = arith.constant 0 : index
    %c8 = arith.constant 8 : index
    %c0_47 = arith.constant 0 : index
    %c0_48 = arith.constant 0 : index
    %171 = vector.load %arg10[%c0_46, %c8, %c0_47, %c0_48] : memref<1x16x16x4xf32, #tpu.memory_space<vmem>>, vector<1x8x16x4xf32>
    %172 = vector.shape_cast %171 : vector<1x8x16x4xf32> to vector<8x16x4xf32>
    %173 = vector.shape_cast %170 : vector<8x16x4xf32> to vector<1x8x16x4xf32>
    tpu.vector_store %arg10[%c0_46, %c8, %c0_47, %c0_48], %173 {strides = array<i32>} : memref<1x16x16x4xf32, #tpu.memory_space<vmem>>, vector<1x8x16x4xf32>,
    return
  }
  func.func @transform_0(%arg0: i32, %arg1: i32) -> (i32, i32, i32, i32) {
    %c0_i32 = arith.constant 0 : i32
    %c0_i32_0 = arith.constant 0 : i32
    %c0_i32_1 = arith.constant 0 : i32
    %c0_i32_2 = arith.constant 0 : i32
    return %arg0, %c0_i32, %c0_i32_0, %c0_i32_1 : i32, i32, i32, i32
  }
  func.func @transform_1(%arg0: i32, %arg1: i32) -> (i32, i32) {
    %c0_i32 = arith.constant 0 : i32
    %c0_i32_0 = arith.constant 0 : i32
    %c0_i32_1 = arith.constant 0 : i32
    return %c0_i32, %c0_i32_0 : i32, i32
  }
  func.func @transform_2(%arg0: i32, %arg1: i32) -> (i32, i32) {
    %c0_i32 = arith.constant 0 : i32
    %c0_i32_0 = arith.constant 0 : i32
    %c0_i32_1 = arith.constant 0 : i32
    return %c0_i32, %c0_i32_0 : i32, i32
  }
  func.func @transform_3(%arg0: i32, %arg1: i32) -> (i32, i32) {
    %c0_i32 = arith.constant 0 : i32
    %c0_i32_0 = arith.constant 0 : i32
    %c0_i32_1 = arith.constant 0 : i32
    return %c0_i32, %c0_i32_0 : i32, i32
  }
  func.func @transform_4(%arg0: i32, %arg1: i32) -> (i32, i32, i32) {
    %c0_i32 = arith.constant 0 : i32
    %c0_i32_0 = arith.constant 0 : i32
    %c0_i32_1 = arith.constant 0 : i32
    %c0_i32_2 = arith.constant 0 : i32
    return %c0_i32, %c0_i32_0, %c0_i32_1 : i32, i32, i32
  }
  func.func @transform_5(%arg0: i32, %arg1: i32) -> (i32, i32) {
    %c0_i32 = arith.constant 0 : i32
    %c0_i32_0 = arith.constant 0 : i32
    %c0_i32_1 = arith.constant 0 : i32
    return %c0_i32, %c0_i32_0 : i32, i32
  }
  func.func @transform_6(%arg0: i32, %arg1: i32) -> (i32, i32) {
    %c0_i32 = arith.constant 0 : i32
    %c0_i32_0 = arith.constant 0 : i32
    %c0_i32_1 = arith.constant 0 : i32
    return %c0_i32, %c0_i32_0 : i32, i32
  }
  func.func @transform_7(%arg0: i32, %arg1: i32) -> (i32, i32) {
    %c0_i32 = arith.constant 0 : i32
    %c0_i32_0 = arith.constant 0 : i32
    %c0_i32_1 = arith.constant 0 : i32
    return %c0_i32, %c0_i32_0 : i32, i32
  }
  func.func @transform_8(%arg0: i32, %arg1: i32) -> (i32, i32, i32, i32) {
    %c0_i32 = arith.constant 0 : i32
    %c0_i32_0 = arith.constant 0 : i32
    %c0_i32_1 = arith.constant 0 : i32
    return %arg0, %arg1, %c0_i32, %c0_i32_0 : i32, i32, i32, i32
  }
}

</mosaic_0001>

<bundles_post_ra>
// kernel: tpu_custom_call.1
= control target key start
LH: loop header
LB: loop body
LE: loop exit
PB: predicated region body
PF: predicated region fallthrough
CT: control target
= control target key end

     0   :  { %13 = vsyncpa [#allocation3], 0  ;;  %s7290_s0 = inlined_call_operand.vmem [shape: f32[2,18,24,4], index: 0, kind: input, shape index: {}]   ;;  %s7291_s1 = inlined_call_operand.vmem [shape: f32[432,1], index: 1, kind: input, shape index: {}]   ;;  %s7292_s2 = inlined_call_operand.vmem [shape: f32[4,8], index: 2, kind: input, shape index: {}]   ;;  %s7293_s3 = inlined_call_operand.vmem [shape: f32[1,8], index: 3, kind: input, shape index: {}]   ;;  %s7294_s4 = inlined_call_operand.vmem [shape: f32[9,1,8], index: 4, kind: input, shape index: {}]   ;;  %s7295_s5 = inlined_call_operand.vmem [shape: f32[1,8], index: 5, kind: input, shape index: {}]   ;;  %s7296_s6 = inlined_call_operand.vmem [shape: f32[8,4], index: 6, kind: input, shape index: {}]   ;;  %s7297_s7 = inlined_call_operand.vmem [shape: f32[1,4], index: 7, kind: input, shape index: {}]   ;;  %s7298_s8 = inlined_call_operand.hbm [shape: f32[2,16,64], index: 8, kind: output, shape index: {}]  }
   0x1   :  { %15 = vsyncpa [#allocation3 + $0x1], 0  ;;  %s4003_s27 = smov 0   ;;  %s4005_s28 = smov 0  }
   0x2   :  { %s4007_s29 = smov 0   ;;  %s4009_s30 = smov 0  }
   0x3   :  { %s4011_s9 = smov 0   ;;  %s4013_s10 = smov 0  }
   0x4 LB: > { %s3592_s11 = sadd.s32 4294967295, %s3937_s10   ;;  %s3593_s12 = sadd.s32 4294967294, %s3937_s10   ;;  %s3937_s10 = sphi %s4013_s10, %s21_s10   ;;  %s3933_s9 = sphi %s4011_s9, %s7652_s9   ;;  %s3929_s30 = sphi %s4009_s30, %s7651_s30   ;;  %s3925_s29 = sphi %s4007_s29, %s7650_s29   ;;  %s3921_s28 = sphi %s4005_s28, %s7649_s28   ;;  %s3917_s27 = sphi %s4003_s27, %s7648_s27  }
   0x5   : > { %s33_s13 = sadd.s32 1, %s3933_s9  ;;  %s215_s14 = sadd.s32 1, %s3925_s29 }
   0x6   : > { %p35_p0 = scmp.ge.s32.totalorder %s33_s13, 2  ;;  %p225_p1 = scmp.ne.s32.totalorder %s3925_s29, %s3921_s28 }
   0x7   : > { %p226_p2 = scmp.eq.s32.totalorder %s3592_s11, 1  ;;  %p231_p3 = scmp.ne.s32.totalorder %s3921_s28, %s3917_s27 }
   0x8   : > { %s7654_s13 = smov (%p35_p0, %s33_s13), 0  ;;  %p232_p5 = scmp.eq.s32.totalorder %s3593_s12, 1 }
   0x9   : > { %p4043_p4 = por %p226_p2, %p225_p1  ;;  %s210_s16 = ssub.s32 %s3933_s9, %s7654_s13 }
   0xa   : > { %p3596_p6 = scmp.ge.s32.totalorder %s3937_s10, 1  ;;  %p213_p7 = scmp.eq.s32.totalorder %s210_s16, 0 }
   0xb   : > { %p4050_p8 = por %p232_p5, %p231_p3  ;;  %p279_p9 = scmp.lt.s32.totalorder %s3937_s10, 3 }
   0xc   : > { %s4056_s18 = scalar_select %p213_p7, %s3925_s29, %s215_s14  }
   0xd   : > { %p280_p10 = pnand %p3596_p6, %p279_p9 }
   0xf   : > { %283 = sbr.rel (%p280_p10) target bundleno = 915 (0x393), region = 52 }
  0x14   : > { %v443_v0 = vld [vmem:[%s7292_s2] sm:$0xf]  ;;  %vm611_vm0 = vcmask 1043456   ;;  %p313_p11 = scmp.lt.s32.totalorder %s3929_s30, 1  ;;  %v3939_v3 = vmov 0   ;;  %vm448_vm1 = vcmask 31744  }
  0x15   : > { %3599 = vmatpush.msk.msra.mxu0 %vm611_vm0, %v443_v0  ;;  %3741 = vmatpush.msk.msra.mxu3 %vm611_vm0, %v443_v0  ;;  %v413_v1 = vld [vmem:[%s7291_s1 + $0xc0] sm:$0xff]  ;;  %v414_v6 = vld [vmem:[%s7291_s1 + $0xc8] sm:$0xff]  ;;  %v416_v9 = vld [vmem:[%s7291_s1 + $0xd8] sm:$0xff]  ;;  %vm1910_vm4 = vcmask 64512   ;;  %vm2081_vm5 = vcmask 1047556   ;;  %s3942_s16 = smov 28  }
  0x16   : > { %v389_v2 = vld [vmem:[%s7291_s1] sm:$0xff]  ;;  %s314_s25 = scalar_select %p313_p11, %s3929_s30, 1  ;;  %3818 = vset.pattern.permute.xlu1 %v3939_v3  ;;  %3817 = vset.pattern.permute.xlu0 %v3939_v3  ;;  %v390_v7 = vld [vmem:[%s7291_s1 + $0x8] sm:$0xff]  ;;  %v415_v12 = vld [vmem:[%s7291_s1 + $0xd0] sm:$0xff]  ;;  %vm2367_vm6 = vcmask 97280   ;;  %vm2369_vm7 = vcmask 130048  }
  0x17   : > { %1024 = vperm.xlu0 %3817, %v413_v1   ;;  %904 = vperm.xlu1 %3818, %v389_v2   ;;  %v392_v13 = vld [vmem:[%s7291_s1 + $0x18] sm:$0xff]  ;;  %v417_v14 = vld [vmem:[%s7291_s1 + $0xe0] sm:$0xff]  ;;  %v419_v17 = vld [vmem:[%s7291_s1 + $0xf0] sm:$0xff]  ;;  %s3943_s19 = smov 20   ;;  %s3944_s20 = smov 12   ;;  %vm2371_vm8 = vcmask 162816  }
  0x18   : > { %s3742_s26 = smul.u32 432, %s314_s25  ;;  %3740 = vmatpush.msk.msra.mxu1 %vm611_vm0, %v443_v0  ;;  %3819 = vset.pattern.permute.xlu2 %v3939_v3  ;;  %v393_v18 = vld [vmem:[%s7291_s1 + $0x20] sm:$0xff]  ;;  %v418_v21 = vld [vmem:[%s7291_s1 + $0xe8] sm:$0xff]  ;;  %v420_v22 = vld [vmem:[%s7291_s1 + $0xf8] sm:$0xff]  ;;  %s3945_s21 = smov 4   ;;  %vm2373_vm9 = vcmask 195584  }
  0x19   : > { %1039 = vperm.xlu2 %3819, %v416_v9   ;;  %v391_v23 = vld [vmem:[%s7291_s1 + $0x10] sm:$0xff]  ;;  %v394_v26 = vld [vmem:[%s7291_s1 + $0x28] sm:$0xff]  ;;  %v421_v30 = vld [vmem:[%s7291_s1 + $0x100] sm:$0xff]  ;;  %s3946_s24 = smov 24   ;;  %s3947_s25 = smov 8   ;;  %vm2375_vm10 = vcmask 228352  }
  0x1a   : > { %s4072_s14 = scalar_lea.vmem %s7290_s0, %s3742_s26  ;;  %v395_v27 = vld [vmem:[%s7291_s1 + $0x30] sm:$0xff]  ;;  %v422_v31 = vld [vmem:[%s7291_s1 + $0x108] sm:$0xff]  ;;  %v396_v38 = vld [vmem:[%s7291_s1 + $0x38] sm:$0xff]  ;;  %s7388_s23 = smov 16   ;;  %vm2377_vm11 = vcmask 261120   ;;  %vm2379_vm12 = vcmask 293888  }
  0x1b   : > { %v334_v4 = vld [vmem:[%s4072_s14] sm:$0xff]  ;;  %v360_v8 = vld [vmem:[%s4072_s14 + $0xd0] sm:$0xff]  ;;  %v335_v10 = vld [vmem:[%s4072_s14 + $0x8] sm:$0xff]  ;;  %s7386_s26 = smov 56   ;;  %s7387_s11 = smov 44   ;;  %vm2381_vm13 = vcmask 326656  }
  0x1c   : > { %v362_v5 = vld [vmem:[%s4072_s14 + $0xe0] sm:$0xff]  ;;  %3600 = vmatmul.msk.f32.vlgmr.msra.gmra.mxu0 %vm448_vm1, %v334_v4  ;;  %3626 = vmatmul.msk.f32.vlgmr.msra.gmra.mxu1 %vm448_vm1, %v360_v8  ;;  %v363_v11 = vld [vmem:[%s4072_s14 + $0xe8] sm:$0xff]  ;;  %v336_v15 = vld [vmem:[%s4072_s14 + $0x10] sm:$0xff]  ;;  %s3954_s12 = smov 40   ;;  %s3955_s22 = smov 48   ;;  %vm2383_vm14 = vcmask 359424  }
  0x1d   : > { %3628 = vmatmul.msk.f32.vlgmr.msra.gmra.mxu3 %vm448_vm1, %v362_v5  ;;  %v364_v16 = vld [vmem:[%s4072_s14 + $0xf0] sm:$0xff]  ;;  %v337_v19 = vld [vmem:[%s4072_s14 + $0x18] sm:$0xff]  ;;  %v338_v24 = vld [vmem:[%s4072_s14 + $0x20] sm:$0xff]  ;;  %vm2385_vm15 = vcmask 392192   ;;  %vm2387_vm0 = vcmask 424960  }
  0x1e   : > { %v365_v20 = vld [vmem:[%s4072_s14 + $0xf8] sm:$0xff]  ;;  %v366_v25 = vld [vmem:[%s4072_s14 + $0x100] sm:$0xff]  ;;  %v339_v28 = vld [vmem:[%s4072_s14 + $0x28] sm:$0xff] }
  0x1f   : > { %1029 = vperm.xlu0 %3817, %v414_v6   ;;  %909 = vperm.xlu1 %3818, %v390_v7   ;;  %v367_v29 = vld [vmem:[%s4072_s14 + $0x108] sm:$0xff]  ;;  %v340_v32 = vld [vmem:[%s4072_s14 + $0x30] sm:$0xff]  ;;  %v341_v36 = vld [vmem:[%s4072_s14 + $0x38] sm:$0xff] }
  0x20   : > { %v368_v33 = vld [vmem:[%s4072_s14 + $0x110] sm:$0xff]  ;;  %v398_v34 = vld [vmem:[%s7291_s1 + $0x48] sm:$0xff]  ;;  %v369_v37 = vld [vmem:[%s4072_s14 + $0x118] sm:$0xff] }
  0x21   : > { %1044 = vperm.xlu2 %3819, %v417_v14   ;;  %v399_v35 = vld [vmem:[%s7291_s1 + $0x50] sm:$0xff]  ;;  %v424_v39 = vld [vmem:[%s7291_s1 + $0x118] sm:$0xff]  ;;  %v425_v40 = vld [vmem:[%s7291_s1 + $0x120] sm:$0xff] }
  0x22   : > { %v342_v41 = vld [vmem:[%s4072_s14 + $0x40] sm:$0xff]  ;;  %v402_v45 = vld [vmem:[%s7291_s1 + $0x68] sm:$0xff]  ;;  %v423_v48 = vld [vmem:[%s7291_s1 + $0x110] sm:$0xff] }
  0x23   : > { %v370_v42 = vld [vmem:[%s4072_s14 + $0x120] sm:$0xff]  ;;  %v343_v46 = vld [vmem:[%s4072_s14 + $0x48] sm:$0xff]  ;;  %v427_v49 = vld [vmem:[%s7291_s1 + $0x130] sm:$0xff] }
  0x24   : > { %3601 = vmatmul.msk.f32.gmra.mxu0 %vm448_vm1, %v335_v10  ;;  %v397_v43 = vld [vmem:[%s7291_s1 + $0x40] sm:$0xff]  ;;  %v371_v47 = vld [vmem:[%s4072_s14 + $0x128] sm:$0xff]  ;;  %v428_v50 = vld [vmem:[%s7291_s1 + $0x138] sm:$0xff] }
  0x25   : > { %3629 = vmatmul.msk.f32.gmra.mxu3 %vm448_vm1, %v363_v11  ;;  %v401_v44 = vld [vmem:[%s7291_s1 + $0x60] sm:$0xff]  ;;  %v344_v51 = vld [vmem:[%s4072_s14 + $0x50] sm:$0xff]  ;;  %v400_v53 = vld [vmem:[%s7291_s1 + $0x58] sm:$0xff] }
  0x26   : > { %v372_v52 = vld [vmem:[%s4072_s14 + $0x130] sm:$0xff]  ;;  %v404_v54 = vld [vmem:[%s7291_s1 + $0x78] sm:$0xff]  ;;  %v405_v55 = vld [vmem:[%s7291_s1 + $0x80] sm:$0xff] }
  0x27   : > { %1034 = vperm.xlu0 %3817, %v415_v12   ;;  %919 = vperm.xlu1 %3818, %v392_v13   ;;  %v345_v56 = vld [vmem:[%s4072_s14 + $0x58] sm:$0xff]  ;;  %v426_v58 = vld [vmem:[%s7291_s1 + $0x128] sm:$0xff]  ;;  %v431_v60 = vld [vmem:[%s7291_s1 + $0x150] sm:$0xff] }
  0x28   : > { %v373_v57 = vld [vmem:[%s4072_s14 + $0x138] sm:$0xff]  ;;  %v430_v59 = vld [vmem:[%s7291_s1 + $0x148] sm:$0xff]  ;;  %v346_v61 = vld [vmem:[%s4072_s14 + $0x60] sm:$0xff] }
  0x29   : > { %924 = vperm.xlu2 %3819, %v393_v18   ;;  %v374_v62 = vld [vmem:[%s4072_s14 + $0x140] sm:$0xff]  ;;  %v403_v63 = vld [vmem:[%s7291_s1 + $0x70] sm:$0xff]  ;;  %v408_v1 = vld [vmem:[%s7291_s1 + $0x98] sm:$0xff] }
  0x2a   : > { %v407_v0 = vld [vmem:[%s7291_s1 + $0x90] sm:$0xff]  ;;  %v347_v2 = vld [vmem:[%s4072_s14 + $0x68] sm:$0xff]  ;;  %v361_v4 = vld [vmem:[%s4072_s14 + $0xd8] sm:$0xff] }
  0x2b   : > { %v375_v3 = vld [vmem:[%s4072_s14 + $0x148] sm:$0xff]  ;;  %3627 = vmatmul.msk.f32.gmra.mxu1 %vm448_vm1, %v361_v4  ;;  %v429_v5 = vld [vmem:[%s7291_s1 + $0x140] sm:$0xff]  ;;  %v348_v7 = vld [vmem:[%s4072_s14 + $0x70] sm:$0xff] }
  0x2c   : > { %3602 = vmatmul.msk.f32.gmra.mxu0 %vm448_vm1, %v336_v15  ;;  %v433_v6 = vld [vmem:[%s7291_s1 + $0x160] sm:$0xff]  ;;  %v376_v8 = vld [vmem:[%s4072_s14 + $0x150] sm:$0xff]  ;;  %v434_v10 = vld [vmem:[%s7291_s1 + $0x168] sm:$0xff] }
  0x2d   : > { %3630 = vmatmul.msk.f32.gmra.mxu3 %vm448_vm1, %v364_v16  ;;  %v406_v11 = vld [vmem:[%s7291_s1 + $0x88] sm:$0xff]  ;;  %v349_v13 = vld [vmem:[%s4072_s14 + $0x78] sm:$0xff]  ;;  %v411_v16 = vld [vmem:[%s7291_s1 + $0xb0] sm:$0xff] }
  0x2e   : > { %v410_v12 = vld [vmem:[%s7291_s1 + $0xa8] sm:$0xff]  ;;  %v377_v14 = vld [vmem:[%s4072_s14 + $0x158] sm:$0xff] }
  0x2f   : > { %1054 = vperm.xlu0 %3817, %v419_v17   ;;  %1059 = vperm.xlu1 %3818, %v420_v22   ;;  %v432_v17 = vld [vmem:[%s7291_s1 + $0x158] sm:$0xff] }
  0x30   : > { %v436_v18 = vld [vmem:[%s7291_s1 + $0x178] sm:$0xff] }
  0x31   : > { %914 = vperm.xlu2 %3819, %v391_v23   ;;  %v437_v23 = vld [vmem:[%s7291_s1 + $0x180] sm:$0xff] }
  0x34   : > { %3603 = vmatmul.msk.f32.gmra.mxu0 %vm448_vm1, %v337_v19 }
  0x35   : > { %3631 = vmatmul.msk.f32.gmra.mxu3 %vm448_vm1, %v365_v20  ;;  %v350_v20 = vld [vmem:[%s4072_s14 + $0x80] sm:$0xff] }
  0x37   : > { %1049 = vperm.xlu0 %3817, %v418_v21   ;;  %934 = vperm.xlu1 %3818, %v395_v27   ;;  %v378_v21 = vld [vmem:[%s4072_s14 + $0x160] sm:$0xff] }
  0x39   : > { %939 = vperm.xlu2 %3819, %v396_v38  }
  0x3c   : > { %3604 = vmatmul.msk.f32.gmra.mxu0 %vm448_vm1, %v338_v24 }
  0x3d   : > { %3632 = vmatmul.msk.f32.gmra.mxu3 %vm448_vm1, %v366_v25 }
  0x3f   : > { %929 = vperm.xlu0 %3817, %v394_v26   ;;  %1064 = vperm.xlu1 %3818, %v421_v30   ;;  %v4293_v26 = vld [vmem:[%s7293_s3] ss:$0 sm:$0xff]  ;;  %v438_v30 = vld [vmem:[%s7291_s1 + $0x188] sm:$0xff] }
  0x41   : > { %944 = vperm.xlu2 %3819, %v397_v43  }
  0x44   : > { %3605 = vmatmul.msk.f32.gmra.mxu0 %vm448_vm1, %v339_v28 }
  0x45   : > { %3633 = vmatmul.msk.f32.gmra.mxu3 %vm448_vm1, %v367_v29  ;;  %v409_v29 = vld [vmem:[%s7291_s1 + $0xa0] sm:$0xff] }
  0x47   : > { %1069 = vperm.xlu0 %3817, %v422_v31   ;;  %949 = vperm.xlu1 %3818, %v398_v34  }
  0x49   : > { %1074 = vperm.xlu2 %3819, %v423_v48   ;;  %v352_v48 = vld [vmem:[%s4072_s14 + $0x90] sm:$0xff] }
  0x4c   : > { %3606 = vmatmul.msk.f32.gmra.mxu0 %vm448_vm1, %v340_v32  ;;  %v351_v32 = vld [vmem:[%s4072_s14 + $0x88] sm:$0xff] }
  0x4d   : > { %3634 = vmatmul.msk.f32.gmra.mxu3 %vm448_vm1, %v368_v33  ;;  %v379_v33 = vld [vmem:[%s4072_s14 + $0x168] sm:$0xff] }
  0x4f   : > { %954 = vperm.xlu0 %3817, %v399_v35   ;;  %1079 = vperm.xlu1 %3818, %v424_v39   ;;  %v440_v35 = vld [vmem:[%s7291_s1 + $0x198] sm:$0xff] }
  0x51   : > { %959 = vperm.xlu2 %3819, %v400_v53  }
  0x54   : > { %3607 = vmatmul.msk.f32.gmra.mxu0 %vm448_vm1, %v341_v36 }
  0x55   : > { %3635 = vmatmul.msk.f32.gmra.mxu3 %vm448_vm1, %v369_v37 }
  0x57   : > { %1084 = vperm.xlu0 %3817, %v425_v40   ;;  %964 = vperm.xlu1 %3818, %v401_v44   ;;  %v435_v44 = vld [vmem:[%s7291_s1 + $0x170] sm:$0xff] }
  0x59   : > { %1089 = vperm.xlu2 %3819, %v426_v58  }
  0x5c   : > { %3608 = vmatmul.msk.f32.gmra.mxu0 %vm448_vm1, %v342_v41 }
  0x5d   : > { %3636 = vmatmul.msk.f32.gmra.mxu3 %vm448_vm1, %v370_v42 }
  0x5f   : > { %969 = vperm.xlu0 %3817, %v402_v45   ;;  %1094 = vperm.xlu1 %3818, %v427_v49   ;;  %v441_v45 = vld [vmem:[%s7291_s1 + $0x1a0] sm:$0xff]  ;;  %v380_v49 = vld [vmem:[%s4072_s14 + $0x170] sm:$0xff] }
  0x61   : > { %974 = vperm.xlu2 %3819, %v403_v63  }
  0x64   : > { %3609 = vmatmul.msk.f32.gmra.mxu0 %vm448_vm1, %v343_v46 }
  0x65   : > { %3637 = vmatmul.msk.f32.gmra.mxu3 %vm448_vm1, %v371_v47 }
  0x67   : > { %1099 = vperm.xlu0 %3817, %v428_v50   ;;  %979 = vperm.xlu1 %3818, %v404_v54   ;;  %v1301_v50 = vlaneseq }
  0x69   : > { %1104 = vperm.xlu2 %3819, %v429_v5   ;;  %v4327_v54 = vshrl.u32 %v1301_v50, 7 }
  0x6b   : > { %vm1303_vm2 = vcmp.lt.s32.totalorder %v4327_v54, 7  ;;  %vm1403_vm3 = vcmp.lt.s32.totalorder %v4327_v54, 6 }
  0x6c   : > { %3610 = vmatmul.msk.f32.gmra.mxu0 %vm448_vm1, %v344_v51 }
  0x6d   : > { %3638 = vmatmul.msk.f32.gmra.mxu3 %vm448_vm1, %v372_v52 }
  0x6f   : > { %984 = vperm.xlu0 %3817, %v405_v55   ;;  %1109 = vperm.xlu1 %3818, %v430_v59   ;;  %v4334_v59 = vld [vmem:[%s7294_s4] ss:$0 sm:$0xff] }
  0x71   : > { %989 = vperm.xlu2 %3819, %v406_v11  }
  0x73   : > { %v4284_v24 = vpop.permute.xlu2 %1039 }
  0x74   : > { %3611 = vmatmul.msk.f32.gmra.mxu0 %vm448_vm1, %v345_v56  ;;  %7393 = vst [vmem:[#allocation7_spill] sm:$0xff] %v4284_v24 }
  0x75   : > { %3639 = vmatmul.msk.f32.gmra.mxu3 %vm448_vm1, %v373_v57 }
  0x77   : > { %1114 = vperm.xlu0 %3817, %v431_v60   ;;  %994 = vperm.xlu1 %3818, %v407_v0  }
  0x79   : > { %1119 = vperm.xlu2 %3819, %v432_v17  }
  0x7b   : > { %v1045_v38 = vpop.permute.xlu2 %1044 }
  0x7c   : > { %3612 = vmatmul.msk.f32.gmra.mxu0 %vm448_vm1, %v346_v61 }
  0x7d   : > { %3640 = vmatmul.msk.f32.gmra.mxu3 %vm448_vm1, %v374_v62  ;;  %v412_v62 = vld [vmem:[%s7291_s1 + $0xb8] sm:$0xff] }
  0x7f   : > { %999 = vperm.xlu0 %3817, %v408_v1   ;;  %1124 = vperm.xlu1 %3818, %v433_v6  }
  0x81   : > { %1004 = vperm.xlu2 %3819, %v409_v29  }
  0x84   : > { %3613 = vmatmul.msk.f32.gmra.mxu0 %vm448_vm1, %v347_v2  ;;  %v353_v2 = vld [vmem:[%s4072_s14 + $0x98] sm:$0xff] }
  0x85   : > { %3641 = vmatmul.msk.f32.gmra.mxu3 %vm448_vm1, %v375_v3  ;;  %v381_v3 = vld [vmem:[%s4072_s14 + $0x178] sm:$0xff] }
  0x87   : > { %1129 = vperm.xlu0 %3817, %v434_v10   ;;  %1009 = vperm.xlu1 %3818, %v410_v12  }
  0x89   : > { %v4247_v9 = vpop.permute.xlu0 %1024  ;;  %v4288_v25 = vpop.permute.xlu1 %904  ;;  %1134 = vperm.xlu2 %3819, %v435_v44  }
  0x8a   : > { %7391 = vst [vmem:[#allocation5_spill] sm:$0xff] %v4247_v9 }
  0x8c   : > { %3614 = vmatmul.msk.f32.gmra.mxu0 %vm448_vm1, %v348_v7  ;;  %v4357_v7 = vld [vmem:[%s7294_s4 + $0x1] ss:$0 sm:$0xff] }
  0x8d   : > { %3642 = vmatmul.msk.f32.gmra.mxu3 %vm448_vm1, %v376_v8 }
  0x8f   : > { %1014 = vperm.xlu0 %3817, %v411_v16   ;;  %1139 = vperm.xlu1 %3818, %v436_v18  }
  0x91   : > { %v4262_v15 = vpop.permute.xlu0 %1029  ;;  %v4311_v41 = vpop.permute.xlu1 %909  ;;  %1019 = vperm.xlu2 %3819, %v412_v62  }
  0x92   : > { %7392 = vst [vmem:[#allocation6_spill] sm:$0xff] %v4262_v15 }
  0x94   : > { %3615 = vmatmul.msk.f32.gmra.mxu0 %vm448_vm1, %v349_v13 }
  0x95   : > { %3643 = vmatmul.msk.f32.gmra.mxu3 %vm448_vm1, %v377_v14  ;;  %v4378_v14 = vld [vmem:[%s7294_s4 + $0x2] ss:$0 sm:$0xff] }
  0x97   : > { %1144 = vperm.xlu0 %3817, %v437_v23   ;;  %1149 = vperm.xlu1 %3818, %v438_v30  }
  0x99   : > { %v4275_v19 = vpop.f32.mrf.mxu0  ;;  %v4279_v22 = vpop.permute.xlu0 %1034 }
  0x9a   : > { %v710_v39 = vpop.f32.mrf.mxu1  ;;  %v920_v57 = vpop.permute.xlu1 %919 }
  0x9b   : > { %v711_v43 = vadd.f32 %v4293_v26, %v710_v39 }
  0x9c   : > { %3616 = vmatmul.msk.f32.gmra.mxu0 %vm448_vm1, %v350_v20 }
  0x9d   : > { %3644 = vmatmul.msk.f32.gmra.mxu3 %vm448_vm1, %v378_v21  ;;  %v820_v52 = vmax.f32 %v711_v43, 0.0  ;;  %v633_v21 = vadd.f32 %v4293_v26, %v4275_v19 }
  0x9f   : > { %1159 = vperm.xlu0 %3817, %v440_v35   ;;  %1164 = vperm.xlu1 %3818, %v441_v45   ;;  %v874_v61 = vmin.f32 %v820_v52, 6.0  ;;  %v925_v52 = vpop.permute.xlu2 %924 }
  0xa0   : > { %v716_v27 = vpop.f32.mrf.mxu3 }
  0xa1   : > { %v717_v28 = vadd.f32 %v4293_v26, %v716_v27  ;;  %v635_v31 = vpop.f32.mrf.mxu0  ;;  %v1055_v37 = vpop.permute.xlu0 %1054  ;;  %v4385_v20 = vmul.f32 %v4279_v22, %v874_v61 }
  0xa2   : > { %v636_v10 = vadd.f32 %v4293_v26, %v635_v31  ;;  %v1060_v31 = vpop.permute.xlu1 %1059 }
  0xa3   : > { %v822_v34 = vmax.f32 %v717_v28, 0.0  ;;  %7399 = vst [vmem:[#allocation13_spill] sm:$0xff] %v4385_v20  ;;  %v4397_v22 = vrot.slane %v4385_v20, 1 }
  0xa4   : > { %3617 = vmatmul.msk.f32.gmra.mxu0 %vm448_vm1, %v351_v32  ;;  %v795_v28 = vmax.f32 %v636_v10, 0.0 }
  0xa5   : > { %v876_v36 = vmin.f32 %v822_v34, 6.0  ;;  %3645 = vmatmul.msk.f32.gmra.mxu3 %vm448_vm1, %v379_v33  ;;  %v439_v33 = vld [vmem:[%s7291_s1 + $0x190] sm:$0xff]  ;;  %7401 = vst [vmem:[#allocation15_spill] sm:$0xff] %v4397_v22 }
  0xa6   : > { %1154 = vperm.xlu2 %3819, %v439_v33   ;;  %v849_v43 = vmin.f32 %v795_v28, 6.0 }
  0xa7   : > { %v4309_v40 = vmul.f32 %v1045_v38, %v876_v36  ;;  %v354_v36 = vld [vmem:[%s4072_s14 + $0xa0] sm:$0xff] }
  0xa8   : > { %v719_v42 = vpop.f32.mrf.mxu3  ;;  %v382_v38 = vld [vmem:[%s4072_s14 + $0x180] sm:$0xff] }
  0xa9   : > { %7394 = vst [vmem:[#allocation8_spill] sm:$0xff] %v4309_v40  ;;  %v720_v46 = vadd.f32 %v4293_v26, %v719_v42  ;;  %v4321_v47 = vpop.f32.mrf.mxu0  ;;  %v1050_v55 = vpop.permute.xlu0 %1049  ;;  %v7302_v63 = vrot.slane %v4309_v40, 1  ;;  %v7299_v0 = vrot.slane %v4309_v40, 2  ;;  %v2399_v6 = vmul.f32 %v4334_v59, %v4309_v40 }
  0xaa   : > { %v794_v42 = vmax.f32 %v633_v21, 0.0 }
  0xab   : > { %v823_v51 = vmax.f32 %v720_v46, 0.0 }
  0xac   : > { %3618 = vmatmul.msk.f32.gmra.mxu0 %vm448_vm1, %v352_v48 }
  0xad   : > { %3646 = vmatmul.msk.f32.gmra.mxu3 %vm448_vm1, %v380_v49  ;;  %v877_v53 = vmin.f32 %v823_v51, 6.0  ;;  %v848_v51 = vmin.f32 %v794_v42, 6.0 }
  0xaf   : > { %v4329_v58 = vmul.f32 %v1050_v55, %v877_v53  ;;  %v4432_v55 = vmul.f32 %v4311_v41, %v849_v43  ;;  %v442_v41 = vld [vmem:[%s7291_s1 + $0x1a8] sm:$0xff]  ;;  %v4454_v10 = vmul.f32 %v4288_v25, %v848_v51  ;;  %v4472_v25 = vld [vmem:[%s7294_s4 + $0x3] ss:$0 sm:$0xff] }
  0xb0   : > { %v722_v56 = vpop.f32.mrf.mxu3  ;;  %1169 = vperm.xlu2 %3819, %v442_v41   ;;  %v329_v41 = vld [vmem:[%s7296_s6] sm:$0xff] }
  0xb1   : > { %v723_v60 = vadd.f32 %v4293_v26, %v722_v56  ;;  %v641_v1 = vpop.f32.mrf.mxu0  ;;  %v4345_v4 = vrot.slane %v4329_v58, 1  ;;  %v4348_v5 = vrot.slane %v4329_v58, 2  ;;  %7406 = vst [vmem:[#allocation20_spill] sm:$0xff] %v4454_v10  ;;  %1998 = vmatpush.msrb.mxu1 %v329_v41  ;;  %3107 = vmatpush.msra.mxu2 %v329_v41 }
  0xb2   : > { %v642_v11 = vadd.f32 %v4293_v26, %v641_v1 }
  0xb3   : > { %7395 = vst [vmem:[#allocation9_spill] sm:$0xff] %v4345_v4  ;;  %v824_v8 = vmax.f32 %v723_v60, 0.0  ;;  %v4366_v12 = vsel %vm1303_vm2, %v7302_v63, %v4345_v4  ;;  %v4373_v13 = vsel %vm1403_vm3, %v7299_v0, %v4348_v5 }
  0xb4   : > { %7396 = vst [vmem:[#allocation10_spill] sm:$0xff] %v4348_v5  ;;  %3619 = vmatmul.msk.f32.gmra.mxu0 %vm448_vm1, %v353_v2  ;;  %v2484_v17 = vmul.f32 %v4357_v7, %v4366_v12  ;;  %v797_v18 = vmax.f32 %v642_v11, 0.0  ;;  %v2569_v27 = vmul.f32 %v4378_v14, %v4373_v13 }
  0xb5   : > { %7397 = vst [vmem:[#allocation11_spill] sm:$0xff] %v4366_v12  ;;  %v878_v16 = vmin.f32 %v824_v8, 6.0  ;;  %3647 = vmatmul.msk.f32.gmra.mxu3 %vm448_vm1, %v381_v3  ;;  %v4451_v8 = vpop.permute.xlu1 %934 }
  0xb6   : > { %7398 = vst [vmem:[#allocation12_spill] sm:$0xff] %v4373_v13  ;;  %v2508_v23 = vadd.f32 %v2484_v17, %v2399_v6  ;;  %v851_v29 = vmin.f32 %v797_v18, 6.0  ;;  %v355_v6 = vld [vmem:[%s4072_s14 + $0xa8] sm:$0xff]  ;;  %v1278_v18 = vrot.slane %v4432_v55, 1 }
  0xb7   : > { %v4391_v32 = vmul.f32 %v1055_v37, %v878_v16  ;;  %v4405_v37 = vrot.slane %v4385_v20, 2  ;;  %v2400_v16 = vmul.f32 %v4334_v59, %v4329_v58 }
  0xb8   : > { %v725_v30 = vpop.f32.mrf.mxu3  ;;  %v4399_v34 = vmul.f32 %v920_v57, %v851_v29  ;;  %v2593_v39 = vadd.f32 %v2569_v27, %v2508_v23  ;;  %v639_v57 = vadd.f32 %v4293_v26, %v4321_v47  ;;  %v383_v47 = vld [vmem:[%s4072_s14 + $0x188] sm:$0xff]  ;;  %v7301_v29 = vrot.slane %v4454_v10, 1 }
  0xb9   : > { %7400 = vst [vmem:[#allocation14_spill] sm:$0xff] %v4391_v32  ;;  %v726_v19 = vadd.f32 %v4293_v26, %v725_v30  ;;  %v644_v35 = vpop.f32.mrf.mxu0  ;;  %v4414_v46 = vrot.slane %v4391_v32, 1  ;;  %v4437_v60 = vrot.slane %v4391_v32, 2 }
  0xba   : > { %7402 = vst [vmem:[#allocation16_spill] sm:$0xff] %v4405_v37  ;;  %v4408_v44 = vrot.slane %v4399_v34, 1  ;;  %v4411_v45 = vrot.slane %v4399_v34, 2  ;;  %v645_v50 = vadd.f32 %v4293_v26, %v644_v35  ;;  %v796_v21 = vmax.f32 %v639_v57, 0.0  ;;  %v384_v57 = vld [vmem:[%s4072_s14 + $0x190] sm:$0xff] }
  0xbb   : > { %7403 = vst [vmem:[#allocation17_spill] sm:$0xff] %v4414_v46  ;;  %v825_v49 = vmax.f32 %v726_v19, 0.0  ;;  %v4443_v61 = vsel %vm1303_vm2, %v4345_v4, %v4414_v46  ;;  %v4465_v23 = vsel %vm1403_vm3, %v4348_v5, %v4437_v60  ;;  %v1482_v41 = vmul.f32 %v4472_v25, %v4399_v34  ;;  %v359_v46 = vld [vmem:[%s4072_s14 + $0xc8] sm:$0xff] }
  0xbc   : > { %3620 = vmatmul.msk.f32.gmra.mxu0 %vm448_vm1, %v354_v36  ;;  %v4422_v48 = vsel %vm1303_vm2, %v4397_v22, %v4408_v44  ;;  %v4429_v53 = vsel %vm1403_vm3, %v4405_v37, %v4411_v45  ;;  %7404 = vst [vmem:[#allocation18_spill] sm:$0xff] %v4437_v60  ;;  %v798_v2 = vmax.f32 %v645_v50, 0.0  ;;  %v2485_v17 = vmul.f32 %v4357_v7, %v4443_v61  ;;  %v387_v37 = vld [vmem:[%s4072_s14 + $0x1a8] sm:$0xff] }
  0xbd   : > { %3648 = vmatmul.msk.f32.gmra.mxu3 %vm448_vm1, %v382_v38  ;;  %7405 = vst [vmem:[#allocation19_spill] sm:$0xff] %v4443_v61  ;;  %v879_v1 = vmin.f32 %v825_v49, 6.0  ;;  %v2570_v19 = vmul.f32 %v4378_v14, %v4465_v23  ;;  %v1326_v38 = vsel %vm1303_vm2, %v7301_v29, %v1278_v18  ;;  %v850_v42 = vmin.f32 %v796_v21, 6.0 }
  0xbe   : > { %7407 = vst [vmem:[#allocation21_spill] sm:$0xff] %v4465_v23  ;;  %v852_v27 = vmin.f32 %v798_v2, 6.0  ;;  %v2509_v33 = vadd.f32 %v2485_v17, %v2400_v16  ;;  %v1229_v17 = vmul.f32 %v4334_v59, %v4454_v10 }
  0xbf   : > { %v4474_v28 = vmul.f32 %v1060_v31, %v879_v1  ;;  %v915_v31 = vpop.permute.xlu2 %914  ;;  %v1380_v1 = vrot.slane %v4432_v55, 2 }
  0xc0   : > { %v728_v56 = vpop.f32.mrf.mxu3  ;;  %v4488_v49 = vmul.f32 %v925_v52, %v852_v27  ;;  %v1331_v52 = vmul.f32 %v4357_v7, %v1326_v38 }
  0xc1   : > { %v729_v62 = vadd.f32 %v4293_v26, %v728_v56  ;;  %v647_v3 = vpop.f32.mrf.mxu0  ;;  %7408 = vst [vmem:[#allocation22_spill] sm:$0xff] %v4474_v28  ;;  %v2617_v35 = vmul.f32 %v4472_v25, %v4474_v28  ;;  %v356_v56 = vld [vmem:[%s4072_s14 + $0xb0] sm:$0xff] }
  0xc2   : > { %v648_v43 = vadd.f32 %v4293_v26, %v647_v3  ;;  %v7300_v3 = vrot.slane %v4454_v10, 2  ;;  %v1281_v21 = vrot.slane %v4488_v49, 1  ;;  %v7415_v22 = vrot.slane %v4488_v49, 2 }
  0xc3   : > { %v826_v11 = vmax.f32 %v729_v62, 0.0  ;;  %v4490_v50 = vadd.f32 %v2617_v35, %v2593_v39  ;;  %v1065_v62 = vpop.permute.xlu1 %1064  ;;  %v2594_v39 = vadd.f32 %v2570_v19, %v2509_v33  ;;  %v1355_v33 = vadd.f32 %v1331_v52, %v1229_v17 }
  0xc4   : > { %3621 = vmatmul.msk.f32.gmra.mxu0 %vm448_vm1, %v355_v6  ;;  %v1426_v27 = vsel %vm1403_vm3, %v7300_v3, %v1380_v1  ;;  %v7303_v52 = vrot.slane %v4488_v49, 2 }
  0xc5   : > { %3649 = vmatmul.msk.f32.gmra.mxu3 %vm448_vm1, %v383_v47  ;;  %v880_v30 = vmin.f32 %v826_v11, 6.0  ;;  %7409 = vst [vmem:[#allocation23_spill] sm:$0xff] %v4490_v50  ;;  %v4503_v47 = vmul.f32 %v915_v31, %v850_v42  ;;  %v799_v11 = vmax.f32 %v648_v43, 0.0  ;;  %v1431_v31 = vmul.f32 %v4378_v14, %v1426_v27 }
  0xc6   : > { %v4525_v43 = vsel %vm1303_vm2, %v4408_v44, %v1281_v21 }
  0xc7   : > { %v4499_v6 = vmul.f32 %v1065_v62, %v880_v30  ;;  %v1279_v38 = vrot.slane %v4503_v47, 1  ;;  %v853_v42 = vmin.f32 %v799_v11, 6.0  ;;  %v385_v62 = vld [vmem:[%s4072_s14 + $0x198] sm:$0xff]  ;;  %v940_v11 = vpop.permute.xlu2 %939  ;;  %v1455_v17 = vadd.f32 %v1431_v31, %v1355_v33  ;;  %v4557_v33 = vld [vmem:[%s7294_s4 + $0x6] ss:$0 sm:$0xff] }
  0xc8   : > { %v4481_v36 = vpop.f32.mrf.mxu3  ;;  %v1381_v63 = vrot.slane %v4503_v47, 2 }
  0xc9   : > { %v650_v51 = vpop.f32.mrf.mxu0  ;;  %7410 = vst [vmem:[#allocation24_spill] sm:$0xff] %v4499_v6  ;;  %v2618_v16 = vmul.f32 %v4472_v25, %v4499_v6  ;;  %v1325_v27 = vsel %vm1303_vm2, %v1278_v18, %v1279_v38  ;;  %v4552_v18 = vsel %vm1403_vm3, %v4411_v45, %v7303_v52  ;;  %v386_v52 = vld [vmem:[%s4072_s14 + $0x1a0] sm:$0xff] }
  0xca   : > { %v651_v2 = vadd.f32 %v4293_v26, %v650_v51  ;;  %v930_v51 = vpop.permute.xlu0 %929 }
  0xcb   : > { %v4518_v35 = vadd.f32 %v2618_v16, %v2594_v39  ;;  %v4542_v3 = vmul.f32 %v930_v51, %v853_v42  ;;  %v1332_v51 = vmul.f32 %v4357_v7, %v1325_v27  ;;  %v358_v27 = vld [vmem:[%s4072_s14 + $0xc0] sm:$0xff] }
  0xcc   : > { %3622 = vmatmul.msk.f32.gmra.mxu0 %vm448_vm1, %v356_v56  ;;  %v800_v30 = vmax.f32 %v651_v2, 0.0  ;;  %v4534_v2 = vld [vmem:[%s7294_s4 + $0x4] ss:$0 sm:$0xff] }
  0xcd   : > { %3650 = vmatmul.msk.f32.gmra.mxu3 %vm448_vm1, %v384_v57  ;;  %7411 = vst [vmem:[#allocation25_spill] sm:$0xff] %v4518_v35  ;;  %v357_v57 = vld [vmem:[%s4072_s14 + $0xb8] sm:$0xff]  ;;  %v1540_v0 = vmul.f32 %v4534_v2, %v4525_v43 }
  0xce   : > { %v854_v39 = vmin.f32 %v800_v30, 6.0  ;;  %v1506_v30 = vadd.f32 %v1482_v41, %v1455_v17  ;;  %v1230_v17 = vmul.f32 %v4334_v59, %v4432_v55 }
  0xcf   : > { %v945_v4 = vpop.permute.xlu2 %944 }
  0xd0   : > { %v4516_v19 = vpop.f32.mrf.mxu3  ;;  %v4560_v42 = vmul.f32 %v4451_v8, %v854_v39  ;;  %v1425_v8 = vsel %vm1403_vm3, %v1380_v1, %v1381_v63  ;;  %v1356_v55 = vadd.f32 %v1332_v51, %v1230_v17  ;;  %v1324_v1 = vsel %vm1303_vm2, %v1279_v38, %v4408_v44  ;;  %v4609_v38 = vld [vmem:[%s7294_s4 + $0x7] ss:$0 sm:$0xff] }
  0xd1   : > { %v653_v56 = vpop.f32.mrf.mxu0  ;;  %v1432_v17 = vmul.f32 %v4378_v14, %v1425_v8 }
  0xd2   : > { %v654_v16 = vadd.f32 %v4293_v26, %v653_v56  ;;  %v4566_v56 = vld [vmem:[%s7294_s4 + $0x5] ss:$0 sm:$0xff]  ;;  %v4582_v35 = vrot.slane %v4560_v42, 1 }
  0xd3   : > { %v1456_v23 = vadd.f32 %v1432_v17, %v1356_v55  ;;  %v4644_v55 = vld [vmem:[%s7295_s5] ss:$0 sm:$0xff] }
  0xd4   : > { %v801_v29 = vmax.f32 %v654_v16, 0.0  ;;  %3623 = vmatmul.msk.f32.gmra.mxu0 %vm448_vm1, %v357_v57  ;;  %v1564_v16 = vadd.f32 %v1540_v0, %v1506_v30  ;;  %7412 = vst [vmem:[#allocation26_spill] sm:$0xff] %v4582_v35 }
  0xd5   : > { %3651 = vmatmul.msk.f32.gmra.mxu3 %vm448_vm1, %v385_v62  ;;  %v1282_v62 = vrot.slane %v4542_v3, 1 }
  0xd6   : > { %v855_v31 = vmin.f32 %v801_v29, 6.0  ;;  %v1598_v29 = vmul.f32 %v4566_v56, %v4552_v18 }
  0xd7   : > { %v4597_v50 = vsel %vm1303_vm2, %v1281_v21, %v1282_v62  ;;  %v1483_v21 = vmul.f32 %v4472_v25, %v4488_v49 }
  0xd8   : > { %v4568_v57 = vpop.f32.mrf.mxu3  ;;  %v4571_v41 = vmul.f32 %v940_v11, %v855_v31  ;;  %v1649_v11 = vmul.f32 %v4557_v33, %v4560_v42  ;;  %v4592_v31 = vrot.slane %v4560_v42, 2  ;;  %v1622_v44 = vadd.f32 %v1598_v29, %v1564_v16 }
  0xd9   : > { %v656_v39 = vpop.f32.mrf.mxu0  ;;  %v1333_v16 = vmul.f32 %v4357_v7, %v1324_v1  ;;  %v1384_v29 = vrot.slane %v4542_v3, 2  ;;  %v1231_v1 = vmul.f32 %v4334_v59, %v4503_v47  ;;  %v1507_v17 = vadd.f32 %v1483_v21, %v1456_v23  ;;  %v4664_v23 = vpop.permute.xlu0 %1069 }
  0xda   : > { %v1284_v0 = vrot.slane %v4571_v41, 1  ;;  %v7307_v30 = vrot.slane %v4571_v41, 2  ;;  %7413 = vst [vmem:[#allocation27_spill] sm:$0xff] %v4592_v31  ;;  %v657_v5 = vadd.f32 %v4293_v26, %v656_v39 }
  0xdb   : > { %v1357_v47 = vadd.f32 %v1333_v16, %v1231_v1  ;;  %v1484_v16 = vmul.f32 %v4472_v25, %v4542_v3  ;;  %v4701_v24 = vsel %vm1403_vm3, %v1384_v29, %v4592_v31 }
  0xdc   : > { %3624 = vmatmul.msk.f32.gmra.mxu0 %vm448_vm1, %v358_v27  ;;  %v4604_v51 = vsel %vm1303_vm2, %v4582_v35, %v1284_v0  ;;  %v802_v39 = vmax.f32 %v657_v5, 0.0  ;;  %v1673_v27 = vadd.f32 %v1649_v11, %v1622_v44  ;;  %v4628_v5 = vld [vmem:[%s7294_s4 + $0x8] ss:$0 sm:$0xff]  ;;  %v1424_v11 = vsel %vm1403_vm3, %v1381_v63, %v4411_v45 }
  0xdd   : > { %3652 = vmatmul.msk.f32.gmra.mxu3 %vm448_vm1, %v386_v52  ;;  %v4619_v52 = vsel %vm1403_vm3, %v4592_v31, %v7307_v30  ;;  %v1707_v8 = vmul.f32 %v4609_v38, %v4604_v51  ;;  %v1541_v30 = vmul.f32 %v4534_v2, %v4597_v50  ;;  %v4654_v63 = vsel %vm1403_vm3, %v7415_v22, %v1384_v29 }
  0xde   : > { %v856_v61 = vmin.f32 %v802_v39, 6.0  ;;  %v1765_v12 = vmul.f32 %v4628_v5, %v4619_v52  ;;  %v1600_v29 = vmul.f32 %v4566_v56, %v4701_v24 }
  0xdf   : > { %v1731_v44 = vadd.f32 %v1707_v8, %v1673_v27  ;;  %v1433_v8 = vmul.f32 %v4378_v14, %v1424_v11  ;;  %v1565_v21 = vadd.f32 %v1541_v30, %v1507_v17  ;;  %v1650_v30 = vmul.f32 %v4557_v33, %v4571_v41 }
  0xe0   : > { %v4632_v13 = vpop.f32.mrf.mxu3  ;;  %v4646_v39 = vmul.f32 %v945_v4, %v856_v61  ;;  %v4661_v4 = vsel %vm1303_vm2, %v1282_v62, %v4582_v35  ;;  %v1599_v62 = vmul.f32 %v4566_v56, %v4654_v63 }
  0xe1   : > { %7414 = vst [vmem:[#allocation28_spill] sm:$0xff] %v4632_v13  ;;  %v659_v60 = vpop.f32.mrf.mxu0  ;;  %v1789_v27 = vadd.f32 %v1765_v12, %v1731_v44  ;;  %v1457_v11 = vadd.f32 %v1433_v8, %v1357_v47  ;;  %v4680_v44 = vpop.permute.xlu2 %1074 }
  0xe2   : > { %v660_v45 = vadd.f32 %v4293_v26, %v659_v60  ;;  %v1285_v61 = vrot.slane %v4646_v39, 1  ;;  %v1387_v60 = vrot.slane %v4646_v39, 2  ;;  %7416 = vst [vmem:[#allocation29_spill] sm:$0xff] %v4680_v44 }
  0xe3   : > { %v1835_v12 = vadd.f32 %v4644_v55, %v1789_v27  ;;  %v950_v27 = vpop.permute.xlu1 %949  ;;  %v1508_v10 = vadd.f32 %v1484_v16, %v1457_v11 }
  0xe4   : > { %v803_v22 = vmax.f32 %v660_v45, 0.0  ;;  %3625 = vmatmul.msk.f32.gmra.mxu0 %vm448_vm1, %v359_v46  ;;  %v4676_v1 = vsel %vm1303_vm2, %v1284_v0, %v1285_v61  ;;  %v1334_v45 = vmul.f32 %v4357_v7, %v4525_v43  ;;  %v1623_v0 = vadd.f32 %v1599_v62, %v1565_v21 }
  0xe5   : > { %3653 = vmatmul.msk.f32.gmra.mxu3 %vm448_vm1, %v387_v37  ;;  %v1859_v17 = vmax.f32 %v1835_v12, 0.0  ;;  %v1542_v37 = vmul.f32 %v4534_v2, %v4661_v4  ;;  %v1708_v15 = vmul.f32 %v4609_v38, %v4676_v1  ;;  %v1232_v21 = vmul.f32 %v4334_v59, %v4399_v34 }
  0xe6   : > { %v857_v46 = vmin.f32 %v803_v22, 6.0  ;;  %v7418_v22 = vrot.slane %v4571_v41, 2  ;;  %v1674_v43 = vadd.f32 %v1650_v30, %v1623_v0  ;;  %v1651_v34 = vmul.f32 %v4557_v33, %v4646_v39 }
  0xe7   : > { %v1883_v8 = vmin.f32 %v1859_v17, 6.0  ;;  %v1566_v62 = vadd.f32 %v1542_v37, %v1508_v10  ;;  %v1358_v30 = vadd.f32 %v1334_v45, %v1232_v21  ;;  %v1335_v10 = vmul.f32 %v4357_v7, %v4597_v50  ;;  %v955_v37 = vpop.permute.xlu0 %954 }
  0xe8   : > { %v4686_v35 = vpop.f32.mrf.mxu3  ;;  %v4690_v47 = vmul.f32 %v950_v27, %v857_v46  ;;  %v4696_v12 = vsel %vm1403_vm3, %v7418_v22, %v1387_v60  ;;  %v1732_v46 = vadd.f32 %v1708_v15, %v1674_v43  ;;  %v1434_v45 = vmul.f32 %v4378_v14, %v4552_v18 }
  0xe9   : > { %7417 = vst [vmem:[#allocation30_spill] sm:$0xff] %v4686_v35  ;;  %v662_v9 = vpop.f32.mrf.mxu0  ;;  %3670 = vmatmul.msk.f32.vlgmr.msrb.gmra.mxu1 %vm1910_vm4, %v1883_v8  ;;  %v1766_v17 = vmul.f32 %v4628_v5, %v4696_v12  ;;  %v1624_v8 = vadd.f32 %v1600_v29, %v1566_v62  ;;  %v1233_v43 = vmul.f32 %v4334_v59, %v4488_v49 }
  0xea   : > { %v1286_v16 = vrot.slane %v4690_v47, 1  ;;  %v663_v11 = vadd.f32 %v4293_v26, %v662_v9  ;;  %v1388_v0 = vrot.slane %v4690_v47, 2  ;;  %v1543_v18 = vmul.f32 %v4534_v2, %v4604_v51 }
  0xeb   : > { %v1790_v15 = vadd.f32 %v1766_v17, %v1732_v46  ;;  %v1458_v46 = vadd.f32 %v1434_v45, %v1358_v30  ;;  %v960_v17 = vpop.permute.xlu2 %959  ;;  %v1675_v31 = vadd.f32 %v1651_v34, %v1624_v8  ;;  %v1359_v35 = vadd.f32 %v1335_v10, %v1233_v43 }
  0xec   : > { %v4712_v27 = vsel %vm1303_vm2, %v1285_v61, %v1286_v16  ;;  %v804_v9 = vmax.f32 %v663_v11, 0.0  ;;  %v1485_v61 = vmul.f32 %v4472_v25, %v4560_v42  ;;  %v4738_v13 = vsel %vm1403_vm3, %v1387_v60, %v1388_v0 }
  0xed   : > { %v1709_v22 = vmul.f32 %v4609_v38, %v4712_v27  ;;  %v1836_v11 = vadd.f32 %v4644_v55, %v1790_v15  ;;  %v1435_v30 = vmul.f32 %v4378_v14, %v4654_v63  ;;  %v1486_v10 = vmul.f32 %v4472_v25, %v4571_v41 }
  0xee   : > { %v858_v21 = vmin.f32 %v804_v9, 6.0  ;;  %v1509_v49 = vadd.f32 %v1485_v61, %v1458_v46  ;;  %v1767_v45 = vmul.f32 %v4628_v5, %v4738_v13  ;;  %v1601_v61 = vmul.f32 %v4566_v56, %v4619_v52 }
  0xef   : > { %v1860_v29 = vmax.f32 %v1836_v11, 0.0  ;;  %v1459_v60 = vadd.f32 %v1435_v30, %v1359_v35  ;;  %v1652_v35 = vmul.f32 %v4557_v33, %v4690_v47  ;;  %v4762_v46 = vpop.permute.xlu0 %1084 }
  0xf0   : > { %v4729_v50 = vpop.f32.mrf.mxu3  ;;  %v4734_v44 = vmul.f32 %v955_v37, %v858_v21  ;;  %v1567_v8 = vadd.f32 %v1543_v18, %v1509_v49  ;;  %v1544_v21 = vmul.f32 %v4534_v2, %v4676_v1 }
  0xf1   : > { %7419 = vst [vmem:[#allocation31_spill] sm:$0xff] %v4729_v50  ;;  %v665_v62 = vpop.f32.mrf.mxu0  ;;  %v1733_v50 = vadd.f32 %v1709_v22, %v1675_v31  ;;  %v1884_v15 = vmin.f32 %v1860_v29, 6.0  ;;  %v4756_v22 = vpop.permute.xlu1 %1079  ;;  %v1510_v49 = vadd.f32 %v1486_v10, %v1459_v60 }
  0xf2   : > { %v666_v9 = vadd.f32 %v4293_v26, %v665_v62  ;;  %v1287_v34 = vrot.slane %v4734_v44, 1  ;;  %v1389_v63 = vrot.slane %v4734_v44, 2  ;;  %v1625_v62 = vadd.f32 %v1601_v61, %v1567_v8 }
  0xf3   : > { %3671 = vmatmul.msk.f32.gmra.mxu1 %vm1910_vm4, %v1884_v15  ;;  %v1791_v11 = vadd.f32 %v1767_v45, %v1733_v50  ;;  %v4775_v15 = vpop.permute.xlu2 %1089 }
  0xf4   : > { %v805_v37 = vmax.f32 %v666_v9, 0.0  ;;  %v4751_v31 = vsel %vm1303_vm2, %v1286_v16, %v1287_v34  ;;  %v4773_v50 = vsel %vm1403_vm3, %v1388_v0, %v1389_v63  ;;  %v1676_v45 = vadd.f32 %v1652_v35, %v1625_v62 }
  0xf5   : > { %v1710_v29 = vmul.f32 %v4609_v38, %v4751_v31  ;;  %v1837_v30 = vadd.f32 %v4644_v55, %v1791_v11  ;;  %v1768_v60 = vmul.f32 %v4628_v5, %v4773_v50  ;;  %v732_v62 = vadd.f32 %v4293_v26, %v4481_v36 }
  0xf6   : > { %v859_v43 = vmin.f32 %v805_v37, 6.0  ;;  %v4809_v36 = vmul.f32 %v4472_v25, %v4385_v20 }
  0xf7   : > { %v1861_v61 = vmax.f32 %v1837_v30, 0.0  ;;  %v1734_v10 = vadd.f32 %v1710_v29, %v1676_v45  ;;  %v1234_v30 = vmul.f32 %v4334_v59, %v4542_v3 }
  0xf8   : > { %v4764_v18 = vpop.f32.mrf.mxu3  ;;  %v4766_v16 = vmul.f32 %v960_v17, %v859_v43  ;;  %v1602_v17 = vmul.f32 %v4566_v56, %v4696_v12  ;;  %v1653_v43 = vmul.f32 %v4557_v33, %v4734_v44  ;;  %7422 = vst [vmem:[#allocation34_spill] sm:$0xff] %v4809_v36  ;;  %v827_v36 = vmax.f32 %v732_v62, 0.0 }
  0xf9   : > { %7420 = vst [vmem:[#allocation32_spill] sm:$0xff] %v4764_v18  ;;  %v668_v9 = vpop.f32.mrf.mxu0  ;;  %v1568_v18 = vadd.f32 %v1544_v21, %v1510_v49  ;;  %v1336_v21 = vmul.f32 %v4357_v7, %v4661_v4  ;;  %v1885_v35 = vmin.f32 %v1861_v61, 6.0  ;;  %v1792_v29 = vadd.f32 %v1768_v60, %v1734_v10  ;;  %v965_v3 = vpop.permute.xlu1 %964 }
  0xfa   : > { %v7325_v37 = vrot.slane %v4766_v16, 1  ;;  %v669_v8 = vadd.f32 %v4293_v26, %v668_v9  ;;  %v7326_v49 = vrot.slane %v4766_v16, 2  ;;  %v4817_v61 = vmul.f32 %v4472_v25, %v4329_v58  ;;  %v970_v60 = vpop.permute.xlu0 %969 }
  0xfb   : > { %v1626_v9 = vadd.f32 %v1602_v17, %v1568_v18  ;;  %3672 = vmatmul.msk.f32.gmra.mxu1 %vm1910_vm4, %v1885_v35  ;;  %v4813_v18 = vmul.f32 %v4557_v33, %v4329_v58  ;;  %v1360_v10 = vadd.f32 %v1336_v21, %v1234_v30  ;;  %v1838_v35 = vadd.f32 %v4644_v55, %v1792_v29  ;;  %v4843_v30 = vpop.permute.xlu2 %974 }
  0xfc   : > { %v4787_v0 = vsel %vm1303_vm2, %v1287_v34, %v7325_v37  ;;  %v806_v11 = vmax.f32 %v669_v8, 0.0  ;;  %v4805_v8 = vmul.f32 %v4472_v25, %v4309_v40  ;;  %7424 = vst [vmem:[#allocation36_spill] sm:$0xff] %v4817_v61  ;;  %v4824_v37 = vsel %vm1403_vm3, %v1389_v63, %v7326_v49 }
  0xfd   : > { %v1711_v4 = vmul.f32 %v4609_v38, %v4787_v0  ;;  %7423 = vst [vmem:[#allocation35_spill] sm:$0xff] %v4813_v18  ;;  %v1677_v17 = vadd.f32 %v1653_v43, %v1626_v9  ;;  %v4831_v58 = vmul.f32 %v4334_v59, %v4391_v32  ;;  %v735_v21 = vadd.f32 %v4293_v26, %v4516_v19 }
  0xfe   : > { %v860_v34 = vmin.f32 %v806_v11, 6.0  ;;  %7421 = vst [vmem:[#allocation33_spill] sm:$0xff] %v4805_v8  ;;  %v1487_v29 = vmul.f32 %v4472_v25, %v4646_v39  ;;  %v1436_v63 = vmul.f32 %v4378_v14, %v4701_v24  ;;  %v4841_v62 = vmul.f32 %v4472_v25, %v4391_v32 }
  0xff   : > { %v1735_v9 = vadd.f32 %v1711_v4, %v1677_v17  ;;  %7425 = vst [vmem:[#allocation37_spill] sm:$0xff] %v4831_v58  ;;  %v1862_v4 = vmax.f32 %v1838_v35, 0.0  ;;  %v4849_v19 = vmul.f32 %v4534_v2, %v4422_v48  ;;  %v4853_v17 = vmul.f32 %v4566_v56, %v4429_v53 }
 0x100   : > { %v4799_v45 = vpop.f32.mrf.mxu3  ;;  %v4826_v8 = vmul.f32 %v965_v3, %v860_v34  ;;  %7426 = vst [vmem:[#allocation38_spill] sm:$0xff] %v4841_v62  ;;  %v1769_v3 = vmul.f32 %v4628_v5, %v4824_v37  ;;  %v1545_v24 = vmul.f32 %v4534_v2, %v4712_v27  ;;  %v881_v49 = vmin.f32 %v827_v36, 6.0 }
 0x101   : > { %v671_v11 = vpop.f32.mrf.mxu0  ;;  %7427 = vst [vmem:[#allocation39_spill] sm:$0xff] %v4849_v19  ;;  %v4860_v62 = vmul.f32 %v4334_v59, %v4474_v28  ;;  %v828_v19 = vmax.f32 %v735_v21, 0.0  ;;  %v1654_v21 = vmul.f32 %v4557_v33, %v4766_v16 }
 0x102   : > { %v672_v43 = vadd.f32 %v4293_v26, %v671_v11  ;;  %7428 = vst [vmem:[#allocation40_spill] sm:$0xff] %v4853_v17  ;;  %v1460_v11 = vadd.f32 %v1436_v63, %v1360_v10  ;;  %v7327_v18 = vrot.slane %v4826_v8, 1  ;;  %v1793_v35 = vadd.f32 %v1769_v3, %v1735_v9 }
 0x103   : > { %7429 = vst [vmem:[#allocation41_spill] sm:$0xff] %v4860_v62  ;;  %v1337_v10 = vmul.f32 %v4357_v7, %v4604_v51  ;;  %v738_v63 = vadd.f32 %v4293_v26, %v4568_v57  ;;  %v7432_v57 = vrot.slane %v4766_v16, 1  ;;  %v1391_v51 = vrot.slane %v4826_v8, 2 }
 0x104   : > { %v807_v34 = vmax.f32 %v672_v43, 0.0  ;;  %v1886_v43 = vmin.f32 %v1862_v4, 6.0  ;;  %v1511_v53 = vadd.f32 %v1487_v29, %v1460_v11  ;;  %v1839_v9 = vadd.f32 %v4644_v55, %v1793_v35 }
 0x105   : > { %v4874_v4 = vmul.f32 %v4334_v59, %v4499_v6  ;;  %v1235_v11 = vmul.f32 %v4334_v59, %v4560_v42  ;;  %v882_v35 = vmin.f32 %v828_v19, 6.0  ;;  %v829_v17 = vmax.f32 %v738_v63, 0.0  ;;  %v7435_v63 = vld [vmem:[#allocation29_spill] sm:$0xff] }
 0x106   : > { %v861_v36 = vmin.f32 %v807_v34, 6.0  ;;  %3673 = vmatmul.msk.f32.gmra.mxu1 %vm1910_vm4, %v1886_v43  ;;  %v1569_v3 = vadd.f32 %v1545_v24, %v1511_v53  ;;  %v4881_v34 = vmul.f32 %v4664_v23, %v881_v49  ;;  %v4889_v43 = vsel %vm1303_vm2, %v7432_v57, %v7327_v18  ;;  %v4893_v53 = vpop.permute.xlu0 %1099 }
 0x107   : > { %7430 = vst [vmem:[#allocation42_spill] sm:$0xff] %v4874_v4  ;;  %v1603_v24 = vmul.f32 %v4566_v56, %v4738_v13  ;;  %v1863_v42 = vmax.f32 %v1839_v9, 0.0  ;;  %v1361_v57 = vadd.f32 %v1337_v10, %v1235_v11  ;;  %v1712_v18 = vmul.f32 %v4609_v38, %v4889_v43  ;;  %v7434_v4 = vld [vmem:[#allocation28_spill] sm:$0xff] }
 0x108   : > { %v4863_v61 = vpop.f32.mrf.mxu3  ;;  %7431 = vst [vmem:[#allocation43_spill] sm:$0xff] %v4881_v34  ;;  %v4898_v23 = vmul.f32 %v4334_v59, %v4881_v34  ;;  %v4900_v49 = vmul.f32 %v970_v60, %v861_v36  ;;  %v741_v9 = vadd.f32 %v4293_v26, %v7434_v4  ;;  %v1488_v62 = vmul.f32 %v4472_v25, %v4690_v47  ;;  %v4912_v36 = vpop.permute.xlu2 %1104 }
 0x109   : > { %v674_v29 = vpop.f32.mrf.mxu0  ;;  %v1887_v19 = vmin.f32 %v1863_v42, 6.0  ;;  %v1627_v48 = vadd.f32 %v1603_v24, %v1569_v3  ;;  %v1437_v60 = vmul.f32 %v4378_v14, %v4619_v52  ;;  %v4917_v3 = vmul.f32 %v7435_v63, %v882_v35 }
 0x10a   : > { %7433 = vst [vmem:[#allocation44_spill] sm:$0xff] %v4898_v23  ;;  %v675_v23 = vadd.f32 %v4293_v26, %v674_v29  ;;  %v7437_v24 = vrot.slane %v4766_v16, 2  ;;  %v1546_v29 = vmul.f32 %v4534_v2, %v4751_v31  ;;  %v883_v63 = vmin.f32 %v829_v17, 6.0 }
 0x10b   : > { %7436 = vst [vmem:[#allocation28_spill] sm:$0xff] %v4917_v3  ;;  %v1678_v42 = vadd.f32 %v1654_v21, %v1627_v48  ;;  %v1461_v35 = vadd.f32 %v1437_v60, %v1361_v57  ;;  %v4934_v10 = vmul.f32 %v4472_v25, %v4881_v34  ;;  %v830_v52 = vmax.f32 %v741_v9, 0.0  ;;  %v7441_v60 = vld [vmem:[#allocation30_spill] sm:$0xff] }
 0x10c   : > { %v4925_v4 = vsel %vm1403_vm3, %v7437_v24, %v1391_v51  ;;  %v4938_v24 = vmul.f32 %v4334_v59, %v4917_v3  ;;  %v808_v20 = vmax.f32 %v675_v23, 0.0  ;;  %v4946_v57 = vmul.f32 %v4472_v25, %v4917_v3 }
 0x10d   : > { %7438 = vst [vmem:[#allocation29_spill] sm:$0xff] %v4934_v10  ;;  %v1736_v21 = vadd.f32 %v1712_v18, %v1678_v42  ;;  %v1770_v6 = vmul.f32 %v4628_v5, %v4925_v4  ;;  %v1512_v32 = vadd.f32 %v1488_v62, %v1461_v35  ;;  %v744_v10 = vadd.f32 %v4293_v26, %v7441_v60 }
 0x10e   : > { %3674 = vmatmul.msk.f32.gmra.mxu1 %vm1910_vm4, %v1887_v19  ;;  %7439 = vst [vmem:[#allocation45_spill] sm:$0xff] %v4938_v24  ;;  %v7442_v18 = vrot.slane %v4900_v49, 1  ;;  %v7443_v23 = vrot.slane %v4826_v8, 1  ;;  %v4960_v35 = vmul.f32 %v4756_v22, %v883_v63  ;;  %v1338_v17 = vmul.f32 %v4357_v7, %v4676_v1 }
 0x10f   : > { %7440 = vst [vmem:[#allocation46_spill] sm:$0xff] %v4946_v57  ;;  %v1794_v24 = vadd.f32 %v1770_v6, %v1736_v21  ;;  %v1570_v42 = vadd.f32 %v1546_v29, %v1512_v32  ;;  %v1604_v6 = vmul.f32 %v4566_v56, %v4773_v50  ;;  %v4966_v21 = vpop.permute.xlu0 %984  ;;  %v1655_v60 = vmul.f32 %v4557_v33, %v4826_v8  ;;  %v7446_v57 = vld [vmem:[#allocation31_spill] sm:$0xff] }
 0x110   : > { %v4919_v11 = vpop.f32.mrf.mxu3  ;;  %v4956_v9 = vsel %vm1303_vm2, %v7443_v23, %v7442_v18  ;;  %7444 = vst [vmem:[#allocation30_spill] sm:$0xff] %v4960_v35  ;;  %v1236_v18 = vmul.f32 %v4334_v59, %v4571_v41  ;;  %v884_v23 = vmin.f32 %v830_v52, 6.0  ;;  %v862_v19 = vmin.f32 %v808_v20, 6.0  ;;  %v4983_v34 = vpop.permute.xlu2 %989 }
 0x111   : > { %v677_v48 = vpop.f32.mrf.mxu0  ;;  %v1840_v32 = vadd.f32 %v4644_v55, %v1794_v24  ;;  %v831_v22 = vmax.f32 %v744_v10, 0.0  ;;  %v4975_v29 = vmul.f32 %v4334_v59, %v4960_v35  ;;  %v1628_v63 = vadd.f32 %v1604_v6, %v1570_v42 }
 0x112   : > { %v1713_v62 = vmul.f32 %v4609_v38, %v4956_v9  ;;  %v747_v3 = vadd.f32 %v4293_v26, %v7446_v57  ;;  %v678_v20 = vadd.f32 %v4293_v26, %v677_v48  ;;  %v7447_v10 = vrot.slane %v4900_v49, 2 }
 0x113   : > { %7445 = vst [vmem:[#allocation47_spill] sm:$0xff] %v4975_v29  ;;  %v1864_v41 = vmax.f32 %v1840_v32, 0.0  ;;  %v1362_v6 = vadd.f32 %v1338_v17, %v1236_v18  ;;  %v1095_v29 = vpop.permute.xlu1 %1094  ;;  %v1679_v28 = vadd.f32 %v1655_v60, %v1628_v63  ;;  %v4995_v57 = vmul.f32 %v4762_v46, %v884_v23 }
 0x114   : > { %v4990_v52 = vsel %vm1403_vm3, %v1391_v51, %v7447_v10  ;;  %v1438_v48 = vmul.f32 %v4378_v14, %v4696_v12  ;;  %v5000_v32 = vmul.f32 %v4843_v30, %v862_v19  ;;  %v885_v51 = vmin.f32 %v831_v22, 6.0 }
 0x115   : > { %7448 = vst [vmem:[#allocation31_spill] sm:$0xff] %v4995_v57  ;;  %v1888_v40 = vmin.f32 %v1864_v41, 6.0  ;;  %v1489_v10 = vmul.f32 %v4472_v25, %v4734_v44  ;;  %v1737_v24 = vadd.f32 %v1713_v62, %v1679_v28  ;;  %v1771_v17 = vmul.f32 %v4628_v5, %v4990_v52 }
 0x116   : > { %v1237_v60 = vmul.f32 %v4334_v59, %v4646_v39  ;;  %v5010_v46 = vmul.f32 %v4472_v25, %v4960_v35  ;;  %v832_v12 = vmax.f32 %v747_v3, 0.0  ;;  %v809_v18 = vmax.f32 %v678_v20, 0.0 }
 0x117   : > { %3675 = vmatmul.msk.f32.gmra.mxu1 %vm1910_vm4, %v1888_v40  ;;  %v1462_v30 = vadd.f32 %v1438_v48, %v1362_v6  ;;  %v1339_v19 = vmul.f32 %v4357_v7, %v4712_v27  ;;  %v1547_v28 = vmul.f32 %v4534_v2, %v4787_v0  ;;  %v1795_v62 = vadd.f32 %v1771_v17, %v1737_v24  ;;  %v5028_v27 = vpop.permute.xlu0 %1114 }
 0x118   : > { %v4977_v1 = vpop.f32.mrf.mxu3  ;;  %7449 = vst [vmem:[#allocation48_spill] sm:$0xff] %v5010_v46  ;;  %v5019_v23 = vmul.f32 %v4334_v59, %v4995_v57  ;;  %v7341_v22 = vrot.slane %v5000_v32, 1  ;;  %v5026_v63 = vmul.f32 %v4775_v15, %v885_v51  ;;  %v1238_v6 = vmul.f32 %v4334_v59, %v4690_v47  ;;  %v5042_v15 = vld [vmem:[%s7293_s3] ss:$0 sm:$0xff]  ;;  %v7455_v51 = vld [vmem:[#allocation32_spill] sm:$0xff]  ;;  %v5048_v40 = vpop.permute.xlu2 %1119 }
 0x119   : > { %v680_v58 = vpop.f32.mrf.mxu0  ;;  %7452 = vst [vmem:[#allocation51_spill] sm:$0xff] %v5028_v27  ;;  %v1841_v20 = vadd.f32 %v4644_v55, %v1795_v62  ;;  %v1513_v24 = vadd.f32 %v1489_v10, %v1462_v30  ;;  %v5037_v48 = vmul.f32 %v4472_v25, %v4995_v57  ;;  %v750_v17 = vadd.f32 %v5042_v15, %v7455_v51 }
 0x11a   : > { %7450 = vst [vmem:[#allocation49_spill] sm:$0xff] %v5019_v23  ;;  %v681_v3 = vadd.f32 %v4293_v26, %v680_v58  ;;  %v886_v26 = vmin.f32 %v832_v12, 6.0  ;;  %v863_v58 = vmin.f32 %v809_v18, 6.0  ;;  %v1363_v62 = vadd.f32 %v1339_v19, %v1237_v60 }
 0x11b   : > { %7451 = vst [vmem:[#allocation50_spill] sm:$0xff] %v5026_v63  ;;  %v1439_v10 = vmul.f32 %v4378_v14, %v4738_v13  ;;  %v1571_v47 = vadd.f32 %v1547_v28, %v1513_v24  ;;  %v1865_v42 = vmax.f32 %v1841_v20, 0.0  ;;  %v7457_v12 = vrot.slane %v4900_v49, 1  ;;  %v980_v28 = vpop.permute.xlu1 %979 }
 0x11c   : > { %7454 = vst [vmem:[#allocation53_spill] sm:$0xff] %v5037_v48  ;;  %v810_v39 = vmax.f32 %v681_v3, 0.0  ;;  %v1393_v51 = vrot.slane %v5000_v32, 2  ;;  %v5061_v60 = vmul.f32 %v4334_v59, %v5026_v63  ;;  %v1605_v3 = vmul.f32 %v4566_v56, %v4824_v37 }
 0x11d   : > { %7456 = vst [vmem:[#allocation32_spill] sm:$0xff] %v5048_v40  ;;  %v5056_v18 = vsel %vm1303_vm2, %v7457_v12, %v7341_v22  ;;  %v5067_v20 = vmul.f32 %v1095_v29, %v886_v26  ;;  %v1340_v24 = vmul.f32 %v4357_v7, %v4751_v31  ;;  %v5071_v12 = vmul.f32 %v980_v28, %v863_v58 }
 0x11e   : > { %7458 = vst [vmem:[#allocation54_spill] sm:$0xff] %v5061_v60  ;;  %v1889_v22 = vmin.f32 %v1865_v42, 6.0  ;;  %v1490_v48 = vmul.f32 %v4472_v25, %v4766_v16  ;;  %v1656_v13 = vmul.f32 %v4557_v33, %v4900_v49  ;;  %v1714_v19 = vmul.f32 %v4609_v38, %v5056_v18 }
 0x11f   : > { %7459 = vst [vmem:[#allocation55_spill] sm:$0xff] %v5067_v20  ;;  %v5081_v29 = vmul.f32 %v4472_v25, %v5026_v63  ;;  %v833_v26 = vmax.f32 %v750_v17, 0.0  ;;  %v864_v46 = vmin.f32 %v810_v39, 6.0  ;;  %v7461_v7 = vrot.slane %v4900_v49, 2 }
 0x120   : > { %v5031_v41 = vpop.f32.mrf.mxu3  ;;  %3676 = vmatmul.msk.f32.gmra.mxu1 %vm1910_vm4, %v1889_v22  ;;  %v1239_v42 = vmul.f32 %v4334_v59, %v4734_v44  ;;  %v1463_v58 = vadd.f32 %v1439_v10, %v1363_v62  ;;  %v5096_v39 = vmul.f32 %v4334_v59, %v5067_v20  ;;  %v1364_v17 = vadd.f32 %v1340_v24, %v1238_v6 }
 0x121   : > { %7453 = vst [vmem:[#allocation52_spill] sm:$0xff] %v5031_v41  ;;  %v683_v30 = vpop.f32.mrf.mxu0  ;;  %v1629_v41 = vadd.f32 %v1605_v3, %v1571_v47  ;;  %v5088_v31 = vsel %vm1403_vm3, %v7461_v7, %v1393_v51  ;;  %v1548_v47 = vmul.f32 %v4534_v2, %v4889_v43  ;;  %v5100_v7 = vpop.permute.xlu0 %999  ;;  %v1440_v59 = vmul.f32 %v4378_v14, %v4773_v50 }
 0x122   : > { %7460 = vst [vmem:[#allocation56_spill] sm:$0xff] %v5081_v29  ;;  %v1292_v29 = vrot.slane %v5071_v12, 1  ;;  %v1772_v44 = vmul.f32 %v4628_v5, %v5088_v31  ;;  %v684_v6 = vadd.f32 %v5042_v15, %v683_v30  ;;  %v7464_v14 = vrot.slane %v5000_v32, 1 }
 0x123   : > { %v1680_v28 = vadd.f32 %v1656_v13, %v1629_v41  ;;  %7462 = vst [vmem:[#allocation57_spill] sm:$0xff] %v5096_v39  ;;  %v1514_v41 = vadd.f32 %v1490_v48, %v1463_v58  ;;  %v887_v13 = vmin.f32 %v833_v26, 6.0  ;;  %v5108_v39 = vmul.f32 %v4966_v21, %v864_v46  ;;  %v5117_v26 = vpop.permute.xlu2 %1004  ;;  %v5128_v21 = vld [vmem:[%s7294_s4 + $0x1] ss:$0 sm:$0xff] }
 0x124   : > { %v1464_v48 = vadd.f32 %v1440_v59, %v1364_v17  ;;  %v5123_v50 = vsel %vm1303_vm2, %v7464_v14, %v1292_v29  ;;  %v1341_v46 = vmul.f32 %v5128_v21, %v4787_v0  ;;  %v1491_v17 = vmul.f32 %v4472_v25, %v4826_v8 }
 0x125   : > { %v1738_v40 = vadd.f32 %v1714_v19, %v1680_v28  ;;  %v1394_v19 = vrot.slane %v5071_v12, 2  ;;  %v1572_v28 = vadd.f32 %v1548_v47, %v1514_v41  ;;  %v1657_v47 = vmul.f32 %v4557_v33, %v5000_v32 }
 0x126   : > { %v811_v41 = vmax.f32 %v684_v6, 0.0  ;;  %v5157_v6 = vld [vmem:[%s7294_s4] ss:$0 sm:$0xff] }
 0x127   : > { %v1796_v22 = vadd.f32 %v1772_v44, %v1738_v40  ;;  %v1606_v40 = vmul.f32 %v4566_v56, %v4925_v4  ;;  %v5140_v44 = vmul.f32 %v4893_v53, %v887_v13  ;;  %v5145_v0 = vsel %vm1403_vm3, %v1393_v51, %v1394_v19 }
 0x128   : > { %v767_v3 = vpop.f32.mrf.mxu3  ;;  %v1549_v53 = vmul.f32 %v4534_v2, %v4956_v9  ;;  %v5161_v51 = vmul.f32 %v5157_v6, %v4766_v16 }
 0x129   : > { %v768_v62 = vadd.f32 %v5042_v15, %v767_v3  ;;  %v686_v10 = vpop.f32.mrf.mxu0  ;;  %v5115_v3 = vmul.f32 %v4472_v25, %v5067_v20  ;;  %v1842_v30 = vadd.f32 %v4644_v55, %v1796_v22  ;;  %7465 = vst [vmem:[#allocation59_spill] sm:$0xff] %v5140_v44  ;;  %v1630_v14 = vadd.f32 %v1606_v40, %v1572_v28  ;;  %v1130_v27 = vpop.permute.xlu0 %1129 }
 0x12a   : > { %v1715_v22 = vmul.f32 %v4609_v38, %v5123_v50  ;;  %v1365_v28 = vadd.f32 %v1341_v46, %v1239_v42  ;;  %v1515_v20 = vadd.f32 %v1491_v17, %v1464_v48  ;;  %v7467_v42 = vrot.slane %v5108_v39, 1  ;;  %v713_v17 = vpop.f32.mrf.mxu1 }
 0x12b   : > { %7463 = vst [vmem:[#allocation58_spill] sm:$0xff] %v5115_v3  ;;  %v839_v58 = vmax.f32 %v768_v62, 0.0  ;;  %v1866_v59 = vmax.f32 %v1842_v30, 0.0  ;;  %v753_v3 = vadd.f32 %v5042_v15, %v4799_v45  ;;  %v1681_v30 = vadd.f32 %v1657_v47, %v1630_v14 }
 0x12c   : > { %v5167_v45 = vmul.f32 %v5157_v6, %v5140_v44  ;;  %v5176_v46 = vsel %vm1303_vm2, %v1292_v29, %v7467_v42  ;;  %v7344_v47 = vrot.slane %v5108_v39, 2  ;;  %v1573_v48 = vadd.f32 %v1549_v53, %v1515_v20  ;;  %v5189_v29 = vld [vmem:[%s7294_s4 + $0x2] ss:$0 sm:$0xff] }
 0x12d   : > { %v893_v13 = vmin.f32 %v839_v58, 6.0  ;;  %v1890_v40 = vmin.f32 %v1866_v59, 6.0  ;;  %v865_v58 = vmin.f32 %v811_v41, 6.0  ;;  %v1739_v23 = vadd.f32 %v1715_v22, %v1681_v30  ;;  %v1135_v30 = vpop.permute.xlu2 %1134 }
 0x12e   : > { %7466 = vst [vmem:[#allocation60_spill] sm:$0xff] %v5167_v45  ;;  %v834_v59 = vmax.f32 %v753_v3, 0.0  ;;  %v1607_v41 = vmul.f32 %v4566_v56, %v4990_v52  ;;  %v1441_v3 = vmul.f32 %v5189_v29, %v4824_v37  ;;  %v1716_v20 = vmul.f32 %v4609_v38, %v5176_v46 }
 0x12f   : > { %3677 = vmatmul.msk.f32.gmra.mxu1 %vm1910_vm4, %v1890_v40  ;;  %v5181_v14 = vmul.f32 %v1130_v27, %v893_v13  ;;  %v687_v27 = vadd.f32 %v5042_v15, %v686_v10  ;;  %v5199_v53 = vmul.f32 %v4983_v34, %v865_v58  ;;  %v5208_v37 = vsel %vm1403_vm3, %v1394_v19, %v7344_v47 }
 0x130   : > { %v770_v24 = vpop.f32.mrf.mxu3  ;;  %v1631_v13 = vadd.f32 %v1607_v41, %v1573_v48  ;;  %v888_v10 = vmin.f32 %v834_v59, 6.0  ;;  %v1342_v42 = vmul.f32 %v5128_v21, %v4889_v43  ;;  %v1492_v19 = vmul.f32 %v4472_v25, %v4900_v49 }
 0x131   : > { %v771_v62 = vadd.f32 %v5042_v15, %v770_v24  ;;  %v5163_v60 = vpop.f32.mrf.mxu0  ;;  %v1773_v24 = vmul.f32 %v4628_v5, %v5145_v0  ;;  %7468 = vst [vmem:[#allocation61_spill] sm:$0xff] %v5181_v14  ;;  %v7346_v41 = vrot.slane %v5181_v14, 1  ;;  %v7348_v34 = vrot.slane %v5181_v14, 2 }
 0x132   : > { %v812_v59 = vmax.f32 %v687_v27, 0.0  ;;  %v1774_v43 = vmul.f32 %v4628_v5, %v5208_v37  ;;  %v690_v27 = vadd.f32 %v5042_v15, %v5163_v60 }
 0x133   : > { %v840_v16 = vmax.f32 %v771_v62, 0.0  ;;  %v1797_v40 = vadd.f32 %v1773_v24, %v1739_v23  ;;  %v1658_v62 = vmul.f32 %v4557_v33, %v5071_v12  ;;  %v5196_v23 = vpop.permute.xlu1 %1109 }
 0x135   : > { %v894_v22 = vmin.f32 %v840_v16, 6.0  ;;  %v1843_v24 = vadd.f32 %v4644_v55, %v1797_v40  ;;  %v1682_v48 = vadd.f32 %v1658_v62, %v1631_v13  ;;  %v1241_v62 = vmul.f32 %v5157_v6, %v4826_v8 }
 0x136   : > { %v866_v8 = vmin.f32 %v812_v59, 6.0 }
 0x137   : > { %v5202_v16 = vmul.f32 %v1135_v30, %v894_v22  ;;  %v1867_v58 = vmax.f32 %v1843_v24, 0.0  ;;  %v1740_v47 = vadd.f32 %v1716_v20, %v1682_v48  ;;  %v1465_v20 = vadd.f32 %v1441_v3, %v1365_v28 }
 0x138   : > { %v1550_v48 = vmul.f32 %v4534_v2, %v5056_v18  ;;  %v714_v28 = vadd.f32 %v5042_v15, %v713_v17 }
 0x139   : > { %7469 = vst [vmem:[#allocation62_spill] sm:$0xff] %v5202_v16  ;;  %v7345_v40 = vrot.slane %v5202_v16, 1  ;;  %v7347_v22 = vrot.slane %v5202_v16, 2  ;;  %v5216_v30 = vpop.f32.mrf.mxu0  ;;  %v1891_v13 = vmin.f32 %v1867_v58, 6.0  ;;  %v1798_v58 = vadd.f32 %v1774_v43, %v1740_v47 }
 0x13a   : > { %v756_v47 = vadd.f32 %v5042_v15, %v4863_v61  ;;  %v1516_v43 = vadd.f32 %v1492_v19, %v1465_v20  ;;  %v7474_v16 = vrot.slane %v5199_v53, 1  ;;  %v1608_v61 = vmul.f32 %v4566_v56, %v5088_v31 }
 0x13b   : > { %v5229_v24 = vsel %vm1303_vm2, %v7346_v41, %v7345_v40  ;;  %v5237_v25 = vsel %vm1403_vm3, %v7348_v34, %v7347_v22  ;;  %v5247_v40 = vld [vmem:[%s7294_s4 + $0x3] ss:$0 sm:$0xff]  ;;  %v5254_v22 = vmul.f32 %v4912_v36, %v888_v10  ;;  %3678 = vmatmul.msk.f32.gmra.mxu1 %vm1910_vm4, %v1891_v13  ;;  %v1844_v3 = vadd.f32 %v4644_v55, %v1798_v58  ;;  %v995_v13 = vpop.permute.xlu1 %994 }
 0x13c   : > { %7470 = vst [vmem:[#allocation63_spill] sm:$0xff] %v5229_v24  ;;  %v5251_v41 = vmul.f32 %v5247_v40, %v5140_v44  ;;  %v1366_v34 = vadd.f32 %v1342_v42, %v5161_v51  ;;  %v7475_v36 = vrot.slane %v5108_v39, 1  ;;  %v1396_v10 = vrot.slane %v5199_v53, 2 }
 0x13d   : > { %7471 = vst [vmem:[#allocation64_spill] sm:$0xff] %v5237_v25  ;;  %v1868_v59 = vmax.f32 %v1844_v3, 0.0  ;;  %v1574_v19 = vadd.f32 %v1550_v48, %v1516_v43  ;;  %v1659_v51 = vmul.f32 %v4557_v33, %v5108_v39  ;;  %v5279_v60 = vmul.f32 %v5157_v6, %v5254_v22 }
 0x13e   : > { %7472 = vst [vmem:[#allocation65_spill] sm:$0xff] %v5251_v41  ;;  %v5270_v17 = vsel %vm1303_vm2, %v7475_v36, %v7474_v16  ;;  %v1493_v42 = vmul.f32 %v5247_v40, %v5000_v32  ;;  %v1442_v16 = vmul.f32 %v5189_v29, %v4925_v4  ;;  %v821_v20 = vmax.f32 %v714_v28, 0.0 }
 0x13f   : > { %7473 = vst [vmem:[#allocation66_spill] sm:$0xff] %v5254_v22  ;;  %v5285_v58 = vmul.f32 %v995_v13, %v866_v8  ;;  %v1892_v36 = vmin.f32 %v1868_v59, 6.0  ;;  %v1632_v3 = vadd.f32 %v1608_v61, %v1574_v19  ;;  %v1717_v48 = vmul.f32 %v4609_v38, %v5270_v17  ;;  %v5304_v19 = vpop.f32.mrf.mxu3 }
 0x140   : > { %7476 = vst [vmem:[#allocation67_spill] sm:$0xff] %v5279_v60  ;;  %v2416_v33 = vmul.f32 %v5157_v6, %v5181_v14  ;;  %v813_v43 = vmax.f32 %v690_v27, 0.0  ;;  %v7477_v41 = vrot.slane %v5108_v39, 2  ;;  %v2501_v4 = vmul.f32 %v5128_v21, %v5229_v24 }
 0x141   : > { %v5299_v28 = vpop.f32.mrf.mxu0  ;;  %v1466_v61 = vadd.f32 %v1442_v16, %v1366_v34  ;;  %v1551_v59 = vmul.f32 %v4534_v2, %v5123_v50  ;;  %v1683_v27 = vadd.f32 %v1659_v51, %v1632_v3  ;;  %v1343_v13 = vmul.f32 %v5128_v21, %v4956_v9 }
 0x142   : > { %v5295_v60 = vsel %vm1403_vm3, %v7477_v41, %v1396_v10  ;;  %v875_v14 = vmin.f32 %v821_v20, 6.0  ;;  %v2525_v41 = vadd.f32 %v2501_v4, %v2416_v33  ;;  %v2586_v24 = vmul.f32 %v5189_v29, %v5237_v25  ;;  %v7480_v4 = vld [vmem:[#allocation7_spill] sm:$0xff] }
 0x143   : > { %3679 = vmatmul.msk.f32.gmra.mxu1 %vm1910_vm4, %v1892_v36  ;;  %v1295_v45 = vrot.slane %v5285_v58, 1  ;;  %v1741_v8 = vadd.f32 %v1717_v48, %v1683_v27  ;;  %v1775_v34 = vmul.f32 %v4628_v5, %v5295_v60  ;;  %v1517_v2 = vadd.f32 %v1493_v42, %v1466_v61 }
 0x144   : > { %v835_v51 = vmax.f32 %v756_v47, 0.0  ;;  %v867_v3 = vmin.f32 %v813_v43, 6.0  ;;  %v5315_v44 = vadd.f32 %v2586_v24, %v2525_v41  ;;  %v693_v9 = vadd.f32 %v5042_v15, %v5216_v30 }
 0x145   : > { %v1799_v20 = vadd.f32 %v1775_v34, %v1741_v8  ;;  %v7357_v36 = vrot.slane %v5285_v58, 2  ;;  %v1575_v33 = vadd.f32 %v1551_v59, %v1517_v2  ;;  %v5322_v48 = vmul.f32 %v5247_v40, %v5254_v22 }
 0x146   : > { %7478 = vst [vmem:[#allocation68_spill] sm:$0xff] %v5315_v44  ;;  %v759_v42 = vadd.f32 %v5042_v15, %v4919_v11  ;;  %v5327_v61 = vmul.f32 %v7480_v4, %v875_v14  ;;  %v1609_v24 = vmul.f32 %v4566_v56, %v5145_v0  ;;  %v1367_v47 = vadd.f32 %v1343_v13, %v1241_v62  ;;  %v5343_v11 = vld [vmem:[%s7294_s4 + $0x6] ss:$0 sm:$0xff]  ;;  %v5351_v13 = vpop.permute.xlu1 %1124 }
 0x147   : > { %7479 = vst [vmem:[#allocation69_spill] sm:$0xff] %v5322_v48  ;;  %v1845_v30 = vadd.f32 %v4644_v55, %v1799_v20  ;;  %v7482_v43 = vrot.slane %v5199_v53, 1  ;;  %v1660_v14 = vmul.f32 %v5343_v11, %v5199_v53  ;;  %v889_v56 = vmin.f32 %v835_v51, 6.0 }
 0x148   : > { %7481 = vst [vmem:[#allocation7_spill] sm:$0xff] %v5327_v61  ;;  %v1494_v62 = vmul.f32 %v5247_v40, %v5071_v12  ;;  %v1443_v59 = vmul.f32 %v5189_v29, %v4990_v52  ;;  %v1633_v27 = vadd.f32 %v1609_v24, %v1575_v33  ;;  %v5354_v41 = vmul.f32 %v5100_v7, %v867_v3  ;;  %v5380_v24 = vpop.f32.mrf.mxu3 }
 0x149   : > { %v5338_v8 = vsel %vm1303_vm2, %v7482_v43, %v1295_v45  ;;  %7483 = vst [vmem:[#allocation70_spill] sm:$0xff] %v5351_v13  ;;  %v814_v34 = vmax.f32 %v693_v9, 0.0  ;;  %v1869_v2 = vmax.f32 %v1845_v30, 0.0  ;;  %v5360_v20 = vsel %vm1403_vm3, %v1396_v10, %v7357_v36  ;;  %v5367_v33 = vpop.f32.mrf.mxu0  ;;  %v5376_v10 = vld [vmem:[%s7294_s4 + $0x4] ss:$0 sm:$0xff]  ;;  %v7488_v36 = vld [vmem:[#allocation8_spill] sm:$0xff] }
 0x14a   : > { %v836_v51 = vmax.f32 %v759_v42, 0.0  ;;  %v5363_v4 = vrot.slane %v5327_v61, 1  ;;  %v1684_v43 = vadd.f32 %v1660_v14, %v1633_v27  ;;  %v1718_v52 = vmul.f32 %v4609_v38, %v5338_v8  ;;  %7485 = vst [vmem:[#allocation72_spill] sm:$0xff] %v5380_v24 }
 0x14b   : > { %v5371_v7 = vadd.f32 %v5042_v15, %v4977_v1  ;;  %v1467_v3 = vadd.f32 %v1443_v59, %v1367_v47  ;;  %v1552_v9 = vmul.f32 %v5376_v10, %v5176_v46  ;;  %v1893_v42 = vmin.f32 %v1869_v2, 6.0 }
 0x14c   : > { %v1242_v38 = vmul.f32 %v5157_v6, %v4900_v49  ;;  %v1344_v30 = vmul.f32 %v5128_v21, %v5056_v18  ;;  %v1742_v1 = vadd.f32 %v1718_v52, %v1684_v43  ;;  %v1776_v47 = vmul.f32 %v4628_v5, %v5360_v20 }
 0x14d   : > { %7484 = vst [vmem:[#allocation71_spill] sm:$0xff] %v5371_v7  ;;  %v5389_v14 = vmul.f32 %v5196_v23, %v889_v56  ;;  %v1296_v59 = vrot.slane %v5354_v41, 1  ;;  %v868_v27 = vmin.f32 %v814_v34, 6.0  ;;  %3680 = vmatmul.msk.f32.gmra.mxu1 %vm1910_vm4, %v1893_v42  ;;  %v1518_v2 = vadd.f32 %v1494_v62, %v1467_v3 }
 0x14e   : > { %v1243_v16 = vmul.f32 %v5157_v6, %v5000_v32  ;;  %v5395_v49 = vmin.f32 %v836_v51, 6.0  ;;  %v7489_v18 = vrot.slane %v7488_v36, 1  ;;  %v1800_v23 = vadd.f32 %v1776_v47, %v1742_v1 }
 0x14f   : > { %7486 = vst [vmem:[#allocation73_spill] sm:$0xff] %v5389_v14  ;;  %v1244_v56 = vmul.f32 %v5157_v6, %v5071_v12  ;;  %v5408_v62 = vrot.slane %v5327_v61, 2  ;;  %v1576_v43 = vadd.f32 %v1552_v9, %v1518_v2  ;;  %v2398_v32 = vmul.f32 %v5157_v6, %v5327_v61  ;;  %v5419_v12 = vld [vmem:[%s7294_s4 + $0x5] ss:$0 sm:$0xff] }
 0x150   : > { %7487 = vst [vmem:[#allocation74_spill] sm:$0xff] %v5395_v49  ;;  %v5402_v5 = vsel %vm1303_vm2, %v5363_v4, %v7489_v18  ;;  %v1368_v51 = vadd.f32 %v1344_v30, %v1242_v38  ;;  %v1846_v52 = vadd.f32 %v4644_v55, %v1800_v23  ;;  %v1398_v3 = vrot.slane %v5354_v41, 2  ;;  %v5464_v25 = vpop.f32.mrf.mxu3 }
 0x151   : > { %v2483_v42 = vmul.f32 %v5128_v21, %v5402_v5  ;;  %v1610_v1 = vmul.f32 %v5419_v12, %v5208_v37  ;;  %v5424_v9 = vmul.f32 %v5117_v26, %v868_v27  ;;  %v5430_v55 = vsel %vm1303_vm2, %v1295_v45, %v1296_v59  ;;  %v1010_v27 = vpop.permute.xlu1 %1009  ;;  %7491 = vst [vmem:[#allocation75_spill] sm:$0xff] %v5464_v25 }
 0x152   : > { %v1444_v38 = vmul.f32 %v5189_v29, %v5088_v31  ;;  %v1345_v30 = vmul.f32 %v5128_v21, %v5123_v50  ;;  %v774_v47 = vadd.f32 %v5042_v15, %v5304_v19  ;;  %v1870_v2 = vmax.f32 %v1846_v52, 0.0  ;;  %v5457_v52 = vld [vmem:[%s7294_s4 + $0x7] ss:$0 sm:$0xff] }
 0x153   : > { %v1495_v26 = vmul.f32 %v5247_v40, %v5108_v39  ;;  %v696_v18 = vadd.f32 %v5042_v15, %v5299_v28  ;;  %v1634_v23 = vadd.f32 %v1610_v1, %v1576_v43  ;;  %v1661_v45 = vmul.f32 %v5343_v11, %v5285_v58  ;;  %v701_v43 = vpop.f32.mrf.mxu0 }
 0x154   : > { %v5446_v31 = vmul.f32 %v5247_v40, %v5327_v61  ;;  %v1894_v50 = vmin.f32 %v1870_v2, 6.0  ;;  %v7490_v34 = vrot.slane %v5285_v58, 2  ;;  %v1719_v28 = vmul.f32 %v5457_v52, %v5430_v55 }
 0x155   : > { %v1468_v1 = vadd.f32 %v1444_v38, %v1368_v51  ;;  %v7364_v44 = vrot.slane %v5424_v9, 1  ;;  %v1553_v2 = vmul.f32 %v5376_v10, %v5270_v17  ;;  %v1685_v24 = vadd.f32 %v1661_v45, %v1634_v23  ;;  %v5474_v51 = vld [vmem:[%s7294_s4 + $0x8] ss:$0 sm:$0xff] }
 0x156   : > { %v5452_v19 = vsel %vm1403_vm3, %v7490_v34, %v1398_v3  ;;  %v5466_v34 = vadd.f32 %v2483_v42, %v2398_v32  ;;  %v1369_v48 = vadd.f32 %v1345_v30, %v1243_v16  ;;  %v1346_v13 = vmul.f32 %v5128_v21, %v5176_v46  ;;  %3681 = vmatmul.msk.f32.gmra.mxu1 %vm1910_vm4, %v1894_v50 }
 0x157   : > { %v841_v22 = vmax.f32 %v774_v47, 0.0  ;;  %v815_v7 = vmax.f32 %v696_v18, 0.0  ;;  %v1743_v49 = vadd.f32 %v1719_v28, %v1685_v24  ;;  %v1777_v38 = vmul.f32 %v5474_v51, %v5452_v19 }
 0x158   : > { %7492 = vst [vmem:[#allocation76_spill] sm:$0xff] %v5466_v34  ;;  %v1519_v23 = vadd.f32 %v1495_v26, %v1468_v1  ;;  %v1245_v16 = vmul.f32 %v5157_v6, %v5108_v39  ;;  %v1246_v46 = vmul.f32 %v5157_v6, %v5199_v53  ;;  %v1445_v32 = vmul.f32 %v5189_v29, %v5145_v0 }
 0x159   : > { %v1347_v24 = vmul.f32 %v5128_v21, %v5270_v17  ;;  %v1801_v42 = vadd.f32 %v1777_v38, %v1743_v49  ;;  %v5490_v30 = vsel %vm1303_vm2, %v1296_v59, %v7364_v44  ;;  %v7363_v47 = vrot.slane %v5424_v9, 2  ;;  %v5502_v59 = vld [vmem:[%s7295_s5] ss:$0 sm:$0xff] }
 0x15a   : > { %v1577_v26 = vadd.f32 %v1553_v2, %v1519_v23  ;;  %v1370_v39 = vadd.f32 %v1346_v13, %v1244_v56  ;;  %v895_v18 = vmin.f32 %v841_v22, 6.0  ;;  %v1611_v45 = vmul.f32 %v5419_v12, %v5295_v60 }
 0x15b   : > { %v1662_v0 = vmul.f32 %v5343_v11, %v5354_v41  ;;  %v1496_v17 = vmul.f32 %v5247_v40, %v5199_v53  ;;  %v1469_v49 = vadd.f32 %v1445_v32, %v1369_v48  ;;  %v869_v50 = vmin.f32 %v815_v7, 6.0  ;;  %v1140_v53 = vpop.permute.xlu1 %1139 }
 0x15c   : > { %v1847_v28 = vadd.f32 %v5502_v59, %v1801_v42  ;;  %v1446_v22 = vmul.f32 %v5189_v29, %v5208_v37  ;;  %v699_v13 = vadd.f32 %v5042_v15, %v5367_v33  ;;  %v1635_v56 = vadd.f32 %v1611_v45, %v1577_v26  ;;  %v704_v42 = vpop.f32.mrf.mxu0  ;;  %v782_v45 = vpop.f32.mrf.mxu3 }
 0x15d   : > { %v1720_v1 = vmul.f32 %v5457_v52, %v5490_v30  ;;  %v1247_v48 = vmul.f32 %v5157_v6, %v5285_v58  ;;  %v1371_v7 = vadd.f32 %v1347_v24, %v1245_v16  ;;  %v5517_v38 = vsel %vm1403_vm3, %v1398_v3, %v7363_v47 }
 0x15e   : > { %v1871_v2 = vmax.f32 %v1847_v28, 0.0  ;;  %v5521_v37 = vmul.f32 %v5247_v40, %v5285_v58  ;;  %v5523_v33 = vadd.f32 %v1446_v22, %v1370_v39  ;;  %v5525_v23 = vmul.f32 %v1140_v53, %v895_v18 }
 0x15f   : > { %v1686_v32 = vadd.f32 %v1662_v0, %v1635_v56  ;;  %v5529_v16 = vmul.f32 %v5157_v6, %v5354_v41  ;;  %v1447_v24 = vmul.f32 %v5189_v29, %v5295_v60  ;;  %v5533_v26 = vmul.f32 %v1010_v27, %v869_v50 }
 0x160   : > { %7493 = vst [vmem:[#allocation77_spill] sm:$0xff] %v5525_v23  ;;  %v1895_v3 = vmin.f32 %v1871_v2, 6.0  ;;  %v1348_v58 = vmul.f32 %v5128_v21, %v5338_v8  ;;  %v816_v39 = vmax.f32 %v699_v13, 0.0  ;;  %v1778_v18 = vmul.f32 %v5474_v51, %v5517_v38  ;;  %v1020_v2 = vpop.permute.xlu2 %1019 }
 0x161   : > { %v1744_v28 = vadd.f32 %v1720_v1, %v1686_v32  ;;  %v5541_v0 = vmul.f32 %v5247_v40, %v5354_v41  ;;  %v5543_v22 = vadd.f32 %v1447_v24, %v1371_v7  ;;  %v702_v60 = vadd.f32 %v5042_v15, %v701_v43 }
 0x162   : > { %3682 = vmatmul.msk.f32.gmra.mxu1 %vm1910_vm4, %v1895_v3  ;;  %v705_v27 = vadd.f32 %v5042_v15, %v704_v42  ;;  %v5550_v50 = vmul.f32 %v5157_v6, %v5525_v23  ;;  %v5553_v13 = vrot.slane %v5525_v23, 1  ;;  %v783_v56 = vadd.f32 %v5042_v15, %v782_v45 }
 0x163   : > { %v1802_v1 = vadd.f32 %v1778_v18, %v1744_v28  ;;  %v5557_v41 = vrot.slane %v5525_v23, 2  ;;  %v1298_v53 = vrot.slane %v5533_v26, 1  ;;  %v1554_v43 = vmul.f32 %v5376_v10, %v5338_v8 }
 0x164   : > { %7494 = vst [vmem:[#allocation78_spill] sm:$0xff] %v5553_v13  ;;  %v818_v7 = vmax.f32 %v705_v27, 0.0  ;;  %v5564_v32 = vmul.f32 %v5157_v6, %v5424_v9  ;;  %v1372_v42 = vadd.f32 %v1348_v58, %v1246_v46  ;;  %v870_v24 = vmin.f32 %v816_v39, 6.0  ;;  %v1015_v58 = vpop.permute.xlu0 %1014  ;;  %v7496_v39 = vld [vmem:[#allocation5_spill] sm:$0xff] }
 0x165   : > { %7495 = vst [vmem:[#allocation79_spill] sm:$0xff] %v5557_v41  ;;  %v1848_v3 = vadd.f32 %v5502_v59, %v1802_v1  ;;  %v1349_v45 = vmul.f32 %v5128_v21, %v5430_v55  ;;  %v817_v28 = vmax.f32 %v702_v60, 0.0  ;;  %v1520_v47 = vadd.f32 %v1496_v17, %v1469_v49 }
 0x166   : > { %v872_v18 = vmin.f32 %v818_v7, 6.0  ;;  %v5569_v44 = vpop.f32.mrf.mxu1  ;;  %v5573_v8 = vmul.f32 %v5247_v40, %v5424_v9  ;;  %v1448_v27 = vmul.f32 %v5189_v29, %v5360_v20  ;;  %v844_v23 = vmax.f32 %v783_v56, 0.0 }
 0x167   : > { %v1872_v46 = vmax.f32 %v1848_v3, 0.0  ;;  %v7497_v25 = vrot.slane %v5424_v9, 1  ;;  %v1400_v49 = vrot.slane %v5533_v26, 2  ;;  %v1578_v60 = vadd.f32 %v1554_v43, %v1520_v47 }
 0x168   : > { %v5578_v1 = vmul.f32 %v7496_v39, %v872_v18  ;;  %v1612_v7 = vmul.f32 %v5419_v12, %v5360_v20  ;;  %v5589_v14 = vmul.f32 %v1015_v58, %v870_v24  ;;  %v1663_v3 = vmul.f32 %v5343_v11, %v5424_v9  ;;  %v1155_v57 = vpop.permute.xlu2 %1154 }
 0x169   : > { %v5584_v17 = vsel %vm1303_vm2, %v7497_v25, %v1298_v53  ;;  %v1896_v56 = vmin.f32 %v1872_v46, 6.0  ;;  %v5595_v18 = vmul.f32 %v5157_v6, %v5533_v26  ;;  %v5597_v39 = vadd.f32 %v1448_v27, %v1372_v42  ;;  %v707_v27 = vpop.f32.mrf.mxu0 }
 0x16a   : > { %v1373_v25 = vadd.f32 %v1349_v45, %v1247_v48  ;;  %v871_v63 = vmin.f32 %v817_v28, 6.0  ;;  %v5601_v47 = vmul.f32 %v5247_v40, %v5533_v26  ;;  %v1350_v20 = vmul.f32 %v5128_v21, %v5490_v30 }
 0x16b   : > { %3683 = vmatmul.msk.f32.gmra.mxu1 %vm1910_vm4, %v1896_v56  ;;  %v1636_v43 = vadd.f32 %v1612_v7, %v1578_v60  ;;  %v1721_v24 = vmul.f32 %v5457_v52, %v5584_v17  ;;  %v1449_v46 = vmul.f32 %v5189_v29, %v5452_v19  ;;  %v898_v42 = vmin.f32 %v844_v23, 6.0 }
 0x16c   : > { %v5611_v48 = vrot.slane %v5578_v1, 1  ;;  %v7498_v45 = vrot.slane %v5424_v9, 2  ;;  %v1555_v58 = vmul.f32 %v5376_v10, %v5430_v55  ;;  %v1613_v60 = vmul.f32 %v5419_v12, %v5452_v19 }
 0x16d   : > { %v1687_v7 = vadd.f32 %v1663_v3, %v1636_v43  ;;  %v5626_v23 = vmul.f32 %v5157_v6, %v5589_v14  ;;  %v5630_v9 = vmul.f32 %v5247_v40, %v5589_v14  ;;  %v5632_v56 = vadd.f32 %v1449_v46, %v1373_v25 }
 0x16e   : > { %v5617_v28 = vsel %vm1403_vm3, %v7498_v45, %v1400_v49  ;;  %v5634_v45 = vmul.f32 %v1020_v2, %v871_v63  ;;  %v1374_v55 = vadd.f32 %v1350_v20, %v5529_v16  ;;  %v1450_v19 = vmul.f32 %v5189_v29, %v5517_v38 }
 0x16f   : > { %v1745_v3 = vadd.f32 %v1721_v24, %v1687_v7  ;;  %v1779_v43 = vmul.f32 %v5474_v51, %v5617_v28  ;;  %v5641_v35 = vmul.f32 %v1155_v57, %v898_v42  ;;  %v5644_v34 = vrot.slane %v5578_v1, 2 }
 0x170   : > { %v2479_v63 = vsel %vm1303_vm2, %v5553_v13, %v5611_v48  ;;  %v1521_v16 = vadd.f32 %v5521_v37, %v5523_v33  ;;  %v5652_v2 = vpop.f32.mrf.mxu1  ;;  %v708_v20 = vadd.f32 %v5042_v15, %v707_v27  ;;  %v7500_v24 = vrot.slane %v5589_v14, 1 }
 0x171   : > { %7499 = vst [vmem:[#allocation5_spill] sm:$0xff] %v5641_v35  ;;  %v1803_v25 = vadd.f32 %v1779_v43, %v1745_v3  ;;  %v7376_v46 = vrot.slane %v5589_v14, 2  ;;  %v5661_v42 = vrot.slane %v5634_v45, 1  ;;  %v1556_v7 = vmul.f32 %v5376_v10, %v5490_v30 }
 0x172   : > { %v1305_v57 = vsel %vm1303_vm2, %v1298_v53, %v7500_v24  ;;  %v1579_v13 = vadd.f32 %v1555_v58, %v1521_v16  ;;  %v1664_v37 = vmul.f32 %v5343_v11, %v5533_v26  ;;  %v5667_v33 = vadd.f32 %v1450_v19, %v1374_v55 }
 0x173   : > { %v1614_v15 = vmul.f32 %v5419_v12, %v5517_v38  ;;  %v2503_v27 = vmul.f32 %v5128_v21, %v2479_v63  ;;  %v1849_v53 = vadd.f32 %v5502_v59, %v1803_v25  ;;  %v5674_v3 = vrot.slane %v5641_v35, 1 }
 0x174   : > { %v1351_v43 = vmul.f32 %v5128_v21, %v5584_v17  ;;  %v1637_v30 = vadd.f32 %v1613_v60, %v1579_v13  ;;  %v1722_v58 = vmul.f32 %v5457_v52, %v1305_v57  ;;  %v2564_v26 = vsel %vm1403_vm3, %v5557_v41, %v5644_v34  ;;  %v7503_v13 = vld [vmem:[#allocation20_spill] sm:$0xff] }
 0x175   : > { %7501 = vst [vmem:[#allocation80_spill] sm:$0xff] %v5674_v3  ;;  %v1873_v55 = vmax.f32 %v1849_v53, 0.0  ;;  %v819_v38 = vmax.f32 %v708_v20, 0.0  ;;  %v1405_v19 = vsel %vm1403_vm3, %v1400_v49, %v7376_v46  ;;  %v2636_v63 = vmul.f32 %v5247_v40, %v5641_v35 }
 0x176   : > { %v5690_v16 = vrot.slane %v5641_v35, 2  ;;  %v7504_v60 = vrot.slane %v7503_v13, 1  ;;  %v1688_v24 = vadd.f32 %v1664_v37, %v1637_v30  ;;  %v5699_v20 = vmul.f32 %v5157_v6, %v5634_v45 }
 0x177   : > { %v5703_v49 = vmul.f32 %v5247_v40, %v5634_v45  ;;  %v1897_v53 = vmin.f32 %v1873_v55, 6.0  ;;  %v2527_v46 = vadd.f32 %v2503_v27, %v5550_v50  ;;  %v1352_v35 = vmul.f32 %v5128_v21, %v1305_v57 }
 0x178   : > { %7502 = vst [vmem:[#allocation81_spill] sm:$0xff] %v5690_v16  ;;  %v1327_v25 = vsel %vm1303_vm2, %v5661_v42, %v7504_v60  ;;  %v1746_v41 = vadd.f32 %v1722_v58, %v1688_v24  ;;  %v1780_v61 = vmul.f32 %v5474_v51, %v1405_v19  ;;  %v2588_v36 = vmul.f32 %v5189_v29, %v2564_v26  ;;  %v2006_v24 = vpop.f32.mrf.mxu1 }
 0x179   : > { %v2667_v37 = vsel %vm1303_vm2, %v5674_v3, %v5363_v4  ;;  %v5714_v30 = vmul.f32 %v5128_v21, %v1327_v25  ;;  %v1375_v60 = vadd.f32 %v1351_v43, %v5564_v32  ;;  %3684 = vmatmul.msk.f32.gmra.mxu1 %vm1910_vm4, %v1897_v53  ;;  %v873_v50 = vmin.f32 %v819_v38, 6.0 }
 0x17a   : > { %v1451_v27 = vmul.f32 %v5189_v29, %v5617_v28  ;;  %v1557_v58 = vmul.f32 %v5376_v10, %v5584_v17  ;;  %v1804_v26 = vadd.f32 %v1780_v61, %v1746_v41  ;;  %v2612_v55 = vadd.f32 %v2588_v36, %v2527_v46  ;;  %v7505_v46 = vld [vmem:[#allocation6_spill] sm:$0xff] }
 0x17b   : > { %v5724_v3 = vmul.f32 %v5247_v40, %v5578_v1  ;;  %v1615_v25 = vmul.f32 %v5419_v12, %v5617_v28  ;;  %v2722_v32 = vsel %vm1403_vm3, %v5690_v16, %v5408_v62  ;;  %v1522_v43 = vadd.f32 %v5541_v0, %v5543_v22 }
 0x17c   : > { %v1376_v17 = vadd.f32 %v1352_v35, %v5595_v18  ;;  %v1850_v36 = vadd.f32 %v5502_v59, %v1804_v26  ;;  %v2660_v61 = vadd.f32 %v2636_v63, %v2612_v55  ;;  %v2691_v41 = vmul.f32 %v5376_v10, %v2667_v37  ;;  %v5749_v35 = vld [vmem:[%s7297_s7] ss:$0 sm:$0xff] }
 0x17d   : > { %v5738_v38 = vmul.f32 %v7505_v46, %v873_v50  ;;  %v7506_v28 = vrot.slane %v5589_v14, 1  ;;  %v1402_v24 = vrot.slane %v5634_v45, 2  ;;  %v1580_v16 = vadd.f32 %v1556_v7, %v1522_v43 }
 0x17e   : > { %v1874_v0 = vmax.f32 %v1850_v36, 0.0  ;;  %v2715_v22 = vadd.f32 %v2691_v41, %v2660_v61  ;;  %v2746_v18 = vmul.f32 %v5419_v12, %v2722_v32  ;;  %v1665_v63 = vmul.f32 %v5343_v11, %v5589_v14 }
 0x17f   : > { %v1304_v53 = vsel %vm1303_vm2, %v7506_v28, %v5661_v42  ;;  %v2395_v37 = vmul.f32 %v5157_v6, %v5578_v1  ;;  %v5756_v50 = vadd.f32 %v1451_v27, %v1375_v60  ;;  %v1452_v26 = vmul.f32 %v5189_v29, %v1405_v19 }
 0x180   : > { %v1558_v7 = vmul.f32 %v5376_v10, %v1305_v57  ;;  %v1898_v55 = vmin.f32 %v1874_v0, 6.0  ;;  %v5760_v43 = vadd.f32 %v2746_v18, %v2715_v22  ;;  %v1638_v36 = vadd.f32 %v1614_v15, %v1580_v16 }
 0x181   : > { %v1723_v61 = vmul.f32 %v5457_v52, %v1304_v53  ;;  %v1531_v32 = vrot.slane %v5738_v38, 1  ;;  %v1616_v41 = vmul.f32 %v5419_v12, %v1405_v19  ;;  %v7508_v46 = vrot.slane %v5589_v14, 2 }
 0x182   : > { %7507 = vst [vmem:[#allocation20_spill] sm:$0xff] %v5760_v43  ;;  %v1523_v27 = vadd.f32 %v5573_v8, %v5597_v39  ;;  %v5771_v57 = vadd.f32 %v1452_v26, %v1376_v17  ;;  %3685 = vmatmul.msk.f32.gmra.mxu1 %vm1910_vm4, %v1898_v55  ;;  %v2001_v15 = vadd.f32 %v5749_v35, %v5569_v44  ;;  %v3654_v8 = vld [vmem:[%s4072_s14 + $0x19] sm:$0xff] }
 0x183   : > { %v1404_v60 = vsel %vm1403_vm3, %v7508_v46, %v1402_v24  ;;  %v1689_v16 = vadd.f32 %v1665_v63, %v1638_v36  ;;  %v1535_v19 = vsel %vm1303_vm2, %v5661_v42, %v5611_v48  ;;  %v1504_v14 = vmul.f32 %v5247_v40, %v5738_v38  ;;  %v5788_v0 = vpop.f32.mrf.mxu1 }
 0x184   : > { %v5784_v28 = vmul.f32 %v5157_v6, %v5738_v38  ;;  %v1353_v39 = vmul.f32 %v5128_v21, %v1304_v53  ;;  %v1581_v17 = vadd.f32 %v1557_v58, %v1523_v27  ;;  %v1781_v22 = vmul.f32 %v5474_v51, %v1404_v60 }
 0x185   : > { %v1747_v44 = vadd.f32 %v1723_v61, %v1689_v16  ;;  %v5794_v42 = vsel %vm1403_vm3, %v1402_v24, %v5644_v34  ;;  %v1666_v40 = vmul.f32 %v5343_v11, %v5634_v45  ;;  %v1724_v63 = vmul.f32 %v5457_v52, %v1535_v19 }
 0x186   : > { %v1639_v18 = vadd.f32 %v1615_v25, %v1581_v17  ;;  %v1524_v26 = vadd.f32 %v5601_v47, %v5632_v56  ;;  %v1534_v58 = vsel %vm1303_vm2, %v5611_v48, %v1531_v32  ;;  %v5804_v55 = vadd.f32 %v3654_v8, %v2001_v15 }
 0x187   : > { %v1559_v36 = vmul.f32 %v5376_v10, %v1304_v53  ;;  %v1805_v61 = vadd.f32 %v1781_v22, %v1747_v44  ;;  %v1589_v46 = vrot.slane %v5738_v38, 2  ;;  %v1667_v45 = vmul.f32 %v5343_v11, %v5578_v1 }
 0x188   : > { %v1690_v27 = vadd.f32 %v1666_v40, %v1639_v18  ;;  %v1582_v16 = vadd.f32 %v1558_v7, %v1524_v26  ;;  %v2480_v25 = vmul.f32 %v5128_v21, %v1534_v58  ;;  %v1377_v47 = vadd.f32 %v1353_v39, %v5626_v23  ;;  %v7510_v40 = vld [vmem:[#allocation15_spill] sm:$0xff] }
 0x189   : > { %v7509_v56 = vrot.slane %v7503_v13, 2  ;;  %v1851_v53 = vadd.f32 %v5502_v59, %v1805_v61  ;;  %v1782_v15 = vmul.f32 %v5474_v51, %v5794_v42  ;;  %v1725_v1 = vmul.f32 %v5457_v52, %v1534_v58  ;;  %v3655_v61 = vld [vmem:[%s4072_s14 + $0x21] sm:$0xff] }
 0x18a   : > { %v1748_v8 = vadd.f32 %v1724_v63, %v1690_v27  ;;  %v1640_v7 = vadd.f32 %v1616_v41, %v1582_v16  ;;  %v1525_v17 = vadd.f32 %v5630_v9, %v5667_v33  ;;  %v1453_v23 = vmul.f32 %v5189_v29, %v1404_v60 }
 0x18b   : > { %v5816_v48 = vsel %vm1403_vm3, %v1402_v24, %v7509_v56  ;;  %v1875_v13 = vmax.f32 %v1851_v53, 0.0  ;;  %v5828_v24 = vsel %vm1403_vm3, %v5644_v34, %v1589_v46  ;;  %v2504_v39 = vadd.f32 %v2480_v25, %v2395_v37 }
 0x18c   : > { %v1806_v44 = vadd.f32 %v1782_v15, %v1748_v8  ;;  %v1691_v22 = vadd.f32 %v1667_v45, %v1640_v7  ;;  %v1533_v41 = vsel %vm1303_vm2, %v1531_v32, %v7510_v40  ;;  %v1583_v18 = vadd.f32 %v1559_v36, %v1525_v17  ;;  %v5842_v45 = vpop.f32.mrf.mxu1  ;;  %v7511_v32 = vld [vmem:[#allocation16_spill] sm:$0xff] }
 0x18d   : > { %v1477_v63 = vadd.f32 %v1453_v23, %v1377_v47  ;;  %v1617_v26 = vmul.f32 %v5419_v12, %v1404_v60  ;;  %v1899_v9 = vmin.f32 %v1875_v13, 6.0  ;;  %v2004_v33 = vadd.f32 %v5749_v35, %v5652_v2 }
 0x18e   : > { %v1852_v27 = vadd.f32 %v5502_v59, %v1806_v44  ;;  %v1749_v34 = vadd.f32 %v1725_v1, %v1691_v22  ;;  %v1783_v37 = vmul.f32 %v5474_v51, %v5828_v24  ;;  %v2565_v16 = vmul.f32 %v5189_v29, %v5828_v24  ;;  %v7514_v22 = vld [vmem:[#allocation17_spill] sm:$0xff] }
 0x18f   : > { %3686 = vmatmul.msk.f32.gmra.mxu1 %vm1910_vm4, %v1899_v9  ;;  %v1591_v60 = vsel %vm1403_vm3, %v1589_v46, %v7511_v32  ;;  %v1641_v36 = vadd.f32 %v1617_v26, %v1583_v18  ;;  %v1668_v2 = vmul.f32 %v5343_v11, %v5738_v38  ;;  %v1726_v25 = vmul.f32 %v5457_v52, %v1533_v41  ;;  %v7512_v38 = vld [vmem:[#allocation22_spill] sm:$0xff] }
 0x190   : > { %v1876_v47 = vmax.f32 %v1852_v27, 0.0  ;;  %v1807_v56 = vadd.f32 %v1783_v37, %v1749_v34  ;;  %v2589_v53 = vadd.f32 %v2565_v16, %v2504_v39  ;;  %v2481_v15 = vmul.f32 %v5128_v21, %v1533_v41  ;;  %v7516_v26 = vld [vmem:[#allocation18_spill] sm:$0xff]  ;;  %v7517_v16 = vld [vmem:[#allocation37_spill] sm:$0xff] }
 0x191   : > { %v1528_v8 = vadd.f32 %v1504_v14, %v1477_v63  ;;  %v5852_v7 = vadd.f32 %v3655_v61, %v2004_v33  ;;  %v1560_v1 = vmul.f32 %v5376_v10, %v1535_v19  ;;  %v1692_v17 = vadd.f32 %v1668_v2, %v1641_v36 }
 0x192   : > { %v1853_v23 = vadd.f32 %v5502_v59, %v1807_v56  ;;  %v1562_v46 = vmul.f32 %v5376_v10, %v1533_v41  ;;  %v1784_v13 = vmul.f32 %v5474_v51, %v1591_v60  ;;  %v7513_v44 = vrot.slane %v7512_v38, 1  ;;  %v7518_v56 = vld [vmem:[#allocation8_spill] sm:$0xff] }
 0x193   : > { %v1900_v18 = vmin.f32 %v1876_v47, 6.0  ;;  %v1750_v14 = vadd.f32 %v1726_v25, %v1692_v17  ;;  %v7515_v19 = vrot.slane %v7512_v38, 2  ;;  %v2505_v33 = vadd.f32 %v2481_v15, %v5784_v28 }
 0x194   : > { %v5863_v39 = vsel %vm1303_vm2, %v7514_v22, %v7513_v44  ;;  %v1877_v9 = vmax.f32 %v1853_v23, 0.0  ;;  %v2637_v27 = vadd.f32 %v5446_v31, %v2589_v53  ;;  %v1618_v34 = vmul.f32 %v5419_v12, %v5794_v42 }
 0x195   : > { %v2486_v63 = vmul.f32 %v5128_v21, %v5863_v39  ;;  %v5872_v41 = vsel %vm1403_vm3, %v7516_v26, %v7515_v19  ;;  %v5881_v37 = vmul.f32 %v5376_v10, %v1534_v58  ;;  %v2668_v2 = vmul.f32 %v5376_v10, %v5402_v5  ;;  %v7520_v19 = vld [vmem:[#allocation14_spill] sm:$0xff] }
 0x196   : > { %v2571_v61 = vmul.f32 %v5189_v29, %v5872_v41  ;;  %v5888_v25 = vadd.f32 %v5749_v35, %v5788_v0  ;;  %v1808_v28 = vadd.f32 %v1784_v13, %v1750_v14  ;;  %v2566_v47 = vmul.f32 %v5189_v29, %v1591_v60  ;;  %v2014_v14 = vpop.f32.mrf.mxu1 }
 0x197   : > { %v2510_v36 = vadd.f32 %v2486_v63, %v7517_v16  ;;  %v7519_v31 = vrot.slane %v7518_v56, 2  ;;  %3687 = vmatmul.msk.f32.gmra.mxu1 %vm1910_vm4, %v1900_v18  ;;  %v1586_v58 = vadd.f32 %v1562_v46, %v1528_v8  ;;  %v2692_v15 = vadd.f32 %v2668_v2, %v2637_v27 }
 0x198   : > { %v1901_v17 = vmin.f32 %v1877_v9, 6.0  ;;  %v1620_v23 = vmul.f32 %v5419_v12, %v1591_v60  ;;  %v2590_v13 = vadd.f32 %v2566_v47, %v2505_v33  ;;  %v1526_v44 = vadd.f32 %v5703_v49, %v5756_v50  ;;  %v7521_v33 = vld [vmem:[#allocation13_spill] sm:$0xff] }
 0x199   : > { %v5896_v42 = vsel %vm1403_vm3, %v5408_v62, %v7519_v31  ;;  %v5899_v53 = vadd.f32 %v2571_v61, %v2510_v36  ;;  %v2771_v16 = vmul.f32 %v5343_v11, %v7520_v19  ;;  %v1702_v8 = vsel %vm1303_vm2, %v7510_v40, %v5363_v4  ;;  %v7522_v36 = vld [vmem:[#allocation24_spill] sm:$0xff] }
 0x19a   : > { %v2723_v0 = vmul.f32 %v5419_v12, %v5896_v42  ;;  %v1760_v46 = vsel %vm1403_vm3, %v7511_v32, %v5408_v62  ;;  %v1854_v60 = vadd.f32 %v5502_v59, %v1808_v28  ;;  %v2826_v49 = vmul.f32 %v5457_v52, %v5863_v39 }
 0x19b   : > { %v2881_v50 = vmul.f32 %v5474_v51, %v5872_v41  ;;  %v1584_v18 = vadd.f32 %v1560_v1, %v1526_v44  ;;  %v1669_v61 = vmul.f32 %v5343_v11, %v7521_v33  ;;  %v2397_v4 = vmul.f32 %v5157_v6, %v7521_v33 }
 0x19c   : > { %v2747_v63 = vadd.f32 %v2723_v0, %v2692_v15  ;;  %v2482_v40 = vmul.f32 %v5128_v21, %v1702_v8  ;;  %v1727_v62 = vmul.f32 %v5457_v52, %v1702_v8  ;;  %v2567_v32 = vmul.f32 %v5189_v29, %v1760_v46 }
 0x19d   : > { %v1642_v27 = vadd.f32 %v1618_v34, %v1584_v18  ;;  %v7523_v2 = vrot.slane %v7522_v36, 1  ;;  %v7524_v28 = vrot.slane %v7512_v38, 1  ;;  %v7525_v15 = vrot.slane %v7522_v36, 2 }
 0x19e   : > { %v2795_v9 = vadd.f32 %v2771_v16, %v2747_v63  ;;  %v2506_v31 = vadd.f32 %v2482_v40, %v2397_v4  ;;  %v7526_v34 = vrot.slane %v7512_v38, 2  ;;  %v7527_v63 = vld [vmem:[#allocation33_spill] sm:$0xff]  ;;  %v7528_v16 = vld [vmem:[#allocation11_spill] sm:$0xff]  ;;  %v1785_v40 = vmul.f32 %v5474_v51, %v1760_v46 }
 0x19f   : > { %v5934_v1 = vsel %vm1303_vm2, %v7524_v28, %v7523_v2  ;;  %v1693_v44 = vadd.f32 %v1669_v61, %v1642_v27  ;;  %v2638_v19 = vadd.f32 %v7527_v63, %v2590_v13  ;;  %v2669_v8 = vmul.f32 %v5376_v10, %v7528_v16  ;;  %3688 = vmatmul.msk.f32.gmra.mxu1 %vm1910_vm4, %v1901_v17  ;;  %v7530_v61 = vld [vmem:[#allocation12_spill] sm:$0xff] }
 0x1a0   : > { %v2850_v47 = vadd.f32 %v2826_v49, %v2795_v9  ;;  %v2487_v6 = vmul.f32 %v5128_v21, %v5934_v1  ;;  %v5944_v0 = vsel %vm1403_vm3, %v7526_v34, %v7525_v15  ;;  %v1878_v21 = vmax.f32 %v1854_v60, 0.0  ;;  %v7529_v9 = vld [vmem:[#allocation41_spill] sm:$0xff]  ;;  %v7531_v15 = vld [vmem:[#allocation36_spill] sm:$0xff] }
 0x1a1   : > { %v2572_v14 = vmul.f32 %v5189_v29, %v5944_v0  ;;  %v2591_v18 = vadd.f32 %v2567_v32, %v2506_v31  ;;  %v1751_v4 = vadd.f32 %v1727_v62, %v1693_v44  ;;  %v2693_v2 = vadd.f32 %v2669_v8, %v2638_v19 }
 0x1a2   : > { %v2905_v49 = vadd.f32 %v2881_v50, %v2850_v47  ;;  %v2511_v33 = vadd.f32 %v2487_v6, %v7529_v9  ;;  %v2724_v27 = vmul.f32 %v5419_v12, %v7530_v61  ;;  %v1619_v13 = vmul.f32 %v5419_v12, %v5828_v24  ;;  %v2016_v9 = vpop.f32.mrf.mxu1 }
 0x1a3   : > { %v2639_v34 = vadd.f32 %v7531_v15, %v2591_v18  ;;  %v1644_v60 = vadd.f32 %v1620_v23, %v1586_v58  ;;  %v1809_v50 = vadd.f32 %v1785_v40, %v1751_v4  ;;  %v2772_v62 = vmul.f32 %v5343_v11, %v7512_v38  ;;  %v7532_v23 = vld [vmem:[#allocation43_spill] sm:$0xff] }
 0x1a4   : > { %v2948_v28 = vadd.f32 %v5502_v59, %v2905_v49  ;;  %v5960_v17 = vadd.f32 %v2572_v14, %v2511_v33  ;;  %v2748_v32 = vadd.f32 %v2724_v27, %v2693_v2  ;;  %v1902_v46 = vmin.f32 %v1878_v21, 6.0  ;;  %v7537_v40 = vld [vmem:[#allocation19_spill] sm:$0xff] }
 0x1a5   : > { %v5966_v47 = vmul.f32 %v5189_v29, %v5896_v42  ;;  %v1527_v24 = vadd.f32 %v5724_v3, %v5771_v57  ;;  %v1855_v6 = vadd.f32 %v5502_v59, %v1809_v50  ;;  %v2827_v58 = vmul.f32 %v5457_v52, %v5934_v1  ;;  %v5985_v3 = vld [vmem:[%s7294_s4 + $0x1] ss:$0 sm:$0xff]  ;;  %v7538_v15 = vld [vmem:[#allocation7_spill] sm:$0xff] }
 0x1a6   : > { %v2972_v31 = vmax.f32 %v2948_v28, 0.0  ;;  %v2796_v44 = vadd.f32 %v2772_v62, %v2748_v32  ;;  %v7533_v14 = vrot.slane %v7532_v23, 1  ;;  %v7534_v63 = vrot.slane %v7522_v36, 1  ;;  %v7539_v32 = vld [vmem:[#allocation42_spill] sm:$0xff] }
 0x1a7   : > { %v1585_v8 = vadd.f32 %v5881_v37, %v1527_v24  ;;  %v7535_v21 = vrot.slane %v7532_v23, 2  ;;  %v7536_v49 = vrot.slane %v7522_v36, 2  ;;  %v2882_v37 = vmul.f32 %v5474_v51, %v5944_v0  ;;  %3689 = vmatmul.msk.f32.gmra.mxu1 %vm1910_vm4, %v1902_v46 }
 0x1a8   : > { %v5979_v38 = vsel %vm1303_vm2, %v7534_v63, %v7533_v14  ;;  %v2996_v19 = vmin.f32 %v2972_v31, 6.0  ;;  %v2851_v33 = vadd.f32 %v2827_v58, %v2796_v44  ;;  %v2670_v2 = vmul.f32 %v5376_v10, %v7537_v40  ;;  %v3656_v40 = vld [vmem:[%s4072_s14 + $0x31] sm:$0xff] }
 0x1a9   : > { %v2488_v57 = vmul.f32 %v5985_v3, %v5979_v38  ;;  %v5995_v18 = vsel %vm1403_vm3, %v7536_v49, %v7535_v21  ;;  %v2083_v27 = vrot.slane %v5804_v55, 4  ;;  %v1643_v28 = vadd.f32 %v1619_v13, %v1585_v8 }
 0x1aa   : > { %v2573_v4 = vmul.f32 %v5189_v29, %v5995_v18  ;;  %3710 = vmatmul.msk.f32.vlgmr.msra.gmra.mxu2 %vm1910_vm4, %v2996_v19  ;;  %v1670_v50 = vmul.f32 %v5343_v11, %v7538_v15  ;;  %v1879_v31 = vmax.f32 %v1855_v6, 0.0  ;;  %v2906_v24 = vadd.f32 %v2882_v37, %v2851_v33  ;;  %v7540_v29 = vld [vmem:[#allocation21_spill] sm:$0xff] }
 0x1ab   : > { %v2512_v62 = vadd.f32 %v2488_v57, %v7539_v32  ;;  %v2694_v44 = vadd.f32 %v2670_v2, %v2639_v34  ;;  %v2725_v58 = vmul.f32 %v5419_v12, %v7540_v29  ;;  %v1728_v63 = vmul.f32 %v5457_v52, %v5402_v5  ;;  %v3658_v57 = vld [vmem:[%s4072_s14 + $0x49] sm:$0xff] }
 0x1ac   : > { %v1694_v14 = vadd.f32 %v1670_v50, %v1643_v28  ;;  %v2773_v13 = vmul.f32 %v5343_v11, %v7522_v36  ;;  %v2949_v19 = vadd.f32 %v5502_v59, %v2906_v24  ;;  %v1786_v6 = vmul.f32 %v5474_v51, %v5896_v42 }
 0x1ad   : > { %v6013_v46 = vadd.f32 %v2573_v4, %v2512_v62  ;;  %v2749_v8 = vadd.f32 %v2725_v58, %v2694_v44  ;;  %v2828_v34 = vmul.f32 %v5457_v52, %v5979_v38  ;;  %v2017_v49 = vadd.f32 %v5749_v35, %v2016_v9  ;;  %v7541_v62 = vld [vmem:[#allocation28_spill] sm:$0xff]  ;;  %v2019_v58 = vpop.f32.mrf.mxu1 }
 0x1ae   : > { %v1752_v21 = vadd.f32 %v1728_v63, %v1694_v14  ;;  %v1671_v5 = vmul.f32 %v5343_v11, %v7518_v56  ;;  %v1903_v33 = vmin.f32 %v1879_v31, 6.0  ;;  %v2973_v37 = vmax.f32 %v2949_v19, 0.0 }
 0x1af   : > { %v2797_v36 = vadd.f32 %v2773_v13, %v2749_v8  ;;  %v2883_v4 = vmul.f32 %v5474_v51, %v5995_v18  ;;  %v2068_v2 = vadd.f32 %v3658_v57, %v2017_v49  ;;  %v1729_v15 = vmul.f32 %v5457_v52, %v7528_v16 }
 0x1b0   : > { %v1810_v42 = vadd.f32 %v1786_v6, %v1752_v21  ;;  %v1695_v28 = vadd.f32 %v1671_v5, %v1644_v60  ;;  %v2997_v50 = vmin.f32 %v2973_v37, 6.0  ;;  %v1787_v9 = vmul.f32 %v5474_v51, %v7530_v61  ;;  %3690 = vmatmul.msk.f32.gmra.mxu1 %vm1910_vm4, %v1903_v33 }
 0x1b1   : > { %v2852_v32 = vadd.f32 %v2828_v34, %v2797_v36  ;;  %v7542_v56 = vrot.slane %v7541_v62, 1  ;;  %v7543_v31 = vrot.slane %v7532_v23, 1  ;;  %v2080_v44 = vrot.slane %v2068_v2, 4  ;;  %v6067_v34 = vld [vmem:[%s7294_s4 + $0x2] ss:$0 sm:$0xff] }
 0x1b2   : > { %v1856_v60 = vadd.f32 %v5502_v59, %v1810_v42  ;;  %v6044_v16 = vsel %vm2081_vm5, %v2068_v2, %v2083_v27  ;;  %v1753_v29 = vadd.f32 %v1729_v15, %v1695_v28  ;;  %v6047_v61 = vadd.f32 %v3656_v40, %v5888_v25  ;;  %3711 = vmatmul.msk.f32.gmra.mxu2 %vm1910_vm4, %v2997_v50  ;;  %v7547_v40 = vld [vmem:[#allocation76_spill] sm:$0xff]  ;;  %v7548_v50 = vld [vmem:[#allocation38_spill] sm:$0xff] }
 0x1b3   : > { %v6039_v24 = vsel %vm1303_vm2, %v7543_v31, %v7542_v56  ;;  %v2907_v14 = vadd.f32 %v2883_v4, %v2852_v32  ;;  %v7544_v13 = vrot.slane %v7541_v62, 2  ;;  %v7545_v19 = vrot.slane %v7532_v23, 2 }
 0x1b4   : > { %v2489_v63 = vmul.f32 %v5985_v3, %v6039_v24  ;;  %v1880_v27 = vmax.f32 %v1856_v60, 0.0  ;;  %v6062_v8 = vsel %vm2081_vm5, %v2080_v44, %v5804_v55  ;;  %v1811_v25 = vadd.f32 %v1787_v9, %v1753_v29  ;;  %v7546_v55 = vld [vmem:[#allocation44_spill] sm:$0xff] }
 0x1b5   : > { %v6058_v6 = vsel %vm1403_vm3, %v7545_v19, %v7544_v13  ;;  %v1378_v21 = vadd.f32 %v5714_v30, %v5699_v20  ;;  %v1454_v49 = vmul.f32 %v6067_v34, %v5816_v48  ;;  %v2950_v5 = vadd.f32 %v5502_v59, %v2907_v14  ;;  %v3659_v9 = vld [vmem:[%s4072_s14 + $0x51] sm:$0xff]  ;;  %v7549_v14 = vld [vmem:[#allocation34_spill] sm:$0xff]  ;;  %v7551_v13 = vld [vmem:[#allocation9_spill] sm:$0xff] }
 0x1b6   : > { %v2574_v57 = vmul.f32 %v6067_v34, %v6058_v6  ;;  %v2513_v33 = vadd.f32 %v2489_v63, %v7546_v55  ;;  %v2195_v37 = vrot.slane %v5852_v7, 4  ;;  %v2671_v36 = vmul.f32 %v5376_v10, %v5863_v39  ;;  %v7557_v55 = vld [vmem:[#allocation23_spill] sm:$0xff] }
 0x1b7   : > { %v1857_v4 = vadd.f32 %v5502_v59, %v1811_v25  ;;  %v2592_v42 = vadd.f32 %v5966_v47, %v7547_v40  ;;  %v2095_v20 = vrot.slane %v6047_v61, 4  ;;  %v2726_v30 = vmul.f32 %v5419_v12, %v5872_v41 }
 0x1b8   : > { %v2974_v48 = vmax.f32 %v2950_v5, 0.0  ;;  %v6086_v2 = vadd.f32 %v2574_v57, %v2513_v33  ;;  %v6090_v28 = vadd.f32 %v5749_v35, %v5842_v45  ;;  %v2672_v39 = vmul.f32 %v5376_v10, %v5934_v1 }
 0x1b9   : > { %v1904_v15 = vmin.f32 %v1880_v27, 6.0  ;;  %v2640_v32 = vadd.f32 %v7548_v50, %v2592_v42  ;;  %v2727_v47 = vmul.f32 %v5419_v12, %v5944_v0  ;;  %v2020_v41 = vadd.f32 %v5749_v35, %v2019_v58  ;;  %v7550_v58 = vld [vmem:[#allocation26_spill] sm:$0xff]  ;;  %v7558_v42 = vld [vmem:[#allocation39_spill] sm:$0xff] }
 0x1ba   : > { %v2998_v56 = vmin.f32 %v2974_v48, 6.0  ;;  %v1478_v31 = vadd.f32 %v1454_v49, %v1378_v21  ;;  %v2673_v45 = vmul.f32 %v5376_v10, %v5979_v38  ;;  %v1881_v60 = vmax.f32 %v1857_v4, 0.0  ;;  %v7552_v38 = vld [vmem:[#allocation30_spill] sm:$0xff] }
 0x1bb   : > { %3691 = vmatmul.msk.f32.gmra.mxu1 %vm1910_vm4, %v1904_v15  ;;  %v2695_v44 = vadd.f32 %v2671_v36, %v2640_v32  ;;  %v2774_v1 = vmul.f32 %v5343_v11, %v7532_v23  ;;  %v2829_v29 = vmul.f32 %v5457_v52, %v6039_v24  ;;  %v2069_v0 = vadd.f32 %v3659_v9, %v2020_v41  ;;  %v2022_v36 = vpop.f32.mrf.mxu1  ;;  %v7560_v41 = vld [vmem:[#allocation27_spill] sm:$0xff] }
 0x1bc   : > { %3712 = vmatmul.msk.f32.gmra.mxu2 %vm1910_vm4, %v2998_v56  ;;  %v1529_v63 = vadd.f32 %v7549_v14, %v1478_v31  ;;  %v1703_v19 = vsel %vm1303_vm2, %v7551_v13, %v7550_v58  ;;  %v7553_v25 = vrot.slane %v7552_v38, 1  ;;  %v7554_v57 = vrot.slane %v7541_v62, 1  ;;  %v7561_v31 = vld [vmem:[#allocation10_spill] sm:$0xff]  ;;  %v7563_v13 = vld [vmem:[#allocation35_spill] sm:$0xff] }
 0x1bd   : > { %v2750_v27 = vadd.f32 %v2726_v30, %v2695_v44  ;;  %v7555_v21 = vrot.slane %v7552_v38, 2  ;;  %v7556_v49 = vrot.slane %v7541_v62, 2  ;;  %v2696_v33 = vadd.f32 %v2672_v39, %v7557_v55 }
 0x1be   : > { %v6118_v23 = vsel %vm1303_vm2, %v7554_v57, %v7553_v25  ;;  %v2193_v4 = vrot.slane %v2069_v0, 4  ;;  %v6130_v40 = vsel %vm2081_vm5, %v2069_v0, %v2195_v37  ;;  %v1587_v30 = vadd.f32 %v7558_v42, %v1529_v63  ;;  %v7559_v37 = vld [vmem:[#allocation40_spill] sm:$0xff]  ;;  %v7562_v0 = vld [vmem:[#allocation45_spill] sm:$0xff] }
 0x1bf   : > { %v6126_v5 = vsel %vm1403_vm3, %v7556_v49, %v7555_v21  ;;  %v2490_v48 = vmul.f32 %v5985_v3, %v6118_v23  ;;  %v2728_v15 = vmul.f32 %v5419_v12, %v5995_v18  ;;  %v2798_v50 = vadd.f32 %v2774_v1, %v2750_v27 }
 0x1c0   : > { %v2884_v32 = vmul.f32 %v5474_v51, %v6058_v6  ;;  %v2575_v39 = vmul.f32 %v6067_v34, %v6126_v5  ;;  %v6143_v9 = vsel %vm2081_vm5, %v2193_v4, %v5852_v7  ;;  %v1645_v56 = vadd.f32 %v7559_v37, %v1587_v30 }
 0x1c1   : > { %v1761_v44 = vsel %vm1403_vm3, %v7561_v31, %v7560_v41  ;;  %v2514_v18 = vadd.f32 %v2490_v48, %v7562_v0  ;;  %v1905_v1 = vmin.f32 %v1881_v60, 6.0  ;;  %v2853_v14 = vadd.f32 %v2829_v29, %v2798_v50  ;;  %v7564_v29 = vld [vmem:[#allocation31_spill] sm:$0xff] }
 0x1c2   : > { %v1730_v63 = vmul.f32 %v5457_v52, %v1703_v19  ;;  %v2751_v58 = vadd.f32 %v2727_v47, %v2696_v33  ;;  %v1696_v27 = vadd.f32 %v7563_v13, %v1645_v56  ;;  %v2775_v7 = vmul.f32 %v5343_v11, %v7541_v62  ;;  %v7570_v31 = vld [vmem:[#allocation47_spill] sm:$0xff] }
 0x1c3   : > { %v6153_v25 = vadd.f32 %v2575_v39, %v2514_v18  ;;  %v2830_v57 = vmul.f32 %v5457_v52, %v6118_v23  ;;  %3692 = vmatmul.msk.f32.gmra.mxu1 %vm1910_vm4, %v1905_v1  ;;  %v2908_v21 = vadd.f32 %v2884_v32, %v2853_v14  ;;  %v1788_v49 = vmul.f32 %v5474_v51, %v1761_v44  ;;  %v7569_v32 = vld [vmem:[#allocation25_spill] sm:$0xff]  ;;  %v2024_v0 = vpop.f32.mrf.mxu1 }
 0x1c4   : > { %v2885_v60 = vmul.f32 %v5474_v51, %v6126_v5  ;;  %v7565_v47 = vrot.slane %v7564_v29, 1  ;;  %v7566_v19 = vrot.slane %v7552_v38, 1  ;;  %v1754_v11 = vadd.f32 %v1730_v63, %v1696_v27 }
 0x1c5   : > { %v2799_v62 = vadd.f32 %v2775_v7, %v2751_v58  ;;  %v7567_v36 = vrot.slane %v7564_v29, 2  ;;  %v7568_v4 = vrot.slane %v7552_v38, 2  ;;  %v2674_v30 = vmul.f32 %v5376_v10, %v6039_v24  ;;  %v6193_v10 = vld [vmem:[%s7294_s4 + $0x6] ss:$0 sm:$0xff]  ;;  %v7571_v7 = vld [vmem:[#allocation50_spill] sm:$0xff] }
 0x1c6   : > { %v6169_v55 = vsel %vm1303_vm2, %v7566_v19, %v7565_v47  ;;  %v2951_v48 = vadd.f32 %v5502_v59, %v2908_v21  ;;  %v2697_v39 = vadd.f32 %v2673_v45, %v7569_v32  ;;  %v2729_v37 = vmul.f32 %v5419_v12, %v6058_v6  ;;  %v7577_v32 = vld [vmem:[#allocation73_spill] sm:$0xff] }
 0x1c7   : > { %v2491_v33 = vmul.f32 %v5985_v3, %v6169_v55  ;;  %v6179_v42 = vsel %vm1403_vm3, %v7568_v4, %v7567_v36  ;;  %v1812_v56 = vadd.f32 %v1788_v49, %v1754_v11  ;;  %v2854_v41 = vadd.f32 %v2830_v57, %v2799_v62  ;;  %v7576_v4 = vld [vmem:[#allocation29_spill] sm:$0xff] }
 0x1c8   : > { %v2576_v50 = vmul.f32 %v6067_v34, %v6179_v42  ;;  %v2975_v18 = vmax.f32 %v2951_v48, 0.0  ;;  %v2752_v1 = vadd.f32 %v2728_v15, %v2697_v39  ;;  %v2776_v24 = vmul.f32 %v6193_v10, %v7552_v38  ;;  %v3660_v15 = vld [vmem:[%s4072_s14 + $0x61] sm:$0xff] }
 0x1c9   : > { %v2515_v44 = vadd.f32 %v2491_v33, %v7570_v31  ;;  %v2831_v45 = vmul.f32 %v5457_v52, %v6169_v55  ;;  %v1858_v12 = vadd.f32 %v5502_v59, %v1812_v56  ;;  %v2909_v6 = vadd.f32 %v2885_v60, %v2854_v41  ;;  %v3657_v56 = vld [vmem:[%s4072_s14 + $0x39] sm:$0xff] }
 0x1ca   : > { %v2886_v63 = vmul.f32 %v5474_v51, %v6179_v42  ;;  %v2999_v58 = vmin.f32 %v2975_v18, 6.0  ;;  %v2800_v13 = vadd.f32 %v2776_v24, %v2752_v1  ;;  %v2025_v27 = vadd.f32 %v5749_v35, %v2024_v0 }
 0x1cb   : > { %v6200_v14 = vadd.f32 %v2576_v50, %v2515_v44  ;;  %v7572_v57 = vrot.slane %v7571_v7, 1  ;;  %v7573_v38 = vmov %v7565_v47  ;;  %v1882_v21 = vmax.f32 %v1858_v12, 0.0  ;;  %v6233_v50 = vld [vmem:[%s7294_s4] ss:$0 sm:$0xff]  ;;  %v7579_v12 = vld [vmem:[#allocation74_spill] sm:$0xff] }
 0x1cc   : > { %v2952_v49 = vadd.f32 %v5502_v59, %v2909_v6  ;;  %v7574_v47 = vrot.slane %v7571_v7, 2  ;;  %v7575_v19 = vmov %v7567_v36  ;;  %3713 = vmatmul.msk.f32.gmra.mxu2 %vm1910_vm4, %v2999_v58  ;;  %v2855_v62 = vadd.f32 %v2831_v45, %v2800_v13  ;;  %v7578_v44 = vld [vmem:[#allocation49_spill] sm:$0xff]  ;;  %v7580_v6 = vld [vmem:[#allocation51_spill] sm:$0xff] }
 0x1cd   : > { %v6212_v52 = vsel %vm1303_vm2, %v7573_v38, %v7572_v57  ;;  %v2070_v33 = vadd.f32 %v3660_v15, %v2025_v27  ;;  %v2643_v48 = vadd.f32 %v7576_v4, %v5899_v53  ;;  %v6237_v39 = vmul.f32 %v6233_v50, %v7577_v32  ;;  %v7581_v58 = vld [vmem:[#allocation71_spill] sm:$0xff] }
 0x1ce   : > { %v2492_v60 = vmul.f32 %v5985_v3, %v6212_v52  ;;  %v6223_v11 = vsel %vm1403_vm3, %v7575_v19, %v7574_v47  ;;  %v1906_v41 = vmin.f32 %v1882_v21, 6.0  ;;  %v2976_v31 = vmax.f32 %v2952_v49, 0.0  ;;  %v6266_v21 = vld [vmem:[%s7294_s4 + $0x4] ss:$0 sm:$0xff] }
 0x1cf   : > { %v2577_v36 = vmul.f32 %v6067_v34, %v6223_v11  ;;  %v2910_v18 = vadd.f32 %v2886_v63, %v2855_v62  ;;  %v2093_v1 = vrot.slane %v2070_v33, 4  ;;  %v6244_v53 = vsel %vm2081_vm5, %v2070_v33, %v2095_v20 }
 0x1d0   : > { %v2516_v0 = vadd.f32 %v2492_v60, %v7578_v44  ;;  %v2698_v24 = vadd.f32 %v2674_v30, %v2643_v48  ;;  %v2454_v45 = vrot.slane %v7577_v32, 1  ;;  %v6249_v15 = vmul.f32 %v7580_v6, %v7579_v12  ;;  %3693 = vmatmul.msk.f32.gmra.mxu1 %vm1910_vm4, %v1906_v41  ;;  %v6291_v48 = vld [vmem:[%s7294_s4 + $0x5] ss:$0 sm:$0xff]  ;;  %v7588_v44 = vld [vmem:[#allocation46_spill] sm:$0xff] }
 0x1d1   : > { %v7582_v13 = vmax.f32 %v7581_v58, 0.0  ;;  %v2067_v57 = vadd.f32 %v3657_v56, %v6090_v28  ;;  %v6259_v20 = vsel %vm2081_vm5, %v2093_v1, %v6047_v61  ;;  %v2777_v38 = vmul.f32 %v6193_v10, %v7564_v29  ;;  %v6274_v61 = vld [vmem:[%s7294_s4 + $0x7] ss:$0 sm:$0xff]  ;;  %v3661_v29 = vld [vmem:[%s4072_s14 + $0x69] sm:$0xff] }
 0x1d2   : > { %v6254_v63 = vadd.f32 %v2577_v36, %v2516_v0  ;;  %v2753_v30 = vadd.f32 %v2729_v37, %v2698_v24  ;;  %v2675_v49 = vmul.f32 %v6266_v21, %v6118_v23  ;;  %v3000_v60 = vmin.f32 %v2976_v31, 6.0  ;;  %v2027_v37 = vpop.f32.mrf.mxu1  ;;  %v7583_v23 = vld [vmem:[#allocation55_spill] sm:$0xff]  ;;  %v7589_v58 = vld [vmem:[#allocation54_spill] sm:$0xff] }
 0x1d3   : > { %v891_v27 = vmin.f32 %v7582_v13, 6.0  ;;  %v2953_v47 = vadd.f32 %v5502_v59, %v2910_v18  ;;  %v2832_v28 = vmul.f32 %v6274_v61, %v6212_v52  ;;  %v2887_v62 = vmul.f32 %v5474_v51, %v6223_v11 }
 0x1d4   : > { %v2801_v19 = vadd.f32 %v2777_v38, %v2753_v30  ;;  %v2028_v33 = vadd.f32 %v5749_v35, %v2027_v37  ;;  %v7584_v36 = vrot.slane %v7583_v23, 1  ;;  %v7585_v59 = vrot.slane %v7571_v7, 1  ;;  %3714 = vmatmul.msk.f32.gmra.mxu2 %vm1910_vm4, %v3000_v60 }
 0x1d5   : > { %v2730_v56 = vmul.f32 %v6291_v48, %v6126_v5  ;;  %v7586_v51 = vrot.slane %v7583_v23, 2  ;;  %v7587_v35 = vrot.slane %v7571_v7, 2  ;;  %v2644_v0 = vadd.f32 %v7588_v44, %v5960_v17 }
 0x1d6   : > { %v2470_v4 = vsel %vm1303_vm2, %v7585_v59, %v7584_v36  ;;  %v2207_v18 = vrot.slane %v2067_v57, 4  ;;  %v2856_v1 = vadd.f32 %v2832_v28, %v2801_v19  ;;  %v2071_v24 = vadd.f32 %v3661_v29, %v2028_v33  ;;  %v7591_v33 = vld [vmem:[#allocation32_spill] sm:$0xff]  ;;  %v7593_v59 = vld [vmem:[#allocation59_spill] sm:$0xff] }
 0x1d7   : > { %v2493_v41 = vmul.f32 %v5985_v3, %v2470_v4  ;;  %v6302_v31 = vsel %vm1403_vm3, %v7587_v35, %v7586_v51  ;;  %v2539_v12 = vrot.slane %v7577_v32, 2  ;;  %v2977_v6 = vmax.f32 %v2953_v47, 0.0 }
 0x1d8   : > { %v2578_v5 = vmul.f32 %v6067_v34, %v6302_v31  ;;  %v2699_v30 = vadd.f32 %v2675_v49, %v2644_v0  ;;  %v2911_v38 = vadd.f32 %v2887_v62, %v2856_v1  ;;  %v2205_v37 = vrot.slane %v2071_v24, 4 }
 0x1d9   : > { %v2517_v13 = vadd.f32 %v2493_v41, %v7589_v58  ;;  %v6312_v36 = vsel %vm2081_vm5, %v2071_v24, %v2207_v18  ;;  %v2778_v17 = vmul.f32 %v6193_v10, %v7571_v7  ;;  %v7385_v60 = vrot.slane %v6249_v15, 1 }
 0x1da   : > { %7590 = vst [vmem:[#allocation6_spill] sm:$0xff] %v6312_v36  ;;  %v2754_v29 = vadd.f32 %v2730_v56, %v2699_v30  ;;  %v2833_v19 = vmul.f32 %v6274_v61, %v2470_v4  ;;  %v6321_v47 = vmul.f32 %v7591_v33, %v891_v27  ;;  %v2676_v49 = vmul.f32 %v6266_v21, %v6169_v55  ;;  %v6339_v56 = vld [vmem:[%s7295_s5] ss:$0 sm:$0xff]  ;;  %v6345_v55 = vld [vmem:[%s7294_s4 + $0x8] ss:$0 sm:$0xff]  ;;  %v2030_v1 = vpop.f32.mrf.mxu1 }
 0x1db   : > { %v6317_v28 = vadd.f32 %v2578_v5, %v2517_v13  ;;  %v6326_v62 = vsel %vm2081_vm5, %v2205_v37, %v2067_v57  ;;  %v7594_v41 = vrot.slane %v7593_v59, 1  ;;  %v7595_v7 = vrot.slane %v7583_v23, 1  ;;  %v7598_v13 = vld [vmem:[#allocation48_spill] sm:$0xff] }
 0x1dc   : > { %7592 = vst [vmem:[#allocation15_spill] sm:$0xff] %v6326_v62  ;;  %v2954_v27 = vadd.f32 %v6339_v56, %v2911_v38  ;;  %v2802_v35 = vadd.f32 %v2778_v17, %v2754_v29  ;;  %v2888_v57 = vmul.f32 %v6345_v55, %v6302_v31  ;;  %v2731_v0 = vmul.f32 %v6291_v48, %v6179_v42  ;;  %v6366_v38 = vld [vmem:[%s7293_s3] ss:$0 sm:$0xff]  ;;  %v7599_v37 = vld [vmem:[#allocation52_spill] sm:$0xff] }
 0x1dd   : > { %v6334_v51 = vsel %vm1303_vm2, %v7595_v7, %v7594_v41  ;;  %v3001_v18 = vmin.f32 %v2977_v6, 6.0  ;;  %v7596_v24 = vrot.slane %v7593_v59, 2  ;;  %v7597_v5 = vrot.slane %v7583_v23, 2  ;;  %v7600_v17 = vld [vmem:[#allocation57_spill] sm:$0xff] }
 0x1de   : > { %v2494_v44 = vmul.f32 %v5985_v3, %v6334_v51  ;;  %v2645_v30 = vadd.f32 %v7598_v13, %v6013_v46  ;;  %v765_v42 = vadd.f32 %v6366_v38, %v7599_v37  ;;  %v2857_v6 = vadd.f32 %v2833_v19, %v2802_v35  ;;  %v7601_v13 = vld [vmem:[#allocation66_spill] sm:$0xff] }
 0x1df   : > { %v6359_v58 = vsel %vm1403_vm3, %v7597_v5, %v7596_v24  ;;  %3715 = vmatmul.msk.f32.gmra.mxu2 %vm1910_vm4, %v3001_v18  ;;  %v2677_v41 = vmul.f32 %v6266_v21, %v6212_v52  ;;  %v2732_v46 = vmul.f32 %v6291_v48, %v6223_v11  ;;  %v2779_v1 = vmul.f32 %v6193_v10, %v7583_v23 }
 0x1e0   : > { %v2518_v29 = vadd.f32 %v2494_v44, %v7600_v17  ;;  %v2579_v33 = vmul.f32 %v6067_v34, %v6359_v58  ;;  %v2700_v7 = vadd.f32 %v2676_v49, %v2645_v30  ;;  %v2978_v24 = vmax.f32 %v2954_v27, 0.0  ;;  %v7606_v27 = vld [vmem:[#allocation53_spill] sm:$0xff] }
 0x1e1   : > { %v2912_v5 = vadd.f32 %v2888_v57, %v2857_v6  ;;  %v2834_v35 = vmul.f32 %v6274_v61, %v6334_v51  ;;  %v7602_v18 = vrot.slane %v7601_v13, 1  ;;  %v7603_v37 = vrot.slane %v7593_v59, 1 }
 0x1e2   : > { %v6380_v19 = vadd.f32 %v2579_v33, %v2518_v29  ;;  %v2755_v44 = vadd.f32 %v2731_v0, %v2700_v7  ;;  %v7604_v11 = vrot.slane %v7601_v13, 2  ;;  %v7605_v49 = vrot.slane %v7593_v59, 2 }
 0x1e3   : > { %v2468_v52 = vsel %vm1303_vm2, %v7603_v37, %v7602_v18  ;;  %v2646_v57 = vadd.f32 %v7606_v27, %v6086_v2  ;;  %v838_v30 = vmax.f32 %v765_v42, 0.0  ;;  %v2678_v0 = vmul.f32 %v6266_v21, %v2470_v4  ;;  %v7607_v2 = vld [vmem:[#allocation60_spill] sm:$0xff] }
 0x1e4   : > { %v6396_v23 = vsel %vm1403_vm3, %v7605_v49, %v7604_v11  ;;  %v2495_v6 = vmul.f32 %v5985_v3, %v2468_v52  ;;  %v2803_v29 = vadd.f32 %v2779_v1, %v2755_v44  ;;  %v2889_v33 = vmul.f32 %v6345_v55, %v6359_v58 }
 0x1e5   : > { %v2580_v17 = vmul.f32 %v6067_v34, %v6396_v23  ;;  %v2701_v7 = vadd.f32 %v2677_v41, %v2646_v57  ;;  %v2780_v18 = vmul.f32 %v6193_v10, %v7593_v59  ;;  %v3002_v37 = vmin.f32 %v2978_v24, 6.0 }
 0x1e6   : > { %v2955_v11 = vadd.f32 %v6339_v56, %v2912_v5  ;;  %v2519_v42 = vadd.f32 %v2495_v6, %v7607_v2  ;;  %v2835_v4 = vmul.f32 %v6274_v61, %v2468_v52  ;;  %v2858_v49 = vadd.f32 %v2834_v35, %v2803_v29 }
 0x1e7   : > { %v2756_v27 = vadd.f32 %v2732_v46, %v2701_v7  ;;  %v7608_v1 = vrot.slane %v7601_v13, 1  ;;  %v7609_v59 = vrot.slane %v7601_v13, 2  ;;  %v2733_v24 = vmul.f32 %v6291_v48, %v6302_v31  ;;  %3716 = vmatmul.msk.f32.gmra.mxu2 %vm1910_vm4, %v3002_v37  ;;  %v7610_v7 = vld [vmem:[#allocation56_spill] sm:$0xff]  ;;  %v6443_v31 = vld [vmem:[%s7294_s4 + $0x3] ss:$0 sm:$0xff] }
 0x1e8   : > { %v6429_v46 = vadd.f32 %v2580_v17, %v2519_v42  ;;  %v2913_v57 = vadd.f32 %v2889_v33, %v2858_v49  ;;  %v2890_v29 = vmul.f32 %v6345_v55, %v6396_v23  ;;  %v2647_v2 = vadd.f32 %v7610_v7, %v6153_v25 }
 0x1e9   : > { %v6417_v44 = vsel %vm1303_vm2, %v7608_v1, %v2454_v45  ;;  %v6425_v41 = vsel %vm1403_vm3, %v7609_v59, %v2539_v12  ;;  %v2804_v6 = vadd.f32 %v2780_v18, %v2756_v27  ;;  %v6447_v17 = vmul.f32 %v6443_v31, %v7577_v32  ;;  %v7611_v18 = vld [vmem:[#allocation67_spill] sm:$0xff] }
 0x1ea   : > { %v2496_v5 = vmul.f32 %v5985_v3, %v6417_v44  ;;  %v2581_v35 = vmul.f32 %v6067_v34, %v6425_v41  ;;  %v2413_v37 = vmul.f32 %v6233_v50, %v6249_v15  ;;  %v2979_v49 = vmax.f32 %v2955_v11, 0.0 }
 0x1eb   : > { %v2859_v27 = vadd.f32 %v2835_v4, %v2804_v6  ;;  %v2702_v1 = vadd.f32 %v2678_v0, %v2647_v2  ;;  %v2781_v25 = vmul.f32 %v6193_v10, %v7601_v13  ;;  %v2679_v59 = vmul.f32 %v6266_v21, %v6334_v51  ;;  %v6468_v0 = vpop.f32.mrf.mxu1 }
 0x1ec   : > { %v2520_v42 = vadd.f32 %v2496_v5, %v7611_v18  ;;  %v6465_v33 = vsel %vm1303_vm2, %v2454_v45, %v7385_v60  ;;  %v2540_v11 = vrot.slane %v6249_v15, 2  ;;  %v892_v4 = vmin.f32 %v838_v30, 6.0  ;;  %v7612_v30 = vld [vmem:[#allocation58_spill] sm:$0xff] }
 0x1ed   : > { %v2914_v5 = vadd.f32 %v2890_v29, %v2859_v27  ;;  %v2757_v13 = vadd.f32 %v2733_v24, %v2702_v1  ;;  %v2836_v51 = vmul.f32 %v6274_v61, %v6417_v44  ;;  %v2497_v6 = vmul.f32 %v5985_v3, %v6465_v33 }
 0x1ee   : > { %v6457_v7 = vadd.f32 %v2581_v35, %v2520_v42  ;;  %v2734_v35 = vmul.f32 %v6291_v48, %v6359_v58  ;;  %v2551_v45 = vsel %vm1403_vm3, %v2539_v12, %v2540_v11  ;;  %v2648_v2 = vadd.f32 %v7612_v30, %v6200_v14  ;;  %v7613_v12 = vld [vmem:[#allocation70_spill] sm:$0xff] }
 0x1ef   : > { %v3003_v18 = vmin.f32 %v2979_v49, 6.0  ;;  %v2956_v24 = vadd.f32 %v6339_v56, %v2913_v57  ;;  %v2805_v29 = vadd.f32 %v2781_v25, %v2757_v13  ;;  %v2891_v42 = vmul.f32 %v6345_v55, %v6425_v41 }
 0x1f0   : > { %v6487_v58 = vmul.f32 %v6443_v31, %v6249_v15  ;;  %v2521_v27 = vadd.f32 %v2497_v6, %v6237_v39  ;;  %v2582_v1 = vmul.f32 %v6067_v34, %v2551_v45  ;;  %v2703_v60 = vadd.f32 %v2679_v59, %v2648_v2 }
 0x1f1   : > { %v6492_v26 = vmul.f32 %v7613_v12, %v892_v4  ;;  %3717 = vmatmul.msk.f32.gmra.mxu2 %vm1910_vm4, %v3003_v18  ;;  %v2680_v14 = vmul.f32 %v6266_v21, %v2468_v52  ;;  %v2860_v57 = vadd.f32 %v2836_v51, %v2805_v29  ;;  %v2782_v49 = vmul.f32 %v6193_v10, %v7577_v32  ;;  %v7616_v18 = vld [vmem:[#allocation65_spill] sm:$0xff] }
 0x1f2   : > { %v6498_v25 = vadd.f32 %v2582_v1, %v2521_v27  ;;  %v2758_v13 = vadd.f32 %v2734_v35, %v2703_v60  ;;  %v2837_v39 = vmul.f32 %v6274_v61, %v6465_v33  ;;  %v7614_v6 = vrot.slane %v6321_v47, 1 }
 0x1f3   : > { %v7615_v59 = vrot.slane %v6249_v15, 1  ;;  %v2980_v30 = vmax.f32 %v2956_v24, 0.0  ;;  %v2915_v2 = vadd.f32 %v2891_v42, %v2860_v57  ;;  %v2541_v51 = vrot.slane %v6321_v47, 2 }
 0x1f4   : > { %v2735_v32 = vmul.f32 %v6291_v48, %v6396_v23  ;;  %v2806_v60 = vadd.f32 %v2782_v49, %v2758_v13  ;;  %v2892_v35 = vmul.f32 %v6345_v55, %v2551_v45  ;;  %v2649_v29 = vadd.f32 %v7616_v18, %v6254_v63  ;;  %v6530_v13 = vpop.f32.mrf.mxu1 }
 0x1f5   : > { %v2465_v4 = vsel %vm1303_vm2, %v7615_v59, %v7614_v6  ;;  %v2414_v27 = vmul.f32 %v6233_v50, %v6321_v47  ;;  %v2957_v1 = vadd.f32 %v6339_v56, %v2914_v5  ;;  %v2550_v42 = vsel %vm1403_vm3, %v2540_v11, %v2541_v51  ;;  %7617 = vst [vmem:[#allocation16_spill] sm:$0xff] %v6530_v13 }
 0x1f6   : > { %v2498_v52 = vmul.f32 %v5985_v3, %v2465_v4  ;;  %v2861_v12 = vadd.f32 %v2837_v39, %v2806_v60  ;;  %v2583_v57 = vmul.f32 %v6067_v34, %v2550_v42  ;;  %v2704_v6 = vadd.f32 %v2680_v14, %v2649_v29  ;;  %v7619_v29 = vld [vmem:[#allocation75_spill] sm:$0xff] }
 0x1f7   : > { %v2783_v23 = vmul.f32 %v6193_v10, %v6249_v15  ;;  %v6525_v49 = vmul.f32 %v6443_v31, %v6321_v47  ;;  %v2415_v63 = vmul.f32 %v6233_v50, %v6492_v26  ;;  %v2457_v5 = vrot.slane %v6492_v26, 1 }
 0x1f8   : > { %v2522_v24 = vadd.f32 %v2498_v52, %v2413_v37  ;;  %v3004_v37 = vmin.f32 %v2980_v30, 6.0  ;;  %v6532_v11 = vadd.f32 %v2892_v35, %v2861_v12  ;;  %v2759_v59 = vadd.f32 %v2735_v32, %v2704_v6  ;;  %v7618_v52 = vld [vmem:[#allocation61_spill] sm:$0xff] }
 0x1f9   : > { %v2838_v14 = vmul.f32 %v6274_v61, %v2465_v4  ;;  %v2630_v15 = vmul.f32 %v6443_v31, %v6492_v26  ;;  %v2631_v60 = vmul.f32 %v6443_v31, %v7618_v52  ;;  %v2981_v18 = vmax.f32 %v2957_v1, 0.0 }
 0x1fa   : > { %v2607_v39 = vadd.f32 %v2583_v57, %v2522_v24  ;;  %3718 = vmatmul.msk.f32.gmra.mxu2 %vm1910_vm4, %v3004_v37  ;;  %v2681_v30 = vmul.f32 %v6266_v21, %v6417_v44  ;;  %v6544_v35 = vadd.f32 %v6366_v38, %v7619_v29  ;;  %v2736_v32 = vmul.f32 %v6291_v48, %v6425_v41  ;;  %v7621_v44 = vld [vmem:[#allocation69_spill] sm:$0xff] }
 0x1fb   : > { %v2807_v24 = vadd.f32 %v2783_v23, %v2759_v59  ;;  %v2893_v12 = vmul.f32 %v6345_v55, %v2550_v42  ;;  %v2958_v57 = vadd.f32 %v6339_v56, %v2915_v2  ;;  %v7620_v6 = vrot.slane %v6321_v47, 1 }
 0x1fc   : > { %v2542_v37 = vrot.slane %v6492_v26, 2  ;;  %v2650_v43 = vadd.f32 %v7621_v44, %v6317_v28  ;;  %v2682_v29 = vmul.f32 %v6266_v21, %v6465_v33  ;;  %v2737_v41 = vmul.f32 %v6291_v48, %v2551_v45 }
 0x1fd   : > { %v2464_v1 = vsel %vm1303_vm2, %v7620_v6, %v2457_v5  ;;  %v2862_v23 = vadd.f32 %v2838_v14, %v2807_v24  ;;  %v3005_v22 = vmin.f32 %v2981_v18, 6.0  ;;  %v2784_v6 = vmul.f32 %v6193_v10, %v6321_v47 }
 0x1fe   : > { %v2499_v59 = vmul.f32 %v5985_v3, %v2464_v1  ;;  %v2549_v2 = vsel %vm1403_vm3, %v2541_v51, %v2542_v37  ;;  %v2705_v62 = vadd.f32 %v2681_v30, %v2650_v43  ;;  %v2683_v36 = vmul.f32 %v6266_v21, %v2465_v4  ;;  %v2038_v4 = vpop.f32.mrf.mxu1 }
 0x1ff   : > { %v6566_v13 = vadd.f32 %v2893_v12, %v2862_v23  ;;  %v2584_v33 = vmul.f32 %v6067_v34, %v2549_v2  ;;  %v2982_v44 = vmax.f32 %v2958_v57, 0.0  ;;  %v2839_v14 = vmul.f32 %v6274_v61, %v2464_v1 }
 0x200   : > { %v2523_v28 = vadd.f32 %v2499_v59, %v2414_v27  ;;  %v2760_v45 = vadd.f32 %v2736_v32, %v2705_v62  ;;  %v2651_v18 = vadd.f32 %v6447_v17, %v6380_v19  ;;  %v2738_v51 = vmul.f32 %v6291_v48, %v2550_v42 }
 0x201   : > { %v2894_v30 = vmul.f32 %v6345_v55, %v2549_v2  ;;  %v2652_v47 = vadd.f32 %v6487_v58, %v6429_v46  ;;  %v7622_v24 = vrot.slane %v7618_v52, 1  ;;  %v7623_v32 = vrot.slane %v7618_v52, 2  ;;  %v6589_v58 = vpop.f32.mrf.mxu3 }
 0x202   : > { %v2608_v43 = vadd.f32 %v2584_v33, %v2523_v28  ;;  %3719 = vmatmul.msk.f32.gmra.mxu2 %vm1910_vm4, %v3005_v22  ;;  %v2808_v27 = vadd.f32 %v2784_v6, %v2760_v45  ;;  %v2706_v17 = vadd.f32 %v2682_v29, %v2651_v18  ;;  %v2684_v42 = vmul.f32 %v6266_v21, %v2464_v1 }
 0x203   : > { %v2463_v62 = vsel %vm1303_vm2, %v2457_v5, %v7622_v24  ;;  %v2548_v19 = vsel %vm1403_vm3, %v2542_v37, %v7623_v32  ;;  %v2739_v12 = vmul.f32 %v6291_v48, %v2549_v2  ;;  %v2785_v59 = vmul.f32 %v6193_v10, %v6492_v26 }
 0x204   : > { %v2500_v46 = vmul.f32 %v5985_v3, %v2463_v62  ;;  %v2585_v22 = vmul.f32 %v6067_v34, %v2548_v19  ;;  %v2863_v57 = vadd.f32 %v2839_v14, %v2808_v27  ;;  %v2685_v23 = vmul.f32 %v6266_v21, %v2463_v62 }
 0x205   : > { %v2761_v5 = vadd.f32 %v2737_v41, %v2706_v17  ;;  %v2740_v37 = vmul.f32 %v6291_v48, %v2548_v19  ;;  %v2840_v1 = vmul.f32 %v6274_v61, %v2463_v62  ;;  %v2895_v29 = vmul.f32 %v6345_v55, %v2548_v19  ;;  %v7626_v19 = vld [vmem:[#allocation72_spill] sm:$0xff] }
 0x206   : > { %v2524_v6 = vadd.f32 %v2500_v46, %v2415_v63  ;;  %v2918_v2 = vadd.f32 %v2894_v30, %v2863_v57  ;;  %v2707_v33 = vadd.f32 %v2683_v36, %v2652_v47  ;;  %v2786_v45 = vmul.f32 %v6193_v10, %v7618_v52  ;;  %v7624_v30 = vld [vmem:[#allocation62_spill] sm:$0xff]  ;;  %v7625_v47 = vld [vmem:[#allocation63_spill] sm:$0xff] }
 0x207   : > { %v2809_v28 = vadd.f32 %v2785_v59, %v2761_v5  ;;  %v2653_v41 = vadd.f32 %v6525_v49, %v6457_v7  ;;  %v2654_v26 = vadd.f32 %v2630_v15, %v6498_v25  ;;  %v2655_v63 = vadd.f32 %v2631_v60, %v2607_v39  ;;  %v7628_v59 = vld [vmem:[#allocation78_spill] sm:$0xff] }
 0x208   : > { %v6599_v14 = vadd.f32 %v2585_v22, %v2524_v6  ;;  %v3006_v18 = vmin.f32 %v2982_v44, 6.0  ;;  %v2959_v4 = vadd.f32 %v6339_v56, %v6532_v11  ;;  %v2762_v24 = vadd.f32 %v2738_v51, %v2707_v33  ;;  %v6624_v22 = vpop.f32.mrf.mxu1  ;;  %v7630_v33 = vld [vmem:[#allocation79_spill] sm:$0xff] }
 0x209   : > { %v2864_v27 = vadd.f32 %v2840_v1, %v2809_v28  ;;  %v2632_v36 = vmul.f32 %v6443_v31, %v7624_v30  ;;  %v2841_v52 = vmul.f32 %v6274_v61, %v7625_v47  ;;  %v2708_v62 = vadd.f32 %v2684_v42, %v2653_v41  ;;  %v7627_v42 = vld [vmem:[#allocation64_spill] sm:$0xff]  ;;  %v788_v1 = vpop.f32.mrf.mxu3 }
 0x20a   : > { %v2709_v32 = vadd.f32 %v2685_v23, %v2654_v26  ;;  %v777_v7 = vadd.f32 %v6366_v38, %v7626_v19  ;;  %3720 = vmatmul.msk.f32.gmra.mxu2 %vm1910_vm4, %v3006_v18  ;;  %v2810_v49 = vadd.f32 %v2786_v45, %v2762_v24  ;;  %v2787_v11 = vmul.f32 %v6193_v10, %v7624_v30  ;;  %v1150_v24 = vpop.permute.xlu1 %1149 }
 0x20b   : > { %v6613_v25 = vadd.f32 %v2895_v29, %v2864_v27  ;;  %v2763_v39 = vadd.f32 %v2739_v12, %v2708_v62  ;;  %v2686_v60 = vmul.f32 %v6266_v21, %v7625_v47  ;;  %v843_v44 = vmax.f32 %v6544_v35, 0.0 }
 0x20c   : > { %v6617_v15 = vadd.f32 %v2740_v37, %v2709_v32  ;;  %v2983_v51 = vmax.f32 %v2959_v4, 0.0  ;;  %v2865_v17 = vadd.f32 %v2841_v52, %v2810_v49  ;;  %v2896_v46 = vmul.f32 %v6345_v55, %v7627_v42 }
 0x20d   : > { %v2811_v57 = vadd.f32 %v2787_v11, %v2763_v39  ;;  %v2710_v23 = vadd.f32 %v2686_v60, %v2655_v63  ;;  %v2741_v5 = vmul.f32 %v6291_v48, %v7627_v42  ;;  %v2656_v12 = vadd.f32 %v2632_v36, %v2608_v43 }
 0x20e   : > { %v7629_v6 = vrot.slane %v7624_v30, 1  ;;  %v842_v35 = vmax.f32 %v777_v7, 0.0  ;;  %v6633_v29 = vadd.f32 %v2896_v46, %v2865_v17  ;;  %v7631_v45 = vrot.slane %v7624_v30, 2  ;;  %v1145_v7 = vpop.permute.xlu0 %1144 }
 0x20f   : > { %v6635_v28 = vadd.f32 %v2741_v5, %v2710_v23  ;;  %v897_v26 = vmin.f32 %v843_v44, 6.0  ;;  %v3007_v43 = vmin.f32 %v2983_v51, 6.0  ;;  %v2960_v63 = vadd.f32 %v6339_v56, %v6566_v13 }
 0x210   : > { %v2461_v37 = vsel %vm1303_vm2, %v7629_v6, %v7628_v59  ;;  %v2546_v41 = vsel %vm1403_vm3, %v7631_v45, %v7630_v33  ;;  %v896_v27 = vmin.f32 %v842_v35, 6.0  ;;  %v786_v13 = vadd.f32 %v6366_v38, %v6589_v58  ;;  %v6657_v60 = vpop.f32.mrf.mxu1 }
 0x211   : > { %v2842_v18 = vmul.f32 %v6274_v61, %v2461_v37  ;;  %v2687_v4 = vmul.f32 %v6266_v21, %v2461_v37  ;;  %v2897_v47 = vmul.f32 %v6345_v55, %v2546_v41  ;;  %v2742_v62 = vmul.f32 %v6291_v48, %v2546_v41  ;;  %v791_v51 = vpop.f32.mrf.mxu3 }
 0x212   : > { %3721 = vmatmul.msk.f32.gmra.mxu2 %vm1910_vm4, %v3007_v43  ;;  %v1221_v32 = vmul.f32 %v1150_v24, %v897_v26  ;;  %v2984_v19 = vmax.f32 %v2960_v63, 0.0  ;;  %v6655_v39 = vmul.f32 %v1145_v7, %v896_v27  ;;  %v2961_v42 = vadd.f32 %v6339_v56, %v2918_v2  ;;  %v7632_v26 = vld [vmem:[#allocation80_spill] sm:$0xff] }
 0x213   : > { %v2866_v36 = vadd.f32 %v2842_v18, %v2811_v57  ;;  %v2711_v52 = vadd.f32 %v2687_v4, %v2656_v12  ;;  %v2502_v46 = vmul.f32 %v5985_v3, %v2461_v37  ;;  %v845_v57 = vmax.f32 %v786_v13, 0.0 }
 0x214   : > { %v2662_v44 = vrot.slane %v1221_v32, 1  ;;  %v3008_v17 = vmin.f32 %v2984_v19, 6.0  ;;  %v2661_v23 = vrot.slane %v6655_v39, 1  ;;  %v789_v58 = vadd.f32 %v6366_v38, %v788_v1 }
 0x215   : > { %v6651_v49 = vadd.f32 %v2897_v47, %v2866_v36  ;;  %v6653_v11 = vadd.f32 %v2742_v62, %v2711_v52  ;;  %v2417_v5 = vmul.f32 %v6233_v50, %v7624_v30  ;;  %v792_v12 = vadd.f32 %v6366_v38, %v791_v51  ;;  %v7633_v47 = vld [vmem:[#allocation68_spill] sm:$0xff] }
 0x216   : > { %v6669_v6 = vsel %vm1303_vm2, %v2661_v23, %v2662_v44  ;;  %v2985_v35 = vmax.f32 %v2961_v42, 0.0  ;;  %v2634_v3 = vmul.f32 %v6443_v31, %v6655_v39  ;;  %v899_v37 = vmin.f32 %v845_v57, 6.0  ;;  %v1160_v24 = vpop.permute.xlu0 %1159 }
 0x217   : > { %v2526_v2 = vadd.f32 %v2502_v46, %v2417_v5  ;;  %v2587_v45 = vmul.f32 %v6067_v34, %v2546_v41  ;;  %v2717_v1 = vrot.slane %v1221_v32, 2  ;;  %v6677_v43 = vsel %vm1303_vm2, %v2662_v44, %v7632_v26  ;;  %v7634_v46 = vld [vmem:[#allocation77_spill] sm:$0xff] }
 0x218   : > { %v846_v50 = vmax.f32 %v789_v58, 0.0  ;;  %v2635_v38 = vmul.f32 %v6443_v31, %v1221_v32  ;;  %v2689_v30 = vmul.f32 %v6266_v21, %v6669_v6  ;;  %v847_v63 = vmax.f32 %v792_v12, 0.0  ;;  %v2046_v27 = vpop.f32.mrf.mxu1  ;;  %v7635_v58 = vld [vmem:[#allocation81_spill] sm:$0xff] }
 0x219   : > { %v3940_v18 = vmov 1983009808   ;;  %v2716_v36 = vrot.slane %v6655_v39, 2  ;;  %v3009_v34 = vmin.f32 %v2985_v35, 6.0  ;;  %v2962_v41 = vadd.f32 %v6339_v56, %v6613_v25  ;;  %v1165_v35 = vpop.permute.xlu1 %1164 }
 0x21a   : > { %3722 = vmatmul.msk.f32.gmra.mxu2 %vm1910_vm4, %v3008_v17  ;;  %v2086_v4 = vunpack.c.l.s4 %v3940_v18  ;;  %v2658_v52 = vadd.f32 %v2634_v3, %v7633_v47  ;;  %v2611_v62 = vadd.f32 %v2587_v45, %v2526_v2  ;;  %v6686_v19 = vmul.f32 %v1160_v24, %v899_v37 }
 0x21b   : > { %v2690_v7 = vmul.f32 %v6266_v21, %v6677_v43  ;;  %v6694_v13 = vsel %vm1403_vm3, %v2716_v36, %v2717_v1  ;;  %v900_v44 = vmin.f32 %v846_v50, 6.0  ;;  %v901_v25 = vmin.f32 %v847_v63, 6.0  ;;  %v1170_v50 = vpop.permute.xlu2 %1169 }
 0x21c   : > { %v2659_v51 = vadd.f32 %v2635_v38, %v2611_v62  ;;  %v2713_v17 = vadd.f32 %v2689_v30, %v2658_v52  ;;  %v6697_v42 = vunpack.c.0.s8 %v2086_v4  ;;  %v6701_v57 = vmul.f32 %v6443_v31, %v7634_v46  ;;  %v7636_v38 = vld [vmem:[#allocation5_spill] sm:$0xff] }
 0x21d   : > { %v6706_v5 = vsel %vm1403_vm3, %v2717_v1, %v7635_v58  ;;  %v2986_v12 = vmax.f32 %v2962_v41, 0.0  ;;  %v2789_v3 = vmul.f32 %v6193_v10, %v6655_v39  ;;  %v2744_v2 = vmul.f32 %v6291_v48, %v6694_v13 }
 0x21e   : > { %v2792_v37 = vmul.f32 %v6193_v10, %v6686_v19  ;;  %v2714_v45 = vadd.f32 %v2690_v7, %v2659_v51  ;;  %v2790_v31 = vmul.f32 %v6193_v10, %v1221_v32  ;;  %v6717_v30 = vmul.f32 %v6193_v10, %v7636_v38 }
 0x21f   : > { %v6719_v1 = vmul.f32 %v1165_v35, %v900_v44  ;;  %v2963_v63 = vadd.f32 %v6339_v56, %v6633_v29  ;;  %v2768_v18 = vadd.f32 %v2744_v2, %v2713_v17  ;;  %v2745_v4 = vmul.f32 %v6291_v48, %v6706_v5 }
 0x220   : > { %v6725_v27 = vmul.f32 %v1170_v50, %v901_v25  ;;  %v2092_v24 = vperm.slane %v6044_v16, %v6697_v42  ;;  %v2819_v32 = vrot.slane %v6686_v19, 1  ;;  %v2874_v41 = vrot.slane %v6686_v19, 2 }
 0x221   : > { %v2104_v47 = vperm.slane %v6244_v53, %v6697_v42  ;;  %v3010_v52 = vmin.f32 %v2986_v12, 6.0  ;;  %v6733_v62 = vadd.f32 %v2792_v37, %v2768_v18  ;;  %v6735_v29 = vadd.f32 %v2745_v4, %v2714_v45  ;;  %v3662_v18 = vld [vmem:[%s4072_s14 + $0x79] sm:$0xff]  ;;  %v3666_v4 = vld [vmem:[%s4072_s14 + $0xa9] sm:$0xff] }
 0x222   : > { %3723 = vmatmul.msk.f32.gmra.mxu2 %vm1910_vm4, %v3009_v34  ;;  %v2048_v34 = vpop.f32.mrf.mxu1  ;;  %v6739_v7 = vperm.slane %v6062_v8, %v6697_v42  ;;  %v2666_v16 = vsel %vm1303_vm2, %v7628_v59, %v2661_v23  ;;  %v6746_v44 = vmul.f32 %v6193_v10, %v6719_v1  ;;  %v2820_v51 = vrot.slane %v6719_v1, 1 }
 0x223   : > { %v2987_v53 = vmax.f32 %v2963_v63, 0.0  ;;  %v2788_v17 = vmul.f32 %v6193_v10, %v7634_v46  ;;  %v2875_v25 = vrot.slane %v6719_v1, 2  ;;  %v2821_v8 = vrot.slane %v6725_v27, 1 }
 0x224   : > { %v2143_v59 = vrot.slane %v2092_v24, 4  ;;  %v6757_v23 = vperm.slane %v6259_v20, %v6697_v42  ;;  %v2141_v35 = vrot.slane %v2104_v47, 4  ;;  %v2843_v2 = vmul.f32 %v6274_v61, %v2666_v16  ;;  %v6774_v20 = vld [vmem:[%s7297_s7] ss:$0 sm:$0xff] }
 0x225   : > { %v2844_v37 = vmul.f32 %v6274_v61, %v6669_v6  ;;  %v2131_v10 = vrot.slane %v6739_v7, 4  ;;  %v6765_v46 = vperm.slane %v6143_v9, %v6697_v42  ;;  %v6769_v45 = vperm.slane %v6130_v40, %v6697_v42 }
 0x226   : > { %v2033_v50 = vadd.f32 %v6774_v20, %v6468_v0  ;;  %v2049_v6 = vadd.f32 %v6774_v20, %v2048_v34  ;;  %v3011_v38 = vmin.f32 %v2987_v53, 6.0  ;;  %v2812_v63 = vadd.f32 %v2788_v17, %v6617_v15 }
 0x227   : > { %v2813_v9 = vadd.f32 %v2789_v3, %v6635_v28  ;;  %v2964_v40 = vadd.f32 %v6339_v56, %v6651_v49  ;;  %v2721_v12 = vsel %vm1403_vm3, %v7630_v33, %v2716_v36  ;;  %v6791_v0 = vsel %vm2081_vm5, %v2104_v47, %v2143_v59 }
 0x228   : > { %v2845_v15 = vmul.f32 %v6274_v61, %v6677_v43  ;;  %v2867_v34 = vadd.f32 %v2843_v2, %v2812_v63  ;;  %v6796_v3 = vsel %vm2081_vm5, %v2141_v35, %v2092_v24  ;;  %v6800_v49 = vsel %vm2081_vm5, %v6757_v23, %v2131_v10  ;;  %v7637_v35 = vld [vmem:[#allocation16_spill] sm:$0xff] }
 0x229   : > { %v2868_v28 = vadd.f32 %v2844_v37, %v2813_v9  ;;  %v2243_v39 = vrot.slane %v6765_v46, 4  ;;  %v2255_v33 = vrot.slane %v6769_v45, 4  ;;  %v2688_v36 = vmul.f32 %v6266_v21, %v2666_v16 }
 0x22a   : > { %3724 = vmatmul.msk.f32.gmra.mxu2 %vm1910_vm4, %v3010_v52  ;;  %v2051_v52 = vpop.f32.mrf.mxu1  ;;  %v2814_v47 = vadd.f32 %v2790_v31, %v6653_v11  ;;  %v2072_v53 = vadd.f32 %v3662_v18, %v2033_v50  ;;  %v2076_v43 = vadd.f32 %v3666_v4, %v2049_v6  ;;  %v2898_v17 = vmul.f32 %v6345_v55, %v2721_v12  ;;  %v3663_v11 = vld [vmem:[%s4072_s14 + $0x81] sm:$0xff] }
 0x22b   : > { %v2899_v24 = vmul.f32 %v6345_v55, %v6694_v13  ;;  %v2129_v59 = vrot.slane %v6757_v23, 4  ;;  %v2036_v2 = vadd.f32 %v6774_v20, %v7637_v35  ;;  %v2657_v21 = vadd.f32 %v6701_v57, %v6599_v14  ;;  %v7638_v50 = vld [vmem:[#allocation6_spill] sm:$0xff]  ;;  %v3664_v14 = vld [vmem:[%s4072_s14 + $0x91] sm:$0xff] }
 0x22c   : > { %v2869_v37 = vadd.f32 %v2845_v15, %v2814_v47  ;;  %v2988_v31 = vmax.f32 %v2964_v40, 0.0  ;;  %v2922_v16 = vadd.f32 %v2898_v17, %v2867_v34  ;;  %v6818_v6 = vperm.slane %v7638_v50, %v6697_v42  ;;  %v7639_v35 = vld [vmem:[#allocation15_spill] sm:$0xff] }
 0x22d   : > { %v2923_v10 = vadd.f32 %v2899_v24, %v2868_v28  ;;  %v2041_v13 = vadd.f32 %v6774_v20, %v6624_v22  ;;  %v6822_v23 = vpop.f32.mrf.mxu2  ;;  %v2712_v63 = vadd.f32 %v2688_v36, %v2657_v21  ;;  %v2107_v9 = vrot.slane %v2072_v53, 4  ;;  %v3667_v22 = vld [vmem:[%s4072_s14 + $0xb1] sm:$0xff] }
 0x22e   : > { %v2105_v57 = vrot.slane %v2076_v43, 4  ;;  %v2052_v18 = vadd.f32 %v6774_v20, %v2051_v52  ;;  %v2824_v4 = vsel %vm1303_vm2, %v7632_v26, %v2819_v32  ;;  %v2073_v40 = vadd.f32 %v3663_v11, %v2036_v2  ;;  %v3665_v2 = vld [vmem:[%s4072_s14 + $0x99] sm:$0xff] }
 0x22f   : > { %v2743_v34 = vmul.f32 %v6291_v48, %v2721_v12  ;;  %v3941_v28 = vmov 1934713408   ;;  %v2044_v47 = vadd.f32 %v6774_v20, %v6657_v60  ;;  %v3012_v17 = vmin.f32 %v2988_v31, 6.0 }
 0x230   : > { %v2965_v52 = vadd.f32 %v6339_v56, %v2922_v16  ;;  %v2966_v24 = vadd.f32 %v6339_v56, %v2923_v10  ;;  %v2212_v21 = vperm.slane %v7639_v35, %v6697_v42  ;;  %v2074_v26 = vadd.f32 %v3664_v14, %v2041_v13 }
 0x231   : > { %v2767_v11 = vadd.f32 %v2743_v34, %v2712_v63  ;;  %v2846_v50 = vmul.f32 %v6274_v61, %v2824_v4  ;;  %v2106_v48 = vsel %vm2081_vm5, %v2105_v57, %v2072_v53  ;;  %v2108_v12 = vsel %vm2081_vm5, %v2076_v43, %v2107_v9 }
 0x232   : > { %3725 = vmatmul.msk.f32.gmra.mxu2 %vm1910_vm4, %v3011_v38  ;;  %v2900_v38 = vmul.f32 %v6345_v55, %v6706_v5  ;;  %v2054_v15 = vpop.f32.mrf.mxu1  ;;  %v2134_v5 = vunpack.c.l.s4 %v3941_v28  ;;  %v2130_v60 = vsel %vm2081_vm5, %v2129_v59, %v6739_v7  ;;  %v2879_v53 = vsel %vm1403_vm3, %v7635_v58, %v2874_v41 }
 0x233   : > { %v2815_v10 = vadd.f32 %v6717_v30, %v2767_v11  ;;  %v2219_v43 = vrot.slane %v2073_v40, 4  ;;  %v6857_v13 = vadd.f32 %v3665_v2, %v2044_v47  ;;  %v2990_v63 = vmax.f32 %v2966_v24, 0.0  ;;  %v3668_v15 = vld [vmem:[%s4072_s14 + $0xc1] sm:$0xff] }
 0x234   : > { %v2924_v36 = vadd.f32 %v2900_v38, %v2869_v37  ;;  %v2077_v37 = vadd.f32 %v3667_v22, %v2052_v18  ;;  %v6848_v31 = vunpack.c.0.s8 %v2134_v5  ;;  %v2989_v38 = vmax.f32 %v2965_v52, 0.0 }
 0x235   : > { %v2253_v7 = vrot.slane %v6818_v6, 4  ;;  %v6861_v59 = vperm.slane %v2106_v48, %v6697_v42  ;;  %v2116_v9 = vperm.slane %v2108_v12, %v6697_v42  ;;  %v2870_v30 = vadd.f32 %v2846_v50, %v2815_v10  ;;  %v6865_v4 = vpop.f32.mrf.mxu2 }
 0x236   : > { %v2967_v16 = vadd.f32 %v6339_v56, %v2924_v36  ;;  %v2241_v14 = vrot.slane %v2212_v21, 4  ;;  %v2119_v57 = vrot.slane %v2074_v26, 4  ;;  %v2220_v18 = vsel %vm2081_vm5, %v2077_v37, %v2219_v43 }
 0x237   : > { %v2901_v58 = vmul.f32 %v6345_v55, %v2879_v53  ;;  %v2217_v22 = vrot.slane %v2077_v37, 4  ;;  %v6871_v28 = vperm.slane %v6791_v0, %v6848_v31  ;;  %v6875_v5 = vperm.slane %v6796_v3, %v6848_v31 }
 0x238   : > { %v2991_v36 = vmax.f32 %v2967_v16, 0.0  ;;  %v2231_v47 = vrot.slane %v6857_v13, 4  ;;  %v3014_v24 = vmin.f32 %v2990_v63, 6.0  ;;  %v2167_v35 = vrot.slane %v2116_v9, 4 }
 0x239   : > { %v6880_v2 = vperm.slane %v2220_v18, %v6697_v42  ;;  %v2155_v11 = vrot.slane %v6861_v59, 4  ;;  %v2925_v50 = vadd.f32 %v2901_v58, %v2870_v30  ;;  %v6886_v3 = vperm.slane %v6800_v49, %v6848_v31  ;;  %v3669_v58 = vld [vmem:[%s4072_s14 + $0xc9] sm:$0xff] }
 0x23a   : > { %3726 = vmatmul.msk.f32.gmra.mxu2 %vm1910_vm4, %v3012_v17  ;;  %v2056_v34 = vpop.f32.mrf.mxu1  ;;  %v3013_v17 = vmin.f32 %v2989_v38, 6.0  ;;  %v6892_v48 = vsel %vm2081_vm5, %v6818_v6, %v2255_v33  ;;  %v2244_v12 = vsel %vm2081_vm5, %v2212_v21, %v2243_v39  ;;  %v2218_v37 = vsel %vm2081_vm5, %v2217_v22, %v2073_v40 }
 0x23b   : > { %v2057_v52 = vadd.f32 %v6774_v20, %v2056_v34  ;;  %v2191_v16 = vrot.slane %v6871_v28, 4  ;;  %v2187_v10 = vrot.slane %v6875_v5, 4  ;;  %v6900_v53 = vmin.f32 %v2991_v36, 6.0 }
 0x23c   : > { %v2823_v33 = vsel %vm1303_vm2, %v2819_v32, %v2820_v51  ;;  %v2878_v39 = vsel %vm1403_vm3, %v2874_v41, %v2875_v25  ;;  %v6917_v40 = vadd.f32 %v6339_v56, %v2925_v50  ;;  %v2254_v21 = vsel %vm2081_vm5, %v2253_v7, %v6769_v45 }
 0x23d   : > { %v2078_v0 = vadd.f32 %v3668_v15, %v2057_v52  ;;  %v2242_v38 = vsel %vm2081_vm5, %v2241_v14, %v6765_v46  ;;  %v6924_v32 = vperm.slane %v2218_v37, %v6697_v42  ;;  %v2279_v63 = vrot.slane %v6880_v2, 4 }
 0x23e   : > { %v2183_v41 = vrot.slane %v6886_v3, 4  ;;  %v2847_v7 = vmul.f32 %v6274_v61, %v2823_v33  ;;  %v6936_v15 = vperm.slane %v2130_v60, %v6848_v31  ;;  %v2992_v52 = vmax.f32 %v6917_v40, 0.0 }
 0x23f   : > { %v2117_v49 = vrot.slane %v2078_v0, 4  ;;  %v2120_v43 = vsel %vm2081_vm5, %v2078_v0, %v2119_v57  ;;  %v3115_v30 = vpop.f32.mrf.mxu2  ;;  %v3110_v54 = vadd.f32 %v6774_v20, %v6822_v23 }
 0x240   : > { %v2128_v6 = vperm.slane %v2120_v43, %v6697_v42  ;;  %v2267_v30 = vrot.slane %v6924_v32, 4 }
 0x241   : > { %v2118_v19 = vsel %vm2081_vm5, %v2117_v49, %v2074_v26  ;;  %v2902_v26 = vmul.f32 %v6345_v55, %v2878_v39  ;;  %v2260_v39 = vperm.slane %v2254_v21, %v6848_v31  ;;  %v2822_v21 = vsel %vm1303_vm2, %v2820_v51, %v2821_v8 }
 0x242   : > { %3727 = vmatmul.msk.f32.gmra.mxu2 %vm1910_vm4, %v3013_v17  ;;  %v2124_v57 = vperm.slane %v2118_v19, %v6697_v42  ;;  %v2165_v18 = vrot.slane %v2128_v6, 4  ;;  %v2059_v22 = vpop.f32.mrf.mxu1  ;;  %v2168_v45 = vsel %vm2081_vm5, %v2128_v6, %v2167_v35 }
 0x243   : > { %v2060_v46 = vadd.f32 %v6774_v20, %v2059_v22  ;;  %v2176_v14 = vperm.slane %v2168_v45, %v6848_v31  ;;  %v2299_v51 = vrot.slane %v2260_v39, 4 }
 0x244   : > { %v2166_v34 = vsel %vm2081_vm5, %v2165_v18, %v2116_v9  ;;  %v2156_v36 = vsel %vm2081_vm5, %v2124_v57, %v2155_v11  ;;  %v2153_v17 = vrot.slane %v2124_v57, 4  ;;  %v6950_v9 = vperm.slane %v2244_v12, %v6848_v31 }
 0x245   : > { %v2079_v35 = vadd.f32 %v3669_v58, %v2060_v46  ;;  %v2192_v61 = vsel %vm2081_vm5, %v2176_v14, %v2191_v16  ;;  %v2172_v50 = vperm.slane %v2166_v34, %v6848_v31  ;;  %v2164_v0 = vperm.slane %v2156_v36, %v6848_v31 }
 0x246   : > { %2330 = vrot.lane.b32.xlu0 %v2192_v61, %s3942_s16  ;;  %v2154_v55 = vsel %vm2081_vm5, %v2153_v17, %v6861_v59  ;;  %v2189_v60 = vrot.slane %v2176_v14, 4  ;;  %v2871_v11 = vadd.f32 %v2847_v7, %v6733_v62  ;;  %v2179_v59 = vrot.slane %v6936_v15, 4 }
 0x247   : > { %v2232_v37 = vsel %vm2081_vm5, %v2079_v35, %v2231_v47  ;;  %v2188_v16 = vsel %vm2081_vm5, %v2172_v50, %v2187_v10  ;;  %v2184_v49 = vsel %vm2081_vm5, %v2164_v0, %v2183_v41  ;;  %v2181_v12 = vrot.slane %v2164_v0, 4 }
 0x248   : > { %v2240_v43 = vperm.slane %v2232_v37, %v6697_v42  ;;  %2322 = vrot.lane.b32.xlu1 %v2188_v16, %s3943_s19  ;;  %2314 = vrot.lane.b32.xlu2 %v2184_v49, %s3944_s20  ;;  %v2190_v62 = vsel %vm2081_vm5, %v2189_v60, %v6871_v28  ;;  %v6965_v10 = vperm.slane %v2154_v55, %v6848_v31  ;;  %v2185_v33 = vrot.slane %v2172_v50, 4 }
 0x249   : > { %v2248_v41 = vperm.slane %v2242_v38, %v6848_v31  ;;  %v2182_v28 = vsel %vm2081_vm5, %v2181_v12, %v6886_v3  ;;  %v3016_v60 = vmin.f32 %v2992_v52, 6.0 }
 0x24a   : > { %3728 = vmatmul.msk.f32.gmra.mxu2 %vm1910_vm4, %v3014_v24  ;;  %v2229_v24 = vrot.slane %v2079_v35, 4  ;;  %v2277_v19 = vrot.slane %v2240_v43, 4  ;;  %v2186_v57 = vsel %vm2081_vm5, %v2185_v33, %v6875_v5  ;;  %v2280_v18 = vsel %vm2081_vm5, %v2240_v43, %v2279_v63 }
 0x24b   : > { %v2180_v22 = vsel %vm2081_vm5, %v6965_v10, %v2179_v59  ;;  %v2926_v63 = vadd.f32 %v2902_v26, %v2871_v11  ;;  %v2291_v46 = vrot.slane %v2248_v41, 4  ;;  %v6999_v34 = vperm.slane %v2280_v18, %v6848_v31  ;;  %v3856_v26 = vld [vmem:[%s7294_s4 + $0x6] ss:$0 sm:$0xff] }
 0x24c   : > { %v2230_v47 = vsel %vm2081_vm5, %v2229_v24, %v6857_v13  ;;  %v2295_v13 = vrot.slane %v6950_v9, 4  ;;  %v2278_v38 = vsel %vm2081_vm5, %v2277_v19, %v6880_v2  ;;  %v2794_v50 = vmul.f32 %v3856_v26, %v6725_v27  ;;  %v7641_v59 = vld [vmem:[#allocation17_spill] sm:$0xff]  ;;  %v3699_v26 = vld [vmem:[%s4072_s14 + $0x111] sm:$0xff] }
 0x24d   : > { %v2236_v6 = vperm.slane %v2230_v47, %v6697_v42  ;;  %v2062_v5 = vpop.f32.mrf.mxu1  ;;  %v2284_v7 = vperm.slane %v2278_v38, %v6848_v31  ;;  %v7640_v11 = vrot.slane %v6725_v27, 2  ;;  %v2301_v37 = vrot.slane %v6999_v34, 4 }
 0x24e   : > { %2306 = vrot.lane.b32.xlu0 %v2180_v22, %s3945_s21  ;;  %v2969_v16 = vadd.f32 %v6339_v56, %v2926_v63  ;;  %v2825_v1 = vsel %vm1303_vm2, %v2821_v8, %v7641_v59  ;;  %v3857_v56 = vld [vmem:[%s7294_s4 + $0x8] ss:$0 sm:$0xff]  ;;  %v3694_v5 = vld [vmem:[%s4072_s14 + $0xd9] sm:$0xff]  ;;  %vm2391_vm2 = vcmask 490496  }
 0x24f   : > { %v2268_v58 = vsel %vm2081_vm5, %v2236_v6, %v2267_v30  ;;  %v2265_v3 = vrot.slane %v2236_v6, 4  ;;  %v2300_v17 = vsel %vm2081_vm5, %v2284_v7, %v2299_v51  ;;  %v7004_v61 = vpop.f32.mrf.mxu2  ;;  %v2877_v24 = vsel %vm1403_vm3, %v2875_v25, %v7640_v11 }
 0x250   : > { %v2276_v45 = vperm.slane %v2268_v58, %v6848_v31  ;;  %2326 = vrot.lane.b32.xlu2 %v2190_v62, %s3946_s24  ;;  %2310 = vrot.lane.b32.xlu1 %v2182_v28, %s3947_s25  ;;  %v7037_v25 = vperm.slane %v6892_v48, %v6848_v31  ;;  %v2903_v62 = vmul.f32 %v3857_v56, %v2877_v24  ;;  %v2993_v8 = vmax.f32 %v2969_v16, 0.0  ;;  %v7643_v48 = vld [vmem:[#allocation18_spill] sm:$0xff]  ;;  %v3858_v28 = vld [vmem:[%s7295_s5] ss:$0 sm:$0xff] }
 0x251   : > { %v2266_v2 = vsel %vm2081_vm5, %v2265_v3, %v6924_v32  ;;  %v2817_v32 = vadd.f32 %v6746_v44, %v6735_v29  ;;  %v2297_v44 = vrot.slane %v2284_v7, 4  ;;  %v7644_v19 = vmov %v7640_v11  ;;  %v3698_v7 = vld [vmem:[%s4072_s14 + $0x109] sm:$0xff] }
 0x252   : > { %3729 = vmatmul.msk.f32.gmra.mxu2 %vm1910_vm4, %v6900_v53  ;;  %v3855_v53 = vld [vmem:[%s7294_s4 + $0x7] ss:$0 sm:$0xff]  ;;  %v2296_v36 = vsel %vm2081_vm5, %v2276_v45, %v2295_v13  ;;  %v2272_v35 = vperm.slane %v2266_v2, %v6848_v31  ;;  %v2293_v29 = vrot.slane %v2276_v45, 4  ;;  %v2302_v47 = vsel %vm2081_vm5, %v2301_v37, %v7037_v25  ;;  %v3696_v37 = vld [vmem:[%s4072_s14 + $0xf1] sm:$0xff] }
 0x253   : > { %v2848_v14 = vmul.f32 %v3855_v53, %v2822_v21  ;;  %v2298_v52 = vsel %vm2081_vm5, %v2297_v44, %v2260_v39  ;;  %v2849_v39 = vmul.f32 %v3855_v53, %v2825_v1  ;;  %v2880_v30 = vsel %vm1403_vm3, %v7644_v19, %v7643_v48 }
 0x254   : > { %v2292_v0 = vsel %vm2081_vm5, %v2272_v35, %v2291_v46  ;;  %v2289_v55 = vrot.slane %v2272_v35, 4  ;;  %v2294_v40 = vsel %vm2081_vm5, %v2293_v29, %v6950_v9  ;;  %v7642_v9 = vld [vmem:[#allocation20_spill] sm:$0xff]  ;;  %v2904_v21 = vmul.f32 %v3857_v56, %v2880_v30 }
 0x255   : > { %v2872_v43 = vadd.f32 %v2848_v14, %v2817_v32  ;;  %v2818_v12 = vadd.f32 %v2794_v50, %v7642_v9  ;;  %v3173_v22 = vadd.f32 %v3694_v5, %v3110_v54  ;;  %v3113_v2 = vadd.f32 %v6774_v20, %v6865_v4  ;;  %v3695_v14 = vld [vmem:[%s4072_s14 + $0xe1] sm:$0xff]  ;;  %v3697_v56 = vld [vmem:[%s4072_s14 + $0xf9] sm:$0xff] }
 0x256   : > { %v2290_v49 = vsel %vm2081_vm5, %v2289_v55, %v2248_v41  ;;  %2318 = vrot.lane.b32.xlu0 %v2186_v57, %s7388_s23  ;;  %v3017_v41 = vmin.f32 %v2993_v8, 6.0  ;;  %s3953_s23 = smov 32   ;;  %v3118_v44 = vadd.f32 %v6774_v20, %v7004_v61  ;;  %v3701_v8 = vld [vmem:[%s4072_s14 + $0x129] sm:$0xff]  ;;  %v2177_v54 = vrot.slane %v6965_v10, 4 }
 0x257   : > { %v2927_v33 = vadd.f32 %v2903_v62, %v2872_v43  ;;  %v3120_v6 = vpop.f32.mrf.mxu2  ;;  %v2873_v13 = vadd.f32 %v2849_v39, %v2818_v12  ;;  %v3191_v23 = vrot.slane %v3173_v22, 4  ;;  %v3174_v35 = vadd.f32 %v3695_v14, %v3113_v2 }
 0x258   : > { %2358 = vrot.lane.b32.xlu2 %v2302_v47, %s7386_s26  ;;  %2346 = vrot.lane.b32.xlu1 %v2296_v36, %s7387_s11  ;;  %s3951_s26 = smov 52   ;;  %s3952_s11 = smov 36   ;;  %v3175_v16 = vadd.f32 %v3696_v37, %v3118_v44  ;;  %v3121_v59 = vadd.f32 %v6774_v20, %v3120_v6  ;;  %vm2393_vm3 = vcmask 523264  }
 0x259   : > { %v2970_v57 = vadd.f32 %v3858_v28, %v2927_v33  ;;  %v2928_v27 = vadd.f32 %v2904_v21, %v2873_v13  ;;  %v3303_v55 = vrot.slane %v3174_v35, 4 }
 0x25a   : > { %3730 = vmatmul.msk.f32.gmra.mxu2 %vm1910_vm4, %v3016_v60  ;;  %v3176_v12 = vadd.f32 %v3697_v56, %v3121_v59 }
 0x25b   : > { %v2994_v18 = vmax.f32 %v2970_v57, 0.0  ;;  %v2971_v3 = vadd.f32 %v3858_v28, %v2928_v27 }
 0x25c   : > { %v3315_v39 = vrot.slane %v3176_v12, 4 }
 0x25d   : > { %v3018_v38 = vmin.f32 %v2994_v18, 6.0  ;;  %v2995_v45 = vmax.f32 %v2971_v3, 0.0 }
 0x25e   : > { %2354 = vrot.lane.b32.xlu0 %v2300_v17, %s3951_s26 }
 0x25f   : > { %v3019_v53 = vmin.f32 %v2995_v45, 6.0 }
 0x260   : > { %2338 = vrot.lane.b32.xlu2 %v2292_v0, %s3952_s11  ;;  %2334 = vrot.lane.b32.xlu1 %v2290_v49, %s3953_s23  ;;  %v3700_v49 = vld [vmem:[%s4072_s14 + $0x121] sm:$0xff] }
 0x262   : > { %3731 = vmatmul.msk.f32.gmra.mxu2 %vm1910_vm4, %v3017_v41  ;;  %v3123_v58 = vpop.f32.mrf.mxu2 }
 0x266   : > { %2342 = vrot.lane.b32.xlu0 %v2294_v40, %s3954_s12 }
 0x268   : > { %2350 = vrot.lane.b32.xlu2 %v2298_v52, %s3955_s22  ;;  %v3203_v52 = vrot.slane %v3175_v16, 4 }
 0x26a   : > { %3732 = vmatmul.msk.f32.gmra.mxu2 %vm1910_vm4, %v3018_v38  ;;  %v3125_v51 = vpop.f32.mrf.mxu2 }
 0x26b   : > { %v3126_v63 = vadd.f32 %v6774_v20, %v3125_v51 }
 0x26d   : > { %v3177_v46 = vadd.f32 %v3698_v7, %v3126_v63 }
 0x26f   : > { %v3189_v36 = vrot.slane %v3177_v46, 4  ;;  %v3192_v17 = vsel %vm2081_vm5, %v3177_v46, %v3191_v23 }
 0x271   : > { %v3190_v32 = vsel %vm2081_vm5, %v3189_v36, %v3173_v22  ;;  %v2178_v22 = vsel %vm2081_vm5, %v2177_v54, %v6936_v15 }
 0x272   : > { %3733 = vmatmul.msk.f32.gmra.mxu2 %vm1910_vm4, %v3019_v53  ;;  %v3196_v15 = vperm.slane %v3190_v32, %v6697_v42  ;;  %v3200_v53 = vperm.slane %v3192_v17, %v6697_v42 }
 0x274   : > { %v3128_v50 = vpop.f32.mrf.mxu2 }
 0x275   : > { %v3129_v0 = vadd.f32 %v6774_v20, %v3128_v50 }
 0x277   : > { %v3178_v4 = vadd.f32 %v3699_v26, %v3129_v0 }
 0x279   : > { %v3301_v60 = vrot.slane %v3178_v4, 4  ;;  %v7077_v11 = vsel %vm2081_vm5, %v3178_v4, %v3303_v55  ;;  %v3239_v55 = vrot.slane %v3196_v15, 4  ;;  %v3251_v4 = vrot.slane %v3200_v53, 4 }
 0x27b   : > { %v7080_v24 = vsel %vm2081_vm5, %v3301_v60, %v3174_v35 }
 0x27c   : > { %v3308_v59 = vperm.slane %v7080_v24, %v6697_v42 }
 0x27d   : > { %v3131_v29 = vpop.f32.mrf.mxu2 }
 0x285   : > { %v3133_v43 = vpop.f32.mrf.mxu2 }
 0x286   : > { %v3134_v40 = vadd.f32 %v6774_v20, %v3133_v43 }
 0x288   : > { %v3179_v1 = vadd.f32 %v3700_v49, %v3134_v40  ;;  %v3706_v40 = vld [vmem:[%s4072_s14 + $0x169] sm:$0xff] }
 0x28a   : > { %v3201_v62 = vrot.slane %v3179_v1, 4  ;;  %v3204_v9 = vsel %vm2081_vm5, %v3179_v1, %v3203_v52  ;;  %v3702_v52 = vld [vmem:[%s4072_s14 + $0x139] sm:$0xff] }
 0x28b   : > { %v3212_v10 = vperm.slane %v3204_v9, %v6697_v42 }
 0x28c   : > { %v3202_v47 = vsel %vm2081_vm5, %v3201_v62, %v3175_v16 }
 0x28d   : > { %v3136_v33 = vpop.f32.mrf.mxu2  ;;  %v3208_v14 = vperm.slane %v3202_v47, %v6697_v42  ;;  %v3249_v0 = vrot.slane %v3212_v10, 4  ;;  %v3252_v17 = vsel %vm2081_vm5, %v3212_v10, %v3251_v4  ;;  %v3703_v47 = vld [vmem:[%s4072_s14 + $0x141] sm:$0xff] }
 0x28e   : > { %v3137_v61 = vadd.f32 %v6774_v20, %v3136_v33 }
 0x28f   : > { %v3237_v60 = vrot.slane %v3208_v14, 4  ;;  %v3240_v32 = vsel %vm2081_vm5, %v3208_v14, %v3239_v55  ;;  %v3250_v44 = vsel %vm2081_vm5, %v3249_v0, %v3200_v53 }
 0x290   : > { %v3180_v48 = vadd.f32 %v3701_v8, %v3137_v61  ;;  %v3351_v61 = vrot.slane %v3308_v59, 4 }
 0x291   : > { %v3238_v37 = vsel %vm2081_vm5, %v3237_v60, %v3196_v15  ;;  %v3260_v15 = vperm.slane %v3252_v17, %v6848_v31 }
 0x292   : > { %v3313_v19 = vrot.slane %v3180_v48, 4  ;;  %v3316_v30 = vsel %vm2081_vm5, %v3180_v48, %v3315_v39  ;;  %v3704_v39 = vld [vmem:[%s4072_s14 + $0x151] sm:$0xff]  ;;  %v7153_v4 = vperm.slane %v3238_v37, %v6848_v31 }
 0x294   : > { %v3314_v41 = vsel %vm2081_vm5, %v3313_v19, %v3176_v12  ;;  %v3707_v19 = vld [vmem:[%s4072_s14 + $0x171] sm:$0xff] }
 0x295   : > { %v3139_v6 = vpop.f32.mrf.mxu2  ;;  %v3320_v49 = vperm.slane %v3314_v41, %v6697_v42  ;;  %v3324_v41 = vperm.slane %v3316_v30, %v6697_v42 }
 0x297   : > { %v3349_v56 = vrot.slane %v3320_v49, 4  ;;  %v7134_v54 = vsel %vm2081_vm5, %v3320_v49, %v3351_v61  ;;  %v3361_v30 = vrot.slane %v3324_v41, 4 }
 0x29d   : > { %v3141_v28 = vpop.f32.mrf.mxu2 }
 0x29e   : > { %v3142_v43 = vadd.f32 %v6774_v20, %v3141_v28  ;;  %v3350_v28 = vsel %vm2081_vm5, %v3349_v56, %v3308_v59  ;;  %v3709_v59 = vld [vmem:[%s4072_s14 + $0x189] sm:$0xff] }
 0x2a0   : > { %v3181_v62 = vadd.f32 %v3702_v52, %v3142_v43 }
 0x2a2   : > { %v2315_v38 = vpop.permute.xlu2 %2314  ;;  %v3215_v24 = vrot.slane %v3181_v62, 4 }
 0x2a5   : > { %v3144_v57 = vpop.f32.mrf.mxu2 }
 0x2a6   : > { %v3145_v12 = vadd.f32 %v6774_v20, %v3144_v57 }
 0x2aa   : > { %v2327_v36 = vpop.permute.xlu2 %2326 }
 0x2ad   : > { %v3147_v13 = vpop.f32.mrf.mxu2 }
 0x2ae   : > { %v3182_v13 = vadd.f32 %v3703_v47, %v3145_v12  ;;  %v3287_v47 = vrot.slane %v7153_v4, 4 }
 0x2b5   : > { %v3149_v21 = vpop.f32.mrf.mxu2 }
 0x2b6   : > { %v3150_v8 = vadd.f32 %v6774_v20, %v3149_v21 }
 0x2b8   : > { %v2331_v27 = vpop.permute.xlu0 %2330  ;;  %v3183_v57 = vadd.f32 %v3704_v39, %v3150_v8 }
 0x2ba   : > { %v2323_v58 = vpop.permute.xlu1 %2322 }
 0x2bd   : > { %v3152_v18 = vpop.f32.mrf.mxu2 }
 0x2be   : > { %v3153_v6 = vadd.f32 %v6774_v20, %v3152_v18  ;;  %v3708_v18 = vld [vmem:[%s4072_s14 + $0x181] sm:$0xff] }
 0x2c0   : > { %v2307_v5 = vpop.permute.xlu0 %2306 }
 0x2c1   : > { %v2365_v45 = vsel %vm448_vm1, %v2178_v22, %v2307_v5 }
 0x2c2   : > { %v2311_v7 = vpop.permute.xlu1 %2310 }
 0x2c3   : > { %v2366_v51 = vsel %vm1910_vm4, %v2365_v45, %v2311_v7  ;;  %v3327_v45 = vrot.slane %v3182_v13, 4 }
 0x2c4   : > { %v2368_v2 = vsel %vm2367_vm6, %v2366_v51, %v2315_v38 }
 0x2c5   : > { %v3155_v3 = vpop.f32.mrf.mxu2 }
 0x2c6   : > { %v3312_v3 = vperm.slane %v7077_v11, %v6697_v42  ;;  %v3248_v11 = vperm.slane %v3240_v32, %v6848_v31 }
 0x2c8   : > { %v2319_v23 = vpop.permute.xlu0 %2318  ;;  %v3363_v53 = vrot.slane %v3312_v3, 4  ;;  %v3291_v43 = vrot.slane %v3248_v11, 4 }
 0x2c9   : > { %v2370_v46 = vsel %vm2369_vm7, %v2368_v2, %v2319_v23 }
 0x2ca   : > { %v2372_v35 = vsel %vm2371_vm8, %v2370_v46, %v2323_v58  ;;  %v3364_v32 = vsel %vm2081_vm5, %v3324_v41, %v3363_v53 }
 0x2cb   : > { %v2374_v26 = vsel %vm2373_vm9, %v2372_v35, %v2327_v36  ;;  %v3256_v36 = vperm.slane %v3250_v44, %v6848_v31  ;;  %v3362_v35 = vsel %vm2081_vm5, %v3361_v30, %v3312_v3 }
 0x2cc   : > { %v7109_v50 = vsel %vm2375_vm10, %v2374_v26, %v2331_v27  ;;  %v3705_v27 = vld [vmem:[%s4072_s14 + $0x159] sm:$0xff]  ;;  %s7645_s14 = smov 16  }
 0x2cd   : > { %v3157_v63 = vpop.f32.mrf.mxu2  ;;  %v7139_v5 = vadd.f32 %v3705_v27, %v3153_v6  ;;  %v3295_v56 = vrot.slane %v3256_v36, 4  ;;  %v3372_v27 = vperm.slane %v3364_v32, %v6848_v31 }
 0x2ce   : > { %v3158_v16 = vadd.f32 %v6774_v20, %v3157_v63  ;;  %v3227_v63 = vrot.slane %v3183_v57, 4 }
 0x2cf   : > { %v3339_v14 = vrot.slane %v7139_v5, 4 }
 0x2d0   : > { %v3185_v1 = vadd.f32 %v3706_v40, %v3158_v16  ;;  %v3299_v16 = vrot.slane %v3260_v15, 4 }
 0x2d2   : > { %v3213_v48 = vrot.slane %v3185_v1, 4  ;;  %v3216_v58 = vsel %vm2081_vm5, %v3185_v1, %v3215_v24 }
 0x2d3   : > { %v3224_v7 = vperm.slane %v3216_v58, %v6697_v42 }
 0x2d4   : > { %v3214_v38 = vsel %vm2081_vm5, %v3213_v48, %v3181_v62 }
 0x2d5   : > { %v3160_v29 = vpop.f32.mrf.mxu2  ;;  %v3220_v23 = vperm.slane %v3214_v38, %v6697_v42  ;;  %v3275_v26 = vrot.slane %v3224_v7, 4 }
 0x2d6   : > { %v3161_v33 = vadd.f32 %v6774_v20, %v3160_v29 }
 0x2d7   : > { %v3263_v49 = vrot.slane %v3220_v23, 4 }
 0x2d8   : > { %v3186_v21 = vadd.f32 %v3707_v19, %v3161_v33 }
 0x2da   : > { %v3325_v2 = vrot.slane %v3186_v21, 4  ;;  %v3328_v10 = vsel %vm2081_vm5, %v3186_v21, %v3327_v45 }
 0x2db   : > { %v3336_v29 = vperm.slane %v3328_v10, %v6697_v42 }
 0x2dc   : > { %v3326_v60 = vsel %vm2081_vm5, %v3325_v2, %v3182_v13  ;;  %v3356_v13 = vperm.slane %v3350_v28, %v6848_v31 }
 0x2dd   : > { %v3163_v9 = vpop.f32.mrf.mxu2  ;;  %v3332_v62 = vperm.slane %v3326_v60, %v6697_v42  ;;  %v3387_v8 = vrot.slane %v3336_v29, 4 }
 0x2de   : > { %v3399_v10 = vrot.slane %v3356_v13, 4 }
 0x2e5   : > { %v3165_v22 = vpop.f32.mrf.mxu2 }
 0x2e6   : > { %v3166_v51 = vadd.f32 %v6774_v20, %v3165_v22  ;;  %v3375_v22 = vrot.slane %v3332_v62, 4 }
 0x2e8   : > { %v3187_v46 = vadd.f32 %v3708_v18, %v3166_v51  ;;  %v3360_v51 = vperm.slane %v7134_v54, %v6848_v31 }
 0x2ea   : > { %v3225_v0 = vrot.slane %v3187_v46, 4  ;;  %v3228_v55 = vsel %vm2081_vm5, %v3187_v46, %v3227_v63  ;;  %v3368_v46 = vperm.slane %v3362_v35, %v6848_v31  ;;  %v3403_v35 = vrot.slane %v3360_v51, 4 }
 0x2eb   : > { %v3236_v17 = vperm.slane %v3228_v55, %v6697_v42 }
 0x2ec   : > { %v3226_v44 = vsel %vm2081_vm5, %v3225_v0, %v3183_v57 }
 0x2ed   : > { %v3232_v40 = vperm.slane %v3226_v44, %v6697_v42  ;;  %v3273_v52 = vrot.slane %v3236_v17, 4  ;;  %v3168_v1 = vpop.f32.mrf.mxu2  ;;  %v3276_v37 = vsel %vm2081_vm5, %v3236_v17, %v3275_v26  ;;  %v3407_v17 = vrot.slane %v3368_v46, 4 }
 0x2ee   : > { %v3169_v9 = vadd.f32 %v6774_v20, %v3168_v1  ;;  %v3284_v12 = vperm.slane %v3276_v37, %v6848_v31 }
 0x2ef   : > { %v3264_v33 = vsel %vm2081_vm5, %v3232_v40, %v3263_v49  ;;  %v3274_v61 = vsel %vm2081_vm5, %v3273_v52, %v3224_v7  ;;  %v3261_v39 = vrot.slane %v3232_v40, 4 }
 0x2f0   : > { %v3188_v48 = vadd.f32 %v3709_v59, %v3169_v9  ;;  %v3300_v19 = vsel %vm2081_vm5, %v3284_v12, %v3299_v16  ;;  %v3272_v41 = vperm.slane %v3264_v33, %v6848_v31  ;;  %v3280_v24 = vperm.slane %v3274_v61, %v6848_v31  ;;  %v2347_v33 = vpop.permute.xlu1 %2346 }
 0x2f1   : > { %3438 = vrot.lane.b32.xlu0 %v3300_v19, %s3942_s16  ;;  %v3262_v20 = vsel %vm2081_vm5, %v3261_v39, %v3220_v23  ;;  %v3297_v6 = vrot.slane %v3284_v12, 4  ;;  %s7646_s16 = smov 44   ;;  %v7226_v12 = vpop.permute.xlu2 %2358 }
 0x2f2   : > { %v3337_v57 = vrot.slane %v3188_v48, 4  ;;  %v3340_v58 = vsel %vm2081_vm5, %v3188_v48, %v3339_v14  ;;  %v3292_v21 = vsel %vm2081_vm5, %v3272_v41, %v3291_v43  ;;  %v3296_v38 = vsel %vm2081_vm5, %v3280_v24, %v3295_v56 }
 0x2f3   : > { %v3348_v3 = vperm.slane %v3340_v58, %v6697_v42  ;;  %3422 = vrot.lane.b32.xlu2 %v3292_v21, %s3944_s20  ;;  %3430 = vrot.lane.b32.xlu1 %v3296_v38, %s3943_s19  ;;  %v3298_v30 = vsel %vm2081_vm5, %v3297_v6, %v3260_v15  ;;  %v3289_v18 = vrot.slane %v3272_v41, 4  ;;  %v7186_v45 = vperm.slane %v3262_v20, %v6848_v31  ;;  %s7647_s19 = smov 56   ;;  %s3956_s20 = smov 60  }
 0x2f4   : > { %v3338_v28 = vsel %vm2081_vm5, %v3337_v57, %v7139_v5  ;;  %v3293_v7 = vrot.slane %v3280_v24, 4  ;;  %v3411_v14 = vrot.slane %v3372_v27, 4 }
 0x2f5   : > { %v3344_v63 = vperm.slane %v3338_v28, %v6697_v42  ;;  %v3385_v23 = vrot.slane %v3348_v3, 4  ;;  %v3171_v2 = vpop.f32.mrf.mxu2  ;;  %v3290_v15 = vsel %vm2081_vm5, %v3289_v18, %v3248_v11  ;;  %v3388_v5 = vsel %vm2081_vm5, %v3348_v3, %v3387_v8 }
 0x2f6   : > { %v3294_v53 = vsel %vm2081_vm5, %v3293_v7, %v3256_v36  ;;  %v3396_v54 = vperm.slane %v3388_v5, %v6848_v31  ;;  %v3288_v42 = vsel %vm2081_vm5, %v7186_v45, %v3287_v47  ;;  %v2355_v47 = vpop.permute.xlu0 %2354 }
 0x2f7   : > { %v3373_v26 = vrot.slane %v3344_v63, 4  ;;  %v3376_v0 = vsel %vm2081_vm5, %v3344_v63, %v3375_v22  ;;  %v3386_v55 = vsel %vm2081_vm5, %v3385_v23, %v3336_v29 }
 0x2f8   : > { %v3384_v60 = vperm.slane %v3376_v0, %v6848_v31  ;;  %v3392_v11 = vperm.slane %v3386_v55, %v6848_v31  ;;  %v3409_v32 = vrot.slane %v3396_v54, 4  ;;  %v3412_v44 = vsel %vm2081_vm5, %v3396_v54, %v3411_v14  ;;  %v2335_v48 = vpop.permute.xlu1 %2334 }
 0x2f9   : > { %3414 = vrot.lane.b32.xlu0 %v3288_v42, %s3945_s21  ;;  %v3374_v36 = vsel %vm2081_vm5, %v3373_v26, %v3332_v62  ;;  %v2303_v62 = vrot.slane %v7037_v25, 4  ;;  %v2339_v8 = vpop.permute.xlu2 %2338  ;;  %v3285_v25 = vrot.slane %v7186_v45, 4  ;;  %v2378_v18 = vsel %vm2377_vm11, %v7109_v50, %v2335_v48  ;;  %s310_s21 = sand.u32 1, %s3921_s28  }
 0x2fa   : > { %v3380_v29 = vperm.slane %v3374_v36, %v6848_v31  ;;  %v3404_v16 = vsel %vm2081_vm5, %v3384_v60, %v3403_v35  ;;  %v3401_v49 = vrot.slane %v3384_v60, 4  ;;  %v3405_v43 = vrot.slane %v3392_v11, 4 }
 0x2fb   : > { %3434 = vrot.lane.b32.xlu2 %v3298_v30, %s3946_s24  ;;  %3418 = vrot.lane.b32.xlu1 %v3290_v15, %s3947_s25  ;;  %v3408_v40 = vsel %vm2081_vm5, %v3392_v11, %v3407_v17  ;;  %v3410_v52 = vsel %vm2081_vm5, %v3409_v32, %v3372_v27  ;;  %v2304_v9 = vsel %vm2081_vm5, %v6999_v34, %v2303_v62  ;;  %s3597_s24 = sshll.u32 %s310_s21, 4 }
 0x2fc   : > { %v3400_v59 = vsel %vm2081_vm5, %v3380_v29, %v3399_v10  ;;  %v3402_v1 = vsel %vm2081_vm5, %v3401_v49, %v3360_v51  ;;  %v3406_v37 = vsel %vm2081_vm5, %v3405_v43, %v3368_v46  ;;  %v3397_v56 = vrot.slane %v3380_v29, 4 }
 0x2fd   : > { %v3286_v34 = vsel %vm2081_vm5, %v3285_v25, %v7153_v4  ;;  %v2380_v28 = vsel %vm2379_vm12, %v2378_v18, %v2339_v8 }
 0x2fe   : > { %v3398_v31 = vsel %vm2081_vm5, %v3397_v56, %v3356_v13  ;;  %v2343_v61 = vpop.permute.xlu0 %2342 }
 0x2ff   : > { %v2382_v45 = vsel %vm2381_vm13, %v2380_v28, %v2343_v61 }
 0x300   : > { %v2384_v50 = vsel %vm2383_vm14, %v2382_v45, %v2347_v33 }
 0x301   : > { %3426 = vrot.lane.b32.xlu0 %v3294_v53, %s7645_s14  ;;  %v2351_v39 = vpop.permute.xlu2 %2350 }
 0x302   : > { %v2386_v46 = vsel %vm2385_vm15, %v2384_v50, %v2351_v39 }
 0x303   : > { %3446 = vrot.lane.b32.xlu2 %v3400_v59, %s3952_s11  ;;  %3454 = vrot.lane.b32.xlu1 %v3404_v16, %s7646_s16  ;;  %v2388_v26 = vsel %vm2387_vm0, %v2386_v46, %v2355_v47  ;;  %s3490_s16 = scalar_lea.sflag [#allocation3], %s310_s21 }
 0x309   : > { %3450 = vrot.lane.b32.xlu0 %v3402_v1, %s3954_s12 }
 0x30b   : > { %3458 = vrot.lane.b32.xlu2 %v3406_v37, %s3955_s22  ;;  %3462 = vrot.lane.b32.xlu1 %v3408_v40, %s3951_s26  ;;  %s312_s22 = scalar_lea.vmem [#allocation2], %s3597_s24  ;;  %s3879_s26 = scalar_lea.hbm %s7298_s8, 32 }
 0x30c   : > { %s3504_s14 = sshll.u32 %s312_s22, 4  ;;  %s3505_s14 = int_to_ptr.vmem [resolvable:$true] %s3504_s14 }
 0x311   : > { %3466 = vrot.lane.b32.xlu0 %v3410_v52, %s7647_s19 }
 0x313   : > { %3470 = vrot.lane.b32.xlu2 %v3412_v44, %s3956_s20  ;;  %3442 = vrot.lane.b32.xlu1 %v3398_v31, %s3953_s23  ;;  %s3739_s23 = sshll.u32 %s3929_s30, 4 }
 0x314   : > { %s3503_s12 = scalar_lea.hbm %s7298_s8, %s3739_s23 }
 0x315   : > { %s3506_s30 = sshll.u32 %s3503_s12, 4  ;;  %s3507_s30 = int_to_ptr.hbm [resolvable:$true] %s3506_s30 }
 0x316   : > { %s3873_s19 = sshra.s32 %s3507_s30, 4  ;;  %s3874_s19 = int_to_ptr.hbm [resolvable:$true] %s3873_s19 }
 0x317   : > { %p3880_p1 = scmp.lt.s32.totalorder %s3874_s19, %s7298_s8 }
 0x31b   : > { %2362 = vrot.lane.b32.xlu1 %v2304_v9, %s3956_s20  ;;  %s3875_s20 = scalar_lea.hbm %s3874_s19, 16 }
 0x31c   : > { %p3876_p12 = scmp.ne.s32.totalorder %s3874_s19, %s3875_s20  ;;  %p3881_p2 = scmp.lt.s32.totalorder %s3879_s26, %s3875_s20 }
 0x31e   : > { %p3877_p13 = pnand %p3876_p12, %p4043_p4  ;;  %p3882_p3 = por %p3881_p2, %p3880_p1 }
 0x320   : > { %p3878_p0 = pneg %p3877_p13 }
 0x322   : > { %p3883_p5 = pnand %p3882_p3, %p3878_p0 }
 0x34d   : > { %v3423_v41 = vpop.permute.xlu2 %3422 }
 0x355   : > { %v3435_v13 = vpop.permute.xlu2 %3434 }
 0x35d   : > { %v3447_v21 = vpop.permute.xlu2 %3446 }
 0x363   : > { %v3439_v19 = vpop.permute.xlu0 %3438 }
 0x365   : > { %v3431_v24 = vpop.permute.xlu1 %3430  ;;  %v3459_v51 = vpop.permute.xlu2 %3458 }
 0x36b   : > { %v3415_v20 = vpop.permute.xlu0 %3414 }
 0x36c   : > { %v3473_v27 = vsel %vm448_vm1, %v3286_v34, %v3415_v20  ;;  %vm2389_vm1 = vcmask 457728  }
 0x36d   : > { %v3419_v6 = vpop.permute.xlu1 %3418  ;;  %v3471_v54 = vpop.permute.xlu2 %3470  ;;  %v2390_v35 = vsel %vm2389_vm1, %v2388_v26, %v7226_v12 }
 0x36e   : > { %v3474_v38 = vsel %vm1910_vm4, %v3473_v27, %v3419_v6 }
 0x36f   : > { %v3475_v3 = vsel %vm2367_vm6, %v3474_v38, %v3423_v41 }
 0x373   : > { %v3427_v58 = vpop.permute.xlu0 %3426 }
 0x374   : > { %v3476_v30 = vsel %vm2369_vm7, %v3475_v3, %v3427_v58 }
 0x375   : > { %v3455_v57 = vpop.permute.xlu1 %3454  ;;  %v3477_v4 = vsel %vm2371_vm8, %v3476_v30, %v3431_v24 }
 0x376   : > { %v3478_v63 = vsel %vm2373_vm9, %v3477_v4, %v3435_v13 }
 0x377   : > { %v3479_v2 = vsel %vm2375_vm10, %v3478_v63, %v3439_v19 }
 0x37b   : > { %v3451_v7 = vpop.permute.xlu0 %3450 }
 0x37d   : > { %v3463_v22 = vpop.permute.xlu1 %3462 }
 0x383   : > { %v3467_v0 = vpop.permute.xlu0 %3466 }
 0x385   : > { %v3443_v23 = vpop.permute.xlu1 %3442 }
 0x386   : > { %v3480_v10 = vsel %vm2377_vm11, %v3479_v2, %v3443_v23 }
 0x387   : > { %v3481_v15 = vsel %vm2379_vm12, %v3480_v10, %v3447_v21 }
 0x388   : > { %v3482_v53 = vsel %vm2381_vm13, %v3481_v15, %v3451_v7 }
 0x389   : > { %v3483_v5 = vsel %vm2383_vm14, %v3482_v53, %v3455_v57 }
 0x38a   : > { %v3484_v14 = vsel %vm2385_vm15, %v3483_v5, %v3459_v51 }
 0x38b   : > { %v3485_v55 = vsel %vm2387_vm0, %v3484_v14, %v3463_v22 }
 0x38c   : > { %v3486_v42 = vsel %vm2389_vm1, %v3485_v55, %v3467_v0 }
 0x38d   : > { %v2363_v60 = vpop.permute.xlu1 %2362  ;;  %v3487_v11 = vsel %vm2391_vm2, %v3486_v42, %v3471_v54 }
 0x38e   : > { %v2392_v36 = vsel %vm2391_vm2, %v2390_v35, %v2363_v60  ;;  %3488 = vst.msk [vmem:[%s312_s22 + $0x8] sm:$0xff] %vm2393_vm3, %v3487_v11 }
 0x38f   : > { %2394 = vst.msk [vmem:[%s312_s22] sm:$0xff] %vm2393_vm3, %v2392_v36 }
 0x390   : > { %3886 = shalt.err (!%p3883_p5)
}
 0x391   : > { %s3957_s21 = smov 128  }
 0x392   : > { %3743 = dma.vmem_to_hbm [thread:$0]  (%p4043_p4), %s3505_s14, 256, %s3507_s30, %s3490_s16, %s3957_s21, %s3957_s21, %s3947_s25  }
 0x393 PF: > { %p3749_p6 = scmp.ge.s32.totalorder %s3937_s10, 2  ;;  %s3521_s22 = sand.u32 1, %s3917_s27  }
 0x394   : > { %s3522_s24 = scalar_lea.sflag [#allocation3], %s3521_s22 }
 0x395   : > { %p3746_p7 = pnand %p3749_p6, %p4050_p8 }
 0x397   : > { %p3747_p9 = pneg %p3746_p7 }
 0x399   : > { %3912 = dma.done.wait (%p3747_p9), %s3522_s24, 256  }
 0x39a   : > { %3914 = vsyncadd (%p3747_p9), %s3522_s24, 4294967040  ;;  %s21_s10 = sadd.s32 1, %s3937_s10   ;;  %s7648_s27 = smov %s3921_s28 }
 0x39b   : > { %p18_p10 = scmp.ge.s32.totalorder %s21_s10, 4   ;;  %s7649_s28 = smov %s3925_s29 }
 0x39c   : > { %s7650_s29 = smov %s4056_s18  ;;  %s7651_s30 = smov %s3933_s9 }
 0x39d   : > { %s7652_s9 = smov %s7654_s13  ;;  %20 = sbr.rel (!%p18_p10) target bundleno = 4 (0x4), region = 91 }
 0x3a2   :  { %3528 = vsyncpa [#allocation3], 1 }
 0x3a3   :  { %3530 = vsyncpa [#allocation3 + $0x1], 1 }

// kernel: tpu_custom_call.1
= control target key start
LH: loop header
LB: loop body
LE: loop exit
PB: predicated region body
PF: predicated region fallthrough
CT: control target
= control target key end

     0   :  { %s3317_s27 = smov 0   ;;  %s3319_s28 = smov 0   ;;  %s6149_s0 = inlined_call_operand.vmem [shape: f32[2,18,24,4], index: 0, kind: input, shape index: {}]   ;;  %s6150_s1 = inlined_call_operand.vmem [shape: f32[432,1], index: 1, kind: input, shape index: {}]   ;;  %s6151_s2 = inlined_call_operand.vmem [shape: f32[4,8], index: 2, kind: input, shape index: {}]   ;;  %s6152_s3 = inlined_call_operand.vmem [shape: f32[1,8], index: 3, kind: input, shape index: {}]   ;;  %s6153_s4 = inlined_call_operand.vmem [shape: f32[9,1,8], index: 4, kind: input, shape index: {}]   ;;  %s6154_s5 = inlined_call_operand.vmem [shape: f32[1,8], index: 5, kind: input, shape index: {}]   ;;  %s6155_s6 = inlined_call_operand.vmem [shape: f32[8,4], index: 6, kind: input, shape index: {}]   ;;  %s6156_s7 = inlined_call_operand.vmem [shape: f32[1,4], index: 7, kind: input, shape index: {}]   ;;  %s6157_s8 = inlined_call_operand.vmem [shape: f32[2,16,16,4], index: 8, kind: output, shape index: {}]  }
   0x1   :  { %s3321_s29 = smov 0  }
   0x2 LB: > { %s30_s30 = sadd.s32 1, %s3265_s28  ;;  %p3022_p0 = scmp.ge.s32.totalorder %s3269_s29, 1  ;;  %s3269_s29 = sphi %s3321_s29, %s18_s29   ;;  %s3265_s28 = sphi %s3319_s28, %s6523_s28   ;;  %s3261_s27 = sphi %s3317_s27, %s6522_s27  }
   0x3   : > { %p32_p1 = scmp.ge.s32.totalorder %s30_s30, 2  ;;  %p276_p2 = scmp.lt.s32.totalorder %s3269_s29, 3 }
   0x5   : > { %s6525_s30 = smov (%p32_p1, %s30_s30), 0  ;;  %p277_p3 = pnand %p3022_p0, %p276_p2 }
   0x7   : > { %280 = sbr.rel (%p277_p3) target bundleno = 748 (0x2ec), region = 52 }
   0xc   : > { %v455_v0 = vld [vmem:[%s6151_s2] sm:$0xf]  ;;  %vm623_vm0 = vcmask 1043456   ;;  %p315_p4 = scmp.lt.s32.totalorder %s3261_s27, 1  ;;  %v3271_v3 = vmov 0   ;;  %vm460_vm1 = vcmask 31744  }
   0xd   : > { %3026 = vmatpush.msk.msra.mxu0 %vm623_vm0, %v455_v0  ;;  %3181 = vmatpush.msk.msra.mxu3 %vm623_vm0, %v455_v0  ;;  %v425_v1 = vld [vmem:[%s6150_s1 + $0xc0] sm:$0xff]  ;;  %v426_v6 = vld [vmem:[%s6150_s1 + $0xc8] sm:$0xff]  ;;  %v428_v9 = vld [vmem:[%s6150_s1 + $0xd8] sm:$0xff]  ;;  %vm1922_vm4 = vcmask 64512  }
   0xe   : > { %v401_v2 = vld [vmem:[%s6150_s1] sm:$0xff]  ;;  %s6527_s27 = smov (!%p315_p4, %s3261_s27), 1  ;;  %3209 = vset.pattern.permute.xlu1 %v3271_v3  ;;  %3208 = vset.pattern.permute.xlu0 %v3271_v3  ;;  %v402_v7 = vld [vmem:[%s6150_s1 + $0x8] sm:$0xff]  ;;  %v427_v12 = vld [vmem:[%s6150_s1 + $0xd0] sm:$0xff] }
   0xf   : > { %1036 = vperm.xlu0 %3208, %v425_v1   ;;  %916 = vperm.xlu1 %3209, %v401_v2   ;;  %s3182_s15 = smul.u32 432, %s6527_s27  ;;  %v404_v13 = vld [vmem:[%s6150_s1 + $0x18] sm:$0xff]  ;;  %v429_v14 = vld [vmem:[%s6150_s1 + $0xe0] sm:$0xff]  ;;  %v431_v17 = vld [vmem:[%s6150_s1 + $0xf0] sm:$0xff]  ;;  %s3179_s17 = sshll.u32 %s6527_s27, 8 }
  0x10   : > { %3180 = vmatpush.msk.msra.mxu1 %vm623_vm0, %v455_v0  ;;  %3210 = vset.pattern.permute.xlu2 %v3271_v3  ;;  %v405_v18 = vld [vmem:[%s6150_s1 + $0x20] sm:$0xff]  ;;  %v430_v21 = vld [vmem:[%s6150_s1 + $0xe8] sm:$0xff]  ;;  %v432_v22 = vld [vmem:[%s6150_s1 + $0xf8] sm:$0xff]  ;;  %s5089_s20 = scalar_lea.vmem %s6157_s8, %s3179_s17 }
  0x11   : > { %s3350_s18 = scalar_lea.vmem %s6149_s0, %s3182_s15  ;;  %1051 = vperm.xlu2 %3210, %v428_v9   ;;  %v403_v23 = vld [vmem:[%s6150_s1 + $0x10] sm:$0xff]  ;;  %v406_v26 = vld [vmem:[%s6150_s1 + $0x28] sm:$0xff]  ;;  %v433_v32 = vld [vmem:[%s6150_s1 + $0x100] sm:$0xff] }
  0x12   : > { %v346_v4 = vld [vmem:[%s3350_s18] sm:$0xff]  ;;  %v372_v8 = vld [vmem:[%s3350_s18 + $0xd0] sm:$0xff]  ;;  %v347_v10 = vld [vmem:[%s3350_s18 + $0x8] sm:$0xff] }
  0x13   : > { %v374_v5 = vld [vmem:[%s3350_s18 + $0xe0] sm:$0xff]  ;;  %3027 = vmatmul.msk.f32.vlgmr.msra.gmra.mxu0 %vm460_vm1, %v346_v4  ;;  %3053 = vmatmul.msk.f32.vlgmr.msra.gmra.mxu1 %vm460_vm1, %v372_v8  ;;  %v375_v11 = vld [vmem:[%s3350_s18 + $0xe8] sm:$0xff]  ;;  %v348_v15 = vld [vmem:[%s3350_s18 + $0x10] sm:$0xff] }
  0x14   : > { %3055 = vmatmul.msk.f32.vlgmr.msra.gmra.mxu3 %vm460_vm1, %v374_v5  ;;  %v376_v16 = vld [vmem:[%s3350_s18 + $0xf0] sm:$0xff]  ;;  %v349_v19 = vld [vmem:[%s3350_s18 + $0x18] sm:$0xff]  ;;  %v350_v24 = vld [vmem:[%s3350_s18 + $0x20] sm:$0xff] }
  0x15   : > { %v377_v20 = vld [vmem:[%s3350_s18 + $0xf8] sm:$0xff]  ;;  %v378_v25 = vld [vmem:[%s3350_s18 + $0x100] sm:$0xff]  ;;  %v407_v27 = vld [vmem:[%s6150_s1 + $0x30] sm:$0xff] }
  0x16   : > { %v351_v28 = vld [vmem:[%s3350_s18 + $0x28] sm:$0xff]  ;;  %v352_v30 = vld [vmem:[%s3350_s18 + $0x30] sm:$0xff]  ;;  %v353_v33 = vld [vmem:[%s3350_s18 + $0x38] sm:$0xff] }
  0x17   : > { %1041 = vperm.xlu0 %3208, %v426_v6   ;;  %921 = vperm.xlu1 %3209, %v402_v7   ;;  %v379_v29 = vld [vmem:[%s3350_s18 + $0x108] sm:$0xff]  ;;  %v380_v31 = vld [vmem:[%s3350_s18 + $0x110] sm:$0xff]  ;;  %v381_v34 = vld [vmem:[%s3350_s18 + $0x118] sm:$0xff] }
  0x18   : > { %v434_v35 = vld [vmem:[%s6150_s1 + $0x108] sm:$0xff]  ;;  %v354_v37 = vld [vmem:[%s3350_s18 + $0x40] sm:$0xff]  ;;  %v411_v39 = vld [vmem:[%s6150_s1 + $0x50] sm:$0xff] }
  0x19   : > { %1056 = vperm.xlu2 %3210, %v429_v14   ;;  %v410_v36 = vld [vmem:[%s6150_s1 + $0x48] sm:$0xff]  ;;  %v382_v38 = vld [vmem:[%s3350_s18 + $0x120] sm:$0xff]  ;;  %v408_v40 = vld [vmem:[%s6150_s1 + $0x38] sm:$0xff] }
  0x1a   : > { %v355_v41 = vld [vmem:[%s3350_s18 + $0x48] sm:$0xff]  ;;  %v409_v43 = vld [vmem:[%s6150_s1 + $0x40] sm:$0xff]  ;;  %v436_v44 = vld [vmem:[%s6150_s1 + $0x118] sm:$0xff] }
  0x1b   : > { %3028 = vmatmul.msk.f32.gmra.mxu0 %vm460_vm1, %v347_v10  ;;  %v383_v42 = vld [vmem:[%s3350_s18 + $0x128] sm:$0xff]  ;;  %v356_v45 = vld [vmem:[%s3350_s18 + $0x50] sm:$0xff]  ;;  %v437_v47 = vld [vmem:[%s6150_s1 + $0x120] sm:$0xff] }
  0x1c   : > { %3056 = vmatmul.msk.f32.gmra.mxu3 %vm460_vm1, %v375_v11  ;;  %v384_v46 = vld [vmem:[%s3350_s18 + $0x130] sm:$0xff]  ;;  %v413_v48 = vld [vmem:[%s6150_s1 + $0x60] sm:$0xff]  ;;  %v357_v49 = vld [vmem:[%s3350_s18 + $0x58] sm:$0xff] }
  0x1d   : > { %v385_v50 = vld [vmem:[%s3350_s18 + $0x138] sm:$0xff]  ;;  %v414_v51 = vld [vmem:[%s6150_s1 + $0x68] sm:$0xff]  ;;  %v435_v52 = vld [vmem:[%s6150_s1 + $0x110] sm:$0xff] }
  0x1e   : > { %v358_v53 = vld [vmem:[%s3350_s18 + $0x60] sm:$0xff]  ;;  %v412_v55 = vld [vmem:[%s6150_s1 + $0x58] sm:$0xff]  ;;  %v439_v56 = vld [vmem:[%s6150_s1 + $0x130] sm:$0xff] }
  0x1f   : > { %1046 = vperm.xlu0 %3208, %v427_v12   ;;  %931 = vperm.xlu1 %3209, %v404_v13   ;;  %v386_v54 = vld [vmem:[%s3350_s18 + $0x140] sm:$0xff]  ;;  %v359_v57 = vld [vmem:[%s3350_s18 + $0x68] sm:$0xff]  ;;  %v440_v59 = vld [vmem:[%s6150_s1 + $0x138] sm:$0xff] }
  0x20   : > { %v387_v58 = vld [vmem:[%s3350_s18 + $0x148] sm:$0xff]  ;;  %v416_v60 = vld [vmem:[%s6150_s1 + $0x78] sm:$0xff]  ;;  %v360_v61 = vld [vmem:[%s3350_s18 + $0x70] sm:$0xff] }
  0x21   : > { %936 = vperm.xlu2 %3210, %v405_v18   ;;  %v388_v62 = vld [vmem:[%s3350_s18 + $0x150] sm:$0xff]  ;;  %v417_v0 = vld [vmem:[%s6150_s1 + $0x80] sm:$0xff]  ;;  %v438_v1 = vld [vmem:[%s6150_s1 + $0x128] sm:$0xff] }
  0x22   : > { %v361_v2 = vld [vmem:[%s3350_s18 + $0x78] sm:$0xff]  ;;  %v442_v5 = vld [vmem:[%s6150_s1 + $0x148] sm:$0xff]  ;;  %v415_v6 = vld [vmem:[%s6150_s1 + $0x70] sm:$0xff] }
  0x23   : > { %3029 = vmatmul.msk.f32.gmra.mxu0 %vm460_vm1, %v348_v15  ;;  %v389_v3 = vld [vmem:[%s3350_s18 + $0x158] sm:$0xff]  ;;  %v362_v8 = vld [vmem:[%s3350_s18 + $0x80] sm:$0xff]  ;;  %v443_v11 = vld [vmem:[%s6150_s1 + $0x150] sm:$0xff] }
  0x24   : > { %3057 = vmatmul.msk.f32.gmra.mxu3 %vm460_vm1, %v376_v16  ;;  %v390_v9 = vld [vmem:[%s3350_s18 + $0x160] sm:$0xff]  ;;  %v419_v12 = vld [vmem:[%s6150_s1 + $0x90] sm:$0xff] }
  0x25   : > { %v3539_v15 = vld [vmem:[%s6152_s3] ss:$0 sm:$0xff] }
  0x27   : > { %1066 = vperm.xlu0 %3208, %v431_v17   ;;  %1071 = vperm.xlu1 %3209, %v432_v22   ;;  %v420_v22 = vld [vmem:[%s6150_s1 + $0x98] sm:$0xff] }
  0x29   : > { %926 = vperm.xlu2 %3210, %v403_v23   ;;  %v445_v23 = vld [vmem:[%s6150_s1 + $0x160] sm:$0xff] }
  0x2b   : > { %3030 = vmatmul.msk.f32.gmra.mxu0 %vm460_vm1, %v349_v19  ;;  %v363_v19 = vld [vmem:[%s3350_s18 + $0x88] sm:$0xff] }
  0x2c   : > { %3058 = vmatmul.msk.f32.gmra.mxu3 %vm460_vm1, %v377_v20  ;;  %v391_v20 = vld [vmem:[%s3350_s18 + $0x168] sm:$0xff] }
  0x2f   : > { %1061 = vperm.xlu0 %3208, %v430_v21   ;;  %946 = vperm.xlu1 %3209, %v407_v27  }
  0x31   : > { %951 = vperm.xlu2 %3210, %v408_v40   ;;  %v422_v40 = vld [vmem:[%s6150_s1 + $0xa8] sm:$0xff] }
  0x33   : > { %3031 = vmatmul.msk.f32.gmra.mxu0 %vm460_vm1, %v350_v24  ;;  %v373_v24 = vld [vmem:[%s3350_s18 + $0xd8] sm:$0xff] }
  0x34   : > { %3059 = vmatmul.msk.f32.gmra.mxu3 %vm460_vm1, %v378_v25  ;;  %3054 = vmatmul.msk.f32.gmra.mxu1 %vm460_vm1, %v373_v24 }
  0x37   : > { %941 = vperm.xlu0 %3208, %v406_v26   ;;  %1076 = vperm.xlu1 %3209, %v433_v32  }
  0x39   : > { %956 = vperm.xlu2 %3210, %v409_v43  }
  0x3b   : > { %3032 = vmatmul.msk.f32.gmra.mxu0 %vm460_vm1, %v351_v28 }
  0x3c   : > { %3060 = vmatmul.msk.f32.gmra.mxu3 %vm460_vm1, %v379_v29 }
  0x3f   : > { %1081 = vperm.xlu0 %3208, %v434_v35   ;;  %961 = vperm.xlu1 %3209, %v410_v36   ;;  %v364_v36 = vld [vmem:[%s3350_s18 + $0x90] sm:$0xff] }
  0x41   : > { %1086 = vperm.xlu2 %3210, %v435_v52   ;;  %v3591_v52 = vld [vmem:[%s6153_s4] ss:$0 sm:$0xff] }
  0x43   : > { %3033 = vmatmul.msk.f32.gmra.mxu0 %vm460_vm1, %v352_v30  ;;  %v441_v30 = vld [vmem:[%s6150_s1 + $0x140] sm:$0xff] }
  0x44   : > { %3061 = vmatmul.msk.f32.gmra.mxu3 %vm460_vm1, %v380_v31 }
  0x47   : > { %966 = vperm.xlu0 %3208, %v411_v39   ;;  %1091 = vperm.xlu1 %3209, %v436_v44   ;;  %v446_v39 = vld [vmem:[%s6150_s1 + $0x168] sm:$0xff] }
  0x49   : > { %971 = vperm.xlu2 %3210, %v412_v55  }
  0x4b   : > { %3034 = vmatmul.msk.f32.gmra.mxu0 %vm460_vm1, %v353_v33  ;;  %v1313_v33 = vlaneseq }
  0x4c   : > { %3062 = vmatmul.msk.f32.gmra.mxu3 %vm460_vm1, %v381_v34 }
  0x4f   : > { %1096 = vperm.xlu0 %3208, %v437_v47   ;;  %976 = vperm.xlu1 %3209, %v413_v48  }
  0x51   : > { %1101 = vperm.xlu2 %3210, %v438_v1   ;;  %v448_v1 = vld [vmem:[%s6150_s1 + $0x178] sm:$0xff] }
  0x53   : > { %3035 = vmatmul.msk.f32.gmra.mxu0 %vm460_vm1, %v354_v37  ;;  %v392_v37 = vld [vmem:[%s3350_s18 + $0x170] sm:$0xff] }
  0x54   : > { %3063 = vmatmul.msk.f32.gmra.mxu3 %vm460_vm1, %v382_v38 }
  0x57   : > { %981 = vperm.xlu0 %3208, %v414_v51   ;;  %1106 = vperm.xlu1 %3209, %v439_v56   ;;  %v365_v56 = vld [vmem:[%s3350_s18 + $0x98] sm:$0xff] }
  0x59   : > { %986 = vperm.xlu2 %3210, %v415_v6  }
  0x5b   : > { %3036 = vmatmul.msk.f32.gmra.mxu0 %vm460_vm1, %v355_v41 }
  0x5c   : > { %3064 = vmatmul.msk.f32.gmra.mxu3 %vm460_vm1, %v383_v42  ;;  %v3579_v42 = vshrl.u32 %v1313_v33, 7 }
  0x5e   : > { %vm1315_vm2 = vcmp.lt.s32.totalorder %v3579_v42, 7  ;;  %vm1415_vm3 = vcmp.lt.s32.totalorder %v3579_v42, 6 }
  0x5f   : > { %1111 = vperm.xlu0 %3208, %v440_v59   ;;  %991 = vperm.xlu1 %3209, %v416_v60  }
  0x61   : > { %1116 = vperm.xlu2 %3210, %v441_v30   ;;  %v366_v30 = vld [vmem:[%s3350_s18 + $0xa0] sm:$0xff] }
  0x63   : > { %3037 = vmatmul.msk.f32.gmra.mxu0 %vm460_vm1, %v356_v45 }
  0x64   : > { %3065 = vmatmul.msk.f32.gmra.mxu3 %vm460_vm1, %v384_v46  ;;  %v418_v46 = vld [vmem:[%s6150_s1 + $0x88] sm:$0xff] }
  0x67   : > { %996 = vperm.xlu0 %3208, %v417_v0   ;;  %1121 = vperm.xlu1 %3209, %v442_v5   ;;  %v423_v0 = vld [vmem:[%s6150_s1 + $0xb0] sm:$0xff] }
  0x69   : > { %1001 = vperm.xlu2 %3210, %v418_v46  }
  0x6b   : > { %3038 = vmatmul.msk.f32.gmra.mxu0 %vm460_vm1, %v357_v49  ;;  %v3530_v13 = vpop.permute.xlu2 %1051 }
  0x6c   : > { %3066 = vmatmul.msk.f32.gmra.mxu3 %vm460_vm1, %v385_v50  ;;  %6258 = vst [vmem:[#allocation4_spill] sm:$0xff] %v3530_v13 }
  0x6f   : > { %1126 = vperm.xlu0 %3208, %v443_v11   ;;  %1006 = vperm.xlu1 %3209, %v419_v12  }
  0x73   : > { %3039 = vmatmul.msk.f32.gmra.mxu0 %vm460_vm1, %v358_v53  ;;  %v1057_v27 = vpop.permute.xlu2 %1056 }
  0x74   : > { %3067 = vmatmul.msk.f32.gmra.mxu3 %vm460_vm1, %v386_v54 }
  0x77   : > { %1011 = vperm.xlu0 %3208, %v420_v22   ;;  %1136 = vperm.xlu1 %3209, %v445_v23  }
  0x7b   : > { %3040 = vmatmul.msk.f32.gmra.mxu0 %vm460_vm1, %v359_v57  ;;  %v393_v57 = vld [vmem:[%s3350_s18 + $0x178] sm:$0xff] }
  0x7c   : > { %3068 = vmatmul.msk.f32.gmra.mxu3 %vm460_vm1, %v387_v58 }
  0x7f   : > { %1141 = vperm.xlu0 %3208, %v446_v39   ;;  %1021 = vperm.xlu1 %3209, %v422_v40   ;;  %v937_v40 = vpop.permute.xlu2 %936 }
  0x81   : > { %v3496_v63 = vpop.permute.xlu0 %1036  ;;  %v3534_v14 = vpop.permute.xlu1 %916 }
  0x82   : > { %6256 = vst [vmem:[#allocation2_spill] sm:$0xff] %v3496_v63 }
  0x83   : > { %3041 = vmatmul.msk.f32.gmra.mxu0 %vm460_vm1, %v360_v61  ;;  %v3609_v61 = vld [vmem:[%s6153_s4 + $0x1] ss:$0 sm:$0xff] }
  0x84   : > { %3069 = vmatmul.msk.f32.gmra.mxu3 %vm460_vm1, %v388_v62 }
  0x87   : > { %1026 = vperm.xlu0 %3208, %v423_v0   ;;  %1151 = vperm.xlu1 %3209, %v448_v1  }
  0x89   : > { %v3508_v4 = vpop.permute.xlu0 %1041  ;;  %v3563_v31 = vpop.permute.xlu1 %921 }
  0x8a   : > { %6257 = vst [vmem:[#allocation3_spill] sm:$0xff] %v3508_v4 }
  0x8b   : > { %3042 = vmatmul.msk.f32.gmra.mxu0 %vm460_vm1, %v361_v2 }
  0x8c   : > { %3070 = vmatmul.msk.f32.gmra.mxu3 %vm460_vm1, %v389_v3 }
  0x90   : > { %v3518_v7 = vpop.f32.mrf.mxu0  ;;  %v722_v29 = vpop.f32.mrf.mxu1 }
  0x91   : > { %v3522_v10 = vpop.permute.xlu0 %1046  ;;  %v723_v38 = vadd.f32 %v3539_v15, %v722_v29  ;;  %v932_v50 = vpop.permute.xlu1 %931 }
  0x93   : > { %3043 = vmatmul.msk.f32.gmra.mxu0 %vm460_vm1, %v362_v8  ;;  %v832_v43 = vmax.f32 %v723_v38, 0.0  ;;  %v3637_v8 = vld [vmem:[%s6153_s4 + $0x2] ss:$0 sm:$0xff] }
  0x94   : > { %3071 = vmatmul.msk.f32.gmra.mxu3 %vm460_vm1, %v390_v9 }
  0x95   : > { %v886_v55 = vmin.f32 %v832_v43, 6.0 }
  0x97   : > { %v728_v16 = vpop.f32.mrf.mxu3 }
  0x98   : > { %v729_v17 = vadd.f32 %v3539_v15, %v728_v16  ;;  %v3542_v18 = vpop.f32.mrf.mxu0  ;;  %v3644_v16 = vmul.f32 %v3522_v10, %v886_v55 }
  0x99   : > { %v3555_v26 = vpop.permute.xlu0 %1066  ;;  %v648_v6 = vadd.f32 %v3539_v15, %v3542_v18  ;;  %v1072_v23 = vpop.permute.xlu1 %1071 }
  0x9a   : > { %v834_v21 = vmax.f32 %v729_v17, 0.0  ;;  %6264 = vst [vmem:[#allocation10_spill] sm:$0xff] %v3644_v16  ;;  %v645_v17 = vadd.f32 %v3539_v15, %v3518_v7 }
  0x9b   : > { %3044 = vmatmul.msk.f32.gmra.mxu0 %vm460_vm1, %v363_v19  ;;  %v807_v10 = vmax.f32 %v648_v6, 0.0  ;;  %v367_v6 = vld [vmem:[%s3350_s18 + $0xa8] sm:$0xff] }
  0x9c   : > { %v888_v25 = vmin.f32 %v834_v21, 6.0  ;;  %3072 = vmatmul.msk.f32.gmra.mxu3 %vm460_vm1, %v391_v20  ;;  %v444_v20 = vld [vmem:[%s6150_s1 + $0x158] sm:$0xff] }
  0x9d   : > { %1131 = vperm.xlu2 %3210, %v444_v20  }
  0x9e   : > { %v3558_v28 = vmul.f32 %v1057_v27, %v888_v25  ;;  %v3657_v25 = vrot.slane %v3644_v16, 1 }
  0x9f   : > { %v731_v32 = vpop.f32.mrf.mxu3 }
  0xa0   : > { %6259 = vst [vmem:[#allocation5_spill] sm:$0xff] %v3558_v28  ;;  %v732_v34 = vadd.f32 %v3539_v15, %v731_v32  ;;  %v3566_v35 = vpop.f32.mrf.mxu0  ;;  %v6161_v47 = vrot.slane %v3558_v28, 1  ;;  %v6158_v48 = vrot.slane %v3558_v28, 2  ;;  %v2112_v60 = vmul.f32 %v3591_v52, %v3558_v28  ;;  %v394_v32 = vld [vmem:[%s3350_s18 + $0x180] sm:$0xff] }
  0xa1   : > { %v1062_v45 = vpop.permute.xlu0 %1061  ;;  %6266 = vst [vmem:[#allocation12_spill] sm:$0xff] %v3657_v25 }
  0xa2   : > { %v835_v41 = vmax.f32 %v732_v34, 0.0  ;;  %v806_v34 = vmax.f32 %v645_v17, 0.0  ;;  %v452_v17 = vld [vmem:[%s6150_s1 + $0x198] sm:$0xff] }
  0xa3   : > { %3045 = vmatmul.msk.f32.gmra.mxu0 %vm460_vm1, %v364_v36  ;;  %v3667_v36 = vrot.slane %v3644_v16, 2 }
  0xa4   : > { %3073 = vmatmul.msk.f32.gmra.mxu3 %vm460_vm1, %v392_v37  ;;  %v889_v44 = vmin.f32 %v835_v41, 6.0  ;;  %v450_v37 = vld [vmem:[%s6150_s1 + $0x188] sm:$0xff]  ;;  %v861_v41 = vmin.f32 %v807_v10, 6.0 }
  0xa5   : > { %6267 = vst [vmem:[#allocation13_spill] sm:$0xff] %v3667_v36  ;;  %1161 = vperm.xlu1 %3209, %v450_v37   ;;  %v447_v37 = vld [vmem:[%s6150_s1 + $0x170] sm:$0xff] }
  0xa6   : > { %v3586_v51 = vmul.f32 %v1062_v45, %v889_v44  ;;  %v651_v44 = vadd.f32 %v3539_v15, %v3566_v35  ;;  %v3705_v55 = vmul.f32 %v3563_v31, %v861_v41  ;;  %v3719_v31 = vpop.permute.xlu1 %946 }
  0xa7   : > { %v734_v49 = vpop.f32.mrf.mxu3 }
  0xa8   : > { %v735_v53 = vadd.f32 %v3539_v15, %v734_v49  ;;  %v653_v54 = vpop.f32.mrf.mxu0  ;;  %v3598_v58 = vrot.slane %v3586_v51, 1  ;;  %v3601_v59 = vrot.slane %v3586_v51, 2 }
  0xa9   : > { %v654_v2 = vadd.f32 %v3539_v15, %v653_v54  ;;  %v421_v54 = vld [vmem:[%s6150_s1 + $0xa0] sm:$0xff] }
  0xaa   : > { %6260 = vst [vmem:[#allocation6_spill] sm:$0xff] %v3598_v58  ;;  %v836_v62 = vmax.f32 %v735_v53, 0.0  ;;  %v3623_v3 = vsel %vm1315_vm2, %v6161_v47, %v3598_v58  ;;  %v3630_v5 = vsel %vm1415_vm3, %v6158_v48, %v3601_v59  ;;  %1016 = vperm.xlu2 %3210, %v421_v54   ;;  %v1242_v47 = vmul.f32 %v3591_v52, %v3705_v55 }
  0xab   : > { %6261 = vst [vmem:[#allocation7_spill] sm:$0xff] %v3601_v59  ;;  %3046 = vmatmul.msk.f32.gmra.mxu0 %vm460_vm1, %v365_v56  ;;  %v2197_v11 = vmul.f32 %v3609_v61, %v3623_v3  ;;  %v809_v12 = vmax.f32 %v654_v2, 0.0  ;;  %v2282_v19 = vmul.f32 %v3637_v8, %v3630_v5 }
  0xac   : > { %6262 = vst [vmem:[#allocation8_spill] sm:$0xff] %v3623_v3  ;;  %v890_v9 = vmin.f32 %v836_v62, 6.0  ;;  %3074 = vmatmul.msk.f32.gmra.mxu3 %vm460_vm1, %v393_v57  ;;  %v808_v62 = vmax.f32 %v651_v44, 0.0 }
  0xad   : > { %6263 = vst [vmem:[#allocation9_spill] sm:$0xff] %v3630_v5  ;;  %v2221_v18 = vadd.f32 %v2197_v11, %v2112_v60  ;;  %v863_v21 = vmin.f32 %v809_v12, 6.0 }
  0xae   : > { %v3654_v24 = vmul.f32 %v3555_v26, %v890_v9  ;;  %v449_v26 = vld [vmem:[%s6150_s1 + $0x180] sm:$0xff]  ;;  %v395_v9 = vld [vmem:[%s3350_s18 + $0x188] sm:$0xff]  ;;  %v862_v10 = vmin.f32 %v808_v62, 6.0 }
  0xaf   : > { %v737_v22 = vpop.f32.mrf.mxu3  ;;  %v3659_v7 = vmul.f32 %v932_v50, %v863_v21  ;;  %v3664_v33 = vadd.f32 %v2282_v19, %v2221_v18  ;;  %1156 = vperm.xlu0 %3208, %v449_v26   ;;  %v860_v50 = vmin.f32 %v806_v34, 6.0  ;;  %v453_v18 = vld [vmem:[%s6150_s1 + $0x1a0] sm:$0xff]  ;;  %v2113_v19 = vmul.f32 %v3591_v52, %v3586_v51  ;;  %v927_v34 = vpop.permute.xlu2 %926 }
  0xb0   : > { %6265 = vst [vmem:[#allocation11_spill] sm:$0xff] %v3654_v24  ;;  %v738_v27 = vadd.f32 %v3539_v15, %v737_v22  ;;  %v656_v29 = vpop.f32.mrf.mxu0  ;;  %v3682_v43 = vrot.slane %v3654_v24, 1  ;;  %v3708_v56 = vrot.slane %v3654_v24, 2  ;;  %v1290_v21 = vrot.slane %v3705_v55, 1  ;;  %v3746_v22 = vld [vmem:[%s6153_s4 + $0x3] ss:$0 sm:$0xff]  ;;  %1176 = vperm.xlu1 %3209, %v453_v18  }
  0xb1   : > { %v3676_v38 = vrot.slane %v3659_v7, 1  ;;  %v3679_v39 = vrot.slane %v3659_v7, 2  ;;  %v657_v49 = vadd.f32 %v3539_v15, %v656_v29  ;;  %v3722_v11 = vmul.f32 %v3534_v14, %v860_v50 }
  0xb2   : > { %6268 = vst [vmem:[#allocation14_spill] sm:$0xff] %v3682_v43  ;;  %v837_v46 = vmax.f32 %v738_v27, 0.0  ;;  %v3714_v57 = vsel %vm1315_vm2, %v3598_v58, %v3682_v43  ;;  %v3739_v14 = vsel %vm1415_vm3, %v3601_v59, %v3708_v56  ;;  %v1392_v50 = vrot.slane %v3705_v55, 2  ;;  %1146 = vperm.xlu2 %3210, %v447_v37   ;;  %v3847_v55 = vld [vmem:[%s6153_s4 + $0x6] ss:$0 sm:$0xff] }
  0xb3   : > { %3047 = vmatmul.msk.f32.gmra.mxu0 %vm460_vm1, %v366_v30  ;;  %v3692_v45 = vsel %vm1315_vm2, %v3657_v25, %v3676_v38  ;;  %v3699_v53 = vsel %vm1415_vm3, %v3667_v36, %v3679_v39  ;;  %6269 = vst [vmem:[#allocation15_spill] sm:$0xff] %v3708_v56  ;;  %v810_v1 = vmax.f32 %v657_v49, 0.0  ;;  %v2198_v20 = vmul.f32 %v3609_v61, %v3714_v57  ;;  %v3900_v58 = vld [vmem:[%s6153_s4 + $0x7] ss:$0 sm:$0xff]  ;;  %v371_v56 = vld [vmem:[%s3350_s18 + $0xc8] sm:$0xff] }
  0xb4   : > { %3075 = vmatmul.msk.f32.gmra.mxu3 %vm460_vm1, %v394_v32  ;;  %6270 = vst [vmem:[#allocation16_spill] sm:$0xff] %v3714_v57  ;;  %v891_v0 = vmin.f32 %v837_v46, 6.0  ;;  %v6160_v32 = vrot.slane %v3722_v11, 1  ;;  %v2283_v44 = vmul.f32 %v3637_v8, %v3739_v14 }
  0xb5   : > { %6271 = vst [vmem:[#allocation17_spill] sm:$0xff] %v3722_v11  ;;  %v864_v27 = vmin.f32 %v810_v1, 6.0  ;;  %v2222_v41 = vadd.f32 %v2198_v20, %v2113_v19  ;;  %v368_v1 = vld [vmem:[%s3350_s18 + $0xb0] sm:$0xff] }
  0xb6   : > { %6272 = vst [vmem:[#allocation18_spill] sm:$0xff] %v3739_v14  ;;  %v3749_v30 = vmul.f32 %v1072_v23, %v891_v0  ;;  %v1338_v49 = vsel %vm1315_vm2, %v6160_v32, %v1290_v21 }
  0xb7   : > { %v740_v35 = vpop.f32.mrf.mxu3  ;;  %1171 = vperm.xlu0 %3208, %v452_v17   ;;  %v3768_v54 = vmul.f32 %v937_v40, %v864_v27  ;;  %v6159_v40 = vrot.slane %v3722_v11, 2  ;;  %v2307_v18 = vadd.f32 %v2283_v44, %v2222_v41  ;;  %v952_v32 = vpop.permute.xlu2 %951 }
  0xb8   : > { %v741_v60 = vadd.f32 %v3539_v15, %v740_v35  ;;  %v659_v2 = vpop.f32.mrf.mxu0  ;;  %6273 = vst [vmem:[#allocation19_spill] sm:$0xff] %v3749_v30  ;;  %v2330_v46 = vmul.f32 %v3746_v22, %v3749_v30  ;;  %v3766_v35 = vmul.f32 %v927_v34, %v862_v10  ;;  %v1241_v34 = vmul.f32 %v3591_v52, %v3722_v11 }
  0xb9   : > { %v660_v29 = vadd.f32 %v3539_v15, %v659_v2  ;;  %v396_v2 = vld [vmem:[%s3350_s18 + $0x190] sm:$0xff]  ;;  %v1438_v20 = vsel %vm1415_vm3, %v6159_v40, %v1392_v50  ;;  %v1293_v27 = vrot.slane %v3768_v54, 1 }
  0xba   : > { %v838_v12 = vmax.f32 %v741_v60, 0.0  ;;  %v3771_v62 = vadd.f32 %v2330_v46, %v3664_v33  ;;  %v1343_v33 = vmul.f32 %v3609_v61, %v1338_v49  ;;  %v1291_v10 = vrot.slane %v3766_v35, 1 }
  0xbb   : > { %3048 = vmatmul.msk.f32.gmra.mxu0 %vm460_vm1, %v367_v6  ;;  %v811_v60 = vmax.f32 %v660_v29, 0.0  ;;  %v1077_v6 = vpop.permute.xlu1 %1076  ;;  %v1443_v49 = vmul.f32 %v3637_v8, %v1438_v20 }
  0xbc   : > { %3076 = vmatmul.msk.f32.gmra.mxu3 %vm460_vm1, %v395_v9  ;;  %v892_v26 = vmin.f32 %v838_v12, 6.0  ;;  %6274 = vst [vmem:[#allocation20_spill] sm:$0xff] %v3771_v62  ;;  %v341_v9 = vld [vmem:[%s6155_s6] sm:$0xff]  ;;  %v1367_v46 = vadd.f32 %v1343_v33, %v1241_v34  ;;  %v1494_v33 = vmul.f32 %v3746_v22, %v3659_v7 }
  0xbd   : > { %2010 = vmatpush.msrb.mxu1 %v341_v9  ;;  %2820 = vmatpush.msra.mxu2 %v341_v9  ;;  %v865_v29 = vmin.f32 %v811_v60, 6.0  ;;  %v3806_v60 = vsel %vm1315_vm2, %v3676_v38, %v1293_v27  ;;  %v369_v9 = vld [vmem:[%s3350_s18 + $0xb8] sm:$0xff]  ;;  %v398_v62 = vld [vmem:[%s3350_s18 + $0x1a0] sm:$0xff] }
  0xbe   : > { %v3779_v17 = vmul.f32 %v1077_v6, %v892_v26  ;;  %v942_v26 = vpop.permute.xlu0 %941 }
  0xbf   : > { %v3759_v23 = vpop.f32.mrf.mxu3 }
  0xc0   : > { %v662_v0 = vpop.f32.mrf.mxu0  ;;  %6275 = vst [vmem:[#allocation21_spill] sm:$0xff] %v3779_v17  ;;  %v2331_v19 = vmul.f32 %v3746_v22, %v3779_v17 }
  0xc1   : > { %v663_v12 = vadd.f32 %v3539_v15, %v662_v0  ;;  %v1337_v0 = vsel %vm1315_vm2, %v1290_v21, %v1291_v10  ;;  %v3820_v21 = vld [vmem:[%s6153_s4 + $0x4] ss:$0 sm:$0xff] }
  0xc2   : > { %v3797_v44 = vadd.f32 %v2331_v19, %v2307_v18  ;;  %v424_v18 = vld [vmem:[%s6150_s1 + $0xb8] sm:$0xff]  ;;  %v6162_v19 = vrot.slane %v3768_v54, 2  ;;  %v1344_v34 = vmul.f32 %v3609_v61, %v1337_v0  ;;  %v1552_v48 = vmul.f32 %v3820_v21, %v3806_v60 }
  0xc3   : > { %3049 = vmatmul.msk.f32.gmra.mxu0 %vm460_vm1, %v368_v1  ;;  %v812_v37 = vmax.f32 %v663_v12, 0.0  ;;  %v1393_v1 = vrot.slane %v3766_v35, 2  ;;  %v397_v12 = vld [vmem:[%s3350_s18 + $0x198] sm:$0xff]  ;;  %1031 = vperm.xlu2 %3210, %v424_v18   ;;  %v1336_v0 = vsel %vm1315_vm2, %v1291_v10, %v3676_v38  ;;  %v3855_v10 = vld [vmem:[%s6153_s4 + $0x5] ss:$0 sm:$0xff] }
  0xc4   : > { %3077 = vmatmul.msk.f32.gmra.mxu3 %vm460_vm1, %v396_v2  ;;  %6276 = vst [vmem:[#allocation22_spill] sm:$0xff] %v3797_v44  ;;  %v3808_v2 = vmul.f32 %v942_v26, %v865_v29  ;;  %v1467_v26 = vadd.f32 %v1443_v49, %v1367_v46  ;;  %v1368_v18 = vadd.f32 %v1344_v34, %v1242_v47  ;;  %v370_v44 = vld [vmem:[%s3350_s18 + $0xc0] sm:$0xff] }
  0xc5   : > { %v866_v20 = vmin.f32 %v812_v37, 6.0  ;;  %v1437_v37 = vsel %vm1415_vm3, %v1392_v50, %v1393_v1  ;;  %v1243_v34 = vmul.f32 %v3591_v52, %v3766_v35 }
  0xc6   : > { %v1294_v46 = vrot.slane %v3808_v2, 1  ;;  %v1518_v49 = vadd.f32 %v1494_v33, %v1467_v26  ;;  %v1444_v26 = vmul.f32 %v3637_v8, %v1437_v37 }
  0xc7   : > { %v3795_v41 = vpop.f32.mrf.mxu3  ;;  %v3850_v50 = vmul.f32 %v3719_v31, %v866_v20  ;;  %v1345_v31 = vmul.f32 %v3609_v61, %v1336_v0 }
  0xc8   : > { %v665_v6 = vpop.f32.mrf.mxu0  ;;  %v3870_v20 = vsel %vm1315_vm2, %v1293_v27, %v1294_v46  ;;  %v1495_v27 = vmul.f32 %v3746_v22, %v3768_v54 }
  0xc9   : > { %v666_v29 = vadd.f32 %v3539_v15, %v665_v6  ;;  %v3842_v6 = vsel %vm1415_vm3, %v3679_v39, %v6162_v19  ;;  %v3875_v59 = vrot.slane %v3850_v50, 1  ;;  %v1661_v47 = vmul.f32 %v3847_v55, %v3850_v50 }
  0xca   : > { %v3886_v37 = vrot.slane %v3850_v50, 2 }
  0xcb   : > { %v813_v40 = vmax.f32 %v666_v29, 0.0  ;;  %3050 = vmatmul.msk.f32.gmra.mxu0 %vm460_vm1, %v369_v9  ;;  %v1576_v29 = vadd.f32 %v1552_v48, %v1518_v49  ;;  %6277 = vst [vmem:[#allocation23_spill] sm:$0xff] %v3875_v59  ;;  %v1468_v49 = vadd.f32 %v1444_v26, %v1368_v18  ;;  %v1369_v26 = vadd.f32 %v1345_v31, %v1243_v34  ;;  %v454_v31 = vld [vmem:[%s6150_s1 + $0x1a8] sm:$0xff] }
  0xcc   : > { %3078 = vmatmul.msk.f32.gmra.mxu3 %vm460_vm1, %v397_v12  ;;  %v451_v12 = vld [vmem:[%s6150_s1 + $0x190] sm:$0xff]  ;;  %6278 = vst [vmem:[#allocation24_spill] sm:$0xff] %v3886_v37 }
  0xcd   : > { %v867_v38 = vmin.f32 %v813_v40, 6.0  ;;  %v1610_v40 = vmul.f32 %v3855_v10, %v3842_v6  ;;  %1166 = vperm.xlu2 %3210, %v451_v12  }
  0xcf   : > { %v3857_v9 = vpop.f32.mrf.mxu3  ;;  %v3862_v33 = vmul.f32 %v952_v32, %v867_v38  ;;  %v1396_v38 = vrot.slane %v3808_v2, 2  ;;  %v1634_v35 = vadd.f32 %v1610_v40, %v1576_v29  ;;  %v957_v29 = vpop.permute.xlu2 %956 }
  0xd0   : > { %v668_v19 = vpop.f32.mrf.mxu0 }
  0xd1   : > { %v1296_v48 = vrot.slane %v3862_v33, 1  ;;  %v1398_v32 = vrot.slane %v3862_v33, 2  ;;  %v669_v0 = vadd.f32 %v3539_v15, %v668_v19  ;;  %v1436_v19 = vsel %vm1415_vm3, %v1393_v1, %v3679_v39  ;;  %v3917_v39 = vld [vmem:[%s6153_s4 + $0x8] ss:$0 sm:$0xff] }
  0xd2   : > { %v1685_v40 = vadd.f32 %v1661_v47, %v1634_v35  ;;  %v1519_v1 = vadd.f32 %v1495_v27, %v1468_v49  ;;  %v1445_v34 = vmul.f32 %v3637_v8, %v1436_v19  ;;  %v6279_v47 = vrot.slane %v3768_v54, 2  ;;  %v3936_v27 = vld [vmem:[%s6154_s5] ss:$0 sm:$0xff] }
  0xd3   : > { %3051 = vmatmul.msk.f32.gmra.mxu0 %vm460_vm1, %v370_v44  ;;  %v3895_v12 = vsel %vm1315_vm2, %v3875_v59, %v1296_v48  ;;  %v1553_v44 = vmul.f32 %v3820_v21, %v3870_v20  ;;  %v814_v18 = vmax.f32 %v669_v0, 0.0  ;;  %v3941_v49 = vsel %vm1315_vm2, %v1294_v46, %v3875_v59 }
  0xd4   : > { %3079 = vmatmul.msk.f32.gmra.mxu3 %vm460_vm1, %v398_v62  ;;  %v3910_v62 = vsel %vm1415_vm3, %v3886_v37, %v1398_v32  ;;  %v1719_v14 = vmul.f32 %v3900_v58, %v3895_v12  ;;  %v3929_v35 = vsel %vm1415_vm3, %v6279_v47, %v1396_v38  ;;  %v399_v47 = vld [vmem:[%s3350_s18 + $0x1a8] sm:$0xff] }
  0xd5   : > { %v868_v0 = vmin.f32 %v814_v18, 6.0  ;;  %v1777_v3 = vmul.f32 %v3917_v39, %v3910_v62  ;;  %v1577_v43 = vadd.f32 %v1553_v44, %v1519_v1  ;;  %1181 = vperm.xlu2 %3210, %v454_v31   ;;  %v1611_v4 = vmul.f32 %v3855_v10, %v3929_v35 }
  0xd6   : > { %v1743_v5 = vadd.f32 %v1719_v14, %v1685_v40  ;;  %v1469_v14 = vadd.f32 %v1445_v34, %v1369_v26  ;;  %v1496_v40 = vmul.f32 %v3746_v22, %v3808_v2  ;;  %v1346_v44 = vmul.f32 %v3609_v61, %v3806_v60  ;;  %v962_v34 = vpop.permute.xlu1 %961 }
  0xd7   : > { %v3919_v57 = vpop.f32.mrf.mxu3  ;;  %v3943_v19 = vmul.f32 %v957_v29, %v868_v0  ;;  %v1662_v0 = vmul.f32 %v3847_v55, %v3862_v33  ;;  %v1554_v1 = vmul.f32 %v3820_v21, %v3941_v49  ;;  %v1244_v31 = vmul.f32 %v3591_v52, %v3659_v7 }
  0xd8   : > { %v671_v18 = vpop.f32.mrf.mxu0  ;;  %v1801_v25 = vadd.f32 %v1777_v3, %v1743_v5  ;;  %v3960_v3 = vpop.permute.xlu0 %1081  ;;  %v1520_v60 = vadd.f32 %v1496_v40, %v1469_v14 }
  0xd9   : > { %v672_v36 = vadd.f32 %v3539_v15, %v671_v18  ;;  %v1297_v46 = vrot.slane %v3943_v19, 1  ;;  %v1399_v29 = vrot.slane %v3943_v19, 2 }
  0xda   : > { %v1847_v5 = vadd.f32 %v3936_v27, %v1801_v25  ;;  %v3978_v25 = vsel %vm1415_vm3, %v1396_v38, %v3886_v37  ;;  %v1578_v40 = vadd.f32 %v1554_v1, %v1520_v60 }
  0xdb   : > { %v815_v26 = vmax.f32 %v672_v36, 0.0  ;;  %3052 = vmatmul.msk.f32.gmra.mxu0 %vm460_vm1, %v371_v56  ;;  %v3969_v18 = vsel %vm1315_vm2, %v1296_v48, %v1297_v46  ;;  %v1635_v36 = vadd.f32 %v1611_v4, %v1577_v43  ;;  %v1370_v4 = vadd.f32 %v1346_v44, %v1244_v31  ;;  %v4000_v31 = vpop.permute.xlu2 %1086 }
  0xdc   : > { %3080 = vmatmul.msk.f32.gmra.mxu3 %vm460_vm1, %v399_v47  ;;  %v1871_v59 = vmax.f32 %v1847_v5, 0.0  ;;  %v3973_v47 = vsel %vm1415_vm3, %v1398_v32, %v1399_v29  ;;  %v1720_v48 = vmul.f32 %v3900_v58, %v3969_v18  ;;  %v1446_v32 = vmul.f32 %v3637_v8, %v3842_v6 }
  0xdd   : > { %v869_v56 = vmin.f32 %v815_v26, 6.0  ;;  %v1686_v7 = vadd.f32 %v1662_v0, %v1635_v36  ;;  %v1778_v38 = vmul.f32 %v3917_v39, %v3973_v47  ;;  %v1612_v44 = vmul.f32 %v3855_v10, %v3978_v25 }
  0xde   : > { %v1895_v14 = vmin.f32 %v1871_v59, 6.0  ;;  %v1663_v59 = vmul.f32 %v3847_v55, %v3943_v19  ;;  %v1497_v6 = vmul.f32 %v3746_v22, %v3850_v50  ;;  %v1347_v36 = vmul.f32 %v3609_v61, %v3870_v20 }
  0xdf   : > { %v3980_v11 = vpop.f32.mrf.mxu3  ;;  %v3984_v43 = vmul.f32 %v962_v34, %v869_v56  ;;  %v1744_v5 = vadd.f32 %v1720_v48, %v1686_v7  ;;  %v1470_v60 = vadd.f32 %v1446_v32, %v1370_v4  ;;  %v1636_v7 = vadd.f32 %v1612_v44, %v1578_v40 }
  0xe0   : > { %v674_v26 = vpop.f32.mrf.mxu0  ;;  %3097 = vmatmul.msk.f32.vlgmr.msrb.gmra.mxu1 %vm1922_vm4, %v1895_v14  ;;  %v4021_v20 = vmul.f32 %v3746_v22, %v3644_v16 }
  0xe1   : > { %v1298_v37 = vrot.slane %v3984_v43, 1  ;;  %v1400_v0 = vrot.slane %v3984_v43, 2  ;;  %v675_v1 = vadd.f32 %v3539_v15, %v674_v26  ;;  %v1802_v34 = vadd.f32 %v1778_v38, %v1744_v5 }
  0xe2   : > { %v1555_v26 = vmul.f32 %v3820_v21, %v3895_v12  ;;  %v4017_v5 = vmul.f32 %v3746_v22, %v3558_v28  ;;  %6281 = vst [vmem:[#allocation26_spill] sm:$0xff] %v4021_v20  ;;  %v1687_v4 = vadd.f32 %v1663_v59, %v1636_v7  ;;  %v1521_v32 = vadd.f32 %v1497_v6, %v1470_v60 }
  0xe3   : > { %v4006_v56 = vsel %vm1315_vm2, %v1297_v46, %v1298_v37  ;;  %v816_v48 = vmax.f32 %v675_v1, 0.0  ;;  %v1848_v14 = vadd.f32 %v3936_v27, %v1802_v34  ;;  %v4011_v63 = vsel %vm1415_vm3, %v1399_v29, %v1400_v0  ;;  %v967_v46 = vpop.permute.xlu0 %966 }
  0xe4   : > { %6280 = vst [vmem:[#allocation25_spill] sm:$0xff] %v4017_v5  ;;  %v1721_v40 = vmul.f32 %v3900_v58, %v4006_v56  ;;  %v1245_v29 = vmul.f32 %v3591_v52, %v3768_v54  ;;  %v4031_v34 = vmul.f32 %v3847_v55, %v3586_v51  ;;  %v4035_v20 = vmul.f32 %v3746_v22, %v3586_v51 }
  0xe5   : > { %v870_v38 = vmin.f32 %v816_v48, 6.0  ;;  %v1872_v1 = vmax.f32 %v1848_v14, 0.0  ;;  %v1779_v7 = vmul.f32 %v3917_v39, %v4011_v63  ;;  %v1579_v60 = vadd.f32 %v1555_v26, %v1521_v32  ;;  %v4059_v32 = vpop.permute.xlu1 %1091 }
  0xe6   : > { %6282 = vst [vmem:[#allocation27_spill] sm:$0xff] %v4031_v34  ;;  %v1745_v59 = vadd.f32 %v1721_v40, %v1687_v4  ;;  %v1371_v5 = vadd.f32 %v1347_v36, %v1245_v29  ;;  %v1447_v48 = vmul.f32 %v3637_v8, %v3929_v35  ;;  %v1498_v14 = vmul.f32 %v3746_v22, %v3862_v33 }
  0xe7   : > { %v4027_v44 = vpop.f32.mrf.mxu3  ;;  %6283 = vst [vmem:[#allocation28_spill] sm:$0xff] %v4035_v20  ;;  %v4039_v16 = vmul.f32 %v967_v46, %v870_v38  ;;  %v1896_v6 = vmin.f32 %v1872_v1, 6.0  ;;  %v1613_v36 = vmul.f32 %v3855_v10, %v3910_v62  ;;  %v1664_v26 = vmul.f32 %v3847_v55, %v3984_v43 }
  0xe8   : > { %v677_v54 = vpop.f32.mrf.mxu0  ;;  %v1803_v51 = vadd.f32 %v1779_v7, %v1745_v59  ;;  %v4055_v35 = vmul.f32 %v3591_v52, %v3654_v24  ;;  %v744_v46 = vadd.f32 %v3539_v15, %v3759_v23  ;;  %v1471_v1 = vadd.f32 %v1447_v48, %v1371_v5  ;;  %v972_v7 = vpop.permute.xlu2 %971 }
  0xe9   : > { %v678_v34 = vadd.f32 %v3539_v15, %v677_v54  ;;  %v1299_v4 = vrot.slane %v4039_v16, 1  ;;  %v1401_v40 = vrot.slane %v4039_v16, 2  ;;  %3098 = vmatmul.msk.f32.gmra.mxu1 %vm1922_vm4, %v1896_v6  ;;  %v1556_v59 = vmul.f32 %v3820_v21, %v3969_v18 }
  0xea   : > { %6284 = vst [vmem:[#allocation29_spill] sm:$0xff] %v4055_v35  ;;  %v1849_v38 = vadd.f32 %v3936_v27, %v1803_v51  ;;  %v1637_v6 = vadd.f32 %v1613_v36, %v1579_v60  ;;  %v4070_v20 = vmul.f32 %v3746_v22, %v3654_v24  ;;  %v4078_v5 = vmul.f32 %v3820_v21, %v3692_v45 }
  0xeb   : > { %v817_v29 = vmax.f32 %v678_v34, 0.0  ;;  %v4066_v54 = vsel %vm1315_vm2, %v1298_v37, %v1299_v4  ;;  %v4074_v35 = vsel %vm1415_vm3, %v1400_v0, %v1401_v40  ;;  %v1522_v48 = vadd.f32 %v1498_v14, %v1471_v1 }
  0xec   : > { %6285 = vst [vmem:[#allocation30_spill] sm:$0xff] %v4070_v20  ;;  %v1873_v34 = vmax.f32 %v1849_v38, 0.0  ;;  %v1688_v37 = vadd.f32 %v1664_v26, %v1637_v6  ;;  %v1722_v60 = vmul.f32 %v3900_v58, %v4066_v54  ;;  %v839_v36 = vmax.f32 %v744_v46, 0.0 }
  0xed   : > { %v871_v23 = vmin.f32 %v817_v29, 6.0  ;;  %6286 = vst [vmem:[#allocation31_spill] sm:$0xff] %v4078_v5  ;;  %v1348_v29 = vmul.f32 %v3609_v61, %v3941_v49  ;;  %v747_v0 = vadd.f32 %v3539_v15, %v3795_v41  ;;  %v1780_v14 = vmul.f32 %v3917_v39, %v4074_v35 }
  0xee   : > { %v1897_v20 = vmin.f32 %v1873_v34, 6.0  ;;  %v1746_v45 = vadd.f32 %v1722_v60, %v1688_v37  ;;  %v1580_v1 = vadd.f32 %v1556_v59, %v1522_v48  ;;  %v4094_v26 = vmul.f32 %v3855_v10, %v3699_v53  ;;  %v4108_v48 = vpop.permute.xlu0 %1096 }
  0xef   : > { %v4080_v51 = vpop.f32.mrf.mxu3  ;;  %v4086_v38 = vmul.f32 %v972_v7, %v871_v23  ;;  %v1246_v46 = vmul.f32 %v3591_v52, %v3808_v2  ;;  %v4102_v41 = vmul.f32 %v3591_v52, %v3749_v30  ;;  %v1614_v6 = vmul.f32 %v3855_v10, %v3973_v47 }
  0xf0   : > { %v680_v24 = vpop.f32.mrf.mxu0  ;;  %6287 = vst [vmem:[#allocation32_spill] sm:$0xff] %v4094_v26  ;;  %v1804_v53 = vadd.f32 %v1780_v14, %v1746_v45  ;;  %v893_v23 = vmin.f32 %v839_v36, 6.0  ;;  %v1665_v37 = vmul.f32 %v3847_v55, %v4039_v16  ;;  %v840_v60 = vmax.f32 %v747_v0, 0.0 }
  0xf1   : > { %v1300_v49 = vrot.slane %v4086_v38, 1  ;;  %6288 = vst [vmem:[#allocation33_spill] sm:$0xff] %v4102_v41  ;;  %v681_v59 = vadd.f32 %v3539_v15, %v680_v24  ;;  %3099 = vmatmul.msk.f32.gmra.mxu1 %vm1922_vm4, %v1897_v20  ;;  %v1372_v34 = vadd.f32 %v1348_v29, %v1246_v46  ;;  %v1638_v5 = vadd.f32 %v1614_v6, %v1580_v1  ;;  %v977_v29 = vpop.permute.xlu1 %976 }
  0xf2   : > { %v1850_v26 = vadd.f32 %v3936_v27, %v1804_v53  ;;  %v1448_v24 = vmul.f32 %v3637_v8, %v3978_v25  ;;  %v750_v20 = vadd.f32 %v3539_v15, %v3857_v9  ;;  %v1499_v36 = vmul.f32 %v3746_v22, %v3943_v19 }
  0xf3   : > { %v4112_v2 = vsel %vm1315_vm2, %v1299_v4, %v1300_v49  ;;  %v818_v7 = vmax.f32 %v681_v59, 0.0  ;;  %v6289_v4 = vrot.slane %v4086_v38, 2  ;;  %v1689_v46 = vadd.f32 %v1665_v37, %v1638_v5 }
  0xf4   : > { %v1874_v1 = vmax.f32 %v1850_v26, 0.0  ;;  %v1723_v25 = vmul.f32 %v3900_v58, %v4112_v2  ;;  %v1472_v59 = vadd.f32 %v1448_v24, %v1372_v34  ;;  %v1557_v53 = vmul.f32 %v3820_v21, %v4006_v56 }
  0xf5   : > { %v4127_v45 = vsel %vm1415_vm3, %v1401_v40, %v6289_v4  ;;  %v872_v0 = vmin.f32 %v818_v7, 6.0  ;;  %v4139_v40 = vmul.f32 %v3591_v52, %v3779_v17  ;;  %v894_v24 = vmin.f32 %v840_v60, 6.0 }
  0xf6   : > { %v1898_v26 = vmin.f32 %v1874_v1, 6.0  ;;  %v1747_v5 = vadd.f32 %v1723_v25, %v1689_v46  ;;  %v1523_v37 = vadd.f32 %v1499_v36, %v1472_v59  ;;  %v1781_v34 = vmul.f32 %v3917_v39, %v4127_v45  ;;  %v982_v59 = vpop.permute.xlu0 %981 }
  0xf7   : > { %v4129_v14 = vpop.f32.mrf.mxu3  ;;  %6290 = vst [vmem:[#allocation34_spill] sm:$0xff] %v4139_v40  ;;  %v4141_v7 = vmul.f32 %v977_v29, %v872_v0  ;;  %v841_v6 = vmax.f32 %v750_v20, 0.0  ;;  %v4148_v30 = vmul.f32 %v3960_v3, %v893_v23  ;;  %v4152_v29 = vpop.permute.xlu2 %1101  ;;  %v1349_v36 = vmul.f32 %v3609_v61, %v3895_v12 }
  0xf8   : > { %v683_v4 = vpop.f32.mrf.mxu0  ;;  %v1805_v1 = vadd.f32 %v1781_v34, %v1747_v5  ;;  %v1581_v46 = vadd.f32 %v1557_v53, %v1523_v37  ;;  %v1247_v12 = vmul.f32 %v3591_v52, %v3850_v50  ;;  %v1615_v20 = vmul.f32 %v3855_v10, %v4011_v63 }
  0xf9   : > { %6291 = vst [vmem:[#allocation35_spill] sm:$0xff] %v4141_v7  ;;  %v684_v9 = vadd.f32 %v3539_v15, %v683_v4  ;;  %v6189_v40 = vrot.slane %v4141_v7, 1  ;;  %3100 = vmatmul.msk.f32.gmra.mxu1 %vm1922_vm4, %v1898_v26  ;;  %v4159_v60 = vmul.f32 %v3591_v52, %v4148_v30  ;;  %v6188_v3 = vrot.slane %v4141_v7, 2  ;;  %v4212_v26 = vpop.permute.xlu1 %1106 }
  0xfa   : > { %6292 = vst [vmem:[#allocation36_spill] sm:$0xff] %v4148_v30  ;;  %v1851_v53 = vadd.f32 %v3936_v27, %v1805_v1  ;;  %v895_v4 = vmin.f32 %v841_v6, 6.0  ;;  %v4175_v5 = vmul.f32 %v4000_v31, %v894_v24  ;;  %v1639_v50 = vadd.f32 %v1615_v20, %v1581_v46 }
  0xfb   : > { %v819_v0 = vmax.f32 %v684_v9, 0.0  ;;  %6293 = vst [vmem:[#allocation37_spill] sm:$0xff] %v4159_v60  ;;  %v4166_v23 = vsel %vm1315_vm2, %v1300_v49, %v6189_v40  ;;  %v1666_v49 = vmul.f32 %v3847_v55, %v4086_v38  ;;  %v4186_v6 = vmul.f32 %v3746_v22, %v4148_v30 }
  0xfc   : > { %6294 = vst [vmem:[#allocation38_spill] sm:$0xff] %v4175_v5  ;;  %v1875_v34 = vmax.f32 %v1851_v53, 0.0  ;;  %v1724_v25 = vmul.f32 %v3900_v58, %v4166_v23  ;;  %v6296_v24 = vrot.slane %v4086_v38, 2  ;;  %v4204_v20 = vmul.f32 %v3591_v52, %v4175_v5 }
  0xfd   : > { %v873_v9 = vmin.f32 %v819_v0, 6.0  ;;  %v1373_v0 = vadd.f32 %v1349_v36, %v1247_v12  ;;  %6295 = vst [vmem:[#allocation39_spill] sm:$0xff] %v4186_v6  ;;  %v1500_v36 = vmul.f32 %v3746_v22, %v3984_v43  ;;  %v1449_v12 = vmul.f32 %v3637_v8, %v3910_v62 }
  0xfe   : > { %v4196_v46 = vsel %vm1415_vm3, %v6296_v24, %v6188_v3  ;;  %6297 = vst [vmem:[#allocation40_spill] sm:$0xff] %v4204_v20  ;;  %v4209_v53 = vmul.f32 %v4059_v32, %v895_v4  ;;  %v1899_v41 = vmin.f32 %v1875_v34, 6.0  ;;  %v1558_v3 = vmul.f32 %v3820_v21, %v4066_v54 }
  0xff   : > { %v4177_v37 = vpop.f32.mrf.mxu3  ;;  %v4188_v1 = vmul.f32 %v982_v59, %v873_v9  ;;  %v1690_v9 = vadd.f32 %v1666_v49, %v1639_v50  ;;  %v753_v59 = vadd.f32 %v3539_v15, %v3919_v57  ;;  %v1782_v40 = vmul.f32 %v3917_v39, %v4196_v46  ;;  %v987_v34 = vpop.permute.xlu2 %986 }
 0x100   : > { %v686_v31 = vpop.f32.mrf.mxu0  ;;  %6298 = vst [vmem:[#allocation41_spill] sm:$0xff] %v4209_v53  ;;  %v1473_v6 = vadd.f32 %v1449_v12, %v1373_v0  ;;  %v1350_v57 = vmul.f32 %v3609_v61, %v3969_v18  ;;  %v1248_v0 = vmul.f32 %v3591_v52, %v3862_v33  ;;  %v4232_v18 = vmul.f32 %v3591_v52, %v4209_v53 }
 0x101   : > { %v687_v24 = vadd.f32 %v3539_v15, %v686_v31  ;;  %v1748_v62 = vadd.f32 %v1724_v25, %v1690_v9  ;;  %v1302_v32 = vrot.slane %v4188_v1, 1  ;;  %3101 = vmatmul.msk.f32.gmra.mxu1 %vm1922_vm4, %v1899_v41  ;;  %v4226_v25 = vmul.f32 %v3746_v22, %v4175_v5 }
 0x102   : > { %v1524_v9 = vadd.f32 %v1500_v36, %v1473_v6  ;;  %v842_v12 = vmax.f32 %v753_v59, 0.0  ;;  %6300 = vst [vmem:[#allocation43_spill] sm:$0xff] %v4232_v18  ;;  %v6301_v36 = vrot.slane %v4141_v7, 1  ;;  %v992_v18 = vpop.permute.xlu1 %991 }
 0x103   : > { %v820_v4 = vmax.f32 %v687_v24, 0.0  ;;  %6299 = vst [vmem:[#allocation42_spill] sm:$0xff] %v4226_v25  ;;  %v1806_v31 = vadd.f32 %v1782_v40, %v1748_v62  ;;  %v1374_v25 = vadd.f32 %v1350_v57, %v1248_v0  ;;  %v1616_v40 = vmul.f32 %v3855_v10, %v4074_v35  ;;  %v4257_v0 = vpop.permute.xlu0 %1111 }
 0x104   : > { %v1582_v60 = vadd.f32 %v1558_v3, %v1524_v9  ;;  %v4245_v59 = vsel %vm1315_vm2, %v6301_v36, %v1302_v32  ;;  %v1404_v62 = vrot.slane %v4188_v1, 2  ;;  %v1667_v3 = vmul.f32 %v3847_v55, %v4141_v7  ;;  %6302 = vst [vmem:[#allocation44_spill] sm:$0xff] %v4257_v0 }
 0x105   : > { %v874_v24 = vmin.f32 %v820_v4, 6.0  ;;  %v1852_v20 = vadd.f32 %v3936_v27, %v1806_v31  ;;  %v896_v57 = vmin.f32 %v842_v12, 6.0  ;;  %v1450_v31 = vmul.f32 %v3637_v8, %v3973_v47 }
 0x106   : > { %v1351_v9 = vmul.f32 %v3609_v61, %v4006_v56  ;;  %v1640_v41 = vadd.f32 %v1616_v40, %v1582_v60  ;;  %v4270_v56 = vmul.f32 %v3746_v22, %v4209_v53  ;;  %v4282_v40 = vld [vmem:[%s6152_s3] ss:$0 sm:$0xff] }
 0x107   : > { %v770_v49 = vpop.f32.mrf.mxu3  ;;  %v4239_v6 = vmul.f32 %v987_v34, %v874_v24  ;;  %v1876_v50 = vmax.f32 %v1852_v20, 0.0  ;;  %v1501_v34 = vmul.f32 %v3746_v22, %v4039_v16  ;;  %v1249_v20 = vmul.f32 %v3591_v52, %v3943_v19  ;;  %v4266_v5 = vpop.permute.xlu2 %1116 }
 0x108   : > { %v689_v33 = vpop.f32.mrf.mxu0  ;;  %v1474_v12 = vadd.f32 %v1450_v31, %v1374_v25  ;;  %6303 = vst [vmem:[#allocation45_spill] sm:$0xff] %v4266_v5  ;;  %v1691_v25 = vadd.f32 %v1667_v3, %v1640_v41  ;;  %v1451_v41 = vmul.f32 %v3637_v8, %v4011_v63 }
 0x109   : > { %v690_v4 = vadd.f32 %v3539_v15, %v689_v33  ;;  %v1900_v36 = vmin.f32 %v1876_v50, 6.0  ;;  %v1725_v15 = vmul.f32 %v3900_v58, %v4245_v59  ;;  %v1559_v33 = vmul.f32 %v3820_v21, %v4112_v2  ;;  %6304 = vst [vmem:[#allocation46_spill] sm:$0xff] %v4270_v56 }
 0x10a   : > { %v1303_v47 = vrot.slane %v4239_v6, 1  ;;  %v6305_v50 = vrot.slane %v4141_v7, 2  ;;  %v1375_v31 = vadd.f32 %v1351_v9, %v1249_v20  ;;  %v1525_v56 = vadd.f32 %v1501_v34, %v1474_v12  ;;  %v4339_v13 = vpop.permute.xlu1 %1121 }
 0x10b   : > { %v821_v24 = vmax.f32 %v690_v4, 0.0  ;;  %3102 = vmatmul.msk.f32.gmra.mxu1 %vm1922_vm4, %v1900_v36  ;;  %v4286_v4 = vadd.f32 %v4282_v40, %v3980_v11  ;;  %v1749_v53 = vadd.f32 %v1725_v15, %v1691_v25  ;;  %v1405_v30 = vrot.slane %v4239_v6, 2  ;;  %v997_v63 = vpop.permute.xlu0 %996  ;;  %6309 = vst [vmem:[#allocation49_spill] sm:$0xff] %v4339_v13 }
 0x10c   : > { %v4277_v19 = vsel %vm1415_vm3, %v6305_v50, %v1404_v62  ;;  %v1250_v50 = vmul.f32 %v3591_v52, %v3984_v43  ;;  %v1617_v43 = vmul.f32 %v3855_v10, %v4127_v45  ;;  %v771_v34 = vadd.f32 %v4282_v40, %v770_v49 }
 0x10d   : > { %v875_v60 = vmin.f32 %v821_v24, 6.0  ;;  %v4289_v24 = vmul.f32 %v4108_v48, %v896_v57  ;;  %v1783_v11 = vmul.f32 %v3917_v39, %v4277_v19  ;;  %v4302_v48 = vsel %vm1315_vm2, %v1302_v32, %v1303_v47 }
 0x10e   : > { %v1583_v57 = vadd.f32 %v1559_v33, %v1525_v56  ;;  %v843_v9 = vmax.f32 %v4286_v4, 0.0  ;;  %v1475_v15 = vadd.f32 %v1451_v41, %v1375_v31  ;;  %v4319_v28 = vsel %vm1415_vm3, %v1404_v62, %v1405_v30 }
 0x10f   : > { %6306 = vst [vmem:[#allocation47_spill] sm:$0xff] %v4289_v24  ;;  %v773_v36 = vpop.f32.mrf.mxu3  ;;  %v4295_v3 = vmul.f32 %v992_v18, %v875_v60  ;;  %v1668_v18 = vmul.f32 %v3847_v55, %v4188_v1  ;;  %v1807_v12 = vadd.f32 %v1783_v11, %v1749_v53  ;;  %v1726_v60 = vmul.f32 %v3900_v58, %v4302_v48 }
 0x110   : > { %v692_v17 = vpop.f32.mrf.mxu0  ;;  %v774_v33 = vadd.f32 %v4282_v40, %v773_v36  ;;  %v1641_v56 = vadd.f32 %v1617_v43, %v1583_v57  ;;  %v1502_v53 = vmul.f32 %v3746_v22, %v4086_v38  ;;  %v1352_v31 = vmul.f32 %v3609_v61, %v4066_v54 }
 0x111   : > { %v693_v20 = vadd.f32 %v4282_v40, %v692_v17  ;;  %v1853_v25 = vadd.f32 %v3936_v27, %v1807_v12  ;;  %v6307_v4 = vrot.slane %v4295_v3, 1  ;;  %v848_v36 = vmax.f32 %v771_v34, 0.0 }
 0x112   : > { %v1692_v41 = vadd.f32 %v1668_v18, %v1641_v56  ;;  %v1255_v11 = vmul.f32 %v3591_v52, %v4239_v6  ;;  %v849_v12 = vmax.f32 %v774_v33, 0.0  ;;  %v1784_v32 = vmul.f32 %v3917_v39, %v4319_v28  ;;  %v4354_v33 = vld [vmem:[%s6153_s4] ss:$0 sm:$0xff] }
 0x113   : > { %v822_v49 = vmax.f32 %v693_v20, 0.0  ;;  %v4325_v17 = vsel %vm1315_vm2, %v1303_v47, %v6307_v4  ;;  %v1877_v62 = vmax.f32 %v1853_v25, 0.0  ;;  %v4333_v20 = vpop.permute.xlu2 %1001  ;;  %v6310_v54 = vrot.slane %v4295_v3, 2 }
 0x114   : > { %6308 = vst [vmem:[#allocation48_spill] sm:$0xff] %v4325_v17  ;;  %v1357_v47 = vmul.f32 %v3609_v61, %v4325_v17  ;;  %v1750_v4 = vadd.f32 %v1726_v60, %v1692_v41  ;;  %v1560_v34 = vmul.f32 %v3820_v21, %v4166_v23  ;;  %v4358_v60 = vmul.f32 %v4354_v33, %v4289_v24 }
 0x115   : > { %v876_v57 = vmin.f32 %v822_v49, 6.0  ;;  %v4345_v52 = vsel %vm1415_vm3, %v1405_v30, %v6310_v54  ;;  %v1901_v18 = vmin.f32 %v1877_v62, 6.0  ;;  %v902_v49 = vmin.f32 %v848_v36, 6.0 }
 0x116   : > { %6311 = vst [vmem:[#allocation50_spill] sm:$0xff] %v4345_v52  ;;  %v1381_v61 = vadd.f32 %v1357_v47, %v1255_v11  ;;  %v1808_v30 = vadd.f32 %v1784_v32, %v1750_v4  ;;  %v1457_v41 = vmul.f32 %v3637_v8, %v4345_v52  ;;  %v1526_v62 = vadd.f32 %v1502_v53, %v1475_v15  ;;  %v4378_v15 = vld [vmem:[%s6153_s4 + $0x2] ss:$0 sm:$0xff] }
 0x117   : > { %v776_v43 = vpop.f32.mrf.mxu3  ;;  %v4349_v56 = vmul.f32 %v997_v63, %v876_v57  ;;  %6312 = vst [vmem:[#allocation51_spill] sm:$0xff] %v4358_v60  ;;  %v759_v63 = vadd.f32 %v4282_v40, %v4027_v44  ;;  %v1376_v57 = vadd.f32 %v1352_v31, %v1250_v50  ;;  %3103 = vmatmul.msk.f32.gmra.mxu1 %vm1922_vm4, %v1901_v18  ;;  %v903_v54 = vmin.f32 %v849_v12, 6.0  ;;  %v1127_v50 = vpop.permute.xlu0 %1126 }
 0x118   : > { %v695_v25 = vpop.f32.mrf.mxu0  ;;  %v1618_v47 = vmul.f32 %v3855_v10, %v4196_v46  ;;  %v1854_v36 = vadd.f32 %v3936_v27, %v1808_v30  ;;  %v4369_v60 = vadd.f32 %v1457_v41, %v1381_v61  ;;  %v1584_v4 = vadd.f32 %v1560_v34, %v1526_v62 }
 0x119   : > { %v696_v8 = vadd.f32 %v4282_v40, %v695_v25  ;;  %v1669_v44 = vmul.f32 %v3847_v55, %v4239_v6  ;;  %v1452_v53 = vmul.f32 %v4378_v15, %v4074_v35  ;;  %v4383_v18 = vmul.f32 %v1127_v50, %v902_v49  ;;  %v4416_v50 = vld [vmem:[%s6153_s4 + $0x1] ss:$0 sm:$0xff] }
 0x11a   : > { %6313 = vst [vmem:[#allocation52_spill] sm:$0xff] %v4369_v60  ;;  %v1878_v12 = vmax.f32 %v1854_v36, 0.0  ;;  %v897_v61 = vmin.f32 %v843_v9, 6.0  ;;  %v1642_v25 = vadd.f32 %v1618_v47, %v1584_v4  ;;  %v1727_v30 = vmul.f32 %v3900_v58, %v4325_v17  ;;  %v4403_v4 = vpop.permute.xlu1 %1006 }
 0x11b   : > { %6314 = vst [vmem:[#allocation53_spill] sm:$0xff] %v4383_v18  ;;  %v1132_v41 = vpop.permute.xlu2 %1131  ;;  %v844_v62 = vmax.f32 %v759_v63, 0.0  ;;  %v1476_v11 = vadd.f32 %v1452_v53, %v1376_v57  ;;  %v777_v35 = vadd.f32 %v4282_v40, %v776_v43  ;;  %v823_v13 = vmax.f32 %v696_v8, 0.0 }
 0x11c   : > { %v1902_v32 = vmin.f32 %v1878_v12, 6.0  ;;  %v4388_v60 = vmul.f32 %v1132_v41, %v903_v54  ;;  %v1693_v36 = vadd.f32 %v1669_v44, %v1642_v25  ;;  %v6316_v49 = vrot.slane %v4349_v56, 1 }
 0x11d   : > { %v6317_v9 = vrot.slane %v4295_v3, 1  ;;  %v1503_v63 = vmul.f32 %v3746_v22, %v4141_v7  ;;  %v6318_v43 = vrot.slane %v4349_v56, 2  ;;  %v6319_v8 = vrot.slane %v4295_v3, 2 }
 0x11e   : > { %6315 = vst [vmem:[#allocation54_spill] sm:$0xff] %v4388_v60  ;;  %v1353_v53 = vmul.f32 %v4416_v50, %v4112_v2  ;;  %v1561_v12 = vmul.f32 %v3820_v21, %v4245_v59  ;;  %v1751_v25 = vadd.f32 %v1727_v30, %v1693_v36  ;;  %v1785_v41 = vmul.f32 %v3917_v39, %v4345_v52 }
 0x11f   : > { %v779_v31 = vpop.f32.mrf.mxu3  ;;  %v4397_v47 = vsel %vm1315_vm2, %v6317_v9, %v6316_v49  ;;  %v4411_v44 = vsel %vm1415_vm3, %v6319_v8, %v6318_v43  ;;  %3104 = vmatmul.msk.f32.gmra.mxu1 %vm1922_vm4, %v1902_v32  ;;  %v1256_v49 = vmul.f32 %v4354_v33, %v4295_v3  ;;  %v2169_v9 = vrot.slane %v4388_v60, 1 }
 0x120   : > { %v2254_v43 = vrot.slane %v4388_v60, 2  ;;  %v1358_v8 = vmul.f32 %v4416_v50, %v4397_v47  ;;  %v850_v2 = vmax.f32 %v777_v35, 0.0  ;;  %v877_v34 = vmin.f32 %v823_v13, 6.0  ;;  %v698_v54 = vpop.f32.mrf.mxu0 }
 0x121   : > { %v1809_v57 = vadd.f32 %v1785_v41, %v1751_v25  ;;  %v1458_v32 = vmul.f32 %v4378_v15, %v4411_v44  ;;  %v6320_v30 = vrot.slane %v4383_v18, 1  ;;  %v6322_v5 = vrot.slane %v4383_v18, 2 }
 0x122   : > { %v1382_v0 = vadd.f32 %v1358_v8, %v1256_v49  ;;  %v1527_v35 = vadd.f32 %v1503_v63, %v1476_v11  ;;  %v1251_v13 = vmul.f32 %v4354_v33, %v4039_v16  ;;  %v4449_v25 = vmul.f32 %v3746_v22, %v4289_v24 }
 0x123   : > { %v4437_v36 = vsel %vm1315_vm2, %v6320_v30, %v2169_v9  ;;  %v4443_v52 = vsel %vm1415_vm3, %v6322_v5, %v2254_v43  ;;  %v4452_v41 = vmul.f32 %v4152_v29, %v897_v61  ;;  %v1855_v30 = vadd.f32 %v3936_v27, %v1809_v57 }
 0x124   : > { %6321 = vst [vmem:[#allocation55_spill] sm:$0xff] %v4437_v36  ;;  %v4455_v17 = vmin.f32 %v844_v62, 6.0  ;;  %v1619_v5 = vmul.f32 %v3855_v10, %v4277_v19  ;;  %v4459_v7 = vadd.f32 %v1458_v32, %v1382_v0  ;;  %v1585_v11 = vadd.f32 %v1561_v12, %v1527_v35 }
 0x125   : > { %6323 = vst [vmem:[#allocation56_spill] sm:$0xff] %v4443_v52  ;;  %v1377_v63 = vadd.f32 %v1353_v53, %v1251_v13  ;;  %v904_v49 = vmin.f32 %v850_v2, 6.0  ;;  %v1879_v16 = vmax.f32 %v1855_v30, 0.0  ;;  %v1670_v8 = vmul.f32 %v3847_v55, %v4295_v3 }
 0x126   : > { %6324 = vst [vmem:[#allocation57_spill] sm:$0xff] %v4449_v25  ;;  %v4464_v25 = vmul.f32 %v4333_v20, %v877_v34  ;;  %v780_v29 = vadd.f32 %v4282_v40, %v779_v31  ;;  %v1643_v61 = vadd.f32 %v1619_v5, %v1585_v11  ;;  %v1728_v62 = vmul.f32 %v3900_v58, %v4397_v47  ;;  %v4477_v20 = vpop.permute.xlu0 %1011 }
 0x127   : > { %6325 = vst [vmem:[#allocation58_spill] sm:$0xff] %v4452_v41  ;;  %v1504_v0 = vmul.f32 %v3746_v22, %v4188_v1  ;;  %v4473_v57 = vmul.f32 %v4354_v33, %v4452_v41  ;;  %v1453_v53 = vmul.f32 %v4378_v15, %v4127_v45  ;;  %v1903_v12 = vmin.f32 %v1879_v16, 6.0  ;;  %v782_v2 = vpop.f32.mrf.mxu3  ;;  %v1137_v22 = vpop.permute.xlu1 %1136 }
 0x128   : > { %v762_v31 = vadd.f32 %v4282_v40, %v4080_v51  ;;  %v783_v32 = vadd.f32 %v4282_v40, %v782_v2  ;;  %v1694_v35 = vadd.f32 %v1670_v8, %v1643_v61  ;;  %v1562_v5 = vmul.f32 %v3820_v21, %v4302_v48  ;;  %v701_v61 = vpop.f32.mrf.mxu0 }
 0x129   : > { %6326 = vst [vmem:[#allocation59_spill] sm:$0xff] %v4473_v57  ;;  %v1477_v30 = vadd.f32 %v1453_v53, %v1377_v63  ;;  %3105 = vmatmul.msk.f32.gmra.mxu1 %vm1922_vm4, %v1903_v12  ;;  %v4487_v45 = vmul.f32 %v1137_v22, %v904_v49  ;;  %v6207_v11 = vrot.slane %v4464_v25, 1  ;;  %v851_v16 = vmax.f32 %v780_v29, 0.0  ;;  %v4495_v53 = vpop.permute.xlu2 %1016  ;;  %v4500_v49 = vld [vmem:[%s6153_s4 + $0x3] ss:$0 sm:$0xff] }
 0x12a   : > { %v1752_v51 = vadd.f32 %v1728_v62, %v1694_v35  ;;  %v1786_v34 = vmul.f32 %v3917_v39, %v4411_v44  ;;  %v699_v8 = vadd.f32 %v4282_v40, %v698_v54  ;;  %v4504_v29 = vmul.f32 %v4500_v49, %v4452_v41  ;;  %v6378_v41 = vld [vmem:[#allocation52_spill] sm:$0xff] }
 0x12b   : > { %6327 = vst [vmem:[#allocation60_spill] sm:$0xff] %v4487_v45  ;;  %v6203_v2 = vrot.slane %v4487_v45, 1  ;;  %v6204_v63 = vrot.slane %v4487_v45, 2  ;;  %v1528_v21 = vadd.f32 %v1504_v0, %v1477_v30  ;;  %v2126_v54 = vmul.f32 %v4354_v33, %v4383_v18 }
 0x12c   : > { %6328 = vst [vmem:[#allocation61_spill] sm:$0xff] %v4504_v29  ;;  %v852_v62 = vmax.f32 %v783_v32, 0.0  ;;  %v1810_v12 = vadd.f32 %v1786_v34, %v1752_v51  ;;  %v905_v13 = vmin.f32 %v851_v16, 6.0  ;;  %v2211_v32 = vmul.f32 %v4416_v50, %v4437_v36 }
 0x12d   : > { %v4513_v0 = vsel %vm1315_vm2, %v2169_v9, %v6203_v2  ;;  %v4519_v22 = vsel %vm1415_vm3, %v2254_v43, %v6204_v63  ;;  %v1586_v30 = vadd.f32 %v1562_v5, %v1528_v21  ;;  %v6331_v51 = vrot.slane %v4349_v56, 1 }
 0x12e   : > { %6329 = vst [vmem:[#allocation62_spill] sm:$0xff] %v4513_v0  ;;  %v1856_v34 = vadd.f32 %v3936_v27, %v1810_v12  ;;  %v1252_v2 = vmul.f32 %v4354_v33, %v4086_v38  ;;  %v845_v43 = vmax.f32 %v762_v31, 0.0  ;;  %v1620_v5 = vmul.f32 %v3855_v10, %v4319_v28 }
 0x12f   : > { %6330 = vst [vmem:[#allocation63_spill] sm:$0xff] %v4519_v22  ;;  %v4530_v9 = vsel %vm1315_vm2, %v6331_v51, %v6207_v11  ;;  %v824_v16 = vmax.f32 %v699_v8, 0.0  ;;  %v765_v21 = vadd.f32 %v4282_v40, %v4129_v14  ;;  %v906_v12 = vmin.f32 %v852_v62, 6.0  ;;  %v1142_v8 = vpop.permute.xlu0 %1141 }
 0x130   : > { %v2127_v63 = vmul.f32 %v4354_v33, %v4388_v60  ;;  %v1880_v35 = vmax.f32 %v1856_v34, 0.0  ;;  %v6332_v45 = vrot.slane %v4464_v25, 2  ;;  %v6333_v51 = vrot.slane %v4349_v56, 2 }
 0x131   : > { %v1644_v31 = vadd.f32 %v1620_v5, %v1586_v30  ;;  %v1671_v10 = vmul.f32 %v3847_v55, %v4349_v56  ;;  %v1729_v14 = vmul.f32 %v3900_v58, %v4530_v9  ;;  %v2212_v34 = vmul.f32 %v4416_v50, %v4513_v0 }
 0x132   : > { %v4546_v38 = vsel %vm1415_vm3, %v6333_v51, %v6332_v45  ;;  %v1904_v62 = vmin.f32 %v1880_v35, 6.0  ;;  %v4554_v11 = vmul.f32 %v1142_v8, %v905_v13  ;;  %v2235_v60 = vadd.f32 %v2211_v32, %v2126_v54  ;;  %v4568_v35 = vpop.f32.mrf.mxu0 }
 0x133   : > { %v878_v36 = vmin.f32 %v824_v16, 6.0  ;;  %v702_v18 = vadd.f32 %v4282_v40, %v701_v61  ;;  %v1695_v45 = vadd.f32 %v1671_v10, %v1644_v31  ;;  %v2296_v30 = vmul.f32 %v4378_v15, %v4443_v52  ;;  %v1147_v16 = vpop.permute.xlu2 %1146 }
 0x134   : > { %6334 = vst [vmem:[#allocation64_spill] sm:$0xff] %v4554_v11  ;;  %v899_v5 = vmin.f32 %v845_v43, 6.0  ;;  %v4561_v55 = vmul.f32 %v4212_v26, %v4455_v17  ;;  %v1354_v58 = vmul.f32 %v4416_v50, %v4166_v23  ;;  %3106 = vmatmul.msk.f32.gmra.mxu1 %vm1922_vm4, %v1904_v62  ;;  %v2344_v13 = vmul.f32 %v4500_v49, %v4554_v11  ;;  %v785_v62 = vpop.f32.mrf.mxu3 }
 0x135   : > { %v846_v54 = vmax.f32 %v765_v21, 0.0  ;;  %v1753_v61 = vadd.f32 %v1729_v14, %v1695_v45  ;;  %v1787_v32 = vmul.f32 %v3917_v39, %v4546_v38  ;;  %v2320_v43 = vadd.f32 %v2296_v30, %v2235_v60 }
 0x136   : > { %6335 = vst [vmem:[#allocation65_spill] sm:$0xff] %v4561_v55  ;;  %v4574_v26 = vmul.f32 %v4354_v33, %v4561_v55  ;;  %v4576_v17 = vmul.f32 %v1147_v16, %v906_v12  ;;  %v2236_v23 = vadd.f32 %v2212_v34, %v2127_v63  ;;  %v2297_v51 = vmul.f32 %v4378_v15, %v4519_v22  ;;  %v6340_v16 = vld [vmem:[#allocation48_spill] sm:$0xff] }
 0x137   : > { %v4581_v21 = vmul.f32 %v4403_v4, %v878_v36  ;;  %v825_v31 = vmax.f32 %v702_v18, 0.0  ;;  %v1811_v10 = vadd.f32 %v1787_v32, %v1753_v61  ;;  %v6214_v14 = vrot.slane %v4554_v11, 1 }
 0x138   : > { %6336 = vst [vmem:[#allocation66_spill] sm:$0xff] %v4574_v26  ;;  %v1378_v60 = vadd.f32 %v1354_v58, %v1252_v2  ;;  %v1454_v8 = vmul.f32 %v4378_v15, %v4196_v46  ;;  %v4587_v12 = vadd.f32 %v2344_v13, %v2320_v43  ;;  %v786_v63 = vadd.f32 %v4282_v40, %v785_v62  ;;  %v4598_v46 = vpop.permute.xlu1 %1021  ;;  %v4616_v43 = vld [vmem:[%s6153_s4 + $0x4] ss:$0 sm:$0xff] }
 0x139   : > { %6337 = vst [vmem:[#allocation67_spill] sm:$0xff] %v4576_v17  ;;  %v1857_v34 = vadd.f32 %v3936_v27, %v1811_v10  ;;  %v6215_v4 = vrot.slane %v4576_v17, 1  ;;  %v2321_v36 = vadd.f32 %v2297_v51, %v2236_v23  ;;  %v768_v18 = vadd.f32 %v4282_v40, %v4177_v37  ;;  %v6341_v51 = vld [vmem:[#allocation44_spill] sm:$0xff] }
 0x13a   : > { %v1505_v45 = vmul.f32 %v4500_v49, %v4239_v6  ;;  %v1355_v2 = vmul.f32 %v4416_v50, %v4245_v59  ;;  %v2345_v30 = vmul.f32 %v4500_v49, %v4576_v17  ;;  %v1307_v58 = vrot.slane %v4581_v21, 1  ;;  %v6339_v6 = vld [vmem:[#allocation35_spill] sm:$0xff] }
 0x13b   : > { %v879_v27 = vmin.f32 %v825_v31, 6.0  ;;  %v1881_v13 = vmax.f32 %v1857_v34, 0.0  ;;  %v4609_v37 = vsel %vm1315_vm2, %v6214_v14, %v6215_v4  ;;  %v1253_v59 = vmul.f32 %v4354_v33, %v6339_v6 }
 0x13c   : > { %6338 = vst [vmem:[#allocation68_spill] sm:$0xff] %v4609_v37  ;;  %v900_v61 = vmin.f32 %v846_v54, 6.0  ;;  %v1478_v32 = vadd.f32 %v1454_v8, %v1378_v60  ;;  %v1563_v23 = vmul.f32 %v4616_v43, %v6340_v16  ;;  %v4621_v31 = vmul.f32 %v6341_v51, %v899_v5  ;;  %v4635_v5 = vpop.f32.mrf.mxu0 }
 0x13d   : > { %v853_v10 = vmax.f32 %v786_v63, 0.0  ;;  %v1905_v62 = vmin.f32 %v1881_v13, 6.0  ;;  %v4623_v34 = vadd.f32 %v2345_v30, %v2321_v36  ;;  %v4627_v6 = vmul.f32 %v4354_v33, %v4188_v1  ;;  %v4657_v30 = vld [vmem:[%s6153_s4 + $0x6] ss:$0 sm:$0xff] }
 0x13e   : > { %6342 = vst [vmem:[#allocation35_spill] sm:$0xff] %v4621_v31  ;;  %v847_v54 = vmax.f32 %v768_v18, 0.0  ;;  %v1529_v8 = vadd.f32 %v1505_v45, %v1478_v32  ;;  %v1379_v14 = vadd.f32 %v1355_v2, %v1253_v59  ;;  %v1409_v39 = vrot.slane %v4581_v21, 2  ;;  %v4650_v18 = vld [vmem:[%s6153_s4 + $0x5] ss:$0 sm:$0xff] }
 0x13f   : > { %v4632_v16 = vmul.f32 %v4477_v20, %v879_v27  ;;  %3107 = vmatmul.msk.f32.gmra.mxu1 %vm1922_vm4, %v1905_v62  ;;  %v6343_v63 = vrot.slane %v4464_v25, 1  ;;  %v4645_v36 = vmul.f32 %v4354_v33, %v4621_v31  ;;  %v6345_v20 = vld [vmem:[#allocation50_spill] sm:$0xff]  ;;  %v1672_v27 = vmul.f32 %v4657_v30, %v4464_v25 }
 0x140   : > { %v1621_v45 = vmul.f32 %v4650_v18, %v6345_v20  ;;  %v1587_v2 = vadd.f32 %v1563_v23, %v1529_v8  ;;  %v1455_v32 = vmul.f32 %v4378_v15, %v4277_v19  ;;  %v907_v51 = vmin.f32 %v853_v10, 6.0  ;;  %v725_v8 = vpop.f32.mrf.mxu1  ;;  %v4672_v20 = vld [vmem:[%s6153_s4 + $0x7] ss:$0 sm:$0xff]  ;;  %v1152_v60 = vpop.permute.xlu1 %1151 }
 0x141   : > { %v4641_v1 = vsel %vm1315_vm2, %v6343_v63, %v1307_v58  ;;  %6344 = vst [vmem:[#allocation48_spill] sm:$0xff] %v4645_v36  ;;  %v4665_v62 = vmin.f32 %v847_v54, 6.0  ;;  %v1506_v23 = vmul.f32 %v4500_v49, %v4295_v3  ;;  %v705_v19 = vadd.f32 %v4282_v40, %v4568_v35  ;;  %v6347_v54 = vld [vmem:[#allocation45_spill] sm:$0xff] }
 0x142   : > { %v1645_v63 = vadd.f32 %v1621_v45, %v1587_v2  ;;  %v1730_v13 = vmul.f32 %v4672_v20, %v4641_v1  ;;  %v1479_v59 = vadd.f32 %v1455_v32, %v1379_v14  ;;  %v6346_v10 = vrot.slane %v4464_v25, 2  ;;  %v4692_v32 = vpop.f32.mrf.mxu3 }
 0x143   : > { %v4686_v45 = vmul.f32 %v6347_v54, %v900_v61  ;;  %v1356_v2 = vmul.f32 %v4416_v50, %v4302_v48  ;;  %v1564_v14 = vmul.f32 %v4616_v43, %v4397_v47  ;;  %6349 = vst [vmem:[#allocation50_spill] sm:$0xff] %v4692_v32  ;;  %v1456_v35 = vmul.f32 %v4378_v15, %v4319_v28  ;;  %v4705_v47 = vld [vmem:[%s6153_s4 + $0x8] ss:$0 sm:$0xff] }
 0x144   : > { %v4683_v3 = vsel %vm1415_vm3, %v6346_v10, %v1409_v39  ;;  %v1696_v4 = vadd.f32 %v1672_v27, %v1645_v63  ;;  %v726_v10 = vadd.f32 %v4282_v40, %v725_v8  ;;  %v4698_v0 = vmul.f32 %v1152_v60, %v907_v51  ;;  %v710_v54 = vpop.f32.mrf.mxu0 }
 0x145   : > { %6348 = vst [vmem:[#allocation44_spill] sm:$0xff] %v4686_v45  ;;  %v1622_v61 = vmul.f32 %v4650_v18, %v4411_v44  ;;  %v1788_v27 = vmul.f32 %v4705_v47, %v4683_v3  ;;  %v1530_v63 = vadd.f32 %v1506_v23, %v1479_v59  ;;  %v826_v28 = vmax.f32 %v705_v19, 0.0 }
 0x146   : > { %6350 = vst [vmem:[#allocation45_spill] sm:$0xff] %v4698_v0  ;;  %v1754_v48 = vadd.f32 %v1730_v13, %v1696_v4  ;;  %v2257_v8 = vrot.slane %v4576_v17, 2  ;;  %v6351_v60 = vrot.slane %v4632_v16, 1  ;;  %v2129_v4 = vmul.f32 %v4354_v33, %v4554_v11 }
 0x147   : > { %v1588_v51 = vadd.f32 %v1564_v14, %v1530_v63  ;;  %v1673_v22 = vmul.f32 %v4657_v30, %v4581_v21  ;;  %v833_v23 = vmax.f32 %v726_v10, 0.0  ;;  %v4723_v19 = vrot.slane %v4698_v0, 1  ;;  %v4734_v14 = vld [vmem:[%s6154_s5] ss:$0 sm:$0xff] }
 0x148   : > { %v4715_v44 = vsel %vm1315_vm2, %v1307_v58, %v6351_v60  ;;  %v1812_v13 = vadd.f32 %v1788_v27, %v1754_v48  ;;  %v6353_v32 = vrot.slane %v4632_v16, 2  ;;  %v2214_v63 = vmul.f32 %v4416_v50, %v4609_v37 }
 0x149   : > { %6352 = vst [vmem:[#allocation69_spill] sm:$0xff] %v4723_v19  ;;  %v1646_v27 = vadd.f32 %v1622_v61, %v1588_v51  ;;  %v1731_v10 = vmul.f32 %v4672_v20, %v4715_v44  ;;  %v1380_v60 = vadd.f32 %v1356_v2, %v4627_v6  ;;  %v880_v59 = vmin.f32 %v826_v28, 6.0 }
 0x14a   : > { %v4729_v58 = vsel %vm1415_vm3, %v1409_v39, %v6353_v32  ;;  %v1858_v48 = vadd.f32 %v4734_v14, %v1812_v13  ;;  %v4743_v39 = vrot.slane %v4698_v0, 2  ;;  %v6355_v32 = vrot.slane %v4554_v11, 2 }
 0x14b   : > { %v1697_v61 = vadd.f32 %v1673_v22, %v1646_v27  ;;  %v2238_v51 = vadd.f32 %v2214_v63, %v2129_v4  ;;  %v887_v36 = vmin.f32 %v833_v23, 6.0  ;;  %v6357_v6 = vrot.slane %v4576_v17, 1  ;;  %v4764_v22 = vpop.f32.mrf.mxu3 }
 0x14c   : > { %6354 = vst [vmem:[#allocation70_spill] sm:$0xff] %v4743_v39  ;;  %v4749_v52 = vsel %vm1415_vm3, %v6355_v32, %v2257_v8  ;;  %v1882_v13 = vmax.f32 %v1858_v48, 0.0  ;;  %v1789_v28 = vmul.f32 %v4705_v47, %v4729_v58  ;;  %v2399_v32 = vmul.f32 %v4616_v43, %v4609_v37 }
 0x14d   : > { %6356 = vst [vmem:[#allocation71_spill] sm:$0xff] %v4749_v52  ;;  %v2299_v29 = vmul.f32 %v4378_v15, %v4749_v52  ;;  %v4758_v2 = vsel %vm1315_vm2, %v6357_v6, %v4723_v19  ;;  %v1755_v4 = vadd.f32 %v1731_v10, %v1697_v61  ;;  %v2454_v23 = vmul.f32 %v4650_v18, %v4749_v52  ;;  %v1032_v52 = vpop.permute.xlu2 %1031 }
 0x14e   : > { %6358 = vst [vmem:[#allocation72_spill] sm:$0xff] %v4758_v2  ;;  %v1906_v48 = vmin.f32 %v1882_v13, 6.0  ;;  %v4772_v6 = vmul.f32 %v4495_v53, %v880_v59  ;;  %v1359_v17 = vmul.f32 %v4416_v50, %v4530_v9  ;;  %v2423_v11 = vadd.f32 %v2399_v32, %v4587_v12 }
 0x14f   : > { %6359 = vst [vmem:[#allocation73_spill] sm:$0xff] %v4764_v22  ;;  %v4766_v27 = vadd.f32 %v2299_v29, %v2238_v51  ;;  %v708_v13 = vadd.f32 %v4282_v40, %v4635_v5  ;;  %v1813_v29 = vadd.f32 %v1789_v28, %v1755_v4  ;;  %v4783_v10 = vsel %vm1415_vm3, %v2257_v8, %v4743_v39  ;;  %v6362_v51 = vld [vmem:[#allocation4_spill] sm:$0xff]  ;;  %v6365_v28 = vld [vmem:[#allocation49_spill] sm:$0xff] }
 0x150   : > { %3108 = vmatmul.msk.f32.gmra.mxu1 %vm1922_vm4, %v1906_v48  ;;  %6361 = vst [vmem:[#allocation75_spill] sm:$0xff] %v4783_v10  ;;  %v2400_v53 = vmul.f32 %v4616_v43, %v4758_v2  ;;  %v1257_v59 = vmul.f32 %v4354_v33, %v4349_v56  ;;  %v1480_v61 = vadd.f32 %v1456_v35, %v1380_v60 }
 0x151   : > { %6360 = vst [vmem:[#allocation74_spill] sm:$0xff] %v4766_v27  ;;  %v4790_v12 = vmul.f32 %v6362_v51, %v887_v36  ;;  %v4792_v32 = vadd.f32 %v2454_v23, %v2423_v11  ;;  %v1507_v5 = vmul.f32 %v4500_v49, %v4349_v56  ;;  %v4798_v48 = vmul.f32 %v6365_v28, %v4665_v62  ;;  %v713_v56 = vpop.f32.mrf.mxu0 }
 0x152   : > { %v1859_v8 = vadd.f32 %v4734_v14, %v1813_v29  ;;  %v2424_v4 = vadd.f32 %v2400_v53, %v4623_v34  ;;  %v1258_v63 = vmul.f32 %v4354_v33, %v4464_v25  ;;  %v4806_v36 = vmul.f32 %v4500_v49, %v4464_v25 }
 0x153   : > { %6363 = vst [vmem:[#allocation4_spill] sm:$0xff] %v4790_v12  ;;  %v1383_v11 = vadd.f32 %v1359_v17, %v1257_v59  ;;  %v2455_v35 = vmul.f32 %v4650_v18, %v4783_v10  ;;  %v4812_v62 = vmul.f32 %v4354_v33, %v4581_v21  ;;  %v827_v23 = vmax.f32 %v708_v13, 0.0 }
 0x154   : > { %6364 = vst [vmem:[#allocation76_spill] sm:$0xff] %v4792_v32  ;;  %v1883_v34 = vmax.f32 %v1859_v8, 0.0  ;;  %v1459_v29 = vmul.f32 %v4378_v15, %v4546_v38  ;;  %v1565_v25 = vmul.f32 %v4616_v43, %v4530_v9  ;;  %v4820_v17 = vrot.slane %v4790_v12, 1 }
 0x155   : > { %6366 = vst [vmem:[#allocation49_spill] sm:$0xff] %v4798_v48  ;;  %v4822_v53 = vadd.f32 %v2455_v35, %v2424_v4  ;;  %v4826_v59 = vmul.f32 %v4500_v49, %v4581_v21  ;;  %v711_v51 = vadd.f32 %v4282_v40, %v710_v54  ;;  %v714_v13 = vadd.f32 %v4282_v40, %v713_v56  ;;  %v794_v54 = vpop.f32.mrf.mxu3 }
 0x156   : > { %6367 = vst [vmem:[#allocation77_spill] sm:$0xff] %v4820_v17  ;;  %v1907_v28 = vmin.f32 %v1883_v34, 6.0  ;;  %v4832_v8 = vmul.f32 %v4354_v33, %v4632_v16  ;;  %v4836_v9 = vmul.f32 %v4500_v49, %v4632_v16  ;;  %v4838_v60 = vadd.f32 %v1459_v29, %v1383_v11 }
 0x157   : > { %6368 = vst [vmem:[#allocation78_spill] sm:$0xff] %v4822_v53  ;;  %v1531_v4 = vadd.f32 %v1507_v5, %v1480_v61  ;;  %v881_v35 = vmin.f32 %v827_v23, 6.0  ;;  %v1360_v21 = vmul.f32 %v4416_v50, %v4641_v1  ;;  %v6369_v56 = vrot.slane %v4772_v6, 1  ;;  %v6371_v5 = vld [vmem:[#allocation5_spill] sm:$0xff] }
 0x158   : > { %3109 = vmatmul.msk.f32.gmra.mxu1 %vm1922_vm4, %v1907_v28  ;;  %v6370_v34 = vrot.slane %v4632_v16, 1  ;;  %v1623_v61 = vmul.f32 %v4650_v18, %v4546_v38  ;;  %v6372_v11 = vrot.slane %v6371_v5, 1  ;;  %v1674_v28 = vmul.f32 %v4657_v30, %v4632_v16 }
 0x159   : > { %v1589_v29 = vadd.f32 %v1565_v25, %v1531_v4  ;;  %v828_v38 = vmax.f32 %v711_v51, 0.0  ;;  %v829_v53 = vmax.f32 %v714_v13, 0.0  ;;  %v2111_v32 = vmul.f32 %v4354_v33, %v4790_v12 }
 0x15a   : > { %v4849_v27 = vsel %vm1315_vm2, %v6370_v34, %v6369_v56  ;;  %v4859_v23 = vsel %vm1315_vm2, %v4820_v17, %v6372_v11  ;;  %v4865_v56 = vmul.f32 %v4354_v33, %v4772_v6  ;;  %v4869_v34 = vmul.f32 %v4500_v49, %v4772_v6 }
 0x15b   : > { %6373 = vst [vmem:[#allocation5_spill] sm:$0xff] %v4859_v23  ;;  %v795_v11 = vadd.f32 %v4282_v40, %v794_v54  ;;  %v1647_v10 = vadd.f32 %v1623_v61, %v1589_v29  ;;  %v1732_v25 = vmul.f32 %v4672_v20, %v4849_v27  ;;  %v2196_v4 = vmul.f32 %v4416_v50, %v4859_v23 }
 0x15c   : > { %v4879_v2 = vmul.f32 %v4598_v46, %v881_v35  ;;  %v1384_v22 = vadd.f32 %v1360_v21, %v1258_v63  ;;  %v6374_v51 = vrot.slane %v4772_v6, 2  ;;  %v6375_v13 = vrot.slane %v4632_v16, 2 }
 0x15d   : > { %v4888_v54 = vrot.slane %v4790_v12, 2  ;;  %v4892_v61 = vmul.f32 %v4500_v49, %v4790_v12  ;;  %v1460_v46 = vmul.f32 %v4378_v15, %v4683_v3  ;;  %v1698_v35 = vadd.f32 %v1674_v28, %v1647_v10 }
 0x15e   : > { %v1419_v37 = vsel %vm1415_vm3, %v6375_v13, %v6374_v51  ;;  %v1566_v63 = vmul.f32 %v4616_v43, %v4641_v1  ;;  %v882_v21 = vmin.f32 %v828_v38, 6.0  ;;  %v1361_v16 = vmul.f32 %v4416_v50, %v4715_v44  ;;  %v716_v51 = vpop.f32.mrf.mxu0  ;;  %v4912_v38 = vpop.f32.mrf.mxu1 }
 0x15f   : > { %6376 = vst [vmem:[#allocation79_spill] sm:$0xff] %v4892_v61  ;;  %v883_v29 = vmin.f32 %v829_v53, 6.0  ;;  %v1624_v13 = vmul.f32 %v4650_v18, %v4683_v3  ;;  %v856_v45 = vmax.f32 %v795_v11, 0.0  ;;  %v1756_v26 = vadd.f32 %v1732_v25, %v1698_v35  ;;  %v1027_v3 = vpop.permute.xlu0 %1026 }
 0x160   : > { %v1790_v31 = vmul.f32 %v4705_v47, %v1419_v37  ;;  %v4903_v57 = vadd.f32 %v2196_v4, %v2111_v32  ;;  %v4907_v10 = vmul.f32 %v4354_v33, %v4879_v2  ;;  %v4910_v28 = vadd.f32 %v1460_v46, %v1384_v22 }
 0x161   : > { %v4916_v53 = vmul.f32 %v4500_v49, %v4879_v2  ;;  %v4920_v11 = vmul.f32 %v4354_v33, %v4698_v0  ;;  %v717_v25 = vadd.f32 %v4282_v40, %v716_v51  ;;  %v4923_v4 = vmul.f32 %v1027_v3, %v882_v21 }
 0x162   : > { %6377 = vst [vmem:[#allocation80_spill] sm:$0xff] %v4903_v57  ;;  %v1814_v32 = vadd.f32 %v1790_v31, %v1756_v26  ;;  %v1385_v35 = vadd.f32 %v1361_v16, %v4812_v62  ;;  %v4926_v22 = vmul.f32 %v1032_v52, %v883_v29  ;;  %v1362_v46 = vmul.f32 %v4416_v50, %v4849_v27 }
 0x163   : > { %v910_v1 = vmin.f32 %v856_v45, 6.0  ;;  %v830_v48 = vmax.f32 %v717_v25, 0.0  ;;  %v1532_v0 = vadd.f32 %v4806_v36, %v6378_v41  ;;  %v1461_v26 = vmul.f32 %v4378_v15, %v4729_v58 }
 0x164   : > { %v1860_v55 = vadd.f32 %v4734_v14, %v1814_v32  ;;  %v1567_v31 = vmul.f32 %v4616_v43, %v4715_v44  ;;  %v1625_v52 = vmul.f32 %v4650_v18, %v4729_v58  ;;  %v6379_v62 = vrot.slane %v4879_v2, 1  ;;  %v1167_v58 = vpop.permute.xlu2 %1166 }
 0x165   : > { %v6380_v21 = vrot.slane %v4772_v6, 1  ;;  %v884_v29 = vmin.f32 %v830_v48, 6.0  ;;  %v1590_v36 = vadd.f32 %v1566_v63, %v1532_v0  ;;  %v4950_v51 = vmul.f32 %v4354_v33, %v4923_v4 }
 0x166   : > { %v1884_v16 = vmax.f32 %v1860_v55, 0.0  ;;  %v4952_v44 = vadd.f32 %v1461_v26, %v1385_v35  ;;  %v4955_v3 = vrot.slane %v4926_v22, 1  ;;  %v1386_v32 = vadd.f32 %v1362_v46, %v4832_v8  ;;  %v6382_v55 = vld [vmem:[#allocation2_spill] sm:$0xff]  ;;  %v719_v41 = vpop.f32.mrf.mxu0 }
 0x167   : > { %v4945_v45 = vsel %vm1315_vm2, %v6380_v21, %v6379_v62  ;;  %v4958_v25 = vmul.f32 %v1167_v58, %v910_v1  ;;  %v4961_v48 = vmul.f32 %v6382_v55, %v884_v29  ;;  %v1675_v0 = vmul.f32 %v4657_v30, %v4772_v6  ;;  %v6385_v58 = vld [vmem:[#allocation17_spill] sm:$0xff] }
 0x168   : > { %v1908_v62 = vmin.f32 %v1884_v16, 6.0  ;;  %v1462_v35 = vmul.f32 %v4378_v15, %v1419_v37  ;;  %v1648_v26 = vadd.f32 %v1624_v13, %v1590_v36  ;;  %v1733_v21 = vmul.f32 %v4672_v20, %v4945_v45  ;;  %v4987_v36 = vpop.f32.mrf.mxu1 }
 0x169   : > { %6381 = vst [vmem:[#allocation52_spill] sm:$0xff] %v4958_v25  ;;  %v4971_v8 = vmul.f32 %v4500_v49, %v4923_v4  ;;  %v4975_v1 = vmul.f32 %v4616_v43, %v4849_v27  ;;  %v4978_v46 = vmul.f32 %v4650_v18, %v1419_v37  ;;  %v6383_v16 = vrot.slane %v4879_v2, 2 }
 0x16a   : > { %3110 = vmatmul.msk.f32.gmra.mxu1 %vm1922_vm4, %v1908_v62  ;;  %v6384_v13 = vrot.slane %v4772_v6, 2  ;;  %v6386_v55 = vrot.slane %v6385_v58, 1  ;;  %v4994_v63 = vadd.f32 %v1462_v35, %v1386_v32  ;;  %v4997_v37 = vrot.slane %v4961_v48, 1 }
 0x16b   : > { %v1699_v62 = vadd.f32 %v1675_v0, %v1648_v26  ;;  %v5001_v6 = vmul.f32 %v4500_v49, %v4958_v25  ;;  %v720_v24 = vadd.f32 %v4282_v40, %v719_v41  ;;  %v1264_v32 = vmul.f32 %v4354_v33, %v4926_v22 }
 0x16c   : > { %v1418_v29 = vsel %vm1415_vm3, %v6384_v13, %v6383_v16  ;;  %v1339_v27 = vsel %vm1315_vm2, %v4955_v3, %v6386_v55  ;;  %v5004_v16 = vrot.slane %v4958_v25, 1  ;;  %v1363_v13 = vmul.f32 %v4416_v50, %v4945_v45 }
 0x16d   : > { %v5010_v55 = vrot.slane %v4958_v25, 2  ;;  %v1757_v35 = vadd.f32 %v1733_v21, %v1699_v62  ;;  %v1791_v0 = vmul.f32 %v4705_v47, %v1418_v29  ;;  %v1366_v57 = vmul.f32 %v4416_v50, %v1339_v27 }
 0x16e   : > { %6387 = vst [vmem:[#allocation2_spill] sm:$0xff] %v5004_v16  ;;  %v2380_v26 = vsel %vm1315_vm2, %v5004_v16, %v4820_v17  ;;  %v831_v12 = vmax.f32 %v720_v24, 0.0  ;;  %v1533_v40 = vadd.f32 %v4826_v59, %v4459_v7  ;;  %v5024_v41 = vmul.f32 %v4500_v49, %v4926_v22 }
 0x16f   : > { %6388 = vst [vmem:[#allocation17_spill] sm:$0xff] %v5010_v55  ;;  %v5027_v25 = vrot.slane %v4961_v48, 2  ;;  %v2192_v21 = vsel %vm1315_vm2, %v4723_v19, %v4997_v37  ;;  %v1815_v62 = vadd.f32 %v1791_v0, %v1757_v35  ;;  %v1387_v16 = vadd.f32 %v1363_v13, %v4865_v56  ;;  %v5052_v0 = vld [vmem:[%s6156_s7] ss:$0 sm:$0xff] }
 0x170   : > { %6389 = vst [vmem:[#allocation81_spill] sm:$0xff] %v5024_v41  ;;  %v6390_v24 = vrot.slane %v4923_v4, 1  ;;  %v6391_v27 = vrot.slane %v4879_v2, 1  ;;  %v1413_v59 = vrot.slane %v4923_v4, 2  ;;  %v1591_v17 = vadd.f32 %v1567_v31, %v1533_v40 }
 0x171   : > { %v2404_v41 = vmul.f32 %v4616_v43, %v2380_v26  ;;  %v2435_v35 = vsel %vm1415_vm3, %v5010_v55, %v4888_v54  ;;  %v1861_v56 = vadd.f32 %v4734_v14, %v1815_v62  ;;  %v1676_v13 = vmul.f32 %v4657_v30, %v4879_v2 }
 0x172   : > { %v1317_v7 = vsel %vm1315_vm2, %v6391_v27, %v6390_v24  ;;  %v5054_v24 = vadd.f32 %v1366_v57, %v1264_v32  ;;  %v2216_v31 = vmul.f32 %v4416_v50, %v2192_v21  ;;  %v1463_v26 = vmul.f32 %v4378_v15, %v1418_v29  ;;  %v2018_v27 = vpop.f32.mrf.mxu1 }
 0x173   : > { %v885_v40 = vmin.f32 %v831_v12, 6.0  ;;  %v2277_v62 = vsel %vm1415_vm3, %v4743_v39, %v5027_v25  ;;  %v1885_v55 = vmax.f32 %v1861_v56, 0.0  ;;  %v1649_v19 = vadd.f32 %v1625_v52, %v1591_v17  ;;  %v3081_v27 = vld [vmem:[%s3350_s18 + $0x19] sm:$0xff] }
 0x174   : > { %v1734_v23 = vmul.f32 %v4672_v20, %v1317_v7  ;;  %v5064_v61 = vadd.f32 %v1463_v26, %v1387_v16  ;;  %v1569_v57 = vmul.f32 %v4616_v43, %v4945_v45  ;;  %v5069_v32 = vmul.f32 %v4650_v18, %v1418_v29  ;;  %v6393_v45 = vld [vmem:[#allocation3_spill] sm:$0xff] }
 0x175   : > { %v6392_v12 = vrot.slane %v4879_v2, 2  ;;  %v1909_v39 = vmin.f32 %v1885_v55, 6.0  ;;  %v1364_v17 = vmul.f32 %v4416_v50, %v1317_v7  ;;  %v1700_v52 = vadd.f32 %v1676_v13, %v1649_v19 }
 0x176   : > { %v2013_v16 = vadd.f32 %v5052_v0, %v4912_v38  ;;  %v5081_v56 = vmul.f32 %v4500_v49, %v4961_v48  ;;  %v5084_v29 = vmul.f32 %v6393_v45, %v885_v40  ;;  %v2240_v2 = vadd.f32 %v2216_v31, %v4920_v11 }
 0x177   : > { %v1417_v21 = vsel %vm1415_vm3, %v6392_v12, %v1413_v59  ;;  %v2301_v19 = vmul.f32 %v4378_v15, %v2277_v62  ;;  %3111 = vmatmul.msk.f32.gmra.mxu1 %vm1922_vm4, %v1909_v39  ;;  %v1758_v38 = vadd.f32 %v1734_v23, %v1700_v52  ;;  %v6394_v26 = vrot.slane %v4923_v4, 1 }
 0x178   : > { %v1792_v55 = vmul.f32 %v4705_v47, %v1417_v21  ;;  %v2076_v13 = vadd.f32 %v3081_v27, %v2013_v16  ;;  %v5102_v12 = vmul.f32 %v4354_v33, %v4961_v48  ;;  %v1570_v11 = vmul.f32 %v4616_v43, %v1317_v7 }
 0x179   : > { %v1316_v40 = vsel %vm1315_vm2, %v6394_v26, %v4955_v3  ;;  %v2325_v31 = vadd.f32 %v2301_v19, %v2240_v2  ;;  %v1534_v39 = vadd.f32 %v4836_v9, %v4838_v60  ;;  %v1388_v23 = vadd.f32 %v1364_v17, %v4907_v10 }
 0x17a   : > { %v1464_v62 = vmul.f32 %v4378_v15, %v1417_v21  ;;  %v1816_v27 = vadd.f32 %v1792_v55, %v1758_v38  ;;  %2092 = vst.msk [vmem:[%s5089_s20] sm:$0xff] %vm460_vm1, %v2076_v13  ;;  %v1414_v52 = vrot.slane %v4926_v22, 2  ;;  %v1365_v45 = vmul.f32 %v4416_v50, %v1316_v40  ;;  %v2020_v2 = vpop.f32.mrf.mxu1 }
 0x17b   : > { %v2373_v16 = vadd.f32 %v5001_v6, %v2325_v31  ;;  %v1592_v26 = vadd.f32 %v4975_v1, %v1534_v39  ;;  %v1677_v7 = vmul.f32 %v4657_v30, %v4923_v4  ;;  %v1516_v60 = vmul.f32 %v4500_v49, %v5084_v29  ;;  %v3082_v39 = vld [vmem:[%s3350_s18 + $0x21] sm:$0xff] }
 0x17c   : > { %v1543_v9 = vrot.slane %v5084_v29, 1  ;;  %v1628_v10 = vmul.f32 %v4650_v18, %v1417_v21  ;;  %v1862_v17 = vadd.f32 %v4734_v14, %v1816_v27  ;;  %v2459_v6 = vmul.f32 %v4650_v18, %v2435_v35 }
 0x17d   : > { %v2428_v19 = vadd.f32 %v2404_v41, %v2373_v16  ;;  %v1650_v38 = vadd.f32 %v4978_v46, %v1592_v26  ;;  %v1735_v1 = vmul.f32 %v4672_v20, %v1316_v40  ;;  %v5127_v4 = vmul.f32 %v4354_v33, %v5084_v29 }
 0x17e   : > { %v5129_v55 = vadd.f32 %v1464_v62, %v1388_v23  ;;  %v1886_v49 = vmax.f32 %v1862_v17, 0.0  ;;  %v1416_v13 = vsel %vm1415_vm3, %v1413_v59, %v1414_v52  ;;  %v1389_v41 = vadd.f32 %v1365_v45, %v4950_v51 }
 0x17f   : > { %v5133_v21 = vadd.f32 %v2459_v6, %v2428_v19  ;;  %v6395_v35 = vrot.slane %v6385_v58, 2  ;;  %v1701_v31 = vadd.f32 %v1677_v7, %v1650_v38  ;;  %v2016_v33 = vadd.f32 %v5052_v0, %v4987_v36 }
 0x180   : > { %v1910_v27 = vmin.f32 %v1886_v49, 6.0  ;;  %v1535_v23 = vadd.f32 %v4869_v34, %v4910_v28  ;;  %v1547_v51 = vsel %vm1315_vm2, %v4955_v3, %v4997_v37  ;;  %v1465_v58 = vmul.f32 %v4378_v15, %v1416_v13 }
 0x181   : > { %v1439_v46 = vsel %vm1415_vm3, %v1414_v52, %v6395_v35  ;;  %v1571_v59 = vmul.f32 %v4616_v43, %v1316_v40  ;;  %v1759_v62 = vadd.f32 %v1735_v1, %v1701_v31  ;;  %v1793_v16 = vmul.f32 %v4705_v47, %v1416_v13 }
 0x182   : > { %3112 = vmatmul.msk.f32.gmra.mxu1 %vm1922_vm4, %v1910_v27  ;;  %v5154_v36 = vmul.f32 %v4378_v15, %v1439_v46  ;;  %v2077_v45 = vadd.f32 %v3082_v39, %v2016_v33  ;;  %v1593_v26 = vadd.f32 %v1569_v57, %v1535_v23  ;;  %v1678_v34 = vmul.f32 %v4657_v30, %v4926_v22  ;;  %v5171_v6 = vpop.f32.mrf.mxu1  ;;  %v3083_v46 = vld [vmem:[%s3350_s18 + $0x31] sm:$0xff] }
 0x183   : > { %v1489_v28 = vadd.f32 %v1465_v58, %v1389_v41  ;;  %v1817_v7 = vadd.f32 %v1793_v16, %v1759_v62  ;;  %v1605_v3 = vsel %vm1415_vm3, %v1414_v52, %v5027_v25  ;;  %v1736_v40 = vmul.f32 %v4672_v20, %v1547_v51 }
 0x184   : > { %2093 = vst.msk [vmem:[%s5089_s20 + $0x8] sm:$0xff] %vm460_vm1, %v2077_v45  ;;  %v1651_v17 = vadd.f32 %v5069_v32, %v1593_v26  ;;  %v1536_v19 = vadd.f32 %v4916_v53, %v4952_v44  ;;  %v1546_v22 = vsel %vm1315_vm2, %v4997_v37, %v1543_v9  ;;  %v1601_v57 = vrot.slane %v5084_v29, 2  ;;  %v6397_v26 = vld [vmem:[#allocation13_spill] sm:$0xff] }
 0x185   : > { %v1540_v38 = vadd.f32 %v1516_v60, %v1489_v28  ;;  %v1629_v52 = vmul.f32 %v4650_v18, %v1416_v13  ;;  %v1863_v1 = vadd.f32 %v4734_v14, %v1817_v7  ;;  %v5176_v49 = vmul.f32 %v4616_v43, %v1547_v51  ;;  %v6396_v51 = vld [vmem:[#allocation12_spill] sm:$0xff] }
 0x186   : > { %v1702_v32 = vadd.f32 %v1678_v34, %v1651_v17  ;;  %v1594_v41 = vadd.f32 %v1570_v11, %v1536_v19  ;;  %v1679_v53 = vmul.f32 %v4657_v30, %v4961_v48  ;;  %v2193_v44 = vmul.f32 %v4416_v50, %v1546_v22 }
 0x187   : > { %v1887_v37 = vmax.f32 %v1863_v1, 0.0  ;;  %v5182_v35 = vmul.f32 %v4650_v18, %v1605_v3  ;;  %v1794_v60 = vmul.f32 %v4705_v47, %v1605_v3  ;;  %v1604_v13 = vsel %vm1415_vm3, %v5027_v25, %v1601_v57 }
 0x188   : > { %v1760_v31 = vadd.f32 %v1736_v40, %v1702_v32  ;;  %v1652_v39 = vadd.f32 %v1628_v10, %v1594_v41  ;;  %v1737_v11 = vmul.f32 %v4672_v20, %v1546_v22  ;;  %v2021_v27 = vadd.f32 %v5052_v0, %v2020_v2 }
 0x189   : > { %v1911_v48 = vmin.f32 %v1887_v37, 6.0  ;;  %v2217_v33 = vadd.f32 %v2193_v44, %v5102_v12  ;;  %v1537_v23 = vadd.f32 %v4971_v8, %v4994_v63  ;;  %v1545_v58 = vsel %vm1315_vm2, %v1543_v9, %v6396_v51 }
 0x18a   : > { %v1818_v62 = vadd.f32 %v1794_v60, %v1760_v31  ;;  %v1703_v25 = vadd.f32 %v1679_v53, %v1652_v39  ;;  %v2278_v16 = vmul.f32 %v4378_v15, %v1604_v13  ;;  %v2078_v10 = vadd.f32 %v3083_v46, %v2021_v27  ;;  %v2026_v28 = vpop.f32.mrf.mxu1  ;;  %v6402_v39 = vld [vmem:[#allocation15_spill] sm:$0xff] }
 0x18b   : > { %3113 = vmatmul.msk.f32.gmra.mxu1 %vm1922_vm4, %v1911_v48  ;;  %v1574_v2 = vmul.f32 %v4616_v43, %v1545_v58  ;;  %v1595_v45 = vadd.f32 %v1571_v59, %v1537_v23  ;;  %v1603_v12 = vsel %vm1415_vm3, %v1601_v57, %v6397_v26  ;;  %v1680_v63 = vmul.f32 %v4657_v30, %v5084_v29  ;;  %v6398_v57 = vld [vmem:[#allocation19_spill] sm:$0xff] }
 0x18c   : > { %v1864_v8 = vadd.f32 %v4734_v14, %v1818_v62  ;;  %v5207_v9 = vmul.f32 %v4616_v43, %v1546_v22  ;;  %v1761_v34 = vadd.f32 %v1737_v11, %v1703_v25  ;;  %v1795_v15 = vmul.f32 %v4705_v47, %v1604_v13  ;;  %2094 = vst.msk [vmem:[%s5089_s20 + $0x10] sm:$0xff] %vm460_vm1, %v2078_v10  ;;  %v6400_v22 = vld [vmem:[#allocation14_spill] sm:$0xff]  ;;  %v6405_v25 = vld [vmem:[#allocation79_spill] sm:$0xff]  ;;  %v6406_v10 = vld [vmem:[#allocation5_spill] sm:$0xff] }
 0x18d   : > { %v2302_v7 = vadd.f32 %v2278_v16, %v2217_v33  ;;  %v1653_v59 = vadd.f32 %v1629_v52, %v1595_v45  ;;  %v1738_v3 = vmul.f32 %v4672_v20, %v1545_v58  ;;  %v2194_v40 = vmul.f32 %v4416_v50, %v1545_v58 }
 0x18e   : > { %v1888_v17 = vmax.f32 %v1864_v8, 0.0  ;;  %v1819_v19 = vadd.f32 %v1795_v15, %v1761_v34  ;;  %v1632_v29 = vmul.f32 %v4650_v18, %v1603_v12  ;;  %v6399_v1 = vrot.slane %v6398_v57, 1 }
 0x18f   : > { %v1598_v41 = vadd.f32 %v1574_v2, %v1540_v38  ;;  %v1704_v53 = vadd.f32 %v1680_v63, %v1653_v59  ;;  %v1796_v44 = vmul.f32 %v4705_v47, %v1603_v12  ;;  %v2218_v46 = vadd.f32 %v2194_v40, %v5127_v4  ;;  %v5245_v4 = vld [vmem:[%s6153_s4 + $0x2] ss:$0 sm:$0xff]  ;;  %v3084_v59 = vld [vmem:[%s3350_s18 + $0x39] sm:$0xff]  ;;  %v6407_v40 = vld [vmem:[#allocation11_spill] sm:$0xff] }
 0x190   : > { %v5220_v32 = vsel %vm1315_vm2, %v6400_v22, %v6399_v1  ;;  %v1912_v37 = vmin.f32 %v1888_v17, 6.0  ;;  %v1865_v60 = vadd.f32 %v4734_v14, %v1819_v19  ;;  %v6401_v31 = vrot.slane %v6398_v57, 2  ;;  %v6408_v19 = vld [vmem:[#allocation81_spill] sm:$0xff] }
 0x191   : > { %v2199_v52 = vmul.f32 %v4416_v50, %v5220_v32  ;;  %v1762_v27 = vadd.f32 %v1738_v3, %v1704_v53  ;;  %v6403_v38 = vrot.slane %v6371_v5, 2  ;;  %v6404_v50 = vld [vmem:[#allocation29_spill] sm:$0xff]  ;;  %v2279_v62 = vmul.f32 %v5245_v4, %v1603_v12 }
 0x192   : > { %v5232_v11 = vsel %vm1415_vm3, %v6402_v39, %v6401_v31  ;;  %v1889_v58 = vmax.f32 %v1865_v60, 0.0  ;;  %v2350_v16 = vadd.f32 %v6405_v25, %v2302_v7  ;;  %v2381_v2 = vmul.f32 %v4616_v43, %v6406_v10  ;;  %v6409_v53 = vld [vmem:[#allocation77_spill] sm:$0xff] }
 0x193   : > { %v5239_v48 = vsel %vm1415_vm3, %v4888_v54, %v6403_v38  ;;  %v2223_v33 = vadd.f32 %v2199_v52, %v6404_v50  ;;  %v2284_v23 = vmul.f32 %v5245_v4, %v5232_v11  ;;  %3114 = vmatmul.msk.f32.gmra.mxu1 %vm1922_vm4, %v1912_v37  ;;  %v5255_v45 = vmul.f32 %v4650_v18, %v1604_v13 }
 0x194   : > { %v5257_v63 = vadd.f32 %v1632_v29, %v1598_v41  ;;  %v1820_v8 = vadd.f32 %v1796_v44, %v1762_v27  ;;  %v2303_v15 = vadd.f32 %v2279_v62, %v2218_v46  ;;  %v5263_v28 = vmul.f32 %v5245_v4, %v5239_v48  ;;  %v5284_v37 = vpop.f32.mrf.mxu1  ;;  %v6410_v27 = vld [vmem:[#allocation10_spill] sm:$0xff] }
 0x195   : > { %v5259_v34 = vadd.f32 %v2284_v23, %v2223_v33  ;;  %v2405_v12 = vadd.f32 %v2381_v2, %v2350_v16  ;;  %v2436_v7 = vmul.f32 %v4650_v18, %v5239_v48  ;;  %v1913_v3 = vmin.f32 %v1889_v58, 6.0  ;;  %v6411_v58 = vld [vmem:[#allocation21_spill] sm:$0xff] }
 0x196   : > { %v2484_v13 = vmul.f32 %v4657_v30, %v6407_v40  ;;  %v2024_v17 = vadd.f32 %v5052_v0, %v5171_v6  ;;  %v1538_v29 = vadd.f32 %v6408_v19, %v5064_v61  ;;  %v2539_v41 = vmul.f32 %v4672_v20, %v5220_v32 }
 0x197   : > { %v2460_v1 = vadd.f32 %v2436_v7, %v2405_v12  ;;  %v1714_v44 = vsel %vm1315_vm2, %v6396_v51, %v6409_v53  ;;  %v1772_v52 = vsel %vm1415_vm3, %v6397_v26, %v4888_v54  ;;  %v1866_v6 = vadd.f32 %v4734_v14, %v1820_v8  ;;  %v5295_v51 = vld [vmem:[%s6153_s4] ss:$0 sm:$0xff]  ;;  %v5302_v26 = vld [vmem:[%s6153_s4 + $0x1] ss:$0 sm:$0xff] }
 0x198   : > { %v2594_v61 = vmul.f32 %v4705_v47, %v5232_v11  ;;  %v2079_v60 = vadd.f32 %v3084_v59, %v2024_v17  ;;  %v1596_v46 = vadd.f32 %v5176_v49, %v1538_v29  ;;  %v1681_v38 = vmul.f32 %v4657_v30, %v6410_v27  ;;  %v6416_v17 = vld [vmem:[#allocation25_spill] sm:$0xff]  ;;  %v6417_v29 = vld [vmem:[#allocation8_spill] sm:$0xff] }
 0x199   : > { %v2508_v31 = vadd.f32 %v2484_v13, %v2460_v1  ;;  %v2110_v54 = vmul.f32 %v5295_v51, %v6410_v27  ;;  %v2195_v50 = vmul.f32 %v5302_v26, %v1714_v44  ;;  %v1739_v33 = vmul.f32 %v4672_v20, %v1714_v44 }
 0x19a   : > { %2095 = vst.msk [vmem:[%s5089_s20 + $0x18] sm:$0xff] %vm460_vm1, %v2079_v60  ;;  %v1654_v49 = vadd.f32 %v5182_v35, %v1596_v46  ;;  %v2280_v23 = vmul.f32 %v5245_v4, %v1772_v52  ;;  %v6412_v62 = vrot.slane %v6411_v58, 1  ;;  %v6413_v25 = vrot.slane %v6398_v57, 1  ;;  %v6418_v60 = vld [vmem:[#allocation33_spill] sm:$0xff] }
 0x19b   : > { %v2563_v2 = vadd.f32 %v2539_v41, %v2508_v31  ;;  %v2219_v8 = vadd.f32 %v2195_v50, %v2110_v54  ;;  %v6414_v7 = vrot.slane %v6411_v58, 2  ;;  %v6415_v35 = vrot.slane %v6398_v57, 2  ;;  %3115 = vmatmul.msk.f32.gmra.mxu1 %vm1922_vm4, %v1913_v3  ;;  %v6419_v50 = vld [vmem:[#allocation9_spill] sm:$0xff] }
 0x19c   : > { %v5316_v16 = vsel %vm1315_vm2, %v6413_v25, %v6412_v62  ;;  %v1705_v40 = vadd.f32 %v1681_v38, %v1654_v49  ;;  %v2351_v19 = vadd.f32 %v6416_v17, %v2303_v15  ;;  %v2382_v1 = vmul.f32 %v4616_v43, %v6417_v29  ;;  %v6420_v49 = vld [vmem:[#allocation28_spill] sm:$0xff]  ;;  %v5352_v25 = vpop.f32.mrf.mxu1 }
 0x19d   : > { %v2200_v12 = vmul.f32 %v5302_v26, %v5316_v16  ;;  %v5326_v59 = vsel %vm1415_vm3, %v6415_v35, %v6414_v7  ;;  %v1890_v41 = vmax.f32 %v1866_v6, 0.0  ;;  %v2618_v53 = vadd.f32 %v2594_v61, %v2563_v2 }
 0x19e   : > { %v2285_v13 = vmul.f32 %v5245_v4, %v5326_v59  ;;  %v2304_v44 = vadd.f32 %v2280_v23, %v2219_v8  ;;  %v1763_v31 = vadd.f32 %v1739_v33, %v1705_v40  ;;  %v1797_v27 = vmul.f32 %v4705_v47, %v1772_v52  ;;  %v6421_v40 = vld [vmem:[#allocation36_spill] sm:$0xff] }
 0x19f   : > { %v2224_v46 = vadd.f32 %v2200_v12, %v6418_v60  ;;  %v2406_v54 = vadd.f32 %v2382_v1, %v2351_v19  ;;  %v2437_v3 = vmul.f32 %v4650_v18, %v6419_v50  ;;  %v5340_v38 = vmul.f32 %v4616_v43, %v5220_v32 }
 0x1a0   : > { %v2661_v15 = vadd.f32 %v4734_v14, %v2618_v53  ;;  %v2352_v62 = vadd.f32 %v6420_v49, %v2304_v44  ;;  %v5348_v61 = vmul.f32 %v4650_v18, %v5232_v11  ;;  %v1821_v33 = vadd.f32 %v1797_v27, %v1763_v31  ;;  %v6426_v31 = vld [vmem:[#allocation16_spill] sm:$0xff] }
 0x1a1   : > { %v5344_v6 = vadd.f32 %v2285_v13, %v2224_v46  ;;  %v2461_v52 = vadd.f32 %v2437_v3, %v2406_v54  ;;  %v2485_v23 = vmul.f32 %v4657_v30, %v6398_v57  ;;  %v1914_v2 = vmin.f32 %v1890_v41, 6.0  ;;  %v6427_v54 = vld [vmem:[#allocation4_spill] sm:$0xff] }
 0x1a2   : > { %v2685_v32 = vmax.f32 %v2661_v15, 0.0  ;;  %v2540_v8 = vmul.f32 %v4672_v20, %v5316_v16  ;;  %v1539_v12 = vadd.f32 %v5081_v56, %v5129_v55  ;;  %v1867_v7 = vadd.f32 %v4734_v14, %v1821_v33  ;;  %v6428_v15 = vld [vmem:[#allocation34_spill] sm:$0xff] }
 0x1a3   : > { %v2509_v35 = vadd.f32 %v2485_v23, %v2461_v52  ;;  %v2595_v11 = vmul.f32 %v4705_v47, %v5326_v59  ;;  %v6422_v13 = vrot.slane %v6421_v40, 1  ;;  %v6423_v57 = vrot.slane %v6411_v58, 1  ;;  %3116 = vmatmul.msk.f32.gmra.mxu1 %vm1922_vm4, %v1914_v2  ;;  %v6429_v33 = vld [vmem:[#allocation18_spill] sm:$0xff] }
 0x1a4   : > { %v2709_v19 = vmin.f32 %v2685_v32, 6.0  ;;  %v1597_v1 = vadd.f32 %v5207_v9, %v1539_v12  ;;  %v6424_v56 = vrot.slane %v6421_v40, 2  ;;  %v6425_v55 = vrot.slane %v6411_v58, 2 }
 0x1a5   : > { %v2188_v17 = vsel %vm1315_vm2, %v6423_v57, %v6422_v13  ;;  %v1891_v44 = vmax.f32 %v1867_v7, 0.0  ;;  %v2564_v60 = vadd.f32 %v2540_v8, %v2509_v35  ;;  %v2383_v9 = vmul.f32 %v4616_v43, %v6426_v31  ;;  %v3085_v13 = vld [vmem:[%s3350_s18 + $0x49] sm:$0xff] }
 0x1a6   : > { %v2201_v41 = vmul.f32 %v5302_v26, %v2188_v17  ;;  %v5375_v53 = vsel %vm1415_vm3, %v6425_v55, %v6424_v56  ;;  %3137 = vmatmul.msk.f32.vlgmr.msra.gmra.mxu2 %vm1922_vm4, %v2709_v19  ;;  %v1655_v27 = vadd.f32 %v5255_v45, %v1597_v1  ;;  %v1682_v3 = vmul.f32 %v4657_v30, %v6427_v54 }
 0x1a7   : > { %v2286_v46 = vmul.f32 %v5245_v4, %v5375_v53  ;;  %v2438_v52 = vmul.f32 %v4650_v18, %v6429_v33  ;;  %v2619_v23 = vadd.f32 %v2595_v11, %v2564_v60  ;;  %v1740_v2 = vmul.f32 %v4672_v20, %v6406_v10  ;;  %v6430_v60 = vld [vmem:[#allocation38_spill] sm:$0xff]  ;;  %v6435_v33 = vld [vmem:[#allocation80_spill] sm:$0xff] }
 0x1a8   : > { %v2225_v49 = vadd.f32 %v2201_v41, %v6428_v15  ;;  %v1798_v32 = vmul.f32 %v4705_v47, %v5239_v48  ;;  %v2407_v8 = vadd.f32 %v2383_v9, %v2352_v62  ;;  %v1915_v12 = vmin.f32 %v1891_v44, 6.0  ;;  %v2034_v41 = vpop.f32.mrf.mxu1 }
 0x1a9   : > { %v1706_v7 = vadd.f32 %v1682_v3, %v1655_v27  ;;  %v2486_v45 = vmul.f32 %v4657_v30, %v6411_v58  ;;  %v2662_v57 = vadd.f32 %v4734_v14, %v2619_v23  ;;  %v2541_v11 = vmul.f32 %v4672_v20, %v2188_v17 }
 0x1aa   : > { %v5393_v35 = vadd.f32 %v2286_v46, %v2225_v49  ;;  %v2462_v19 = vadd.f32 %v2438_v52, %v2407_v8  ;;  %v2029_v10 = vadd.f32 %v5052_v0, %v5284_v37  ;;  %v2596_v48 = vmul.f32 %v4705_v47, %v5375_v53  ;;  %v6436_v8 = vld [vmem:[#allocation37_spill] sm:$0xff] }
 0x1ab   : > { %v1764_v1 = vadd.f32 %v1740_v2, %v1706_v7  ;;  %v1683_v62 = vmul.f32 %v4657_v30, %v6371_v5  ;;  %v1741_v58 = vmul.f32 %v4672_v20, %v6417_v29  ;;  %v2686_v56 = vmax.f32 %v2662_v57, 0.0  ;;  %3117 = vmatmul.msk.f32.gmra.mxu1 %vm1922_vm4, %v1915_v12  ;;  %v6437_v57 = vld [vmem:[#allocation30_spill] sm:$0xff] }
 0x1ac   : > { %v2510_v55 = vadd.f32 %v2486_v45, %v2462_v19  ;;  %v2080_v44 = vadd.f32 %v3085_v13, %v2029_v10  ;;  %v6431_v46 = vrot.slane %v6430_v60, 1  ;;  %v6432_v31 = vrot.slane %v6421_v40, 1 }
 0x1ad   : > { %v1822_v9 = vadd.f32 %v1798_v32, %v1764_v1  ;;  %v1707_v27 = vadd.f32 %v1683_v62, %v5257_v63  ;;  %v6433_v29 = vrot.slane %v6430_v60, 2  ;;  %v6434_v54 = vrot.slane %v6421_v40, 2 }
 0x1ae   : > { %v5414_v37 = vsel %vm1315_vm2, %v6432_v31, %v6431_v46  ;;  %v2710_v15 = vmin.f32 %v2686_v56, 6.0  ;;  %v2565_v49 = vadd.f32 %v2541_v11, %v2510_v55  ;;  %2096 = vst.msk [vmem:[%s5089_s20 + $0x20] sm:$0xff] %vm460_vm1, %v2080_v44  ;;  %v2305_v52 = vadd.f32 %v5263_v28, %v6435_v33  ;;  %v6438_v44 = vld [vmem:[#allocation23_spill] sm:$0xff]  ;;  %v6439_v46 = vld [vmem:[#allocation6_spill] sm:$0xff] }
 0x1af   : > { %v2202_v5 = vmul.f32 %v5302_v26, %v5414_v37  ;;  %v5425_v3 = vsel %vm1415_vm3, %v6434_v54, %v6433_v29  ;;  %v1868_v23 = vadd.f32 %v4734_v14, %v1822_v9  ;;  %v1765_v2 = vadd.f32 %v1741_v58, %v1707_v27  ;;  %v6440_v31 = vld [vmem:[#allocation26_spill] sm:$0xff]  ;;  %v6441_v27 = vld [vmem:[#allocation41_spill] sm:$0xff]  ;;  %v6446_v33 = vld [vmem:[#allocation7_spill] sm:$0xff] }
 0x1b0   : > { %v2287_v63 = vmul.f32 %v5245_v4, %v5425_v3  ;;  %v1799_v32 = vmul.f32 %v4705_v47, %v6419_v50  ;;  %v2385_v12 = vmul.f32 %v4616_v43, %v5316_v16  ;;  %v2440_v45 = vmul.f32 %v4650_v18, %v5326_v59  ;;  %3138 = vmatmul.msk.f32.gmra.mxu2 %vm1922_vm4, %v2710_v15  ;;  %v3086_v50 = vld [vmem:[%s3350_s18 + $0x51] sm:$0xff] }
 0x1b1   : > { %v2226_v7 = vadd.f32 %v2202_v5, %v6436_v8  ;;  %v2620_v13 = vadd.f32 %v2596_v48, %v2565_v49  ;;  %v2353_v19 = vadd.f32 %v6437_v57, %v2305_v52  ;;  %v1892_v28 = vmax.f32 %v1868_v23, 0.0 }
 0x1b2   : > { %v2386_v11 = vmul.f32 %v4616_v43, %v2188_v17  ;;  %v1823_v10 = vadd.f32 %v1799_v32, %v1765_v2  ;;  %v2487_v16 = vmul.f32 %v4657_v30, %v6421_v40  ;;  %v2032_v59 = vadd.f32 %v5052_v0, %v5352_v25 }
 0x1b3   : > { %v5445_v1 = vadd.f32 %v2287_v63, %v2226_v7  ;;  %v2663_v62 = vadd.f32 %v4734_v14, %v2620_v13  ;;  %v2408_v58 = vadd.f32 %v5340_v38, %v2353_v19  ;;  %v1916_v48 = vmin.f32 %v1892_v28, 6.0  ;;  %v6445_v63 = vld [vmem:[#allocation24_spill] sm:$0xff] }
 0x1b4   : > { %v1869_v41 = vadd.f32 %v4734_v14, %v1823_v10  ;;  %v2542_v43 = vmul.f32 %v4672_v20, %v5414_v37  ;;  %v1490_v17 = vadd.f32 %v5154_v36, %v5054_v24  ;;  %v2081_v38 = vadd.f32 %v3086_v50, %v2032_v59  ;;  %v6449_v7 = vld [vmem:[#allocation40_spill] sm:$0xff] }
 0x1b5   : > { %v2687_v56 = vmax.f32 %v2663_v62, 0.0  ;;  %v2463_v55 = vadd.f32 %v5348_v61, %v2408_v58  ;;  %v1715_v30 = vsel %vm1315_vm2, %v6439_v46, %v6438_v44  ;;  %v2441_v25 = vmul.f32 %v4650_v18, %v5375_v53  ;;  %3118 = vmatmul.msk.f32.gmra.mxu1 %vm1922_vm4, %v1916_v48  ;;  %v6444_v53 = vld [vmem:[#allocation31_spill] sm:$0xff]  ;;  %v6450_v19 = vld [vmem:[#allocation20_spill] sm:$0xff]  ;;  %v5505_v58 = vld [vmem:[%s6153_s4 + $0x6] ss:$0 sm:$0xff]  ;;  %v2036_v48 = vpop.f32.mrf.mxu1 }
 0x1b6   : > { %v1893_v40 = vmax.f32 %v1869_v41, 0.0  ;;  %v1541_v9 = vadd.f32 %v6440_v31, %v1490_v17  ;;  %v6442_v5 = vrot.slane %v6441_v27, 1  ;;  %v6443_v29 = vrot.slane %v6430_v60, 1  ;;  %2097 = vst.msk [vmem:[%s5089_s20 + $0x28] sm:$0xff] %vm460_vm1, %v2081_v38  ;;  %v6451_v50 = vld [vmem:[#allocation32_spill] sm:$0xff]  ;;  %v6453_v38 = vld [vmem:[#allocation47_spill] sm:$0xff] }
 0x1b7   : > { %v2711_v36 = vmin.f32 %v2687_v56, 6.0  ;;  %v2511_v61 = vadd.f32 %v2487_v16, %v2463_v55  ;;  %v2597_v54 = vmul.f32 %v4705_v47, %v5425_v3  ;;  %v1742_v49 = vmul.f32 %v4672_v20, %v1715_v30  ;;  %v6452_v56 = vld [vmem:[#allocation27_spill] sm:$0xff] }
 0x1b8   : > { %v5473_v24 = vsel %vm1315_vm2, %v6443_v29, %v6442_v5  ;;  %v1599_v15 = vadd.f32 %v6444_v53, %v1541_v9  ;;  %v1773_v52 = vsel %vm1415_vm3, %v6446_v33, %v6445_v63  ;;  %v6447_v23 = vrot.slane %v6441_v27, 2  ;;  %v6459_v33 = vld [vmem:[#allocation43_spill] sm:$0xff] }
 0x1b9   : > { %v2203_v18 = vmul.f32 %v5302_v26, %v5473_v24  ;;  %v6448_v2 = vrot.slane %v6430_v60, 2  ;;  %3139 = vmatmul.msk.f32.gmra.mxu2 %vm1922_vm4, %v2711_v36  ;;  %v2566_v8 = vadd.f32 %v2542_v43, %v2511_v61  ;;  %v2409_v28 = vadd.f32 %v2385_v12, %v6450_v19  ;;  %v5541_v61 = vld [vmem:[%s6153_s4 + $0x4] ss:$0 sm:$0xff] }
 0x1ba   : > { %v1917_v10 = vmin.f32 %v1893_v40, 6.0  ;;  %v1657_v62 = vadd.f32 %v6451_v50, %v1599_v15  ;;  %v2488_v16 = vmul.f32 %v5505_v58, %v6430_v60  ;;  %v2543_v59 = vmul.f32 %v4672_v20, %v5473_v24  ;;  %v6458_v40 = vld [vmem:[#allocation22_spill] sm:$0xff] }
 0x1bb   : > { %v5494_v32 = vsel %vm1415_vm3, %v6448_v2, %v6447_v23  ;;  %v2227_v13 = vadd.f32 %v2203_v18, %v6449_v7  ;;  %v2621_v41 = vadd.f32 %v2597_v54, %v2566_v8  ;;  %v2464_v17 = vadd.f32 %v2440_v45, %v2409_v28  ;;  %v3087_v8 = vld [vmem:[%s3350_s18 + $0x61] sm:$0xff] }
 0x1bc   : > { %v2288_v57 = vmul.f32 %v5245_v4, %v5494_v32  ;;  %v2598_v12 = vmul.f32 %v4705_v47, %v5494_v32  ;;  %v1708_v55 = vadd.f32 %v6452_v56, %v1657_v62  ;;  %v6454_v44 = vrot.slane %v6453_v38, 1  ;;  %v6460_v50 = vld [vmem:[#allocation58_spill] sm:$0xff] }
 0x1bd   : > { %v6455_v46 = vmov %v6442_v5  ;;  %v6456_v20 = vrot.slane %v6453_v38, 2  ;;  %v6457_v30 = vmov %v6447_v23  ;;  %v2410_v31 = vadd.f32 %v2386_v11, %v6458_v40  ;;  %3119 = vmatmul.msk.f32.gmra.mxu1 %vm1922_vm4, %v1917_v10 }
 0x1be   : > { %v5511_v43 = vadd.f32 %v2288_v57, %v2227_v13  ;;  %v5522_v60 = vsel %vm1315_vm2, %v6455_v46, %v6454_v44  ;;  %v2664_v9 = vadd.f32 %v4734_v14, %v2621_v41  ;;  %v2512_v5 = vadd.f32 %v2488_v16, %v2464_v17  ;;  %v5554_v13 = vld [vmem:[%s6153_s4 + $0x7] ss:$0 sm:$0xff]  ;;  %v6465_v46 = vld [vmem:[#allocation49_spill] sm:$0xff] }
 0x1bf   : > { %v5530_v45 = vsel %vm1415_vm3, %v6457_v30, %v6456_v20  ;;  %v2204_v29 = vmul.f32 %v5302_v26, %v5522_v60  ;;  %v2387_v54 = vmul.f32 %v5541_v61, %v5414_v37  ;;  %v1766_v18 = vadd.f32 %v1742_v49, %v1708_v55  ;;  %v5561_v37 = vld [vmem:[%s6153_s4 + $0x8] ss:$0 sm:$0xff]  ;;  %v5592_v30 = vld [vmem:[%s6153_s4 + $0x5] ss:$0 sm:$0xff] }
 0x1c0   : > { %v2289_v36 = vmul.f32 %v5245_v4, %v5530_v45  ;;  %v1800_v11 = vmul.f32 %v4705_v47, %v1773_v52  ;;  %v2465_v53 = vadd.f32 %v2441_v25, %v2410_v31  ;;  %v2688_v15 = vmax.f32 %v2664_v9, 0.0 }
 0x1c1   : > { %v2567_v63 = vadd.f32 %v2543_v59, %v2512_v5  ;;  %v2228_v23 = vadd.f32 %v2204_v29, %v6459_v33  ;;  %v2489_v2 = vmul.f32 %v5505_v58, %v6441_v27  ;;  %v2544_v47 = vmul.f32 %v5554_v13, %v5522_v60  ;;  %v2039_v5 = vpop.f32.mrf.mxu1 }
 0x1c2   : > { %v1824_v7 = vadd.f32 %v1800_v11, %v1766_v18  ;;  %v2599_v25 = vmul.f32 %v5561_v37, %v5530_v45  ;;  %v2037_v27 = vadd.f32 %v5052_v0, %v2036_v48  ;;  %v2712_v49 = vmin.f32 %v2688_v15, 6.0  ;;  %v6467_v11 = vld [vmem:[#allocation51_spill] sm:$0xff] }
 0x1c3   : > { %v2622_v52 = vadd.f32 %v2598_v12, %v2567_v63  ;;  %v5566_v57 = vadd.f32 %v2289_v36, %v2228_v23  ;;  %v2513_v19 = vadd.f32 %v2489_v2, %v2465_v53  ;;  %v6461_v62 = vrot.slane %v6460_v50, 1  ;;  %v3088_v23 = vld [vmem:[%s3350_s18 + $0x69] sm:$0xff] }
 0x1c4   : > { %v1870_v28 = vadd.f32 %v4734_v14, %v1824_v7  ;;  %v2082_v10 = vadd.f32 %v3087_v8, %v2037_v27  ;;  %v6462_v16 = vmov %v6454_v44  ;;  %v6463_v41 = vrot.slane %v6460_v50, 2  ;;  %3140 = vmatmul.msk.f32.gmra.mxu2 %vm1922_vm4, %v2712_v49 }
 0x1c5   : > { %v2184_v59 = vsel %vm1315_vm2, %v6462_v16, %v6461_v62  ;;  %v6464_v48 = vmov %v6456_v20  ;;  %v2665_v12 = vadd.f32 %v4734_v14, %v2622_v52  ;;  %v2568_v56 = vadd.f32 %v2544_v47, %v2513_v19  ;;  %v6466_v14 = vld [vmem:[#allocation39_spill] sm:$0xff]  ;;  %v6473_v19 = vld [vmem:[#allocation42_spill] sm:$0xff] }
 0x1c6   : > { %v5581_v17 = vsel %vm1415_vm3, %v6464_v48, %v6463_v41  ;;  %v2205_v55 = vmul.f32 %v5302_v26, %v2184_v59  ;;  %v2167_v20 = vrot.slane %v6465_v46, 1  ;;  %v2442_v40 = vmul.f32 %v5592_v30, %v5425_v3  ;;  %2098 = vst.msk [vmem:[%s5089_s20 + $0x30] sm:$0xff] %vm460_vm1, %v2082_v10 }
 0x1c7   : > { %v2290_v44 = vmul.f32 %v5245_v4, %v5581_v17  ;;  %v1894_v31 = vmax.f32 %v1870_v28, 0.0  ;;  %v2356_v9 = vadd.f32 %v6466_v14, %v5259_v34  ;;  %v2388_v29 = vmul.f32 %v5541_v61, %v5473_v24  ;;  %v5611_v34 = vld [vmem:[%s6154_s5] ss:$0 sm:$0xff] }
 0x1c8   : > { %v2689_v36 = vmax.f32 %v2665_v12, 0.0  ;;  %v2623_v18 = vadd.f32 %v2599_v25, %v2568_v56  ;;  %v2229_v53 = vadd.f32 %v2205_v55, %v6467_v11  ;;  %v2443_v63 = vmul.f32 %v5592_v30, %v5494_v32 }
 0x1c9   : > { %v1918_v15 = vmin.f32 %v1894_v31, 6.0  ;;  %v2411_v33 = vadd.f32 %v2387_v54, %v2356_v9  ;;  %v2490_v3 = vmul.f32 %v5505_v58, %v6453_v38  ;;  %v2545_v8 = vmul.f32 %v5554_v13, %v2184_v59  ;;  %v6468_v54 = vld [vmem:[#allocation65_spill] sm:$0xff] }
 0x1ca   : > { %v2666_v24 = vadd.f32 %v5611_v34, %v2623_v18  ;;  %v5614_v2 = vadd.f32 %v2290_v44, %v2229_v53  ;;  %v2040_v7 = vadd.f32 %v5052_v0, %v2039_v5  ;;  %v6469_v38 = vrot.slane %v6468_v54, 1 }
 0x1cb   : > { %3120 = vmatmul.msk.f32.gmra.mxu1 %vm1922_vm4, %v1918_v15  ;;  %v2466_v32 = vadd.f32 %v2442_v40, %v2411_v33  ;;  %v6470_v47 = vmov %v6461_v62  ;;  %v6471_v27 = vrot.slane %v6468_v54, 2  ;;  %v6472_v49 = vmov %v6463_v41  ;;  %v6474_v40 = vld [vmem:[#allocation59_spill] sm:$0xff] }
 0x1cc   : > { %v2183_v25 = vsel %vm1315_vm2, %v6470_v47, %v6469_v38  ;;  %v2357_v28 = vadd.f32 %v6473_v19, %v5344_v6  ;;  %v2713_v10 = vmin.f32 %v2689_v36, 6.0  ;;  %v2083_v62 = vadd.f32 %v3088_v23, %v2040_v7  ;;  %v6475_v36 = vld [vmem:[#allocation35_spill] sm:$0xff] }
 0x1cd   : > { %v5631_v52 = vsel %vm1415_vm3, %v6472_v49, %v6471_v27  ;;  %v2206_v16 = vmul.f32 %v5302_v26, %v2183_v25  ;;  %v2389_v48 = vmul.f32 %v5541_v61, %v5522_v60  ;;  %v2514_v12 = vadd.f32 %v2490_v3, %v2466_v32 }
 0x1ce   : > { %v2291_v41 = vmul.f32 %v5245_v4, %v5631_v52  ;;  %v2600_v56 = vmul.f32 %v5561_v37, %v5581_v17  ;;  %v2412_v55 = vadd.f32 %v2388_v29, %v2357_v28  ;;  %3141 = vmatmul.msk.f32.gmra.mxu2 %vm1922_vm4, %v2713_v10  ;;  %v2444_v6 = vmul.f32 %v5592_v30, %v5530_v45 }
 0x1cf   : > { %v2690_v44 = vmax.f32 %v2666_v24, 0.0  ;;  %2099 = vst.msk [vmem:[%s5089_s20 + $0x38] sm:$0xff] %vm460_vm1, %v2083_v62  ;;  %v2230_v31 = vadd.f32 %v2206_v16, %v6474_v40  ;;  %v2491_v14 = vmul.f32 %v5505_v58, %v6460_v50  ;;  %v2569_v9 = vadd.f32 %v2545_v8, %v2514_v12 }
 0x1d0   : > { %v2467_v60 = vadd.f32 %v2443_v63, %v2412_v55  ;;  %v2546_v5 = vmul.f32 %v5554_v13, %v2183_v25  ;;  %v6476_v18 = vrot.slane %v6475_v36, 1  ;;  %v6477_v29 = vmov %v6469_v38  ;;  %v6480_v63 = vld [vmem:[#allocation46_spill] sm:$0xff] }
 0x1d1   : > { %v5657_v45 = vadd.f32 %v2291_v41, %v2230_v31  ;;  %v6478_v15 = vrot.slane %v6475_v36, 2  ;;  %v6479_v33 = vmov %v6471_v27  ;;  %v2358_v3 = vadd.f32 %v6480_v63, %v5393_v35  ;;  %v6481_v38 = vld [vmem:[#allocation66_spill] sm:$0xff]  ;;  %v6482_v41 = vld [vmem:[#allocation44_spill] sm:$0xff] }
 0x1d2   : > { %v2182_v11 = vsel %vm1315_vm2, %v6477_v29, %v6476_v18  ;;  %v2624_v23 = vadd.f32 %v2600_v56, %v2569_v9  ;;  %v2515_v24 = vadd.f32 %v2491_v14, %v2467_v60  ;;  %v2601_v8 = vmul.f32 %v5561_v37, %v5631_v52  ;;  %v2042_v60 = vpop.f32.mrf.mxu1  ;;  %v6487_v29 = vld [vmem:[#allocation57_spill] sm:$0xff] }
 0x1d3   : > { %v2207_v53 = vmul.f32 %v5302_v26, %v2182_v11  ;;  %v2267_v50 = vsel %vm1415_vm3, %v6479_v33, %v6478_v15  ;;  %v2390_v32 = vmul.f32 %v5541_v61, %v2184_v59  ;;  %v2413_v27 = vadd.f32 %v2389_v48, %v2358_v3 }
 0x1d4   : > { %v2292_v7 = vmul.f32 %v5245_v4, %v2267_v50  ;;  %v2492_v49 = vmul.f32 %v5505_v58, %v6468_v54  ;;  %v2714_v19 = vmin.f32 %v2690_v44, 6.0  ;;  %v2667_v28 = vadd.f32 %v5611_v34, %v2624_v23 }
 0x1d5   : > { %v2231_v47 = vadd.f32 %v2207_v53, %v6481_v38  ;;  %v2570_v10 = vadd.f32 %v2546_v5, %v2515_v24  ;;  %v2547_v35 = vmul.f32 %v5554_v13, %v2182_v11  ;;  %v2468_v16 = vadd.f32 %v2444_v6, %v2413_v27 }
 0x1d6   : > { %v6483_v12 = vrot.slane %v6482_v41, 1  ;;  %v6484_v56 = vmov %v6476_v18  ;;  %v6485_v48 = vrot.slane %v6482_v41, 2  ;;  %v6486_v55 = vmov %v6478_v15  ;;  %3142 = vmatmul.msk.f32.gmra.mxu2 %vm1922_vm4, %v2714_v19  ;;  %v5709_v15 = vld [vmem:[%s6153_s4 + $0x3] ss:$0 sm:$0xff] }
 0x1d7   : > { %v5677_v62 = vadd.f32 %v2292_v7, %v2231_v47  ;;  %v2252_v40 = vrot.slane %v6465_v46, 2  ;;  %v2625_v31 = vadd.f32 %v2601_v8, %v2570_v10  ;;  %v2445_v9 = vmul.f32 %v5592_v30, %v5581_v17  ;;  %v6488_v17 = vld [vmem:[#allocation48_spill] sm:$0xff] }
 0x1d8   : > { %v5685_v59 = vsel %vm1315_vm2, %v6484_v56, %v6483_v12  ;;  %v5693_v44 = vsel %vm1415_vm3, %v6486_v55, %v6485_v48  ;;  %v2516_v5 = vadd.f32 %v2492_v49, %v2468_v16  ;;  %v2602_v18 = vmul.f32 %v5561_v37, %v2267_v50  ;;  %v6491_v56 = vld [vmem:[#allocation61_spill] sm:$0xff] }
 0x1d9   : > { %v2208_v6 = vmul.f32 %v5302_v26, %v5685_v59  ;;  %v2293_v14 = vmul.f32 %v5245_v4, %v5693_v44  ;;  %v2359_v53 = vadd.f32 %v6487_v29, %v5445_v1  ;;  %v2337_v33 = vmul.f32 %v5709_v15, %v6468_v54 }
 0x1da   : > { %v2124_v63 = vmul.f32 %v5295_v51, %v6482_v41  ;;  %v2691_v3 = vmax.f32 %v2667_v28, 0.0  ;;  %v2391_v24 = vmul.f32 %v5541_v61, %v2183_v25  ;;  %v2571_v8 = vadd.f32 %v2547_v35, %v2516_v5 }
 0x1db   : > { %v2232_v23 = vadd.f32 %v2208_v6, %v6488_v17  ;;  %v2414_v7 = vadd.f32 %v2390_v32, %v2359_v53  ;;  %v2493_v1 = vmul.f32 %v5505_v58, %v6475_v36  ;;  %v2548_v47 = vmul.f32 %v5554_v13, %v5685_v59  ;;  %v2044_v53 = vpop.f32.mrf.mxu1  ;;  %v6492_v17 = vld [vmem:[#allocation53_spill] sm:$0xff] }
 0x1dc   : > { %v6489_v54 = vmov %v6483_v12  ;;  %v6490_v25 = vmov %v6485_v48  ;;  %v2626_v49 = vadd.f32 %v2602_v18, %v2571_v8  ;;  %v2125_v35 = vmul.f32 %v5295_v51, %v6465_v46 }
 0x1dd   : > { %v5719_v38 = vadd.f32 %v2293_v14, %v2232_v23  ;;  %v5729_v27 = vsel %vm1315_vm2, %v6489_v54, %v2167_v20  ;;  %v5735_v32 = vsel %vm1415_vm3, %v6490_v25, %v2252_v40  ;;  %v2469_v19 = vadd.f32 %v2445_v9, %v2414_v7 }
 0x1de   : > { %v2209_v28 = vmul.f32 %v5302_v26, %v5729_v27  ;;  %v2294_v10 = vmul.f32 %v5245_v4, %v5735_v32  ;;  %v2715_v16 = vmin.f32 %v2691_v3, 6.0  ;;  %v2446_v12 = vmul.f32 %v5592_v30, %v5631_v52  ;;  %v3089_v52 = vld [vmem:[%s3350_s18 + $0x79] sm:$0xff] }
 0x1df   : > { %v2360_v48 = vadd.f32 %v6491_v56, %v5511_v43  ;;  %v2668_v55 = vadd.f32 %v5611_v34, %v2625_v31  ;;  %v2517_v6 = vadd.f32 %v2493_v1, %v2469_v19  ;;  %v2603_v14 = vmul.f32 %v5561_v37, %v5693_v44 }
 0x1e0   : > { %v2233_v9 = vadd.f32 %v2209_v28, %v2124_v63  ;;  %v2392_v60 = vmul.f32 %v5541_v61, %v2182_v11  ;;  %v2447_v5 = vmul.f32 %v5592_v30, %v2267_v50  ;;  %v2494_v29 = vmul.f32 %v5505_v58, %v6482_v41  ;;  %3143 = vmatmul.msk.f32.gmra.mxu2 %vm1922_vm4, %v2715_v16 }
 0x1e1   : > { %v2415_v18 = vadd.f32 %v2391_v24, %v2360_v48  ;;  %v2572_v43 = vadd.f32 %v2548_v47, %v2517_v6  ;;  %v2549_v31 = vmul.f32 %v5554_v13, %v5729_v27  ;;  %v6493_v63 = vrot.slane %v6492_v17, 1 }
 0x1e2   : > { %v5756_v3 = vadd.f32 %v2294_v10, %v2233_v9  ;;  %v2045_v50 = vadd.f32 %v5052_v0, %v2044_v53  ;;  %v6494_v8 = vrot.slane %v6492_v17, 2  ;;  %v2692_v1 = vmax.f32 %v2668_v55, 0.0 }
 0x1e3   : > { %v2179_v11 = vsel %vm1315_vm2, %v2167_v20, %v6493_v63  ;;  %v2470_v23 = vadd.f32 %v2446_v12, %v2415_v18  ;;  %v2627_v47 = vadd.f32 %v2603_v14, %v2572_v43  ;;  %v2361_v25 = vadd.f32 %v2337_v33, %v5566_v57 }
 0x1e4   : > { %v2210_v24 = vmul.f32 %v5302_v26, %v2179_v11  ;;  %v2264_v7 = vsel %vm1415_vm3, %v2252_v40, %v6494_v8  ;;  %v2084_v19 = vadd.f32 %v3089_v52, %v2045_v50  ;;  %v2604_v20 = vmul.f32 %v5561_v37, %v5735_v32 }
 0x1e5   : > { %v2295_v54 = vmul.f32 %v5245_v4, %v2264_v7  ;;  %v2518_v28 = vadd.f32 %v2494_v29, %v2470_v23  ;;  %v2416_v16 = vadd.f32 %v2392_v60, %v2361_v25  ;;  %v2495_v12 = vmul.f32 %v5505_v58, %v6465_v46 }
 0x1e6   : > { %v2234_v10 = vadd.f32 %v2210_v24, %v2125_v35  ;;  %2100 = vst.msk [vmem:[%s5089_s20 + $0x40] sm:$0xff] %vm460_vm1, %v2084_v19  ;;  %v2716_v48 = vmin.f32 %v2692_v1, 6.0  ;;  %v2669_v55 = vadd.f32 %v5611_v34, %v2626_v49  ;;  %v2550_v57 = vmul.f32 %v5554_v13, %v2179_v11 }
 0x1e7   : > { %v2573_v56 = vadd.f32 %v2549_v31, %v2518_v28  ;;  %v2471_v6 = vadd.f32 %v2447_v5, %v2416_v16  ;;  %v2605_v14 = vmul.f32 %v5561_v37, %v2264_v7  ;;  %v2338_v9 = vmul.f32 %v5709_v15, %v6475_v36  ;;  %v3090_v36 = vld [vmem:[%s3350_s18 + $0x81] sm:$0xff]  ;;  %v2047_v50 = vpop.f32.mrf.mxu1 }
 0x1e8   : > { %v5780_v40 = vadd.f32 %v2295_v54, %v2234_v10  ;;  %3144 = vmatmul.msk.f32.gmra.mxu2 %vm1922_vm4, %v2716_v48  ;;  %v2693_v60 = vmax.f32 %v2669_v55, 0.0  ;;  %v2393_v29 = vmul.f32 %v5541_v61, %v5685_v59  ;;  %v2448_v49 = vmul.f32 %v5592_v30, %v5693_v44  ;;  %v6495_v59 = vld [vmem:[#allocation55_spill] sm:$0xff]  ;;  %v6497_v48 = vld [vmem:[#allocation60_spill] sm:$0xff] }
 0x1e9   : > { %v2628_v33 = vadd.f32 %v2604_v20, %v2573_v56  ;;  %v2519_v35 = vadd.f32 %v2495_v12, %v2471_v6  ;;  %v2362_v5 = vadd.f32 %v2338_v9, %v5614_v2  ;;  %v2670_v43 = vadd.f32 %v5611_v34, %v2627_v47  ;;  %v6496_v47 = vld [vmem:[#allocation56_spill] sm:$0xff]  ;;  %v6498_v6 = vld [vmem:[#allocation54_spill] sm:$0xff] }
 0x1ea   : > { %v2717_v53 = vmin.f32 %v2693_v60, 6.0  ;;  %v2496_v63 = vmul.f32 %v5505_v58, %v6492_v17  ;;  %v2551_v24 = vmul.f32 %v5554_v13, %v6495_v59  ;;  %v2339_v44 = vmul.f32 %v5709_v15, %v6482_v41 }
 0x1eb   : > { %v2574_v18 = vadd.f32 %v2550_v57, %v2519_v35  ;;  %v2417_v31 = vadd.f32 %v2393_v29, %v2362_v5  ;;  %v2694_v2 = vmax.f32 %v2670_v43, 0.0  ;;  %v2048_v8 = vadd.f32 %v5052_v0, %v2047_v50  ;;  %v6499_v35 = vld [vmem:[#allocation64_spill] sm:$0xff]  ;;  %v6504_v29 = vld [vmem:[#allocation62_spill] sm:$0xff] }
 0x1ec   : > { %v2606_v54 = vmul.f32 %v5561_v37, %v6496_v47  ;;  %v2394_v19 = vmul.f32 %v5541_v61, %v5729_v27  ;;  %v2340_v28 = vmul.f32 %v5709_v15, %v6465_v46  ;;  %v2671_v20 = vadd.f32 %v5611_v34, %v2628_v33 }
 0x1ed   : > { %v2629_v52 = vadd.f32 %v2605_v14, %v2574_v18  ;;  %v2472_v23 = vadd.f32 %v2448_v49, %v2417_v31  ;;  %v2085_v25 = vadd.f32 %v3090_v36, %v2048_v8  ;;  %v2718_v16 = vmin.f32 %v2694_v2, 6.0  ;;  %v6505_v36 = vld [vmem:[#allocation63_spill] sm:$0xff] }
 0x1ee   : > { %v2449_v0 = vmul.f32 %v5592_v30, %v5735_v32  ;;  %v2363_v41 = vadd.f32 %v2339_v44, %v5657_v45  ;;  %v2395_v12 = vmul.f32 %v5541_v61, %v2179_v11  ;;  %v2128_v27 = vmul.f32 %v5295_v51, %v6497_v48 }
 0x1ef   : > { %v2520_v1 = vadd.f32 %v2496_v63, %v2472_v23  ;;  %2101 = vst.msk [vmem:[%s5089_s20 + $0x48] sm:$0xff] %vm460_vm1, %v2085_v25  ;;  %v2450_v46 = vmul.f32 %v5592_v30, %v2264_v7  ;;  %v2497_v57 = vmul.f32 %v5505_v58, %v6498_v6  ;;  %v2695_v33 = vmax.f32 %v2671_v20, 0.0 }
 0x1f0   : > { %3145 = vmatmul.msk.f32.gmra.mxu2 %vm1922_vm4, %v2717_v53  ;;  %v2418_v55 = vadd.f32 %v2394_v19, %v2363_v41  ;;  %v6500_v14 = vrot.slane %v6499_v35, 1  ;;  %v6501_v32 = vrot.slane %v6497_v48, 1  ;;  %v6502_v11 = vrot.slane %v6499_v35, 2 }
 0x1f1   : > { %v2575_v10 = vadd.f32 %v2551_v24, %v2520_v1  ;;  %v6503_v9 = vrot.slane %v6497_v48, 2  ;;  %v2364_v60 = vadd.f32 %v2340_v28, %v5677_v62  ;;  %v2552_v49 = vmul.f32 %v5554_v13, %v6504_v29 }
 0x1f2   : > { %v5828_v45 = vsel %vm1315_vm2, %v6501_v32, %v6500_v14  ;;  %v2473_v18 = vadd.f32 %v2449_v0, %v2418_v55  ;;  %v2498_v31 = vmul.f32 %v5505_v58, %v6497_v48  ;;  %v2607_v50 = vmul.f32 %v5561_v37, %v6505_v36  ;;  %v6506_v14 = vld [vmem:[#allocation68_spill] sm:$0xff] }
 0x1f3   : > { %v2630_v56 = vadd.f32 %v2606_v54, %v2575_v10  ;;  %v5836_v7 = vsel %vm1415_vm3, %v6503_v9, %v6502_v11  ;;  %v2213_v5 = vmul.f32 %v5302_v26, %v5828_v45  ;;  %v2419_v43 = vadd.f32 %v2395_v12, %v2364_v60  ;;  %v5882_v11 = vld [vmem:[%s6152_s3] ss:$0 sm:$0xff] }
 0x1f4   : > { %v2298_v53 = vmul.f32 %v5245_v4, %v5836_v7  ;;  %v2521_v63 = vadd.f32 %v2497_v57, %v2473_v18  ;;  %v2553_v24 = vmul.f32 %v5554_v13, %v5828_v45  ;;  %v2719_v44 = vmin.f32 %v2695_v33, 6.0  ;;  %v2050_v2 = vpop.f32.mrf.mxu1 }
 0x1f5   : > { %v2237_v23 = vadd.f32 %v2213_v5, %v2128_v27  ;;  %v2474_v62 = vadd.f32 %v2450_v46, %v2419_v43  ;;  %v2672_v8 = vadd.f32 %v5611_v34, %v2629_v52  ;;  %v2608_v25 = vmul.f32 %v5561_v37, %v5836_v7  ;;  %v3091_v46 = vld [vmem:[%s3350_s18 + $0x91] sm:$0xff] }
 0x1f6   : > { %v2576_v1 = vadd.f32 %v2552_v49, %v2521_v63  ;;  %v2341_v20 = vmul.f32 %v5709_v15, %v6492_v17  ;;  %v2673_v0 = vadd.f32 %v5611_v34, %v2630_v56  ;;  %v2396_v12 = vmul.f32 %v5541_v61, %v6495_v59  ;;  %v5872_v56 = vld [vmem:[%s6156_s7] ss:$0 sm:$0xff]  ;;  %v6508_v49 = vld [vmem:[#allocation71_spill] sm:$0xff] }
 0x1f7   : > { %v5852_v4 = vadd.f32 %v2298_v53, %v2237_v23  ;;  %v2522_v54 = vadd.f32 %v2498_v31, %v2474_v62  ;;  %v2696_v10 = vmax.f32 %v2672_v8, 0.0  ;;  %v2451_v27 = vmul.f32 %v5592_v30, %v6496_v47 }
 0x1f8   : > { %3146 = vmatmul.msk.f32.gmra.mxu2 %vm1922_vm4, %v2718_v16  ;;  %v2631_v19 = vadd.f32 %v2607_v50, %v2576_v1  ;;  %v2365_v41 = vadd.f32 %v2341_v20, %v5719_v38  ;;  %v2499_v17 = vmul.f32 %v5505_v58, %v6499_v35  ;;  %v2697_v59 = vmax.f32 %v2673_v0, 0.0  ;;  %v6507_v35 = vld [vmem:[#allocation50_spill] sm:$0xff]  ;;  %v6510_v1 = vld [vmem:[#allocation73_spill] sm:$0xff] }
 0x1f9   : > { %v2577_v28 = vadd.f32 %v2553_v24, %v2522_v54  ;;  %v2720_v52 = vmin.f32 %v2696_v10, 6.0  ;;  %v2342_v47 = vmul.f32 %v5709_v15, %v6498_v6  ;;  %v2554_v32 = vmul.f32 %v5554_v13, %v6506_v14  ;;  %v3092_v54 = vld [vmem:[%s3350_s18 + $0x99] sm:$0xff] }
 0x1fa   : > { %v2420_v57 = vadd.f32 %v2396_v12, %v2365_v41  ;;  %v789_v9 = vadd.f32 %v5882_v11, %v6507_v35  ;;  %v2609_v5 = vmul.f32 %v5561_v37, %v6508_v49  ;;  %v2721_v6 = vmin.f32 %v2697_v59, 6.0 }
 0x1fb   : > { %v2632_v16 = vadd.f32 %v2608_v25, %v2577_v28  ;;  %v2674_v53 = vadd.f32 %v5611_v34, %v2631_v19  ;;  %v2366_v31 = vadd.f32 %v2342_v47, %v5756_v3  ;;  %v2397_v63 = vmul.f32 %v5541_v61, %v6504_v29  ;;  %v6511_v28 = vld [vmem:[#allocation72_spill] sm:$0xff] }
 0x1fc   : > { %v2475_v33 = vadd.f32 %v2451_v27, %v2420_v57  ;;  %v2452_v50 = vmul.f32 %v5592_v30, %v6505_v36  ;;  %v854_v23 = vmax.f32 %v789_v9, 0.0  ;;  %v2343_v8 = vmul.f32 %v5709_v15, %v6497_v48  ;;  %v6512_v48 = vld [vmem:[#allocation75_spill] sm:$0xff]  ;;  %v1157_v57 = vpop.permute.xlu0 %1156  ;;  %v1162_v9 = vpop.permute.xlu1 %1161 }
 0x1fd   : > { %v2421_v24 = vadd.f32 %v2397_v63, %v2366_v31  ;;  %v792_v3 = vadd.f32 %v5882_v11, %v6510_v1  ;;  %v2698_v36 = vmax.f32 %v2674_v53, 0.0  ;;  %v2555_v20 = vmul.f32 %v5554_v13, %v6511_v28 }
 0x1fe   : > { %v2523_v18 = vadd.f32 %v2499_v17, %v2475_v33  ;;  %v908_v10 = vmin.f32 %v854_v23, 6.0  ;;  %v2398_v0 = vmul.f32 %v5541_v61, %v5828_v45  ;;  %v2610_v12 = vmul.f32 %v5561_v37, %v6512_v48 }
 0x1ff   : > { %v2052_v55 = vpop.f32.mrf.mxu1  ;;  %v2476_v19 = vadd.f32 %v2452_v50, %v2421_v24  ;;  %v855_v27 = vmax.f32 %v792_v3, 0.0  ;;  %v2722_v17 = vmin.f32 %v2698_v36, 6.0  ;;  %v3093_v50 = vld [vmem:[%s3350_s18 + $0xa9] sm:$0xff]  ;;  %v6515_v3 = vld [vmem:[#allocation70_spill] sm:$0xff] }
 0x200   : > { %3147 = vmatmul.msk.f32.gmra.mxu2 %vm1922_vm4, %v2719_v44  ;;  %v2053_v38 = vadd.f32 %v5872_v56, %v2052_v55  ;;  %v2578_v43 = vadd.f32 %v2554_v32, %v2523_v18  ;;  %v6509_v44 = vld [vmem:[#allocation67_spill] sm:$0xff]  ;;  %v2367_v55 = vadd.f32 %v2343_v8, %v5780_v40  ;;  %v5917_v47 = vmul.f32 %v1157_v57, %v908_v10 }
 0x201   : > { %v2500_v2 = vmul.f32 %v5505_v58, %v6509_v44  ;;  %v909_v14 = vmin.f32 %v855_v27, 6.0  ;;  %v6516_v27 = vld [vmem:[#allocation76_spill] sm:$0xff] }
 0x202   : > { %v2086_v60 = vadd.f32 %v3091_v46, %v2053_v38  ;;  %v2633_v62 = vadd.f32 %v2609_v5, %v2578_v43  ;;  %v2453_v46 = vmul.f32 %v5592_v30, %v5836_v7  ;;  %v2675_v38 = vadd.f32 %v5611_v34, %v2632_v16  ;;  %v6513_v5 = vld [vmem:[#allocation45_spill] sm:$0xff] }
 0x203   : > { %v2524_v41 = vadd.f32 %v2500_v2, %v2476_v19  ;;  %v2422_v45 = vadd.f32 %v2398_v0, %v2367_v55  ;;  %v2374_v40 = vrot.slane %v5917_v47, 1  ;;  %v5921_v18 = vmul.f32 %v1162_v9, %v909_v14  ;;  %v6514_v43 = vld [vmem:[#allocation69_spill] sm:$0xff] }
 0x204   : > { %2102 = vst.msk [vmem:[%s5089_s20 + $0x50] sm:$0xff] %vm460_vm1, %v2086_v60  ;;  %v2699_v7 = vmax.f32 %v2675_v38, 0.0  ;;  %v797_v60 = vpop.f32.mrf.mxu3  ;;  %v2676_v16 = vadd.f32 %v5611_v34, %v2633_v62  ;;  %v2429_v53 = vrot.slane %v5917_v47, 2  ;;  %v3094_v55 = vld [vmem:[%s3350_s18 + $0xb1] sm:$0xff] }
 0x205   : > { %v2579_v59 = vadd.f32 %v2555_v20, %v2524_v41  ;;  %v2477_v35 = vadd.f32 %v2453_v46, %v2422_v45  ;;  %v2379_v31 = vsel %vm1315_vm2, %v6514_v43, %v2374_v40  ;;  %v2375_v63 = vrot.slane %v5921_v18, 1 }
 0x206   : > { %v2723_v49 = vmin.f32 %v2699_v7, 6.0  ;;  %v2700_v2 = vmax.f32 %v2676_v16, 0.0  ;;  %v2556_v8 = vmul.f32 %v5554_v13, %v2379_v31  ;;  %v798_v1 = vadd.f32 %v5882_v11, %v797_v60  ;;  %v1172_v60 = vpop.permute.xlu0 %1171 }
 0x207   : > { %v2634_v33 = vadd.f32 %v2610_v12, %v2579_v59  ;;  %v5943_v36 = vsel %vm1315_vm2, %v2374_v40, %v2375_v63  ;;  %v2430_v19 = vrot.slane %v5921_v18, 2 }
 0x208   : > { %3148 = vmatmul.msk.f32.gmra.mxu2 %vm1922_vm4, %v2720_v52  ;;  %v2055_v29 = vpop.f32.mrf.mxu1  ;;  %v2724_v10 = vmin.f32 %v2700_v2, 6.0  ;;  %v857_v12 = vmax.f32 %v798_v1, 0.0 }
 0x209   : > { %v2056_v25 = vadd.f32 %v5872_v56, %v2055_v29  ;;  %v2677_v0 = vadd.f32 %v5611_v34, %v2634_v33  ;;  %v5957_v38 = vsel %vm1415_vm3, %v2429_v53, %v2430_v19 }
 0x20a   : > { %v911_v14 = vmin.f32 %v857_v12, 6.0  ;;  %v2612_v9 = vmul.f32 %v5561_v37, %v5957_v38 }
 0x20b   : > { %v2087_v52 = vadd.f32 %v3092_v54, %v2056_v25  ;;  %v2434_v54 = vsel %vm1415_vm3, %v6515_v3, %v2429_v53  ;;  %v2502_v25 = vmul.f32 %v5505_v58, %v5917_v47  ;;  %v2701_v45 = vmax.f32 %v2677_v0, 0.0 }
 0x20c   : > { %v800_v20 = vpop.f32.mrf.mxu3  ;;  %v2611_v41 = vmul.f32 %v5561_v37, %v2434_v54  ;;  %v5973_v43 = vmul.f32 %v1172_v60, %v911_v14  ;;  %v6520_v14 = vld [vmem:[#allocation52_spill] sm:$0xff]  ;;  %v3122_v60 = vld [vmem:[%s3350_s18 + $0xe1] sm:$0xff] }
 0x20d   : > { %2103 = vst.msk [vmem:[%s5089_s20 + $0x58] sm:$0xff] %vm460_vm1, %v2087_v52  ;;  %v2526_v46 = vadd.f32 %v2502_v25, %v6516_v27 }
 0x210   : > { %3149 = vmatmul.msk.f32.gmra.mxu2 %vm1922_vm4, %v2721_v6  ;;  %v2058_v32 = vpop.f32.mrf.mxu1  ;;  %v2501_v6 = vmul.f32 %v5505_v58, %v6513_v5 }
 0x211   : > { %v801_v32 = vadd.f32 %v5882_v11, %v800_v20  ;;  %v2532_v20 = vrot.slane %v5973_v43, 1 }
 0x212   : > { %v2525_v62 = vadd.f32 %v2501_v6, %v2477_v35  ;;  %v2346_v35 = vmul.f32 %v5709_v15, %v6513_v5  ;;  %v6517_v6 = vld [vmem:[#allocation2_spill] sm:$0xff]  ;;  %v2503_v5 = vmul.f32 %v5505_v58, %v5921_v18 }
 0x213   : > { %v5971_v53 = vsel %vm1315_vm2, %v2375_v63, %v6517_v6 }
 0x214   : > { %v2580_v52 = vadd.f32 %v2556_v8, %v2525_v62  ;;  %v2401_v62 = vmul.f32 %v5541_v61, %v2379_v31  ;;  %v2370_v8 = vadd.f32 %v2346_v35, %v5852_v4  ;;  %v2558_v25 = vmul.f32 %v5554_v13, %v5971_v53  ;;  %v6521_v35 = vld [vmem:[#allocation74_spill] sm:$0xff] }
 0x215   : > { %v2456_v31 = vmul.f32 %v5592_v30, %v2434_v54  ;;  %v2347_v4 = vmul.f32 %v5709_v15, %v5917_v47  ;;  %v2215_v47 = vmul.f32 %v5302_v26, %v6511_v28  ;;  %v2402_v26 = vmul.f32 %v5541_v61, %v5943_v36 }
 0x216   : > { %v2635_v33 = vadd.f32 %v2611_v41, %v2580_v52  ;;  %v6518_v41 = vld [vmem:[#allocation78_spill] sm:$0xff]  ;;  %v2425_v27 = vadd.f32 %v2401_v62, %v2370_v8  ;;  %v2587_v28 = vrot.slane %v5973_v43, 2 }
 0x217   : > { %v2527_v12 = vadd.f32 %v2503_v5, %v6518_v41  ;;  %v3246_v62 = vld [vmem:[%s6153_s4 + $0x2] ss:$0 sm:$0xff] }
 0x218   : > { %3150 = vmatmul.msk.f32.gmra.mxu2 %vm1922_vm4, %v2722_v17  ;;  %v2060_v23 = vpop.f32.mrf.mxu1  ;;  %v2557_v17 = vmul.f32 %v5554_v13, %v5943_v36  ;;  %v2678_v16 = vadd.f32 %v5611_v34, %v2635_v33  ;;  %v2300_v8 = vmul.f32 %v3246_v62, %v6512_v48 }
 0x219   : > { %v2061_v24 = vadd.f32 %v5872_v56, %v2060_v23  ;;  %v803_v23 = vpop.f32.mrf.mxu3 }
 0x21a   : > { %v2581_v40 = vadd.f32 %v2557_v17, %v2526_v46  ;;  %v804_v0 = vadd.f32 %v5882_v11, %v803_v23  ;;  %v6519_v46 = vld [vmem:[#allocation17_spill] sm:$0xff]  ;;  %v2130_v11 = vmul.f32 %v5295_v51, %v6509_v44  ;;  %v1177_v17 = vpop.permute.xlu1 %1176  ;;  %v2480_v44 = vadd.f32 %v2456_v31, %v2425_v27 }
 0x21b   : > { %v2088_v29 = vadd.f32 %v3093_v50, %v2061_v24  ;;  %v858_v50 = vmax.f32 %v801_v32, 0.0  ;;  %v3121_v24 = vld [vmem:[%s3350_s18 + $0xd9] sm:$0xff]  ;;  %v2504_v32 = vmul.f32 %v5505_v58, %v6520_v14 }
 0x21c   : > { %v2636_v3 = vadd.f32 %v2612_v9, %v2581_v40  ;;  %v859_v33 = vmax.f32 %v804_v0, 0.0  ;;  %v3095_v40 = vld [vmem:[%s3350_s18 + $0xc1] sm:$0xff]  ;;  %v1182_v0 = vpop.permute.xlu2 %1181 }
 0x21d   : > { %2104 = vst.msk [vmem:[%s5089_s20 + $0x60] sm:$0xff] %vm460_vm1, %v2088_v29  ;;  %v2702_v29 = vmax.f32 %v2678_v16, 0.0 }
 0x21e   : > { %v913_v36 = vmin.f32 %v859_v33, 6.0 }
 0x21f   : > { %v2726_v54 = vmin.f32 %v2702_v29, 6.0 }
 0x220   : > { %3151 = vmatmul.msk.f32.gmra.mxu2 %vm1922_vm4, %v2723_v49  ;;  %v2063_v57 = vpop.f32.mrf.mxu1  ;;  %v2725_v49 = vmin.f32 %v2701_v45, 6.0  ;;  %v1237_v48 = vmul.f32 %v1182_v0, %v913_v36 }
 0x221   : > { %v2064_v59 = vadd.f32 %v5872_v56, %v2063_v57  ;;  %v2679_v57 = vadd.f32 %v5611_v34, %v2636_v3  ;;  %v2528_v3 = vadd.f32 %v2504_v32, %v2480_v44 }
 0x222   : > { %v2534_v33 = vrot.slane %v1237_v48, 1 }
 0x223   : > { %v2089_v7 = vadd.f32 %v3094_v55, %v2064_v59  ;;  %v5993_v55 = vsel %vm1415_vm3, %v2430_v19, %v6519_v46  ;;  %v2582_v59 = vadd.f32 %v2558_v25, %v2527_v12  ;;  %v2537_v19 = vsel %vm1315_vm2, %v6517_v6, %v2532_v20 }
 0x224   : > { %v2613_v51 = vmul.f32 %v5561_v37, %v5993_v55  ;;  %v2703_v16 = vmax.f32 %v2679_v57, 0.0  ;;  %v2559_v23 = vmul.f32 %v5554_v13, %v2537_v19  ;;  %v2457_v25 = vmul.f32 %v5592_v30, %v5957_v38 }
 0x225   : > { %2105 = vst.msk [vmem:[%s5089_s20 + $0x68] sm:$0xff] %vm460_vm1, %v2089_v7  ;;  %v2371_v7 = vadd.f32 %v2347_v4, %v6521_v35  ;;  %v2348_v38 = vmul.f32 %v5709_v15, %v5921_v18  ;;  %v2505_v4 = vmul.f32 %v5505_v58, %v5973_v43  ;;  %v2403_v57 = vmul.f32 %v5541_v61, %v5971_v53 }
 0x226   : > { %v2637_v5 = vadd.f32 %v2613_v51, %v2582_v59  ;;  %v2583_v12 = vadd.f32 %v2559_v23, %v2528_v3 }
 0x227   : > { %v2426_v29 = vadd.f32 %v2402_v26, %v2371_v7  ;;  %v2458_v26 = vmul.f32 %v5592_v30, %v5993_v55  ;;  %v2507_v55 = vmul.f32 %v5505_v58, %v1237_v48 }
 0x228   : > { %3152 = vmatmul.msk.f32.gmra.mxu2 %vm1922_vm4, %v2724_v10  ;;  %v2066_v1 = vpop.f32.mrf.mxu1  ;;  %v912_v10 = vmin.f32 %v858_v50, 6.0  ;;  %v2680_v41 = vadd.f32 %v5611_v34, %v2637_v5  ;;  %v3123_v5 = vld [vmem:[%s3350_s18 + $0xf1] sm:$0xff] }
 0x229   : > { %v2822_v2 = vpop.f32.mrf.mxu2 }
 0x22a   : > { %v2823_v63 = vadd.f32 %v5872_v56, %v2822_v2  ;;  %v6002_v45 = vmul.f32 %v1177_v17, %v912_v10  ;;  %v2592_v10 = vsel %vm1415_vm3, %v6519_v46, %v2587_v28  ;;  %v2704_v15 = vmax.f32 %v2680_v41, 0.0 }
 0x22b   : > { %v2614_v46 = vmul.f32 %v5561_v37, %v2592_v10  ;;  %v3124_v10 = vld [vmem:[%s3350_s18 + $0xf9] sm:$0xff] }
 0x22c   : > { %v2886_v52 = vadd.f32 %v3121_v24, %v2823_v63  ;;  %v2239_v24 = vadd.f32 %v2215_v47, %v2130_v11  ;;  %v2533_v2 = vrot.slane %v6002_v45, 1  ;;  %v2481_v11 = vadd.f32 %v2457_v25, %v2426_v29 }
 0x22d   : > { %v2588_v17 = vrot.slane %v6002_v45, 2  ;;  %v2638_v18 = vadd.f32 %v2614_v46, %v2583_v12  ;;  %v2728_v51 = vmin.f32 %v2704_v15, 6.0  ;;  %v3125_v46 = vld [vmem:[%s3350_s18 + $0x109] sm:$0xff]  ;;  %v3127_v15 = vld [vmem:[%s3350_s18 + $0x121] sm:$0xff] }
 0x22e   : > { %3161 = vst.msk [vmem:[%s5089_s20 + $0x80] sm:$0xff] %vm460_vm1, %v2886_v52  ;;  %v2727_v52 = vmin.f32 %v2703_v16, 6.0  ;;  %v2536_v31 = vsel %vm1315_vm2, %v2532_v20, %v2533_v2  ;;  %v2324_v27 = vadd.f32 %v2300_v8, %v2239_v24  ;;  %v2529_v14 = vadd.f32 %v2505_v4, %v2481_v11 }
 0x22f   : > { %v2560_v43 = vmul.f32 %v5554_v13, %v2536_v31  ;;  %v2591_v61 = vsel %vm1415_vm3, %v2587_v28, %v2588_v17  ;;  %v2681_v44 = vadd.f32 %v5611_v34, %v2638_v18  ;;  %v2535_v7 = vsel %vm1315_vm2, %v2533_v2, %v2534_v33 }
 0x230   : > { %3153 = vmatmul.msk.f32.gmra.mxu2 %vm1922_vm4, %v2725_v49  ;;  %v2372_v19 = vadd.f32 %v2348_v38, %v2324_v27  ;;  %v2615_v28 = vmul.f32 %v5561_v37, %v2591_v61 }
 0x231   : > { %v2584_v35 = vadd.f32 %v2560_v43, %v2529_v14  ;;  %v2705_v16 = vmax.f32 %v2681_v44, 0.0 }
 0x232   : > { %v2068_v9 = vpop.f32.mrf.mxu1  ;;  %v2427_v53 = vadd.f32 %v2403_v57, %v2372_v19  ;;  %v3128_v19 = vld [vmem:[%s3350_s18 + $0x129] sm:$0xff] }
 0x233   : > { %v2825_v49 = vpop.f32.mrf.mxu2  ;;  %v2069_v6 = vadd.f32 %v5872_v56, %v2068_v9  ;;  %v2589_v9 = vrot.slane %v1237_v48, 2  ;;  %v2729_v36 = vmin.f32 %v2705_v16, 6.0 }
 0x234   : > { %v2826_v50 = vadd.f32 %v5872_v56, %v2825_v49 }
 0x235   : > { %v2090_v1 = vadd.f32 %v3095_v40, %v2069_v6  ;;  %v2506_v40 = vmul.f32 %v5505_v58, %v6002_v45  ;;  %v2639_v6 = vadd.f32 %v2615_v28, %v2584_v35  ;;  %v2590_v45 = vsel %vm1415_vm3, %v2588_v17, %v2589_v9 }
 0x236   : > { %v2887_v63 = vadd.f32 %v3122_v60, %v2826_v50  ;;  %v2482_v60 = vadd.f32 %v2458_v26, %v2427_v53  ;;  %v2561_v50 = vmul.f32 %v5554_v13, %v2535_v7  ;;  %v2531_v58 = vadd.f32 %v2507_v55, %v5133_v21  ;;  %v3130_v26 = vld [vmem:[%s3350_s18 + $0x141] sm:$0xff] }
 0x237   : > { %2106 = vst.msk [vmem:[%s5089_s20 + $0x70] sm:$0xff] %vm460_vm1, %v2090_v1  ;;  %v2682_v62 = vadd.f32 %v5611_v34, %v2639_v6  ;;  %v2538_v1 = vsel %vm1315_vm2, %v2534_v33, %v6400_v22  ;;  %v2593_v22 = vsel %vm1415_vm3, %v2589_v9, %v6402_v39 }
 0x238   : > { %3154 = vmatmul.msk.f32.gmra.mxu2 %vm1922_vm4, %v2726_v54  ;;  %3162 = vst.msk [vmem:[%s5089_s20 + $0x88] sm:$0xff] %vm460_vm1, %v2887_v63  ;;  %v3096_v54 = vld [vmem:[%s3350_s18 + $0xc9] sm:$0xff]  ;;  %v2530_v24 = vadd.f32 %v2506_v40, %v2482_v60  ;;  %v2616_v63 = vmul.f32 %v5561_v37, %v2590_v45  ;;  %v2562_v25 = vmul.f32 %v5554_v13, %v2538_v1 }
 0x239   : > { %v2706_v3 = vmax.f32 %v2682_v62, 0.0  ;;  %v2617_v21 = vmul.f32 %v5561_v37, %v2593_v22  ;;  %v3126_v37 = vld [vmem:[%s3350_s18 + $0x111] sm:$0xff]  ;;  %v3133_v45 = vld [vmem:[%s3350_s18 + $0x169] sm:$0xff] }
 0x23a   : > { %v2071_v20 = vpop.f32.mrf.mxu1  ;;  %v2585_v8 = vadd.f32 %v2561_v50, %v2530_v24  ;;  %v2586_v31 = vadd.f32 %v2562_v25, %v2531_v58 }
 0x23b   : > { %v2072_v47 = vadd.f32 %v5872_v56, %v2071_v20  ;;  %v2730_v12 = vmin.f32 %v2706_v3, 6.0 }
 0x23c   : > { %v2828_v59 = vpop.f32.mrf.mxu2  ;;  %v2640_v29 = vadd.f32 %v2616_v63, %v2585_v8  ;;  %v2641_v27 = vadd.f32 %v2617_v21, %v2586_v31  ;;  %v3134_v8 = vld [vmem:[%s3350_s18 + $0x171] sm:$0xff] }
 0x23d   : > { %v2091_v32 = vadd.f32 %v3096_v54, %v2072_v47 }
 0x23e   : > { %v2683_v48 = vadd.f32 %v5611_v34, %v2640_v29  ;;  %v2684_v39 = vadd.f32 %v5611_v34, %v2641_v27  ;;  %v3135_v29 = vld [vmem:[%s3350_s18 + $0x181] sm:$0xff] }
 0x23f   : > { %2107 = vst.msk [vmem:[%s5089_s20 + $0x78] sm:$0xff] %vm460_vm1, %v2091_v32 }
 0x240   : > { %3155 = vmatmul.msk.f32.gmra.mxu2 %vm1922_vm4, %v2727_v52  ;;  %v2707_v13 = vmax.f32 %v2683_v48, 0.0  ;;  %v2708_v4 = vmax.f32 %v2684_v39, 0.0 }
 0x242   : > { %v2731_v42 = vmin.f32 %v2707_v13, 6.0  ;;  %v2732_v54 = vmin.f32 %v2708_v4, 6.0 }
 0x247   : > { %v2830_v23 = vpop.f32.mrf.mxu2 }
 0x248   : > { %3156 = vmatmul.msk.f32.gmra.mxu2 %vm1922_vm4, %v2728_v51  ;;  %v2074_v49 = vpop.f32.mrf.mxu1  ;;  %v2831_v30 = vadd.f32 %v5872_v56, %v2830_v23  ;;  %v3129_v51 = vld [vmem:[%s3350_s18 + $0x139] sm:$0xff] }
 0x249   : > { %v3131_v49 = vld [vmem:[%s3350_s18 + $0x151] sm:$0xff] }
 0x24a   : > { %v2888_v2 = vadd.f32 %v3123_v5, %v2831_v30  ;;  %v3132_v5 = vld [vmem:[%s3350_s18 + $0x159] sm:$0xff] }
 0x24c   : > { %3163 = vst.msk [vmem:[%s5089_s20 + $0x90] sm:$0xff] %vm460_vm1, %v2888_v2 }
 0x250   : > { %3157 = vmatmul.msk.f32.gmra.mxu2 %vm1922_vm4, %v2729_v36 }
 0x251   : > { %v2833_v0 = vpop.f32.mrf.mxu2 }
 0x252   : > { %v2834_v52 = vadd.f32 %v5872_v56, %v2833_v0 }
 0x254   : > { %v2889_v41 = vadd.f32 %v3124_v10, %v2834_v52  ;;  %v3136_v52 = vld [vmem:[%s3350_s18 + $0x189] sm:$0xff] }
 0x256   : > { %3164 = vst.msk [vmem:[%s5089_s20 + $0x98] sm:$0xff] %vm460_vm1, %v2889_v41 }
 0x258   : > { %3158 = vmatmul.msk.f32.gmra.mxu2 %vm1922_vm4, %v2730_v12 }
 0x259   : > { %v2836_v38 = vpop.f32.mrf.mxu2 }
 0x260   : > { %3159 = vmatmul.msk.f32.gmra.mxu2 %vm1922_vm4, %v2731_v42 }
 0x263   : > { %v2838_v57 = vpop.f32.mrf.mxu2 }
 0x264   : > { %v2839_v11 = vadd.f32 %v5872_v56, %v2838_v57 }
 0x266   : > { %v2890_v17 = vadd.f32 %v3125_v46, %v2839_v11 }
 0x268   : > { %3165 = vst.msk [vmem:[%s5089_s20 + $0xa0] sm:$0xff] %vm460_vm1, %v2890_v17  ;;  %3160 = vmatmul.msk.f32.gmra.mxu2 %vm1922_vm4, %v2732_v54 }
 0x26b   : > { %v2841_v20 = vpop.f32.mrf.mxu2 }
 0x26c   : > { %v2842_v34 = vadd.f32 %v5872_v56, %v2841_v20 }
 0x26e   : > { %v2891_v59 = vadd.f32 %v3126_v37, %v2842_v34 }
 0x270   : > { %3166 = vst.msk [vmem:[%s5089_s20 + $0xa8] sm:$0xff] %vm460_vm1, %v2891_v59 }
 0x273   : > { %v2844_v47 = vpop.f32.mrf.mxu2 }
 0x27b   : > { %v2846_v18 = vpop.f32.mrf.mxu2 }
 0x27c   : > { %v2847_v43 = vadd.f32 %v5872_v56, %v2846_v18 }
 0x27e   : > { %v2892_v33 = vadd.f32 %v3127_v15, %v2847_v43 }
 0x280   : > { %3167 = vst.msk [vmem:[%s5089_s20 + $0xb0] sm:$0xff] %vm460_vm1, %v2892_v33 }
 0x283   : > { %v2849_v14 = vpop.f32.mrf.mxu2 }
 0x284   : > { %v2850_v32 = vadd.f32 %v5872_v56, %v2849_v14 }
 0x286   : > { %v2893_v61 = vadd.f32 %v3128_v19, %v2850_v32 }
 0x288   : > { %3168 = vst.msk [vmem:[%s5089_s20 + $0xb8] sm:$0xff] %vm460_vm1, %v2893_v61 }
 0x28b   : > { %v2852_v53 = vpop.f32.mrf.mxu2 }
 0x293   : > { %v2854_v44 = vpop.f32.mrf.mxu2 }
 0x294   : > { %v2855_v35 = vadd.f32 %v5872_v56, %v2854_v44 }
 0x296   : > { %v2894_v7 = vadd.f32 %v3129_v51, %v2855_v35 }
 0x298   : > { %3169 = vst.msk [vmem:[%s5089_s20 + $0xc0] sm:$0xff] %vm460_vm1, %v2894_v7 }
 0x29b   : > { %v2857_v40 = vpop.f32.mrf.mxu2 }
 0x29c   : > { %v2858_v28 = vadd.f32 %v5872_v56, %v2857_v40 }
 0x29e   : > { %v2895_v9 = vadd.f32 %v3130_v26, %v2858_v28 }
 0x2a0   : > { %3170 = vst.msk [vmem:[%s5089_s20 + $0xc8] sm:$0xff] %vm460_vm1, %v2895_v9 }
 0x2a3   : > { %v2860_v60 = vpop.f32.mrf.mxu2 }
 0x2ab   : > { %v2862_v16 = vpop.f32.mrf.mxu2 }
 0x2ac   : > { %v2863_v6 = vadd.f32 %v5872_v56, %v2862_v16 }
 0x2ae   : > { %v2896_v50 = vadd.f32 %v3131_v49, %v2863_v6 }
 0x2b0   : > { %3171 = vst.msk [vmem:[%s5089_s20 + $0xd0] sm:$0xff] %vm460_vm1, %v2896_v50 }
 0x2b3   : > { %v2865_v23 = vpop.f32.mrf.mxu2 }
 0x2b4   : > { %v2866_v24 = vadd.f32 %v5872_v56, %v2865_v23 }
 0x2b6   : > { %v2897_v30 = vadd.f32 %v3132_v5, %v2866_v24 }
 0x2b8   : > { %3172 = vst.msk [vmem:[%s5089_s20 + $0xd8] sm:$0xff] %vm460_vm1, %v2897_v30 }
 0x2bb   : > { %v2868_v55 = vpop.f32.mrf.mxu2 }
 0x2c3   : > { %v2870_v2 = vpop.f32.mrf.mxu2 }
 0x2c4   : > { %v2871_v36 = vadd.f32 %v5872_v56, %v2870_v2 }
 0x2c6   : > { %v2898_v62 = vadd.f32 %v3133_v45, %v2871_v36 }
 0x2c8   : > { %3173 = vst.msk [vmem:[%s5089_s20 + $0xe0] sm:$0xff] %vm460_vm1, %v2898_v62 }
 0x2cb   : > { %v2873_v1 = vpop.f32.mrf.mxu2 }
 0x2cc   : > { %v2874_v63 = vadd.f32 %v5872_v56, %v2873_v1 }
 0x2ce   : > { %v2899_v58 = vadd.f32 %v3134_v8, %v2874_v63 }
 0x2d0   : > { %3174 = vst.msk [vmem:[%s5089_s20 + $0xe8] sm:$0xff] %vm460_vm1, %v2899_v58 }
 0x2d3   : > { %v2876_v3 = vpop.f32.mrf.mxu2 }
 0x2db   : > { %v2878_v25 = vpop.f32.mrf.mxu2 }
 0x2dc   : > { %v2879_v10 = vadd.f32 %v5872_v56, %v2878_v25 }
 0x2de   : > { %v2900_v0 = vadd.f32 %v3135_v29, %v2879_v10 }
 0x2e0   : > { %3175 = vst.msk [vmem:[%s5089_s20 + $0xf0] sm:$0xff] %vm460_vm1, %v2900_v0 }
 0x2e3   : > { %v2881_v22 = vpop.f32.mrf.mxu2 }
 0x2e4   : > { %v2882_v41 = vadd.f32 %v5872_v56, %v2881_v22 }
 0x2e6   : > { %v2901_v12 = vadd.f32 %v3136_v52, %v2882_v41 }
 0x2e8   : > { %3176 = vst.msk [vmem:[%s5089_s20 + $0xf8] sm:$0xff] %vm460_vm1, %v2901_v12 }
 0x2eb   : > { %v2884_v48 = vpop.f32.mrf.mxu2 }
 0x2ec PF: > { %s18_s29 = sadd.s32 1, %s3269_s29   ;;  %s6522_s27 = smov %s3265_s28 }
 0x2ed   : > { %p15_p5 = scmp.ge.s32.totalorder %s18_s29, 4   ;;  %s6523_s28 = smov %s6525_s30 }
 0x2ef   :  { %17 = sbr.rel (!%p15_p5) target bundleno = 2 (0x2), region = 87 }

</bundles_post_ra>
